<compile_context>
chip_gen: v6e
topology: v6e:2x2x1
jax: 0.10.0
libtpu: 0.0.40
codegen_flags: <defaults>
</compile_context>

<pallas_src>
import functools
import math

import jax
import jax.numpy as jnp
from jax.experimental import pallas as pl
from jax.experimental.pallas import tpu as pltpu


NHEAD = 4
NLAYERS = 4
LN_EPS = 1e-5
OUT_DIM = 12


# ----------------------------------------------------------------------------
# Fused whole-forward Pallas kernel
# ----------------------------------------------------------------------------
def _au_fusion_kernel(
    vis_ref, aud_ref,
    wfv_ref, wfa_ref, bf_ref,          # feat_fc (Conv1d k=1), weight split vis/aud
    wc_ref, bc_ref,                    # conv1  (Conv1d k=1)
    wqkv_ref, bqkv_ref,                # per-layer packed QKV projection (d, 3d)
    wo_ref, bo_ref,                    # per-layer packed output projection (d, d)
    ln1g_ref, ln1b_ref,
    w1_ref, b1_ref, w2_ref, b2_ref,    # FFN (dim_feedforward == d_model)
    ln2g_ref, ln2b_ref,
    h1w_ref, h1b_ref, bns_ref, bnt_ref, h2w_ref, h2b_ref,   # head
    out_ref,                           # packed (N, 2*out_dim): [logits | sigmoid]
    *, nlayers, nhead, ln_eps, out_dim,
):
    f32 = jnp.float32
    bf16 = jnp.bfloat16

    def mm(a, w):
        # bf16 operands on the MXU, f32 accumulation.  Weights are stored bf16.
        return jnp.dot(a.astype(bf16), w, preferred_element_type=f32)

    # ---- feat_fc on the (vis | aud) split (avoids materializing the concat) --
    h = mm(vis_ref[...], wfv_ref[...]) + mm(aud_ref[...], wfa_ref[...]) + bf_ref[...]
    h = jnp.maximum(h, 0.1 * h)                           # LeakyReLU(0.1)
    # Dropout(p=0.3) is identity in eval mode.

    # ---- conv1 (k=1) -> (S, d_model) --------------------------------------
    x = mm(h, wc_ref[...]) + bc_ref[...]

    s_len, e = x.shape
    dh = e // nhead
    scale = 1.0 / math.sqrt(dh)

    def layer_norm(y, g, b):
        mu = jnp.mean(y, axis=-1, keepdims=True)
        yc = y - mu
        var = jnp.mean(yc * yc, axis=-1, keepdims=True)
        return yc * jax.lax.rsqrt(var + ln_eps) * g + b

    # ---- TransformerEncoder: 4 post-norm layers, fully in-kernel -----------
    for l in range(nlayers):
        # fused, lane-dense QKV projection: (S, 3e), columns = [q | k | v]
        qkv = mm(x, wqkv_ref[l]) + bqkv_ref[l]

        heads = []
        for hh in range(nhead):
            qh = qkv[:, hh * dh:(hh + 1) * dh]
            kh = qkv[:, e + hh * dh:e + (hh + 1) * dh]
            vh = qkv[:, 2 * e + hh * dh:2 * e + (hh + 1) * dh]
            sc = jax.lax.dot_general(
                qh.astype(bf16), kh.astype(bf16),
                (((1,), (1,)), ((), ())), preferred_element_type=f32) * scale
            m = jnp.max(sc, axis=-1, keepdims=True)
            p = jnp.exp(sc - m)
            p = p / jnp.sum(p, axis=-1, keepdims=True)        # exact softmax
            heads.append(jnp.dot(p.astype(bf16), vh.astype(bf16),
                                 preferred_element_type=f32))

        # single packed output projection over the concatenated heads
        attn = mm(jnp.concatenate(heads, axis=-1), wo_ref[l]) + bo_ref[l]
        x = layer_norm(x + attn, ln1g_ref[l], ln1b_ref[l])

        # feed-forward (relu); dropout = identity (eval)
        ff = jnp.maximum(mm(x, w1_ref[l]) + b1_ref[l], 0.0)
        ff = mm(ff, w2_ref[l]) + b2_ref[l]
        x = layer_norm(x + ff, ln2g_ref[l], ln2b_ref[l])

    # ---- head: Linear(128->32) -> BatchNorm1d(eval) -> Linear(32->12) ------
    y = mm(x, h1w_ref[...]) + h1b_ref[...]
    # TODO(synk): BatchNorm1d modeled in eval mode (running stats); training-mode batch statistics are not reproduced.
    y = y * bns_ref[...] + bnt_ref[...]
    out = mm(y, h2w_ref[...]) + h2b_ref[...]

    # numerically stable sigmoid via EUP tanh: sigmoid(x) = 0.5*(tanh(x/2)+1)
    sig = 0.5 * (jnp.tanh(0.5 * out) + 1.0)
    out_ref[...] = jnp.concatenate([out, sig], axis=-1).astype(out_ref.dtype)


# ----------------------------------------------------------------------------
# Parameter init (deterministic) — stored directly in the fused-kernel layout
# NOTE: weights use (in, out) layout; importing real PyTorch checkpoints
# (nn.Linear / in_proj_weight stored as (out, in)) requires a transpose.
# ----------------------------------------------------------------------------
def init_params(key, vis_dim=1408, aud_dim=768, hidden=(512, 128, 32), out_dim=OUT_DIM):
    keys = iter(jax.random.split(key, 64))

    def w(*shape):  # bf16 weights (halves the dominant weight DMA)
        fan_in = shape[-2]
        return (jax.random.normal(next(keys), shape, jnp.float32)
                / math.sqrt(fan_in)).astype(jnp.bfloat16)

    zeros = lambda *s: jnp.zeros(s, jnp.float32)
    ones = lambda *s: jnp.ones(s, jnp.float32)

    d = hidden[1]
    L = NLAYERS

    p = {}
    # feat_fc: Conv1d(concat_dim -> 512, k=1); weight split along the concat axis
    p["feat_fc_w_vis"] = w(vis_dim, hidden[0])
    p["feat_fc_w_aud"] = w(aud_dim, hidden[0])
    p["feat_fc_b"] = zeros(1, hidden[0])
    # conv1: Conv1d(512 -> 128, k=1)
    p["conv1_w"] = w(hidden[0], d)
    p["conv1_b"] = zeros(1, d)

    # transformer layers: packed per-layer QKV (d, 3d), columns = [q | k | v],
    # heads laid out contiguously (head h occupies columns h*dh:(h+1)*dh of each block)
    p["wqkv"] = w(L, d, 3 * d)
    p["bqkv"] = zeros(L, 1, 3 * d)
    p["wo"] = w(L, d, d)                     # packed output projection
    p["bo"] = zeros(L, 1, d)
    p["ln1_g"], p["ln1_b"] = ones(L, 1, d), zeros(L, 1, d)
    p["w1"], p["b1"] = w(L, d, d), zeros(L, 1, d)   # dim_feedforward == d (=128)
    p["w2"], p["b2"] = w(L, d, d), zeros(L, 1, d)
    p["ln2_g"], p["ln2_b"] = ones(L, 1, d), zeros(L, 1, d)

    # head: Linear(128->32) -> BatchNorm1d(32) [eval] -> Linear(32->12)
    p["head1_w"], p["head1_b"] = w(d, hidden[2]), zeros(1, hidden[2])
    eps = 1e-5
    bn_gamma, bn_beta = ones(hidden[2]), zeros(hidden[2])
    bn_mean, bn_var = zeros(hidden[2]), ones(hidden[2])
    scale = bn_gamma / jnp.sqrt(bn_var + eps)
    p["bn_scale"] = scale.reshape(1, hidden[2])
    p["bn_shift"] = (bn_beta - bn_mean * scale).reshape(1, hidden[2])
    p["head2_w"], p["head2_b"] = w(hidden[2], out_dim), zeros(1, out_dim)
    return p


# ----------------------------------------------------------------------------
# Forward: one pallas_call for the whole model
# ----------------------------------------------------------------------------
def au_fusion_forward(vis_feat, aud_feat, params):
    # TODO(synk): only the default audio_ft == 'audiofeat_wav2vec2' config is wired
    # (aud_feat required); the 'vggish'/'nope' concat_dim variants are not built here.
    assert aud_feat is not None
    n = vis_feat.shape[0]
    out_dim = OUT_DIM

    args = (
        vis_feat, aud_feat,
        params["feat_fc_w_vis"], params["feat_fc_w_aud"], params["feat_fc_b"],
        params["conv1_w"], params["conv1_b"],
        params["wqkv"], params["bqkv"], params["wo"], params["bo"],
        params["ln1_g"], params["ln1_b"],
        params["w1"], params["b1"], params["w2"], params["b2"],
        params["ln2_g"], params["ln2_b"],
        params["head1_w"], params["head1_b"],
        params["bn_scale"], params["bn_shift"],
        params["head2_w"], params["head2_b"],
    )

    vmem_spec = pl.BlockSpec(memory_space=pltpu.MemorySpace.VMEM)
    kernel = functools.partial(
        _au_fusion_kernel, nlayers=NLAYERS, nhead=NHEAD, ln_eps=LN_EPS,
        out_dim=out_dim)

    packed = pl.pallas_call(
        kernel,
        out_shape=jax.ShapeDtypeStruct((n, 2 * out_dim), jnp.float32),
        in_specs=[vmem_spec] * len(args),
        out_specs=vmem_spec,
        compiler_params=pltpu.CompilerParams(
            # ~3.3 MiB bf16 weights + activations resident; fits the 32 MiB
            # scoped default on every generation incl. v7x (64 MiB physical).
            vmem_limit_bytes=32 * 1024 * 1024),
    )(*args)

    out = packed[:, :out_dim]
    out_sig = packed[:, out_dim:]
    return out, out_sig


if __name__ == "__main__":
    key = jax.random.PRNGKey(0)
    k_vis, k_aud = jax.random.split(key)
    N = 8                          # number of tokens / rows (transformer seq dim)
    VIS_DIM, AUD_DIM = 1408, 768   # 1408 + 768 == 2176 (wav2vec2 concat_dim)
    vis_feat = jax.random.normal(k_vis, (N, VIS_DIM), jnp.float32)
    aud_feat = jax.random.normal(k_aud, (N, AUD_DIM), jnp.float32)

    params = init_params(jax.random.PRNGKey(42))
    out, out_sig = au_fusion_forward(vis_feat, aud_feat, params)
    jax.block_until_ready((out, out_sig))

    assert out.shape == (N, 12) and out_sig.shape == (N, 12)
    assert bool(jnp.all(jnp.isfinite(out)))
    assert bool(jnp.all((out_sig >= 0.0) & (out_sig <= 1.0)))
    print("KERNEL_OK")
</pallas_src>

<mosaic_0001>
module attributes {stable_mosaic.version = 11 : i64} {
  func.func @_au_fusion_kernel(%arg0: memref<8x1408xf32, #tpu.memory_space<vmem>>, %arg1: memref<8x768xf32, #tpu.memory_space<vmem>>, %arg2: memref<1408x512xbf16, #tpu.memory_space<vmem>>, %arg3: memref<768x512xbf16, #tpu.memory_space<vmem>>, %arg4: memref<1x512xf32, #tpu.memory_space<vmem>>, %arg5: memref<512x128xbf16, #tpu.memory_space<vmem>>, %arg6: memref<1x128xf32, #tpu.memory_space<vmem>>, %arg7: memref<4x128x384xbf16, #tpu.memory_space<vmem>>, %arg8: memref<4x1x384xf32, #tpu.memory_space<vmem>>, %arg9: memref<4x128x128xbf16, #tpu.memory_space<vmem>>, %arg10: memref<4x1x128xf32, #tpu.memory_space<vmem>>, %arg11: memref<4x1x128xf32, #tpu.memory_space<vmem>>, %arg12: memref<4x1x128xf32, #tpu.memory_space<vmem>>, %arg13: memref<4x128x128xbf16, #tpu.memory_space<vmem>>, %arg14: memref<4x1x128xf32, #tpu.memory_space<vmem>>, %arg15: memref<4x128x128xbf16, #tpu.memory_space<vmem>>, %arg16: memref<4x1x128xf32, #tpu.memory_space<vmem>>, %arg17: memref<4x1x128xf32, #tpu.memory_space<vmem>>, %arg18: memref<4x1x128xf32, #tpu.memory_space<vmem>>, %arg19: memref<128x32xbf16, #tpu.memory_space<vmem>>, %arg20: memref<1x32xf32, #tpu.memory_space<vmem>>, %arg21: memref<1x32xf32, #tpu.memory_space<vmem>>, %arg22: memref<1x32xf32, #tpu.memory_space<vmem>>, %arg23: memref<32x12xbf16, #tpu.memory_space<vmem>>, %arg24: memref<1x12xf32, #tpu.memory_space<vmem>>, %arg25: memref<8x24xf32, #tpu.memory_space<vmem>>) attributes {dimension_semantics = [], scalar_prefetch = 0 : i64, scratch_operands = 0 : i64, tpu.core_type = #tpu.core_type<tc>} {
    %c0 = arith.constant 0 : index
    %c0_0 = arith.constant 0 : index
    %0 = vector.load %arg0[%c0, %c0_0] : memref<8x1408xf32, #tpu.memory_space<vmem>>, vector<8x1408xf32>
    %c0_1 = arith.constant 0 : index
    %c0_2 = arith.constant 0 : index
    %1 = vector.load %arg2[%c0_1, %c0_2] : memref<1408x512xbf16, #tpu.memory_space<vmem>>, vector<1408x512xbf16>
    %2 = arith.truncf %0 : vector<8x1408xf32> to vector<8x1408xbf16>
    %cst = arith.constant dense<0.000000e+00> : vector<8x512xf32>
    %3 = tpu.matmul %2, %1, %cst {dimension_numbers = #tpu.dot_dimension_numbers<[1], [0], [0], [1], [0, 0, 1, 1], [], []>} : vector<8x1408xbf16>, vector<1408x512xbf16>, vector<8x512xf32> -> vector<8x512xf32>
    %c0_3 = arith.constant 0 : index
    %c0_4 = arith.constant 0 : index
    %4 = vector.load %arg1[%c0_3, %c0_4] : memref<8x768xf32, #tpu.memory_space<vmem>>, vector<8x768xf32>
    %c0_5 = arith.constant 0 : index
    %c0_6 = arith.constant 0 : index
    %5 = vector.load %arg3[%c0_5, %c0_6] : memref<768x512xbf16, #tpu.memory_space<vmem>>, vector<768x512xbf16>
    %6 = arith.truncf %4 : vector<8x768xf32> to vector<8x768xbf16>
    %cst_7 = arith.constant dense<0.000000e+00> : vector<8x512xf32>
    %7 = tpu.matmul %6, %5, %cst_7 {dimension_numbers = #tpu.dot_dimension_numbers<[1], [0], [0], [1], [0, 0, 1, 1], [], []>} : vector<8x768xbf16>, vector<768x512xbf16>, vector<8x512xf32> -> vector<8x512xf32>
    %8 = arith.addf %3, %7 : vector<8x512xf32>
    %c0_8 = arith.constant 0 : index
    %c0_9 = arith.constant 0 : index
    %9 = vector.load %arg4[%c0_8, %c0_9] : memref<1x512xf32, #tpu.memory_space<vmem>>, vector<1x512xf32>
    %10 = vector.broadcast %9 : vector<1x512xf32> to vector<8x512xf32>
    %11 = arith.addf %8, %10 : vector<8x512xf32>
    %cst_10 = arith.constant 1.000000e-01 : f32
    %12 = vector.broadcast %cst_10 : f32 to vector<8x512xf32>
    %13 = arith.mulf %12, %11 : vector<8x512xf32>
    %14 = arith.maximumf %11, %13 : vector<8x512xf32>
    %c0_11 = arith.constant 0 : index
    %c0_12 = arith.constant 0 : index
    %15 = vector.load %arg5[%c0_11, %c0_12] : memref<512x128xbf16, #tpu.memory_space<vmem>>, vector<512x128xbf16>
    %16 = arith.truncf %14 : vector<8x512xf32> to vector<8x512xbf16>
    %cst_13 = arith.constant dense<0.000000e+00> : vector<8x128xf32>
    %17 = tpu.matmul %16, %15, %cst_13 {dimension_numbers = #tpu.dot_dimension_numbers<[1], [0], [0], [1], [0, 0, 1, 1], [], []>} : vector<8x512xbf16>, vector<512x128xbf16>, vector<8x128xf32> -> vector<8x128xf32>
    %c0_14 = arith.constant 0 : index
    %c0_15 = arith.constant 0 : index
    %18 = vector.load %arg6[%c0_14, %c0_15] : memref<1x128xf32, #tpu.memory_space<vmem>>, vector<1x128xf32>
    %19 = vector.broadcast %18 : vector<1x128xf32> to vector<8x128xf32>
    %20 = arith.addf %17, %19 : vector<8x128xf32>
    %c0_16 = arith.constant 0 : index
    %c0_17 = arith.constant 0 : index
    %c0_18 = arith.constant 0 : index
    %21 = vector.load %arg7[%c0_16, %c0_17, %c0_18] : memref<4x128x384xbf16, #tpu.memory_space<vmem>>, vector<1x128x384xbf16>
    %22 = vector.shape_cast %21 : vector<1x128x384xbf16> to vector<128x384xbf16>
    %23 = arith.truncf %20 : vector<8x128xf32> to vector<8x128xbf16>
    %cst_19 = arith.constant dense<0.000000e+00> : vector<8x384xf32>
    %24 = tpu.matmul %23, %22, %cst_19 {dimension_numbers = #tpu.dot_dimension_numbers<[1], [0], [0], [1], [0, 0, 1, 1], [], []>} : vector<8x128xbf16>, vector<128x384xbf16>, vector<8x384xf32> -> vector<8x384xf32>
    %c0_20 = arith.constant 0 : index
    %c0_21 = arith.constant 0 : index
    %c0_22 = arith.constant 0 : index
    %25 = vector.load %arg8[%c0_20, %c0_21, %c0_22] : memref<4x1x384xf32, #tpu.memory_space<vmem>>, vector<1x1x384xf32>
    %26 = vector.shape_cast %25 : vector<1x1x384xf32> to vector<1x384xf32>
    %27 = vector.broadcast %26 : vector<1x384xf32> to vector<8x384xf32>
    %28 = arith.addf %24, %27 : vector<8x384xf32>
    %29 = vector.extract_strided_slice %28 {offsets = [0, 0], sizes = [8, 32], strides = [1, 1]} : vector<8x384xf32> to vector<8x32xf32>
    %30 = vector.extract_strided_slice %28 {offsets = [0, 128], sizes = [8, 32], strides = [1, 1]} : vector<8x384xf32> to vector<8x32xf32>
    %31 = vector.extract_strided_slice %28 {offsets = [0, 256], sizes = [8, 32], strides = [1, 1]} : vector<8x384xf32> to vector<8x32xf32>
    %32 = arith.truncf %29 : vector<8x32xf32> to vector<8x32xbf16>
    %33 = arith.truncf %30 : vector<8x32xf32> to vector<8x32xbf16>
    %cst_23 = arith.constant dense<0.000000e+00> : vector<8x8xf32>
    %34 = tpu.matmul %32, %33, %cst_23 {dimension_numbers = #tpu.dot_dimension_numbers<[1], [1], [0], [0], [0, 0, 1, 0], [], []>} : vector<8x32xbf16>, vector<8x32xbf16>, vector<8x8xf32> -> vector<8x8xf32>
    %cst_24 = arith.constant 0.176776692 : f32
    %35 = vector.broadcast %cst_24 : f32 to vector<8x8xf32>
    %36 = arith.mulf %34, %35 : vector<8x8xf32>
    %cst_25 = arith.constant dense<0xFF800000> : vector<8xf32>
    %37 = vector.multi_reduction <maximumf>, %36, %cst_25 [1] : vector<8x8xf32> to vector<8xf32>
    %38 = vector.shape_cast %37 : vector<8xf32> to vector<8x1xf32>
    %39 = vector.broadcast %38 : vector<8x1xf32> to vector<8x8xf32>
    %40 = arith.subf %36, %39 : vector<8x8xf32>
    %41 = math.exp %40 : vector<8x8xf32>
    %cst_26 = arith.constant dense<0.000000e+00> : vector<8xf32>
    %42 = vector.multi_reduction <add>, %41, %cst_26 [1] : vector<8x8xf32> to vector<8xf32>
    %43 = vector.shape_cast %42 : vector<8xf32> to vector<8x1xf32>
    %44 = vector.broadcast %43 : vector<8x1xf32> to vector<8x8xf32>
    %45 = arith.divf %41, %44 : vector<8x8xf32>
    %46 = arith.truncf %45 : vector<8x8xf32> to vector<8x8xbf16>
    %47 = arith.truncf %31 : vector<8x32xf32> to vector<8x32xbf16>
    %cst_27 = arith.constant dense<0.000000e+00> : vector<8x32xf32>
    %48 = tpu.matmul %46, %47, %cst_27 {dimension_numbers = #tpu.dot_dimension_numbers<[1], [0], [0], [1], [0, 0, 1, 1], [], []>} : vector<8x8xbf16>, vector<8x32xbf16>, vector<8x32xf32> -> vector<8x32xf32>
    %49 = vector.extract_strided_slice %28 {offsets = [0, 32], sizes = [8, 32], strides = [1, 1]} : vector<8x384xf32> to vector<8x32xf32>
    %50 = vector.extract_strided_slice %28 {offsets = [0, 160], sizes = [8, 32], strides = [1, 1]} : vector<8x384xf32> to vector<8x32xf32>
    %51 = vector.extract_strided_slice %28 {offsets = [0, 288], sizes = [8, 32], strides = [1, 1]} : vector<8x384xf32> to vector<8x32xf32>
    %52 = arith.truncf %49 : vector<8x32xf32> to vector<8x32xbf16>
    %53 = arith.truncf %50 : vector<8x32xf32> to vector<8x32xbf16>
    %cst_28 = arith.constant dense<0.000000e+00> : vector<8x8xf32>
    %54 = tpu.matmul %52, %53, %cst_28 {dimension_numbers = #tpu.dot_dimension_numbers<[1], [1], [0], [0], [0, 0, 1, 0], [], []>} : vector<8x32xbf16>, vector<8x32xbf16>, vector<8x8xf32> -> vector<8x8xf32>
    %cst_29 = arith.constant 0.176776692 : f32
    %55 = vector.broadcast %cst_29 : f32 to vector<8x8xf32>
    %56 = arith.mulf %54, %55 : vector<8x8xf32>
    %cst_30 = arith.constant dense<0xFF800000> : vector<8xf32>
    %57 = vector.multi_reduction <maximumf>, %56, %cst_30 [1] : vector<8x8xf32> to vector<8xf32>
    %58 = vector.shape_cast %57 : vector<8xf32> to vector<8x1xf32>
    %59 = vector.broadcast %58 : vector<8x1xf32> to vector<8x8xf32>
    %60 = arith.subf %56, %59 : vector<8x8xf32>
    %61 = math.exp %60 : vector<8x8xf32>
    %cst_31 = arith.constant dense<0.000000e+00> : vector<8xf32>
    %62 = vector.multi_reduction <add>, %61, %cst_31 [1] : vector<8x8xf32> to vector<8xf32>
    %63 = vector.shape_cast %62 : vector<8xf32> to vector<8x1xf32>
    %64 = vector.broadcast %63 : vector<8x1xf32> to vector<8x8xf32>
    %65 = arith.divf %61, %64 : vector<8x8xf32>
    %66 = arith.truncf %65 : vector<8x8xf32> to vector<8x8xbf16>
    %67 = arith.truncf %51 : vector<8x32xf32> to vector<8x32xbf16>
    %cst_32 = arith.constant dense<0.000000e+00> : vector<8x32xf32>
    %68 = tpu.matmul %66, %67, %cst_32 {dimension_numbers = #tpu.dot_dimension_numbers<[1], [0], [0], [1], [0, 0, 1, 1], [], []>} : vector<8x8xbf16>, vector<8x32xbf16>, vector<8x32xf32> -> vector<8x32xf32>
    %69 = vector.extract_strided_slice %28 {offsets = [0, 64], sizes = [8, 32], strides = [1, 1]} : vector<8x384xf32> to vector<8x32xf32>
    %70 = vector.extract_strided_slice %28 {offsets = [0, 192], sizes = [8, 32], strides = [1, 1]} : vector<8x384xf32> to vector<8x32xf32>
    %71 = vector.extract_strided_slice %28 {offsets = [0, 320], sizes = [8, 32], strides = [1, 1]} : vector<8x384xf32> to vector<8x32xf32>
    %72 = arith.truncf %69 : vector<8x32xf32> to vector<8x32xbf16>
    %73 = arith.truncf %70 : vector<8x32xf32> to vector<8x32xbf16>
    %cst_33 = arith.constant dense<0.000000e+00> : vector<8x8xf32>
    %74 = tpu.matmul %72, %73, %cst_33 {dimension_numbers = #tpu.dot_dimension_numbers<[1], [1], [0], [0], [0, 0, 1, 0], [], []>} : vector<8x32xbf16>, vector<8x32xbf16>, vector<8x8xf32> -> vector<8x8xf32>
    %cst_34 = arith.constant 0.176776692 : f32
    %75 = vector.broadcast %cst_34 : f32 to vector<8x8xf32>
    %76 = arith.mulf %74, %75 : vector<8x8xf32>
    %cst_35 = arith.constant dense<0xFF800000> : vector<8xf32>
    %77 = vector.multi_reduction <maximumf>, %76, %cst_35 [1] : vector<8x8xf32> to vector<8xf32>
    %78 = vector.shape_cast %77 : vector<8xf32> to vector<8x1xf32>
    %79 = vector.broadcast %78 : vector<8x1xf32> to vector<8x8xf32>
    %80 = arith.subf %76, %79 : vector<8x8xf32>
    %81 = math.exp %80 : vector<8x8xf32>
    %cst_36 = arith.constant dense<0.000000e+00> : vector<8xf32>
    %82 = vector.multi_reduction <add>, %81, %cst_36 [1] : vector<8x8xf32> to vector<8xf32>
    %83 = vector.shape_cast %82 : vector<8xf32> to vector<8x1xf32>
    %84 = vector.broadcast %83 : vector<8x1xf32> to vector<8x8xf32>
    %85 = arith.divf %81, %84 : vector<8x8xf32>
    %86 = arith.truncf %85 : vector<8x8xf32> to vector<8x8xbf16>
    %87 = arith.truncf %71 : vector<8x32xf32> to vector<8x32xbf16>
    %cst_37 = arith.constant dense<0.000000e+00> : vector<8x32xf32>
    %88 = tpu.matmul %86, %87, %cst_37 {dimension_numbers = #tpu.dot_dimension_numbers<[1], [0], [0], [1], [0, 0, 1, 1], [], []>} : vector<8x8xbf16>, vector<8x32xbf16>, vector<8x32xf32> -> vector<8x32xf32>
    %89 = vector.extract_strided_slice %28 {offsets = [0, 96], sizes = [8, 32], strides = [1, 1]} : vector<8x384xf32> to vector<8x32xf32>
    %90 = vector.extract_strided_slice %28 {offsets = [0, 224], sizes = [8, 32], strides = [1, 1]} : vector<8x384xf32> to vector<8x32xf32>
    %91 = vector.extract_strided_slice %28 {offsets = [0, 352], sizes = [8, 32], strides = [1, 1]} : vector<8x384xf32> to vector<8x32xf32>
    %92 = arith.truncf %89 : vector<8x32xf32> to vector<8x32xbf16>
    %93 = arith.truncf %90 : vector<8x32xf32> to vector<8x32xbf16>
    %cst_38 = arith.constant dense<0.000000e+00> : vector<8x8xf32>
    %94 = tpu.matmul %92, %93, %cst_38 {dimension_numbers = #tpu.dot_dimension_numbers<[1], [1], [0], [0], [0, 0, 1, 0], [], []>} : vector<8x32xbf16>, vector<8x32xbf16>, vector<8x8xf32> -> vector<8x8xf32>
    %cst_39 = arith.constant 0.176776692 : f32
    %95 = vector.broadcast %cst_39 : f32 to vector<8x8xf32>
    %96 = arith.mulf %94, %95 : vector<8x8xf32>
    %cst_40 = arith.constant dense<0xFF800000> : vector<8xf32>
    %97 = vector.multi_reduction <maximumf>, %96, %cst_40 [1] : vector<8x8xf32> to vector<8xf32>
    %98 = vector.shape_cast %97 : vector<8xf32> to vector<8x1xf32>
    %99 = vector.broadcast %98 : vector<8x1xf32> to vector<8x8xf32>
    %100 = arith.subf %96, %99 : vector<8x8xf32>
    %101 = math.exp %100 : vector<8x8xf32>
    %cst_41 = arith.constant dense<0.000000e+00> : vector<8xf32>
    %102 = vector.multi_reduction <add>, %101, %cst_41 [1] : vector<8x8xf32> to vector<8xf32>
    %103 = vector.shape_cast %102 : vector<8xf32> to vector<8x1xf32>
    %104 = vector.broadcast %103 : vector<8x1xf32> to vector<8x8xf32>
    %105 = arith.divf %101, %104 : vector<8x8xf32>
    %106 = arith.truncf %105 : vector<8x8xf32> to vector<8x8xbf16>
    %107 = arith.truncf %91 : vector<8x32xf32> to vector<8x32xbf16>
    %cst_42 = arith.constant dense<0.000000e+00> : vector<8x32xf32>
    %108 = tpu.matmul %106, %107, %cst_42 {dimension_numbers = #tpu.dot_dimension_numbers<[1], [0], [0], [1], [0, 0, 1, 1], [], []>} : vector<8x8xbf16>, vector<8x32xbf16>, vector<8x32xf32> -> vector<8x32xf32>
    %109 = tpu.concatenate %48, %68, %88, %108 in 1 : vector<8x32xf32>, vector<8x32xf32>, vector<8x32xf32>, vector<8x32xf32> -> vector<8x128xf32>
    %c0_43 = arith.constant 0 : index
    %c0_44 = arith.constant 0 : index
    %c0_45 = arith.constant 0 : index
    %110 = vector.load %arg9[%c0_43, %c0_44, %c0_45] : memref<4x128x128xbf16, #tpu.memory_space<vmem>>, vector<1x128x128xbf16>
    %111 = vector.shape_cast %110 : vector<1x128x128xbf16> to vector<128x128xbf16>
    %112 = arith.truncf %109 : vector<8x128xf32> to vector<8x128xbf16>
    %cst_46 = arith.constant dense<0.000000e+00> : vector<8x128xf32>
    %113 = tpu.matmul %112, %111, %cst_46 {dimension_numbers = #tpu.dot_dimension_numbers<[1], [0], [0], [1], [0, 0, 1, 1], [], []>} : vector<8x128xbf16>, vector<128x128xbf16>, vector<8x128xf32> -> vector<8x128xf32>
    %c0_47 = arith.constant 0 : index
    %c0_48 = arith.constant 0 : index
    %c0_49 = arith.constant 0 : index
    %114 = vector.load %arg10[%c0_47, %c0_48, %c0_49] : memref<4x1x128xf32, #tpu.memory_space<vmem>>, vector<1x1x128xf32>
    %115 = vector.shape_cast %114 : vector<1x1x128xf32> to vector<1x128xf32>
    %116 = vector.broadcast %115 : vector<1x128xf32> to vector<8x128xf32>
    %117 = arith.addf %113, %116 : vector<8x128xf32>
    %118 = arith.addf %20, %117 : vector<8x128xf32>
    %c0_50 = arith.constant 0 : index
    %c0_51 = arith.constant 0 : index
    %c0_52 = arith.constant 0 : index
    %119 = vector.load %arg11[%c0_50, %c0_51, %c0_52] : memref<4x1x128xf32, #tpu.memory_space<vmem>>, vector<1x1x128xf32>
    %120 = vector.shape_cast %119 : vector<1x1x128xf32> to vector<1x128xf32>
    %c0_53 = arith.constant 0 : index
    %c0_54 = arith.constant 0 : index
    %c0_55 = arith.constant 0 : index
    %121 = vector.load %arg12[%c0_53, %c0_54, %c0_55] : memref<4x1x128xf32, #tpu.memory_space<vmem>>, vector<1x1x128xf32>
    %122 = vector.shape_cast %121 : vector<1x1x128xf32> to vector<1x128xf32>
    %cst_56 = arith.constant dense<0.000000e+00> : vector<8xf32>
    %123 = vector.multi_reduction <add>, %118, %cst_56 [1] : vector<8x128xf32> to vector<8xf32>
    %124 = vector.shape_cast %123 : vector<8xf32> to vector<8x1xf32>
    %cst_57 = arith.constant 1.280000e+02 : f32
    %125 = vector.broadcast %cst_57 : f32 to vector<8x1xf32>
    %126 = arith.divf %124, %125 : vector<8x1xf32>
    %127 = vector.broadcast %126 : vector<8x1xf32> to vector<8x128xf32>
    %128 = arith.subf %118, %127 : vector<8x128xf32>
    %129 = arith.mulf %128, %128 : vector<8x128xf32>
    %cst_58 = arith.constant dense<0.000000e+00> : vector<8xf32>
    %130 = vector.multi_reduction <add>, %129, %cst_58 [1] : vector<8x128xf32> to vector<8xf32>
    %131 = vector.shape_cast %130 : vector<8xf32> to vector<8x1xf32>
    %cst_59 = arith.constant 1.280000e+02 : f32
    %132 = vector.broadcast %cst_59 : f32 to vector<8x1xf32>
    %133 = arith.divf %131, %132 : vector<8x1xf32>
    %cst_60 = arith.constant 9.99999974E-6 : f32
    %134 = vector.broadcast %cst_60 : f32 to vector<8x1xf32>
    %135 = arith.addf %133, %134 : vector<8x1xf32>
    %136 = math.rsqrt %135 : vector<8x1xf32>
    %137 = vector.broadcast %136 : vector<8x1xf32> to vector<8x128xf32>
    %138 = arith.mulf %128, %137 : vector<8x128xf32>
    %139 = vector.broadcast %120 : vector<1x128xf32> to vector<8x128xf32>
    %140 = arith.mulf %138, %139 : vector<8x128xf32>
    %141 = vector.broadcast %122 : vector<1x128xf32> to vector<8x128xf32>
    %142 = arith.addf %140, %141 : vector<8x128xf32>
    %c0_61 = arith.constant 0 : index
    %c0_62 = arith.constant 0 : index
    %c0_63 = arith.constant 0 : index
    %143 = vector.load %arg13[%c0_61, %c0_62, %c0_63] : memref<4x128x128xbf16, #tpu.memory_space<vmem>>, vector<1x128x128xbf16>
    %144 = vector.shape_cast %143 : vector<1x128x128xbf16> to vector<128x128xbf16>
    %145 = arith.truncf %142 : vector<8x128xf32> to vector<8x128xbf16>
    %cst_64 = arith.constant dense<0.000000e+00> : vector<8x128xf32>
    %146 = tpu.matmul %145, %144, %cst_64 {dimension_numbers = #tpu.dot_dimension_numbers<[1], [0], [0], [1], [0, 0, 1, 1], [], []>} : vector<8x128xbf16>, vector<128x128xbf16>, vector<8x128xf32> -> vector<8x128xf32>
    %c0_65 = arith.constant 0 : index
    %c0_66 = arith.constant 0 : index
    %c0_67 = arith.constant 0 : index
    %147 = vector.load %arg14[%c0_65, %c0_66, %c0_67] : memref<4x1x128xf32, #tpu.memory_space<vmem>>, vector<1x1x128xf32>
    %148 = vector.shape_cast %147 : vector<1x1x128xf32> to vector<1x128xf32>
    %149 = vector.broadcast %148 : vector<1x128xf32> to vector<8x128xf32>
    %150 = arith.addf %146, %149 : vector<8x128xf32>
    %cst_68 = arith.constant 0.000000e+00 : f32
    %151 = vector.broadcast %cst_68 : f32 to vector<8x128xf32>
    %152 = arith.maximumf %150, %151 : vector<8x128xf32>
    %c0_69 = arith.constant 0 : index
    %c0_70 = arith.constant 0 : index
    %c0_71 = arith.constant 0 : index
    %153 = vector.load %arg15[%c0_69, %c0_70, %c0_71] : memref<4x128x128xbf16, #tpu.memory_space<vmem>>, vector<1x128x128xbf16>
    %154 = vector.shape_cast %153 : vector<1x128x128xbf16> to vector<128x128xbf16>
    %155 = arith.truncf %152 : vector<8x128xf32> to vector<8x128xbf16>
    %cst_72 = arith.constant dense<0.000000e+00> : vector<8x128xf32>
    %156 = tpu.matmul %155, %154, %cst_72 {dimension_numbers = #tpu.dot_dimension_numbers<[1], [0], [0], [1], [0, 0, 1, 1], [], []>} : vector<8x128xbf16>, vector<128x128xbf16>, vector<8x128xf32> -> vector<8x128xf32>
    %c0_73 = arith.constant 0 : index
    %c0_74 = arith.constant 0 : index
    %c0_75 = arith.constant 0 : index
    %157 = vector.load %arg16[%c0_73, %c0_74, %c0_75] : memref<4x1x128xf32, #tpu.memory_space<vmem>>, vector<1x1x128xf32>
    %158 = vector.shape_cast %157 : vector<1x1x128xf32> to vector<1x128xf32>
    %159 = vector.broadcast %158 : vector<1x128xf32> to vector<8x128xf32>
    %160 = arith.addf %156, %159 : vector<8x128xf32>
    %161 = arith.addf %142, %160 : vector<8x128xf32>
    %c0_76 = arith.constant 0 : index
    %c0_77 = arith.constant 0 : index
    %c0_78 = arith.constant 0 : index
    %162 = vector.load %arg17[%c0_76, %c0_77, %c0_78] : memref<4x1x128xf32, #tpu.memory_space<vmem>>, vector<1x1x128xf32>
    %163 = vector.shape_cast %162 : vector<1x1x128xf32> to vector<1x128xf32>
    %c0_79 = arith.constant 0 : index
    %c0_80 = arith.constant 0 : index
    %c0_81 = arith.constant 0 : index
    %164 = vector.load %arg18[%c0_79, %c0_80, %c0_81] : memref<4x1x128xf32, #tpu.memory_space<vmem>>, vector<1x1x128xf32>
    %165 = vector.shape_cast %164 : vector<1x1x128xf32> to vector<1x128xf32>
    %cst_82 = arith.constant dense<0.000000e+00> : vector<8xf32>
    %166 = vector.multi_reduction <add>, %161, %cst_82 [1] : vector<8x128xf32> to vector<8xf32>
    %167 = vector.shape_cast %166 : vector<8xf32> to vector<8x1xf32>
    %cst_83 = arith.constant 1.280000e+02 : f32
    %168 = vector.broadcast %cst_83 : f32 to vector<8x1xf32>
    %169 = arith.divf %167, %168 : vector<8x1xf32>
    %170 = vector.broadcast %169 : vector<8x1xf32> to vector<8x128xf32>
    %171 = arith.subf %161, %170 : vector<8x128xf32>
    %172 = arith.mulf %171, %171 : vector<8x128xf32>
    %cst_84 = arith.constant dense<0.000000e+00> : vector<8xf32>
    %173 = vector.multi_reduction <add>, %172, %cst_84 [1] : vector<8x128xf32> to vector<8xf32>
    %174 = vector.shape_cast %173 : vector<8xf32> to vector<8x1xf32>
    %cst_85 = arith.constant 1.280000e+02 : f32
    %175 = vector.broadcast %cst_85 : f32 to vector<8x1xf32>
    %176 = arith.divf %174, %175 : vector<8x1xf32>
    %cst_86 = arith.constant 9.99999974E-6 : f32
    %177 = vector.broadcast %cst_86 : f32 to vector<8x1xf32>
    %178 = arith.addf %176, %177 : vector<8x1xf32>
    %179 = math.rsqrt %178 : vector<8x1xf32>
    %180 = vector.broadcast %179 : vector<8x1xf32> to vector<8x128xf32>
    %181 = arith.mulf %171, %180 : vector<8x128xf32>
    %182 = vector.broadcast %163 : vector<1x128xf32> to vector<8x128xf32>
    %183 = arith.mulf %181, %182 : vector<8x128xf32>
    %184 = vector.broadcast %165 : vector<1x128xf32> to vector<8x128xf32>
    %185 = arith.addf %183, %184 : vector<8x128xf32>
    %c1 = arith.constant 1 : index
    %c0_87 = arith.constant 0 : index
    %c0_88 = arith.constant 0 : index
    %186 = vector.load %arg7[%c1, %c0_87, %c0_88] : memref<4x128x384xbf16, #tpu.memory_space<vmem>>, vector<1x128x384xbf16>
    %187 = vector.shape_cast %186 : vector<1x128x384xbf16> to vector<128x384xbf16>
    %188 = arith.truncf %185 : vector<8x128xf32> to vector<8x128xbf16>
    %cst_89 = arith.constant dense<0.000000e+00> : vector<8x384xf32>
    %189 = tpu.matmul %188, %187, %cst_89 {dimension_numbers = #tpu.dot_dimension_numbers<[1], [0], [0], [1], [0, 0, 1, 1], [], []>} : vector<8x128xbf16>, vector<128x384xbf16>, vector<8x384xf32> -> vector<8x384xf32>
    %c1_90 = arith.constant 1 : index
    %c0_91 = arith.constant 0 : index
    %c0_92 = arith.constant 0 : index
    %190 = vector.load %arg8[%c1_90, %c0_91, %c0_92] : memref<4x1x384xf32, #tpu.memory_space<vmem>>, vector<1x1x384xf32>
    %191 = vector.shape_cast %190 : vector<1x1x384xf32> to vector<1x384xf32>
    %192 = vector.broadcast %191 : vector<1x384xf32> to vector<8x384xf32>
    %193 = arith.addf %189, %192 : vector<8x384xf32>
    %194 = vector.extract_strided_slice %193 {offsets = [0, 0], sizes = [8, 32], strides = [1, 1]} : vector<8x384xf32> to vector<8x32xf32>
    %195 = vector.extract_strided_slice %193 {offsets = [0, 128], sizes = [8, 32], strides = [1, 1]} : vector<8x384xf32> to vector<8x32xf32>
    %196 = vector.extract_strided_slice %193 {offsets = [0, 256], sizes = [8, 32], strides = [1, 1]} : vector<8x384xf32> to vector<8x32xf32>
    %197 = arith.truncf %194 : vector<8x32xf32> to vector<8x32xbf16>
    %198 = arith.truncf %195 : vector<8x32xf32> to vector<8x32xbf16>
    %cst_93 = arith.constant dense<0.000000e+00> : vector<8x8xf32>
    %199 = tpu.matmul %197, %198, %cst_93 {dimension_numbers = #tpu.dot_dimension_numbers<[1], [1], [0], [0], [0, 0, 1, 0], [], []>} : vector<8x32xbf16>, vector<8x32xbf16>, vector<8x8xf32> -> vector<8x8xf32>
    %cst_94 = arith.constant 0.176776692 : f32
    %200 = vector.broadcast %cst_94 : f32 to vector<8x8xf32>
    %201 = arith.mulf %199, %200 : vector<8x8xf32>
    %cst_95 = arith.constant dense<0xFF800000> : vector<8xf32>
    %202 = vector.multi_reduction <maximumf>, %201, %cst_95 [1] : vector<8x8xf32> to vector<8xf32>
    %203 = vector.shape_cast %202 : vector<8xf32> to vector<8x1xf32>
    %204 = vector.broadcast %203 : vector<8x1xf32> to vector<8x8xf32>
    %205 = arith.subf %201, %204 : vector<8x8xf32>
    %206 = math.exp %205 : vector<8x8xf32>
    %cst_96 = arith.constant dense<0.000000e+00> : vector<8xf32>
    %207 = vector.multi_reduction <add>, %206, %cst_96 [1] : vector<8x8xf32> to vector<8xf32>
    %208 = vector.shape_cast %207 : vector<8xf32> to vector<8x1xf32>
    %209 = vector.broadcast %208 : vector<8x1xf32> to vector<8x8xf32>
    %210 = arith.divf %206, %209 : vector<8x8xf32>
    %211 = arith.truncf %210 : vector<8x8xf32> to vector<8x8xbf16>
    %212 = arith.truncf %196 : vector<8x32xf32> to vector<8x32xbf16>
    %cst_97 = arith.constant dense<0.000000e+00> : vector<8x32xf32>
    %213 = tpu.matmul %211, %212, %cst_97 {dimension_numbers = #tpu.dot_dimension_numbers<[1], [0], [0], [1], [0, 0, 1, 1], [], []>} : vector<8x8xbf16>, vector<8x32xbf16>, vector<8x32xf32> -> vector<8x32xf32>
    %214 = vector.extract_strided_slice %193 {offsets = [0, 32], sizes = [8, 32], strides = [1, 1]} : vector<8x384xf32> to vector<8x32xf32>
    %215 = vector.extract_strided_slice %193 {offsets = [0, 160], sizes = [8, 32], strides = [1, 1]} : vector<8x384xf32> to vector<8x32xf32>
    %216 = vector.extract_strided_slice %193 {offsets = [0, 288], sizes = [8, 32], strides = [1, 1]} : vector<8x384xf32> to vector<8x32xf32>
    %217 = arith.truncf %214 : vector<8x32xf32> to vector<8x32xbf16>
    %218 = arith.truncf %215 : vector<8x32xf32> to vector<8x32xbf16>
    %cst_98 = arith.constant dense<0.000000e+00> : vector<8x8xf32>
    %219 = tpu.matmul %217, %218, %cst_98 {dimension_numbers = #tpu.dot_dimension_numbers<[1], [1], [0], [0], [0, 0, 1, 0], [], []>} : vector<8x32xbf16>, vector<8x32xbf16>, vector<8x8xf32> -> vector<8x8xf32>
    %cst_99 = arith.constant 0.176776692 : f32
    %220 = vector.broadcast %cst_99 : f32 to vector<8x8xf32>
    %221 = arith.mulf %219, %220 : vector<8x8xf32>
    %cst_100 = arith.constant dense<0xFF800000> : vector<8xf32>
    %222 = vector.multi_reduction <maximumf>, %221, %cst_100 [1] : vector<8x8xf32> to vector<8xf32>
    %223 = vector.shape_cast %222 : vector<8xf32> to vector<8x1xf32>
    %224 = vector.broadcast %223 : vector<8x1xf32> to vector<8x8xf32>
    %225 = arith.subf %221, %224 : vector<8x8xf32>
    %226 = math.exp %225 : vector<8x8xf32>
    %cst_101 = arith.constant dense<0.000000e+00> : vector<8xf32>
    %227 = vector.multi_reduction <add>, %226, %cst_101 [1] : vector<8x8xf32> to vector<8xf32>
    %228 = vector.shape_cast %227 : vector<8xf32> to vector<8x1xf32>
    %229 = vector.broadcast %228 : vector<8x1xf32> to vector<8x8xf32>
    %230 = arith.divf %226, %229 : vector<8x8xf32>
    %231 = arith.truncf %230 : vector<8x8xf32> to vector<8x8xbf16>
    %232 = arith.truncf %216 : vector<8x32xf32> to vector<8x32xbf16>
    %cst_102 = arith.constant dense<0.000000e+00> : vector<8x32xf32>
    %233 = tpu.matmul %231, %232, %cst_102 {dimension_numbers = #tpu.dot_dimension_numbers<[1], [0], [0], [1], [0, 0, 1, 1], [], []>} : vector<8x8xbf16>, vector<8x32xbf16>, vector<8x32xf32> -> vector<8x32xf32>
    %234 = vector.extract_strided_slice %193 {offsets = [0, 64], sizes = [8, 32], strides = [1, 1]} : vector<8x384xf32> to vector<8x32xf32>
    %235 = vector.extract_strided_slice %193 {offsets = [0, 192], sizes = [8, 32], strides = [1, 1]} : vector<8x384xf32> to vector<8x32xf32>
    %236 = vector.extract_strided_slice %193 {offsets = [0, 320], sizes = [8, 32], strides = [1, 1]} : vector<8x384xf32> to vector<8x32xf32>
    %237 = arith.truncf %234 : vector<8x32xf32> to vector<8x32xbf16>
    %238 = arith.truncf %235 : vector<8x32xf32> to vector<8x32xbf16>
    %cst_103 = arith.constant dense<0.000000e+00> : vector<8x8xf32>
    %239 = tpu.matmul %237, %238, %cst_103 {dimension_numbers = #tpu.dot_dimension_numbers<[1], [1], [0], [0], [0, 0, 1, 0], [], []>} : vector<8x32xbf16>, vector<8x32xbf16>, vector<8x8xf32> -> vector<8x8xf32>
    %cst_104 = arith.constant 0.176776692 : f32
    %240 = vector.broadcast %cst_104 : f32 to vector<8x8xf32>
    %241 = arith.mulf %239, %240 : vector<8x8xf32>
    %cst_105 = arith.constant dense<0xFF800000> : vector<8xf32>
    %242 = vector.multi_reduction <maximumf>, %241, %cst_105 [1] : vector<8x8xf32> to vector<8xf32>
    %243 = vector.shape_cast %242 : vector<8xf32> to vector<8x1xf32>
    %244 = vector.broadcast %243 : vector<8x1xf32> to vector<8x8xf32>
    %245 = arith.subf %241, %244 : vector<8x8xf32>
    %246 = math.exp %245 : vector<8x8xf32>
    %cst_106 = arith.constant dense<0.000000e+00> : vector<8xf32>
    %247 = vector.multi_reduction <add>, %246, %cst_106 [1] : vector<8x8xf32> to vector<8xf32>
    %248 = vector.shape_cast %247 : vector<8xf32> to vector<8x1xf32>
    %249 = vector.broadcast %248 : vector<8x1xf32> to vector<8x8xf32>
    %250 = arith.divf %246, %249 : vector<8x8xf32>
    %251 = arith.truncf %250 : vector<8x8xf32> to vector<8x8xbf16>
    %252 = arith.truncf %236 : vector<8x32xf32> to vector<8x32xbf16>
    %cst_107 = arith.constant dense<0.000000e+00> : vector<8x32xf32>
    %253 = tpu.matmul %251, %252, %cst_107 {dimension_numbers = #tpu.dot_dimension_numbers<[1], [0], [0], [1], [0, 0, 1, 1], [], []>} : vector<8x8xbf16>, vector<8x32xbf16>, vector<8x32xf32> -> vector<8x32xf32>
    %254 = vector.extract_strided_slice %193 {offsets = [0, 96], sizes = [8, 32], strides = [1, 1]} : vector<8x384xf32> to vector<8x32xf32>
    %255 = vector.extract_strided_slice %193 {offsets = [0, 224], sizes = [8, 32], strides = [1, 1]} : vector<8x384xf32> to vector<8x32xf32>
    %256 = vector.extract_strided_slice %193 {offsets = [0, 352], sizes = [8, 32], strides = [1, 1]} : vector<8x384xf32> to vector<8x32xf32>
    %257 = arith.truncf %254 : vector<8x32xf32> to vector<8x32xbf16>
    %258 = arith.truncf %255 : vector<8x32xf32> to vector<8x32xbf16>
    %cst_108 = arith.constant dense<0.000000e+00> : vector<8x8xf32>
    %259 = tpu.matmul %257, %258, %cst_108 {dimension_numbers = #tpu.dot_dimension_numbers<[1], [1], [0], [0], [0, 0, 1, 0], [], []>} : vector<8x32xbf16>, vector<8x32xbf16>, vector<8x8xf32> -> vector<8x8xf32>
    %cst_109 = arith.constant 0.176776692 : f32
    %260 = vector.broadcast %cst_109 : f32 to vector<8x8xf32>
    %261 = arith.mulf %259, %260 : vector<8x8xf32>
    %cst_110 = arith.constant dense<0xFF800000> : vector<8xf32>
    %262 = vector.multi_reduction <maximumf>, %261, %cst_110 [1] : vector<8x8xf32> to vector<8xf32>
    %263 = vector.shape_cast %262 : vector<8xf32> to vector<8x1xf32>
    %264 = vector.broadcast %263 : vector<8x1xf32> to vector<8x8xf32>
    %265 = arith.subf %261, %264 : vector<8x8xf32>
    %266 = math.exp %265 : vector<8x8xf32>
    %cst_111 = arith.constant dense<0.000000e+00> : vector<8xf32>
    %267 = vector.multi_reduction <add>, %266, %cst_111 [1] : vector<8x8xf32> to vector<8xf32>
    %268 = vector.shape_cast %267 : vector<8xf32> to vector<8x1xf32>
    %269 = vector.broadcast %268 : vector<8x1xf32> to vector<8x8xf32>
    %270 = arith.divf %266, %269 : vector<8x8xf32>
    %271 = arith.truncf %270 : vector<8x8xf32> to vector<8x8xbf16>
    %272 = arith.truncf %256 : vector<8x32xf32> to vector<8x32xbf16>
    %cst_112 = arith.constant dense<0.000000e+00> : vector<8x32xf32>
    %273 = tpu.matmul %271, %272, %cst_112 {dimension_numbers = #tpu.dot_dimension_numbers<[1], [0], [0], [1], [0, 0, 1, 1], [], []>} : vector<8x8xbf16>, vector<8x32xbf16>, vector<8x32xf32> -> vector<8x32xf32>
    %274 = tpu.concatenate %213, %233, %253, %273 in 1 : vector<8x32xf32>, vector<8x32xf32>, vector<8x32xf32>, vector<8x32xf32> -> vector<8x128xf32>
    %c1_113 = arith.constant 1 : index
    %c0_114 = arith.constant 0 : index
    %c0_115 = arith.constant 0 : index
    %275 = vector.load %arg9[%c1_113, %c0_114, %c0_115] : memref<4x128x128xbf16, #tpu.memory_space<vmem>>, vector<1x128x128xbf16>
    %276 = vector.shape_cast %275 : vector<1x128x128xbf16> to vector<128x128xbf16>
    %277 = arith.truncf %274 : vector<8x128xf32> to vector<8x128xbf16>
    %cst_116 = arith.constant dense<0.000000e+00> : vector<8x128xf32>
    %278 = tpu.matmul %277, %276, %cst_116 {dimension_numbers = #tpu.dot_dimension_numbers<[1], [0], [0], [1], [0, 0, 1, 1], [], []>} : vector<8x128xbf16>, vector<128x128xbf16>, vector<8x128xf32> -> vector<8x128xf32>
    %c1_117 = arith.constant 1 : index
    %c0_118 = arith.constant 0 : index
    %c0_119 = arith.constant 0 : index
    %279 = vector.load %arg10[%c1_117, %c0_118, %c0_119] : memref<4x1x128xf32, #tpu.memory_space<vmem>>, vector<1x1x128xf32>
    %280 = vector.shape_cast %279 : vector<1x1x128xf32> to vector<1x128xf32>
    %281 = vector.broadcast %280 : vector<1x128xf32> to vector<8x128xf32>
    %282 = arith.addf %278, %281 : vector<8x128xf32>
    %283 = arith.addf %185, %282 : vector<8x128xf32>
    %c1_120 = arith.constant 1 : index
    %c0_121 = arith.constant 0 : index
    %c0_122 = arith.constant 0 : index
    %284 = vector.load %arg11[%c1_120, %c0_121, %c0_122] : memref<4x1x128xf32, #tpu.memory_space<vmem>>, vector<1x1x128xf32>
    %285 = vector.shape_cast %284 : vector<1x1x128xf32> to vector<1x128xf32>
    %c1_123 = arith.constant 1 : index
    %c0_124 = arith.constant 0 : index
    %c0_125 = arith.constant 0 : index
    %286 = vector.load %arg12[%c1_123, %c0_124, %c0_125] : memref<4x1x128xf32, #tpu.memory_space<vmem>>, vector<1x1x128xf32>
    %287 = vector.shape_cast %286 : vector<1x1x128xf32> to vector<1x128xf32>
    %cst_126 = arith.constant dense<0.000000e+00> : vector<8xf32>
    %288 = vector.multi_reduction <add>, %283, %cst_126 [1] : vector<8x128xf32> to vector<8xf32>
    %289 = vector.shape_cast %288 : vector<8xf32> to vector<8x1xf32>
    %cst_127 = arith.constant 1.280000e+02 : f32
    %290 = vector.broadcast %cst_127 : f32 to vector<8x1xf32>
    %291 = arith.divf %289, %290 : vector<8x1xf32>
    %292 = vector.broadcast %291 : vector<8x1xf32> to vector<8x128xf32>
    %293 = arith.subf %283, %292 : vector<8x128xf32>
    %294 = arith.mulf %293, %293 : vector<8x128xf32>
    %cst_128 = arith.constant dense<0.000000e+00> : vector<8xf32>
    %295 = vector.multi_reduction <add>, %294, %cst_128 [1] : vector<8x128xf32> to vector<8xf32>
    %296 = vector.shape_cast %295 : vector<8xf32> to vector<8x1xf32>
    %cst_129 = arith.constant 1.280000e+02 : f32
    %297 = vector.broadcast %cst_129 : f32 to vector<8x1xf32>
    %298 = arith.divf %296, %297 : vector<8x1xf32>
    %cst_130 = arith.constant 9.99999974E-6 : f32
    %299 = vector.broadcast %cst_130 : f32 to vector<8x1xf32>
    %300 = arith.addf %298, %299 : vector<8x1xf32>
    %301 = math.rsqrt %300 : vector<8x1xf32>
    %302 = vector.broadcast %301 : vector<8x1xf32> to vector<8x128xf32>
    %303 = arith.mulf %293, %302 : vector<8x128xf32>
    %304 = vector.broadcast %285 : vector<1x128xf32> to vector<8x128xf32>
    %305 = arith.mulf %303, %304 : vector<8x128xf32>
    %306 = vector.broadcast %287 : vector<1x128xf32> to vector<8x128xf32>
    %307 = arith.addf %305, %306 : vector<8x128xf32>
    %c1_131 = arith.constant 1 : index
    %c0_132 = arith.constant 0 : index
    %c0_133 = arith.constant 0 : index
    %308 = vector.load %arg13[%c1_131, %c0_132, %c0_133] : memref<4x128x128xbf16, #tpu.memory_space<vmem>>, vector<1x128x128xbf16>
    %309 = vector.shape_cast %308 : vector<1x128x128xbf16> to vector<128x128xbf16>
    %310 = arith.truncf %307 : vector<8x128xf32> to vector<8x128xbf16>
    %cst_134 = arith.constant dense<0.000000e+00> : vector<8x128xf32>
    %311 = tpu.matmul %310, %309, %cst_134 {dimension_numbers = #tpu.dot_dimension_numbers<[1], [0], [0], [1], [0, 0, 1, 1], [], []>} : vector<8x128xbf16>, vector<128x128xbf16>, vector<8x128xf32> -> vector<8x128xf32>
    %c1_135 = arith.constant 1 : index
    %c0_136 = arith.constant 0 : index
    %c0_137 = arith.constant 0 : index
    %312 = vector.load %arg14[%c1_135, %c0_136, %c0_137] : memref<4x1x128xf32, #tpu.memory_space<vmem>>, vector<1x1x128xf32>
    %313 = vector.shape_cast %312 : vector<1x1x128xf32> to vector<1x128xf32>
    %314 = vector.broadcast %313 : vector<1x128xf32> to vector<8x128xf32>
    %315 = arith.addf %311, %314 : vector<8x128xf32>
    %cst_138 = arith.constant 0.000000e+00 : f32
    %316 = vector.broadcast %cst_138 : f32 to vector<8x128xf32>
    %317 = arith.maximumf %315, %316 : vector<8x128xf32>
    %c1_139 = arith.constant 1 : index
    %c0_140 = arith.constant 0 : index
    %c0_141 = arith.constant 0 : index
    %318 = vector.load %arg15[%c1_139, %c0_140, %c0_141] : memref<4x128x128xbf16, #tpu.memory_space<vmem>>, vector<1x128x128xbf16>
    %319 = vector.shape_cast %318 : vector<1x128x128xbf16> to vector<128x128xbf16>
    %320 = arith.truncf %317 : vector<8x128xf32> to vector<8x128xbf16>
    %cst_142 = arith.constant dense<0.000000e+00> : vector<8x128xf32>
    %321 = tpu.matmul %320, %319, %cst_142 {dimension_numbers = #tpu.dot_dimension_numbers<[1], [0], [0], [1], [0, 0, 1, 1], [], []>} : vector<8x128xbf16>, vector<128x128xbf16>, vector<8x128xf32> -> vector<8x128xf32>
    %c1_143 = arith.constant 1 : index
    %c0_144 = arith.constant 0 : index
    %c0_145 = arith.constant 0 : index
    %322 = vector.load %arg16[%c1_143, %c0_144, %c0_145] : memref<4x1x128xf32, #tpu.memory_space<vmem>>, vector<1x1x128xf32>
    %323 = vector.shape_cast %322 : vector<1x1x128xf32> to vector<1x128xf32>
    %324 = vector.broadcast %323 : vector<1x128xf32> to vector<8x128xf32>
    %325 = arith.addf %321, %324 : vector<8x128xf32>
    %326 = arith.addf %307, %325 : vector<8x128xf32>
    %c1_146 = arith.constant 1 : index
    %c0_147 = arith.constant 0 : index
    %c0_148 = arith.constant 0 : index
    %327 = vector.load %arg17[%c1_146, %c0_147, %c0_148] : memref<4x1x128xf32, #tpu.memory_space<vmem>>, vector<1x1x128xf32>
    %328 = vector.shape_cast %327 : vector<1x1x128xf32> to vector<1x128xf32>
    %c1_149 = arith.constant 1 : index
    %c0_150 = arith.constant 0 : index
    %c0_151 = arith.constant 0 : index
    %329 = vector.load %arg18[%c1_149, %c0_150, %c0_151] : memref<4x1x128xf32, #tpu.memory_space<vmem>>, vector<1x1x128xf32>
    %330 = vector.shape_cast %329 : vector<1x1x128xf32> to vector<1x128xf32>
    %cst_152 = arith.constant dense<0.000000e+00> : vector<8xf32>
    %331 = vector.multi_reduction <add>, %326, %cst_152 [1] : vector<8x128xf32> to vector<8xf32>
    %332 = vector.shape_cast %331 : vector<8xf32> to vector<8x1xf32>
    %cst_153 = arith.constant 1.280000e+02 : f32
    %333 = vector.broadcast %cst_153 : f32 to vector<8x1xf32>
    %334 = arith.divf %332, %333 : vector<8x1xf32>
    %335 = vector.broadcast %334 : vector<8x1xf32> to vector<8x128xf32>
    %336 = arith.subf %326, %335 : vector<8x128xf32>
    %337 = arith.mulf %336, %336 : vector<8x128xf32>
    %cst_154 = arith.constant dense<0.000000e+00> : vector<8xf32>
    %338 = vector.multi_reduction <add>, %337, %cst_154 [1] : vector<8x128xf32> to vector<8xf32>
    %339 = vector.shape_cast %338 : vector<8xf32> to vector<8x1xf32>
    %cst_155 = arith.constant 1.280000e+02 : f32
    %340 = vector.broadcast %cst_155 : f32 to vector<8x1xf32>
    %341 = arith.divf %339, %340 : vector<8x1xf32>
    %cst_156 = arith.constant 9.99999974E-6 : f32
    %342 = vector.broadcast %cst_156 : f32 to vector<8x1xf32>
    %343 = arith.addf %341, %342 : vector<8x1xf32>
    %344 = math.rsqrt %343 : vector<8x1xf32>
    %345 = vector.broadcast %344 : vector<8x1xf32> to vector<8x128xf32>
    %346 = arith.mulf %336, %345 : vector<8x128xf32>
    %347 = vector.broadcast %328 : vector<1x128xf32> to vector<8x128xf32>
    %348 = arith.mulf %346, %347 : vector<8x128xf32>
    %349 = vector.broadcast %330 : vector<1x128xf32> to vector<8x128xf32>
    %350 = arith.addf %348, %349 : vector<8x128xf32>
    %c2 = arith.constant 2 : index
    %c0_157 = arith.constant 0 : index
    %c0_158 = arith.constant 0 : index
    %351 = vector.load %arg7[%c2, %c0_157, %c0_158] : memref<4x128x384xbf16, #tpu.memory_space<vmem>>, vector<1x128x384xbf16>
    %352 = vector.shape_cast %351 : vector<1x128x384xbf16> to vector<128x384xbf16>
    %353 = arith.truncf %350 : vector<8x128xf32> to vector<8x128xbf16>
    %cst_159 = arith.constant dense<0.000000e+00> : vector<8x384xf32>
    %354 = tpu.matmul %353, %352, %cst_159 {dimension_numbers = #tpu.dot_dimension_numbers<[1], [0], [0], [1], [0, 0, 1, 1], [], []>} : vector<8x128xbf16>, vector<128x384xbf16>, vector<8x384xf32> -> vector<8x384xf32>
    %c2_160 = arith.constant 2 : index
    %c0_161 = arith.constant 0 : index
    %c0_162 = arith.constant 0 : index
    %355 = vector.load %arg8[%c2_160, %c0_161, %c0_162] : memref<4x1x384xf32, #tpu.memory_space<vmem>>, vector<1x1x384xf32>
    %356 = vector.shape_cast %355 : vector<1x1x384xf32> to vector<1x384xf32>
    %357 = vector.broadcast %356 : vector<1x384xf32> to vector<8x384xf32>
    %358 = arith.addf %354, %357 : vector<8x384xf32>
    %359 = vector.extract_strided_slice %358 {offsets = [0, 0], sizes = [8, 32], strides = [1, 1]} : vector<8x384xf32> to vector<8x32xf32>
    %360 = vector.extract_strided_slice %358 {offsets = [0, 128], sizes = [8, 32], strides = [1, 1]} : vector<8x384xf32> to vector<8x32xf32>
    %361 = vector.extract_strided_slice %358 {offsets = [0, 256], sizes = [8, 32], strides = [1, 1]} : vector<8x384xf32> to vector<8x32xf32>
    %362 = arith.truncf %359 : vector<8x32xf32> to vector<8x32xbf16>
    %363 = arith.truncf %360 : vector<8x32xf32> to vector<8x32xbf16>
    %cst_163 = arith.constant dense<0.000000e+00> : vector<8x8xf32>
    %364 = tpu.matmul %362, %363, %cst_163 {dimension_numbers = #tpu.dot_dimension_numbers<[1], [1], [0], [0], [0, 0, 1, 0], [], []>} : vector<8x32xbf16>, vector<8x32xbf16>, vector<8x8xf32> -> vector<8x8xf32>
    %cst_164 = arith.constant 0.176776692 : f32
    %365 = vector.broadcast %cst_164 : f32 to vector<8x8xf32>
    %366 = arith.mulf %364, %365 : vector<8x8xf32>
    %cst_165 = arith.constant dense<0xFF800000> : vector<8xf32>
    %367 = vector.multi_reduction <maximumf>, %366, %cst_165 [1] : vector<8x8xf32> to vector<8xf32>
    %368 = vector.shape_cast %367 : vector<8xf32> to vector<8x1xf32>
    %369 = vector.broadcast %368 : vector<8x1xf32> to vector<8x8xf32>
    %370 = arith.subf %366, %369 : vector<8x8xf32>
    %371 = math.exp %370 : vector<8x8xf32>
    %cst_166 = arith.constant dense<0.000000e+00> : vector<8xf32>
    %372 = vector.multi_reduction <add>, %371, %cst_166 [1] : vector<8x8xf32> to vector<8xf32>
    %373 = vector.shape_cast %372 : vector<8xf32> to vector<8x1xf32>
    %374 = vector.broadcast %373 : vector<8x1xf32> to vector<8x8xf32>
    %375 = arith.divf %371, %374 : vector<8x8xf32>
    %376 = arith.truncf %375 : vector<8x8xf32> to vector<8x8xbf16>
    %377 = arith.truncf %361 : vector<8x32xf32> to vector<8x32xbf16>
    %cst_167 = arith.constant dense<0.000000e+00> : vector<8x32xf32>
    %378 = tpu.matmul %376, %377, %cst_167 {dimension_numbers = #tpu.dot_dimension_numbers<[1], [0], [0], [1], [0, 0, 1, 1], [], []>} : vector<8x8xbf16>, vector<8x32xbf16>, vector<8x32xf32> -> vector<8x32xf32>
    %379 = vector.extract_strided_slice %358 {offsets = [0, 32], sizes = [8, 32], strides = [1, 1]} : vector<8x384xf32> to vector<8x32xf32>
    %380 = vector.extract_strided_slice %358 {offsets = [0, 160], sizes = [8, 32], strides = [1, 1]} : vector<8x384xf32> to vector<8x32xf32>
    %381 = vector.extract_strided_slice %358 {offsets = [0, 288], sizes = [8, 32], strides = [1, 1]} : vector<8x384xf32> to vector<8x32xf32>
    %382 = arith.truncf %379 : vector<8x32xf32> to vector<8x32xbf16>
    %383 = arith.truncf %380 : vector<8x32xf32> to vector<8x32xbf16>
    %cst_168 = arith.constant dense<0.000000e+00> : vector<8x8xf32>
    %384 = tpu.matmul %382, %383, %cst_168 {dimension_numbers = #tpu.dot_dimension_numbers<[1], [1], [0], [0], [0, 0, 1, 0], [], []>} : vector<8x32xbf16>, vector<8x32xbf16>, vector<8x8xf32> -> vector<8x8xf32>
    %cst_169 = arith.constant 0.176776692 : f32
    %385 = vector.broadcast %cst_169 : f32 to vector<8x8xf32>
    %386 = arith.mulf %384, %385 : vector<8x8xf32>
    %cst_170 = arith.constant dense<0xFF800000> : vector<8xf32>
    %387 = vector.multi_reduction <maximumf>, %386, %cst_170 [1] : vector<8x8xf32> to vector<8xf32>
    %388 = vector.shape_cast %387 : vector<8xf32> to vector<8x1xf32>
    %389 = vector.broadcast %388 : vector<8x1xf32> to vector<8x8xf32>
    %390 = arith.subf %386, %389 : vector<8x8xf32>
    %391 = math.exp %390 : vector<8x8xf32>
    %cst_171 = arith.constant dense<0.000000e+00> : vector<8xf32>
    %392 = vector.multi_reduction <add>, %391, %cst_171 [1] : vector<8x8xf32> to vector<8xf32>
    %393 = vector.shape_cast %392 : vector<8xf32> to vector<8x1xf32>
    %394 = vector.broadcast %393 : vector<8x1xf32> to vector<8x8xf32>
    %395 = arith.divf %391, %394 : vector<8x8xf32>
    %396 = arith.truncf %395 : vector<8x8xf32> to vector<8x8xbf16>
    %397 = arith.truncf %381 : vector<8x32xf32> to vector<8x32xbf16>
    %cst_172 = arith.constant dense<0.000000e+00> : vector<8x32xf32>
    %398 = tpu.matmul %396, %397, %cst_172 {dimension_numbers = #tpu.dot_dimension_numbers<[1], [0], [0], [1], [0, 0, 1, 1], [], []>} : vector<8x8xbf16>, vector<8x32xbf16>, vector<8x32xf32> -> vector<8x32xf32>
    %399 = vector.extract_strided_slice %358 {offsets = [0, 64], sizes = [8, 32], strides = [1, 1]} : vector<8x384xf32> to vector<8x32xf32>
    %400 = vector.extract_strided_slice %358 {offsets = [0, 192], sizes = [8, 32], strides = [1, 1]} : vector<8x384xf32> to vector<8x32xf32>
    %401 = vector.extract_strided_slice %358 {offsets = [0, 320], sizes = [8, 32], strides = [1, 1]} : vector<8x384xf32> to vector<8x32xf32>
    %402 = arith.truncf %399 : vector<8x32xf32> to vector<8x32xbf16>
    %403 = arith.truncf %400 : vector<8x32xf32> to vector<8x32xbf16>
    %cst_173 = arith.constant dense<0.000000e+00> : vector<8x8xf32>
    %404 = tpu.matmul %402, %403, %cst_173 {dimension_numbers = #tpu.dot_dimension_numbers<[1], [1], [0], [0], [0, 0, 1, 0], [], []>} : vector<8x32xbf16>, vector<8x32xbf16>, vector<8x8xf32> -> vector<8x8xf32>
    %cst_174 = arith.constant 0.176776692 : f32
    %405 = vector.broadcast %cst_174 : f32 to vector<8x8xf32>
    %406 = arith.mulf %404, %405 : vector<8x8xf32>
    %cst_175 = arith.constant dense<0xFF800000> : vector<8xf32>
    %407 = vector.multi_reduction <maximumf>, %406, %cst_175 [1] : vector<8x8xf32> to vector<8xf32>
    %408 = vector.shape_cast %407 : vector<8xf32> to vector<8x1xf32>
    %409 = vector.broadcast %408 : vector<8x1xf32> to vector<8x8xf32>
    %410 = arith.subf %406, %409 : vector<8x8xf32>
    %411 = math.exp %410 : vector<8x8xf32>
    %cst_176 = arith.constant dense<0.000000e+00> : vector<8xf32>
    %412 = vector.multi_reduction <add>, %411, %cst_176 [1] : vector<8x8xf32> to vector<8xf32>
    %413 = vector.shape_cast %412 : vector<8xf32> to vector<8x1xf32>
    %414 = vector.broadcast %413 : vector<8x1xf32> to vector<8x8xf32>
    %415 = arith.divf %411, %414 : vector<8x8xf32>
    %416 = arith.truncf %415 : vector<8x8xf32> to vector<8x8xbf16>
    %417 = arith.truncf %401 : vector<8x32xf32> to vector<8x32xbf16>
    %cst_177 = arith.constant dense<0.000000e+00> : vector<8x32xf32>
    %418 = tpu.matmul %416, %417, %cst_177 {dimension_numbers = #tpu.dot_dimension_numbers<[1], [0], [0], [1], [0, 0, 1, 1], [], []>} : vector<8x8xbf16>, vector<8x32xbf16>, vector<8x32xf32> -> vector<8x32xf32>
    %419 = vector.extract_strided_slice %358 {offsets = [0, 96], sizes = [8, 32], strides = [1, 1]} : vector<8x384xf32> to vector<8x32xf32>
    %420 = vector.extract_strided_slice %358 {offsets = [0, 224], sizes = [8, 32], strides = [1, 1]} : vector<8x384xf32> to vector<8x32xf32>
    %421 = vector.extract_strided_slice %358 {offsets = [0, 352], sizes = [8, 32], strides = [1, 1]} : vector<8x384xf32> to vector<8x32xf32>
    %422 = arith.truncf %419 : vector<8x32xf32> to vector<8x32xbf16>
    %423 = arith.truncf %420 : vector<8x32xf32> to vector<8x32xbf16>
    %cst_178 = arith.constant dense<0.000000e+00> : vector<8x8xf32>
    %424 = tpu.matmul %422, %423, %cst_178 {dimension_numbers = #tpu.dot_dimension_numbers<[1], [1], [0], [0], [0, 0, 1, 0], [], []>} : vector<8x32xbf16>, vector<8x32xbf16>, vector<8x8xf32> -> vector<8x8xf32>
    %cst_179 = arith.constant 0.176776692 : f32
    %425 = vector.broadcast %cst_179 : f32 to vector<8x8xf32>
    %426 = arith.mulf %424, %425 : vector<8x8xf32>
    %cst_180 = arith.constant dense<0xFF800000> : vector<8xf32>
    %427 = vector.multi_reduction <maximumf>, %426, %cst_180 [1] : vector<8x8xf32> to vector<8xf32>
    %428 = vector.shape_cast %427 : vector<8xf32> to vector<8x1xf32>
    %429 = vector.broadcast %428 : vector<8x1xf32> to vector<8x8xf32>
    %430 = arith.subf %426, %429 : vector<8x8xf32>
    %431 = math.exp %430 : vector<8x8xf32>
    %cst_181 = arith.constant dense<0.000000e+00> : vector<8xf32>
    %432 = vector.multi_reduction <add>, %431, %cst_181 [1] : vector<8x8xf32> to vector<8xf32>
    %433 = vector.shape_cast %432 : vector<8xf32> to vector<8x1xf32>
    %434 = vector.broadcast %433 : vector<8x1xf32> to vector<8x8xf32>
    %435 = arith.divf %431, %434 : vector<8x8xf32>
    %436 = arith.truncf %435 : vector<8x8xf32> to vector<8x8xbf16>
    %437 = arith.truncf %421 : vector<8x32xf32> to vector<8x32xbf16>
    %cst_182 = arith.constant dense<0.000000e+00> : vector<8x32xf32>
    %438 = tpu.matmul %436, %437, %cst_182 {dimension_numbers = #tpu.dot_dimension_numbers<[1], [0], [0], [1], [0, 0, 1, 1], [], []>} : vector<8x8xbf16>, vector<8x32xbf16>, vector<8x32xf32> -> vector<8x32xf32>
    %439 = tpu.concatenate %378, %398, %418, %438 in 1 : vector<8x32xf32>, vector<8x32xf32>, vector<8x32xf32>, vector<8x32xf32> -> vector<8x128xf32>
    %c2_183 = arith.constant 2 : index
    %c0_184 = arith.constant 0 : index
    %c0_185 = arith.constant 0 : index
    %440 = vector.load %arg9[%c2_183, %c0_184, %c0_185] : memref<4x128x128xbf16, #tpu.memory_space<vmem>>, vector<1x128x128xbf16>
    %441 = vector.shape_cast %440 : vector<1x128x128xbf16> to vector<128x128xbf16>
    %442 = arith.truncf %439 : vector<8x128xf32> to vector<8x128xbf16>
    %cst_186 = arith.constant dense<0.000000e+00> : vector<8x128xf32>
    %443 = tpu.matmul %442, %441, %cst_186 {dimension_numbers = #tpu.dot_dimension_numbers<[1], [0], [0], [1], [0, 0, 1, 1], [], []>} : vector<8x128xbf16>, vector<128x128xbf16>, vector<8x128xf32> -> vector<8x128xf32>
    %c2_187 = arith.constant 2 : index
    %c0_188 = arith.constant 0 : index
    %c0_189 = arith.constant 0 : index
    %444 = vector.load %arg10[%c2_187, %c0_188, %c0_189] : memref<4x1x128xf32, #tpu.memory_space<vmem>>, vector<1x1x128xf32>
    %445 = vector.shape_cast %444 : vector<1x1x128xf32> to vector<1x128xf32>
    %446 = vector.broadcast %445 : vector<1x128xf32> to vector<8x128xf32>
    %447 = arith.addf %443, %446 : vector<8x128xf32>
    %448 = arith.addf %350, %447 : vector<8x128xf32>
    %c2_190 = arith.constant 2 : index
    %c0_191 = arith.constant 0 : index
    %c0_192 = arith.constant 0 : index
    %449 = vector.load %arg11[%c2_190, %c0_191, %c0_192] : memref<4x1x128xf32, #tpu.memory_space<vmem>>, vector<1x1x128xf32>
    %450 = vector.shape_cast %449 : vector<1x1x128xf32> to vector<1x128xf32>
    %c2_193 = arith.constant 2 : index
    %c0_194 = arith.constant 0 : index
    %c0_195 = arith.constant 0 : index
    %451 = vector.load %arg12[%c2_193, %c0_194, %c0_195] : memref<4x1x128xf32, #tpu.memory_space<vmem>>, vector<1x1x128xf32>
    %452 = vector.shape_cast %451 : vector<1x1x128xf32> to vector<1x128xf32>
    %cst_196 = arith.constant dense<0.000000e+00> : vector<8xf32>
    %453 = vector.multi_reduction <add>, %448, %cst_196 [1] : vector<8x128xf32> to vector<8xf32>
    %454 = vector.shape_cast %453 : vector<8xf32> to vector<8x1xf32>
    %cst_197 = arith.constant 1.280000e+02 : f32
    %455 = vector.broadcast %cst_197 : f32 to vector<8x1xf32>
    %456 = arith.divf %454, %455 : vector<8x1xf32>
    %457 = vector.broadcast %456 : vector<8x1xf32> to vector<8x128xf32>
    %458 = arith.subf %448, %457 : vector<8x128xf32>
    %459 = arith.mulf %458, %458 : vector<8x128xf32>
    %cst_198 = arith.constant dense<0.000000e+00> : vector<8xf32>
    %460 = vector.multi_reduction <add>, %459, %cst_198 [1] : vector<8x128xf32> to vector<8xf32>
    %461 = vector.shape_cast %460 : vector<8xf32> to vector<8x1xf32>
    %cst_199 = arith.constant 1.280000e+02 : f32
    %462 = vector.broadcast %cst_199 : f32 to vector<8x1xf32>
    %463 = arith.divf %461, %462 : vector<8x1xf32>
    %cst_200 = arith.constant 9.99999974E-6 : f32
    %464 = vector.broadcast %cst_200 : f32 to vector<8x1xf32>
    %465 = arith.addf %463, %464 : vector<8x1xf32>
    %466 = math.rsqrt %465 : vector<8x1xf32>
    %467 = vector.broadcast %466 : vector<8x1xf32> to vector<8x128xf32>
    %468 = arith.mulf %458, %467 : vector<8x128xf32>
    %469 = vector.broadcast %450 : vector<1x128xf32> to vector<8x128xf32>
    %470 = arith.mulf %468, %469 : vector<8x128xf32>
    %471 = vector.broadcast %452 : vector<1x128xf32> to vector<8x128xf32>
    %472 = arith.addf %470, %471 : vector<8x128xf32>
    %c2_201 = arith.constant 2 : index
    %c0_202 = arith.constant 0 : index
    %c0_203 = arith.constant 0 : index
    %473 = vector.load %arg13[%c2_201, %c0_202, %c0_203] : memref<4x128x128xbf16, #tpu.memory_space<vmem>>, vector<1x128x128xbf16>
    %474 = vector.shape_cast %473 : vector<1x128x128xbf16> to vector<128x128xbf16>
    %475 = arith.truncf %472 : vector<8x128xf32> to vector<8x128xbf16>
    %cst_204 = arith.constant dense<0.000000e+00> : vector<8x128xf32>
    %476 = tpu.matmul %475, %474, %cst_204 {dimension_numbers = #tpu.dot_dimension_numbers<[1], [0], [0], [1], [0, 0, 1, 1], [], []>} : vector<8x128xbf16>, vector<128x128xbf16>, vector<8x128xf32> -> vector<8x128xf32>
    %c2_205 = arith.constant 2 : index
    %c0_206 = arith.constant 0 : index
    %c0_207 = arith.constant 0 : index
    %477 = vector.load %arg14[%c2_205, %c0_206, %c0_207] : memref<4x1x128xf32, #tpu.memory_space<vmem>>, vector<1x1x128xf32>
    %478 = vector.shape_cast %477 : vector<1x1x128xf32> to vector<1x128xf32>
    %479 = vector.broadcast %478 : vector<1x128xf32> to vector<8x128xf32>
    %480 = arith.addf %476, %479 : vector<8x128xf32>
    %cst_208 = arith.constant 0.000000e+00 : f32
    %481 = vector.broadcast %cst_208 : f32 to vector<8x128xf32>
    %482 = arith.maximumf %480, %481 : vector<8x128xf32>
    %c2_209 = arith.constant 2 : index
    %c0_210 = arith.constant 0 : index
    %c0_211 = arith.constant 0 : index
    %483 = vector.load %arg15[%c2_209, %c0_210, %c0_211] : memref<4x128x128xbf16, #tpu.memory_space<vmem>>, vector<1x128x128xbf16>
    %484 = vector.shape_cast %483 : vector<1x128x128xbf16> to vector<128x128xbf16>
    %485 = arith.truncf %482 : vector<8x128xf32> to vector<8x128xbf16>
    %cst_212 = arith.constant dense<0.000000e+00> : vector<8x128xf32>
    %486 = tpu.matmul %485, %484, %cst_212 {dimension_numbers = #tpu.dot_dimension_numbers<[1], [0], [0], [1], [0, 0, 1, 1], [], []>} : vector<8x128xbf16>, vector<128x128xbf16>, vector<8x128xf32> -> vector<8x128xf32>
    %c2_213 = arith.constant 2 : index
    %c0_214 = arith.constant 0 : index
    %c0_215 = arith.constant 0 : index
    %487 = vector.load %arg16[%c2_213, %c0_214, %c0_215] : memref<4x1x128xf32, #tpu.memory_space<vmem>>, vector<1x1x128xf32>
    %488 = vector.shape_cast %487 : vector<1x1x128xf32> to vector<1x128xf32>
    %489 = vector.broadcast %488 : vector<1x128xf32> to vector<8x128xf32>
    %490 = arith.addf %486, %489 : vector<8x128xf32>
    %491 = arith.addf %472, %490 : vector<8x128xf32>
    %c2_216 = arith.constant 2 : index
    %c0_217 = arith.constant 0 : index
    %c0_218 = arith.constant 0 : index
    %492 = vector.load %arg17[%c2_216, %c0_217, %c0_218] : memref<4x1x128xf32, #tpu.memory_space<vmem>>, vector<1x1x128xf32>
    %493 = vector.shape_cast %492 : vector<1x1x128xf32> to vector<1x128xf32>
    %c2_219 = arith.constant 2 : index
    %c0_220 = arith.constant 0 : index
    %c0_221 = arith.constant 0 : index
    %494 = vector.load %arg18[%c2_219, %c0_220, %c0_221] : memref<4x1x128xf32, #tpu.memory_space<vmem>>, vector<1x1x128xf32>
    %495 = vector.shape_cast %494 : vector<1x1x128xf32> to vector<1x128xf32>
    %cst_222 = arith.constant dense<0.000000e+00> : vector<8xf32>
    %496 = vector.multi_reduction <add>, %491, %cst_222 [1] : vector<8x128xf32> to vector<8xf32>
    %497 = vector.shape_cast %496 : vector<8xf32> to vector<8x1xf32>
    %cst_223 = arith.constant 1.280000e+02 : f32
    %498 = vector.broadcast %cst_223 : f32 to vector<8x1xf32>
    %499 = arith.divf %497, %498 : vector<8x1xf32>
    %500 = vector.broadcast %499 : vector<8x1xf32> to vector<8x128xf32>
    %501 = arith.subf %491, %500 : vector<8x128xf32>
    %502 = arith.mulf %501, %501 : vector<8x128xf32>
    %cst_224 = arith.constant dense<0.000000e+00> : vector<8xf32>
    %503 = vector.multi_reduction <add>, %502, %cst_224 [1] : vector<8x128xf32> to vector<8xf32>
    %504 = vector.shape_cast %503 : vector<8xf32> to vector<8x1xf32>
    %cst_225 = arith.constant 1.280000e+02 : f32
    %505 = vector.broadcast %cst_225 : f32 to vector<8x1xf32>
    %506 = arith.divf %504, %505 : vector<8x1xf32>
    %cst_226 = arith.constant 9.99999974E-6 : f32
    %507 = vector.broadcast %cst_226 : f32 to vector<8x1xf32>
    %508 = arith.addf %506, %507 : vector<8x1xf32>
    %509 = math.rsqrt %508 : vector<8x1xf32>
    %510 = vector.broadcast %509 : vector<8x1xf32> to vector<8x128xf32>
    %511 = arith.mulf %501, %510 : vector<8x128xf32>
    %512 = vector.broadcast %493 : vector<1x128xf32> to vector<8x128xf32>
    %513 = arith.mulf %511, %512 : vector<8x128xf32>
    %514 = vector.broadcast %495 : vector<1x128xf32> to vector<8x128xf32>
    %515 = arith.addf %513, %514 : vector<8x128xf32>
    %c3 = arith.constant 3 : index
    %c0_227 = arith.constant 0 : index
    %c0_228 = arith.constant 0 : index
    %516 = vector.load %arg7[%c3, %c0_227, %c0_228] : memref<4x128x384xbf16, #tpu.memory_space<vmem>>, vector<1x128x384xbf16>
    %517 = vector.shape_cast %516 : vector<1x128x384xbf16> to vector<128x384xbf16>
    %518 = arith.truncf %515 : vector<8x128xf32> to vector<8x128xbf16>
    %cst_229 = arith.constant dense<0.000000e+00> : vector<8x384xf32>
    %519 = tpu.matmul %518, %517, %cst_229 {dimension_numbers = #tpu.dot_dimension_numbers<[1], [0], [0], [1], [0, 0, 1, 1], [], []>} : vector<8x128xbf16>, vector<128x384xbf16>, vector<8x384xf32> -> vector<8x384xf32>
    %c3_230 = arith.constant 3 : index
    %c0_231 = arith.constant 0 : index
    %c0_232 = arith.constant 0 : index
    %520 = vector.load %arg8[%c3_230, %c0_231, %c0_232] : memref<4x1x384xf32, #tpu.memory_space<vmem>>, vector<1x1x384xf32>
    %521 = vector.shape_cast %520 : vector<1x1x384xf32> to vector<1x384xf32>
    %522 = vector.broadcast %521 : vector<1x384xf32> to vector<8x384xf32>
    %523 = arith.addf %519, %522 : vector<8x384xf32>
    %524 = vector.extract_strided_slice %523 {offsets = [0, 0], sizes = [8, 32], strides = [1, 1]} : vector<8x384xf32> to vector<8x32xf32>
    %525 = vector.extract_strided_slice %523 {offsets = [0, 128], sizes = [8, 32], strides = [1, 1]} : vector<8x384xf32> to vector<8x32xf32>
    %526 = vector.extract_strided_slice %523 {offsets = [0, 256], sizes = [8, 32], strides = [1, 1]} : vector<8x384xf32> to vector<8x32xf32>
    %527 = arith.truncf %524 : vector<8x32xf32> to vector<8x32xbf16>
    %528 = arith.truncf %525 : vector<8x32xf32> to vector<8x32xbf16>
    %cst_233 = arith.constant dense<0.000000e+00> : vector<8x8xf32>
    %529 = tpu.matmul %527, %528, %cst_233 {dimension_numbers = #tpu.dot_dimension_numbers<[1], [1], [0], [0], [0, 0, 1, 0], [], []>} : vector<8x32xbf16>, vector<8x32xbf16>, vector<8x8xf32> -> vector<8x8xf32>
    %cst_234 = arith.constant 0.176776692 : f32
    %530 = vector.broadcast %cst_234 : f32 to vector<8x8xf32>
    %531 = arith.mulf %529, %530 : vector<8x8xf32>
    %cst_235 = arith.constant dense<0xFF800000> : vector<8xf32>
    %532 = vector.multi_reduction <maximumf>, %531, %cst_235 [1] : vector<8x8xf32> to vector<8xf32>
    %533 = vector.shape_cast %532 : vector<8xf32> to vector<8x1xf32>
    %534 = vector.broadcast %533 : vector<8x1xf32> to vector<8x8xf32>
    %535 = arith.subf %531, %534 : vector<8x8xf32>
    %536 = math.exp %535 : vector<8x8xf32>
    %cst_236 = arith.constant dense<0.000000e+00> : vector<8xf32>
    %537 = vector.multi_reduction <add>, %536, %cst_236 [1] : vector<8x8xf32> to vector<8xf32>
    %538 = vector.shape_cast %537 : vector<8xf32> to vector<8x1xf32>
    %539 = vector.broadcast %538 : vector<8x1xf32> to vector<8x8xf32>
    %540 = arith.divf %536, %539 : vector<8x8xf32>
    %541 = arith.truncf %540 : vector<8x8xf32> to vector<8x8xbf16>
    %542 = arith.truncf %526 : vector<8x32xf32> to vector<8x32xbf16>
    %cst_237 = arith.constant dense<0.000000e+00> : vector<8x32xf32>
    %543 = tpu.matmul %541, %542, %cst_237 {dimension_numbers = #tpu.dot_dimension_numbers<[1], [0], [0], [1], [0, 0, 1, 1], [], []>} : vector<8x8xbf16>, vector<8x32xbf16>, vector<8x32xf32> -> vector<8x32xf32>
    %544 = vector.extract_strided_slice %523 {offsets = [0, 32], sizes = [8, 32], strides = [1, 1]} : vector<8x384xf32> to vector<8x32xf32>
    %545 = vector.extract_strided_slice %523 {offsets = [0, 160], sizes = [8, 32], strides = [1, 1]} : vector<8x384xf32> to vector<8x32xf32>
    %546 = vector.extract_strided_slice %523 {offsets = [0, 288], sizes = [8, 32], strides = [1, 1]} : vector<8x384xf32> to vector<8x32xf32>
    %547 = arith.truncf %544 : vector<8x32xf32> to vector<8x32xbf16>
    %548 = arith.truncf %545 : vector<8x32xf32> to vector<8x32xbf16>
    %cst_238 = arith.constant dense<0.000000e+00> : vector<8x8xf32>
    %549 = tpu.matmul %547, %548, %cst_238 {dimension_numbers = #tpu.dot_dimension_numbers<[1], [1], [0], [0], [0, 0, 1, 0], [], []>} : vector<8x32xbf16>, vector<8x32xbf16>, vector<8x8xf32> -> vector<8x8xf32>
    %cst_239 = arith.constant 0.176776692 : f32
    %550 = vector.broadcast %cst_239 : f32 to vector<8x8xf32>
    %551 = arith.mulf %549, %550 : vector<8x8xf32>
    %cst_240 = arith.constant dense<0xFF800000> : vector<8xf32>
    %552 = vector.multi_reduction <maximumf>, %551, %cst_240 [1] : vector<8x8xf32> to vector<8xf32>
    %553 = vector.shape_cast %552 : vector<8xf32> to vector<8x1xf32>
    %554 = vector.broadcast %553 : vector<8x1xf32> to vector<8x8xf32>
    %555 = arith.subf %551, %554 : vector<8x8xf32>
    %556 = math.exp %555 : vector<8x8xf32>
    %cst_241 = arith.constant dense<0.000000e+00> : vector<8xf32>
    %557 = vector.multi_reduction <add>, %556, %cst_241 [1] : vector<8x8xf32> to vector<8xf32>
    %558 = vector.shape_cast %557 : vector<8xf32> to vector<8x1xf32>
    %559 = vector.broadcast %558 : vector<8x1xf32> to vector<8x8xf32>
    %560 = arith.divf %556, %559 : vector<8x8xf32>
    %561 = arith.truncf %560 : vector<8x8xf32> to vector<8x8xbf16>
    %562 = arith.truncf %546 : vector<8x32xf32> to vector<8x32xbf16>
    %cst_242 = arith.constant dense<0.000000e+00> : vector<8x32xf32>
    %563 = tpu.matmul %561, %562, %cst_242 {dimension_numbers = #tpu.dot_dimension_numbers<[1], [0], [0], [1], [0, 0, 1, 1], [], []>} : vector<8x8xbf16>, vector<8x32xbf16>, vector<8x32xf32> -> vector<8x32xf32>
    %564 = vector.extract_strided_slice %523 {offsets = [0, 64], sizes = [8, 32], strides = [1, 1]} : vector<8x384xf32> to vector<8x32xf32>
    %565 = vector.extract_strided_slice %523 {offsets = [0, 192], sizes = [8, 32], strides = [1, 1]} : vector<8x384xf32> to vector<8x32xf32>
    %566 = vector.extract_strided_slice %523 {offsets = [0, 320], sizes = [8, 32], strides = [1, 1]} : vector<8x384xf32> to vector<8x32xf32>
    %567 = arith.truncf %564 : vector<8x32xf32> to vector<8x32xbf16>
    %568 = arith.truncf %565 : vector<8x32xf32> to vector<8x32xbf16>
    %cst_243 = arith.constant dense<0.000000e+00> : vector<8x8xf32>
    %569 = tpu.matmul %567, %568, %cst_243 {dimension_numbers = #tpu.dot_dimension_numbers<[1], [1], [0], [0], [0, 0, 1, 0], [], []>} : vector<8x32xbf16>, vector<8x32xbf16>, vector<8x8xf32> -> vector<8x8xf32>
    %cst_244 = arith.constant 0.176776692 : f32
    %570 = vector.broadcast %cst_244 : f32 to vector<8x8xf32>
    %571 = arith.mulf %569, %570 : vector<8x8xf32>
    %cst_245 = arith.constant dense<0xFF800000> : vector<8xf32>
    %572 = vector.multi_reduction <maximumf>, %571, %cst_245 [1] : vector<8x8xf32> to vector<8xf32>
    %573 = vector.shape_cast %572 : vector<8xf32> to vector<8x1xf32>
    %574 = vector.broadcast %573 : vector<8x1xf32> to vector<8x8xf32>
    %575 = arith.subf %571, %574 : vector<8x8xf32>
    %576 = math.exp %575 : vector<8x8xf32>
    %cst_246 = arith.constant dense<0.000000e+00> : vector<8xf32>
    %577 = vector.multi_reduction <add>, %576, %cst_246 [1] : vector<8x8xf32> to vector<8xf32>
    %578 = vector.shape_cast %577 : vector<8xf32> to vector<8x1xf32>
    %579 = vector.broadcast %578 : vector<8x1xf32> to vector<8x8xf32>
    %580 = arith.divf %576, %579 : vector<8x8xf32>
    %581 = arith.truncf %580 : vector<8x8xf32> to vector<8x8xbf16>
    %582 = arith.truncf %566 : vector<8x32xf32> to vector<8x32xbf16>
    %cst_247 = arith.constant dense<0.000000e+00> : vector<8x32xf32>
    %583 = tpu.matmul %581, %582, %cst_247 {dimension_numbers = #tpu.dot_dimension_numbers<[1], [0], [0], [1], [0, 0, 1, 1], [], []>} : vector<8x8xbf16>, vector<8x32xbf16>, vector<8x32xf32> -> vector<8x32xf32>
    %584 = vector.extract_strided_slice %523 {offsets = [0, 96], sizes = [8, 32], strides = [1, 1]} : vector<8x384xf32> to vector<8x32xf32>
    %585 = vector.extract_strided_slice %523 {offsets = [0, 224], sizes = [8, 32], strides = [1, 1]} : vector<8x384xf32> to vector<8x32xf32>
    %586 = vector.extract_strided_slice %523 {offsets = [0, 352], sizes = [8, 32], strides = [1, 1]} : vector<8x384xf32> to vector<8x32xf32>
    %587 = arith.truncf %584 : vector<8x32xf32> to vector<8x32xbf16>
    %588 = arith.truncf %585 : vector<8x32xf32> to vector<8x32xbf16>
    %cst_248 = arith.constant dense<0.000000e+00> : vector<8x8xf32>
    %589 = tpu.matmul %587, %588, %cst_248 {dimension_numbers = #tpu.dot_dimension_numbers<[1], [1], [0], [0], [0, 0, 1, 0], [], []>} : vector<8x32xbf16>, vector<8x32xbf16>, vector<8x8xf32> -> vector<8x8xf32>
    %cst_249 = arith.constant 0.176776692 : f32
    %590 = vector.broadcast %cst_249 : f32 to vector<8x8xf32>
    %591 = arith.mulf %589, %590 : vector<8x8xf32>
    %cst_250 = arith.constant dense<0xFF800000> : vector<8xf32>
    %592 = vector.multi_reduction <maximumf>, %591, %cst_250 [1] : vector<8x8xf32> to vector<8xf32>
    %593 = vector.shape_cast %592 : vector<8xf32> to vector<8x1xf32>
    %594 = vector.broadcast %593 : vector<8x1xf32> to vector<8x8xf32>
    %595 = arith.subf %591, %594 : vector<8x8xf32>
    %596 = math.exp %595 : vector<8x8xf32>
    %cst_251 = arith.constant dense<0.000000e+00> : vector<8xf32>
    %597 = vector.multi_reduction <add>, %596, %cst_251 [1] : vector<8x8xf32> to vector<8xf32>
    %598 = vector.shape_cast %597 : vector<8xf32> to vector<8x1xf32>
    %599 = vector.broadcast %598 : vector<8x1xf32> to vector<8x8xf32>
    %600 = arith.divf %596, %599 : vector<8x8xf32>
    %601 = arith.truncf %600 : vector<8x8xf32> to vector<8x8xbf16>
    %602 = arith.truncf %586 : vector<8x32xf32> to vector<8x32xbf16>
    %cst_252 = arith.constant dense<0.000000e+00> : vector<8x32xf32>
    %603 = tpu.matmul %601, %602, %cst_252 {dimension_numbers = #tpu.dot_dimension_numbers<[1], [0], [0], [1], [0, 0, 1, 1], [], []>} : vector<8x8xbf16>, vector<8x32xbf16>, vector<8x32xf32> -> vector<8x32xf32>
    %604 = tpu.concatenate %543, %563, %583, %603 in 1 : vector<8x32xf32>, vector<8x32xf32>, vector<8x32xf32>, vector<8x32xf32> -> vector<8x128xf32>
    %c3_253 = arith.constant 3 : index
    %c0_254 = arith.constant 0 : index
    %c0_255 = arith.constant 0 : index
    %605 = vector.load %arg9[%c3_253, %c0_254, %c0_255] : memref<4x128x128xbf16, #tpu.memory_space<vmem>>, vector<1x128x128xbf16>
    %606 = vector.shape_cast %605 : vector<1x128x128xbf16> to vector<128x128xbf16>
    %607 = arith.truncf %604 : vector<8x128xf32> to vector<8x128xbf16>
    %cst_256 = arith.constant dense<0.000000e+00> : vector<8x128xf32>
    %608 = tpu.matmul %607, %606, %cst_256 {dimension_numbers = #tpu.dot_dimension_numbers<[1], [0], [0], [1], [0, 0, 1, 1], [], []>} : vector<8x128xbf16>, vector<128x128xbf16>, vector<8x128xf32> -> vector<8x128xf32>
    %c3_257 = arith.constant 3 : index
    %c0_258 = arith.constant 0 : index
    %c0_259 = arith.constant 0 : index
    %609 = vector.load %arg10[%c3_257, %c0_258, %c0_259] : memref<4x1x128xf32, #tpu.memory_space<vmem>>, vector<1x1x128xf32>
    %610 = vector.shape_cast %609 : vector<1x1x128xf32> to vector<1x128xf32>
    %611 = vector.broadcast %610 : vector<1x128xf32> to vector<8x128xf32>
    %612 = arith.addf %608, %611 : vector<8x128xf32>
    %613 = arith.addf %515, %612 : vector<8x128xf32>
    %c3_260 = arith.constant 3 : index
    %c0_261 = arith.constant 0 : index
    %c0_262 = arith.constant 0 : index
    %614 = vector.load %arg11[%c3_260, %c0_261, %c0_262] : memref<4x1x128xf32, #tpu.memory_space<vmem>>, vector<1x1x128xf32>
    %615 = vector.shape_cast %614 : vector<1x1x128xf32> to vector<1x128xf32>
    %c3_263 = arith.constant 3 : index
    %c0_264 = arith.constant 0 : index
    %c0_265 = arith.constant 0 : index
    %616 = vector.load %arg12[%c3_263, %c0_264, %c0_265] : memref<4x1x128xf32, #tpu.memory_space<vmem>>, vector<1x1x128xf32>
    %617 = vector.shape_cast %616 : vector<1x1x128xf32> to vector<1x128xf32>
    %cst_266 = arith.constant dense<0.000000e+00> : vector<8xf32>
    %618 = vector.multi_reduction <add>, %613, %cst_266 [1] : vector<8x128xf32> to vector<8xf32>
    %619 = vector.shape_cast %618 : vector<8xf32> to vector<8x1xf32>
    %cst_267 = arith.constant 1.280000e+02 : f32
    %620 = vector.broadcast %cst_267 : f32 to vector<8x1xf32>
    %621 = arith.divf %619, %620 : vector<8x1xf32>
    %622 = vector.broadcast %621 : vector<8x1xf32> to vector<8x128xf32>
    %623 = arith.subf %613, %622 : vector<8x128xf32>
    %624 = arith.mulf %623, %623 : vector<8x128xf32>
    %cst_268 = arith.constant dense<0.000000e+00> : vector<8xf32>
    %625 = vector.multi_reduction <add>, %624, %cst_268 [1] : vector<8x128xf32> to vector<8xf32>
    %626 = vector.shape_cast %625 : vector<8xf32> to vector<8x1xf32>
    %cst_269 = arith.constant 1.280000e+02 : f32
    %627 = vector.broadcast %cst_269 : f32 to vector<8x1xf32>
    %628 = arith.divf %626, %627 : vector<8x1xf32>
    %cst_270 = arith.constant 9.99999974E-6 : f32
    %629 = vector.broadcast %cst_270 : f32 to vector<8x1xf32>
    %630 = arith.addf %628, %629 : vector<8x1xf32>
    %631 = math.rsqrt %630 : vector<8x1xf32>
    %632 = vector.broadcast %631 : vector<8x1xf32> to vector<8x128xf32>
    %633 = arith.mulf %623, %632 : vector<8x128xf32>
    %634 = vector.broadcast %615 : vector<1x128xf32> to vector<8x128xf32>
    %635 = arith.mulf %633, %634 : vector<8x128xf32>
    %636 = vector.broadcast %617 : vector<1x128xf32> to vector<8x128xf32>
    %637 = arith.addf %635, %636 : vector<8x128xf32>
    %c3_271 = arith.constant 3 : index
    %c0_272 = arith.constant 0 : index
    %c0_273 = arith.constant 0 : index
    %638 = vector.load %arg13[%c3_271, %c0_272, %c0_273] : memref<4x128x128xbf16, #tpu.memory_space<vmem>>, vector<1x128x128xbf16>
    %639 = vector.shape_cast %638 : vector<1x128x128xbf16> to vector<128x128xbf16>
    %640 = arith.truncf %637 : vector<8x128xf32> to vector<8x128xbf16>
    %cst_274 = arith.constant dense<0.000000e+00> : vector<8x128xf32>
    %641 = tpu.matmul %640, %639, %cst_274 {dimension_numbers = #tpu.dot_dimension_numbers<[1], [0], [0], [1], [0, 0, 1, 1], [], []>} : vector<8x128xbf16>, vector<128x128xbf16>, vector<8x128xf32> -> vector<8x128xf32>
    %c3_275 = arith.constant 3 : index
    %c0_276 = arith.constant 0 : index
    %c0_277 = arith.constant 0 : index
    %642 = vector.load %arg14[%c3_275, %c0_276, %c0_277] : memref<4x1x128xf32, #tpu.memory_space<vmem>>, vector<1x1x128xf32>
    %643 = vector.shape_cast %642 : vector<1x1x128xf32> to vector<1x128xf32>
    %644 = vector.broadcast %643 : vector<1x128xf32> to vector<8x128xf32>
    %645 = arith.addf %641, %644 : vector<8x128xf32>
    %cst_278 = arith.constant 0.000000e+00 : f32
    %646 = vector.broadcast %cst_278 : f32 to vector<8x128xf32>
    %647 = arith.maximumf %645, %646 : vector<8x128xf32>
    %c3_279 = arith.constant 3 : index
    %c0_280 = arith.constant 0 : index
    %c0_281 = arith.constant 0 : index
    %648 = vector.load %arg15[%c3_279, %c0_280, %c0_281] : memref<4x128x128xbf16, #tpu.memory_space<vmem>>, vector<1x128x128xbf16>
    %649 = vector.shape_cast %648 : vector<1x128x128xbf16> to vector<128x128xbf16>
    %650 = arith.truncf %647 : vector<8x128xf32> to vector<8x128xbf16>
    %cst_282 = arith.constant dense<0.000000e+00> : vector<8x128xf32>
    %651 = tpu.matmul %650, %649, %cst_282 {dimension_numbers = #tpu.dot_dimension_numbers<[1], [0], [0], [1], [0, 0, 1, 1], [], []>} : vector<8x128xbf16>, vector<128x128xbf16>, vector<8x128xf32> -> vector<8x128xf32>
    %c3_283 = arith.constant 3 : index
    %c0_284 = arith.constant 0 : index
    %c0_285 = arith.constant 0 : index
    %652 = vector.load %arg16[%c3_283, %c0_284, %c0_285] : memref<4x1x128xf32, #tpu.memory_space<vmem>>, vector<1x1x128xf32>
    %653 = vector.shape_cast %652 : vector<1x1x128xf32> to vector<1x128xf32>
    %654 = vector.broadcast %653 : vector<1x128xf32> to vector<8x128xf32>
    %655 = arith.addf %651, %654 : vector<8x128xf32>
    %656 = arith.addf %637, %655 : vector<8x128xf32>
    %c3_286 = arith.constant 3 : index
    %c0_287 = arith.constant 0 : index
    %c0_288 = arith.constant 0 : index
    %657 = vector.load %arg17[%c3_286, %c0_287, %c0_288] : memref<4x1x128xf32, #tpu.memory_space<vmem>>, vector<1x1x128xf32>
    %658 = vector.shape_cast %657 : vector<1x1x128xf32> to vector<1x128xf32>
    %c3_289 = arith.constant 3 : index
    %c0_290 = arith.constant 0 : index
    %c0_291 = arith.constant 0 : index
    %659 = vector.load %arg18[%c3_289, %c0_290, %c0_291] : memref<4x1x128xf32, #tpu.memory_space<vmem>>, vector<1x1x128xf32>
    %660 = vector.shape_cast %659 : vector<1x1x128xf32> to vector<1x128xf32>
    %cst_292 = arith.constant dense<0.000000e+00> : vector<8xf32>
    %661 = vector.multi_reduction <add>, %656, %cst_292 [1] : vector<8x128xf32> to vector<8xf32>
    %662 = vector.shape_cast %661 : vector<8xf32> to vector<8x1xf32>
    %cst_293 = arith.constant 1.280000e+02 : f32
    %663 = vector.broadcast %cst_293 : f32 to vector<8x1xf32>
    %664 = arith.divf %662, %663 : vector<8x1xf32>
    %665 = vector.broadcast %664 : vector<8x1xf32> to vector<8x128xf32>
    %666 = arith.subf %656, %665 : vector<8x128xf32>
    %667 = arith.mulf %666, %666 : vector<8x128xf32>
    %cst_294 = arith.constant dense<0.000000e+00> : vector<8xf32>
    %668 = vector.multi_reduction <add>, %667, %cst_294 [1] : vector<8x128xf32> to vector<8xf32>
    %669 = vector.shape_cast %668 : vector<8xf32> to vector<8x1xf32>
    %cst_295 = arith.constant 1.280000e+02 : f32
    %670 = vector.broadcast %cst_295 : f32 to vector<8x1xf32>
    %671 = arith.divf %669, %670 : vector<8x1xf32>
    %cst_296 = arith.constant 9.99999974E-6 : f32
    %672 = vector.broadcast %cst_296 : f32 to vector<8x1xf32>
    %673 = arith.addf %671, %672 : vector<8x1xf32>
    %674 = math.rsqrt %673 : vector<8x1xf32>
    %675 = vector.broadcast %674 : vector<8x1xf32> to vector<8x128xf32>
    %676 = arith.mulf %666, %675 : vector<8x128xf32>
    %677 = vector.broadcast %658 : vector<1x128xf32> to vector<8x128xf32>
    %678 = arith.mulf %676, %677 : vector<8x128xf32>
    %679 = vector.broadcast %660 : vector<1x128xf32> to vector<8x128xf32>
    %680 = arith.addf %678, %679 : vector<8x128xf32>
    %c0_297 = arith.constant 0 : index
    %c0_298 = arith.constant 0 : index
    %681 = vector.load %arg19[%c0_297, %c0_298] : memref<128x32xbf16, #tpu.memory_space<vmem>>, vector<128x32xbf16>
    %682 = arith.truncf %680 : vector<8x128xf32> to vector<8x128xbf16>
    %cst_299 = arith.constant dense<0.000000e+00> : vector<8x32xf32>
    %683 = tpu.matmul %682, %681, %cst_299 {dimension_numbers = #tpu.dot_dimension_numbers<[1], [0], [0], [1], [0, 0, 1, 1], [], []>} : vector<8x128xbf16>, vector<128x32xbf16>, vector<8x32xf32> -> vector<8x32xf32>
    %c0_300 = arith.constant 0 : index
    %c0_301 = arith.constant 0 : index
    %684 = vector.load %arg20[%c0_300, %c0_301] : memref<1x32xf32, #tpu.memory_space<vmem>>, vector<1x32xf32>
    %685 = vector.broadcast %684 : vector<1x32xf32> to vector<8x32xf32>
    %686 = arith.addf %683, %685 : vector<8x32xf32>
    %c0_302 = arith.constant 0 : index
    %c0_303 = arith.constant 0 : index
    %687 = vector.load %arg21[%c0_302, %c0_303] : memref<1x32xf32, #tpu.memory_space<vmem>>, vector<1x32xf32>
    %688 = vector.broadcast %687 : vector<1x32xf32> to vector<8x32xf32>
    %689 = arith.mulf %686, %688 : vector<8x32xf32>
    %c0_304 = arith.constant 0 : index
    %c0_305 = arith.constant 0 : index
    %690 = vector.load %arg22[%c0_304, %c0_305] : memref<1x32xf32, #tpu.memory_space<vmem>>, vector<1x32xf32>
    %691 = vector.broadcast %690 : vector<1x32xf32> to vector<8x32xf32>
    %692 = arith.addf %689, %691 : vector<8x32xf32>
    %c0_306 = arith.constant 0 : index
    %c0_307 = arith.constant 0 : index
    %693 = vector.load %arg23[%c0_306, %c0_307] : memref<32x12xbf16, #tpu.memory_space<vmem>>, vector<32x12xbf16>
    %694 = arith.truncf %692 : vector<8x32xf32> to vector<8x32xbf16>
    %cst_308 = arith.constant dense<0.000000e+00> : vector<8x12xf32>
    %695 = tpu.matmul %694, %693, %cst_308 {dimension_numbers = #tpu.dot_dimension_numbers<[1], [0], [0], [1], [0, 0, 1, 1], [], []>} : vector<8x32xbf16>, vector<32x12xbf16>, vector<8x12xf32> -> vector<8x12xf32>
    %c0_309 = arith.constant 0 : index
    %c0_310 = arith.constant 0 : index
    %696 = vector.load %arg24[%c0_309, %c0_310] : memref<1x12xf32, #tpu.memory_space<vmem>>, vector<1x12xf32>
    %697 = vector.broadcast %696 : vector<1x12xf32> to vector<8x12xf32>
    %698 = arith.addf %695, %697 : vector<8x12xf32>
    %cst_311 = arith.constant 5.000000e-01 : f32
    %699 = vector.broadcast %cst_311 : f32 to vector<8x12xf32>
    %700 = arith.mulf %699, %698 : vector<8x12xf32>
    %701 = math.tanh %700 : vector<8x12xf32>
    %cst_312 = arith.constant 1.000000e+00 : f32
    %702 = vector.broadcast %cst_312 : f32 to vector<8x12xf32>
    %703 = arith.addf %701, %702 : vector<8x12xf32>
    %cst_313 = arith.constant 5.000000e-01 : f32
    %704 = vector.broadcast %cst_313 : f32 to vector<8x12xf32>
    %705 = arith.mulf %704, %703 : vector<8x12xf32>
    %706 = tpu.concatenate %698, %705 in 1 : vector<8x12xf32>, vector<8x12xf32> -> vector<8x24xf32>
    %c0_314 = arith.constant 0 : index
    %c0_315 = arith.constant 0 : index
    %707 = vector.load %arg25[%c0_314, %c0_315] : memref<8x24xf32, #tpu.memory_space<vmem>>, vector<8x24xf32>
    tpu.vector_store %arg25[%c0_314, %c0_315], %706 {strides = array<i32>} : memref<8x24xf32, #tpu.memory_space<vmem>>, vector<8x24xf32>,
    return
  }
}

</mosaic_0001>

<bundles_post_ra>
// kernel: tpu_custom_call.1
= control target key start
LH: loop header
LB: loop body
LE: loop exit
PB: predicated region body
PF: predicated region fallthrough
CT: control target
= control target key end

     0   :  { %s13806_s0 = inlined_call_operand.hbm [shape: f32[8,1408], index: 0, kind: input, shape index: {}]   ;;  %s13807_s1 = inlined_call_operand.hbm [shape: f32[8,768], index: 1, kind: input, shape index: {}]   ;;  %s13808_s2 = inlined_call_operand.hbm [shape: bf16[1408,512], index: 2, kind: input, shape index: {}]   ;;  %s13809_s3 = inlined_call_operand.hbm [shape: bf16[768,512], index: 3, kind: input, shape index: {}]   ;;  %s13810_s4 = inlined_call_operand.hbm [shape: f32[1,512], index: 4, kind: input, shape index: {}]   ;;  %s13811_s5 = inlined_call_operand.hbm [shape: bf16[512,128], index: 5, kind: input, shape index: {}]   ;;  %s13812_s6 = inlined_call_operand.hbm [shape: f32[1,128], index: 6, kind: input, shape index: {}]   ;;  %s13813_s7 = inlined_call_operand.hbm [shape: bf16[4,128,384], index: 7, kind: input, shape index: {}]   ;;  %s13814_s8 = inlined_call_operand.hbm [shape: f32[4,1,384], index: 8, kind: input, shape index: {}]   ;;  %s13815_s9 = inlined_call_operand.hbm [shape: bf16[4,128,128], index: 9, kind: input, shape index: {}]   ;;  %s13816_s10 = inlined_call_operand.hbm [shape: f32[4,1,128], index: 10, kind: input, shape index: {}]   ;;  %s13817_s11 = inlined_call_operand.hbm [shape: f32[4,1,128], index: 11, kind: input, shape index: {}]   ;;  %s13818_s12 = inlined_call_operand.hbm [shape: f32[4,1,128], index: 12, kind: input, shape index: {}]   ;;  %s13819_s13 = inlined_call_operand.hbm [shape: bf16[4,128,128], index: 13, kind: input, shape index: {}]   ;;  %s13820_s14 = inlined_call_operand.hbm [shape: f32[4,1,128], index: 14, kind: input, shape index: {}]   ;;  %s13821_s15 = inlined_call_operand.hbm [shape: bf16[4,128,128], index: 15, kind: input, shape index: {}]   ;;  %s13822_s16 = inlined_call_operand.hbm [shape: f32[4,1,128], index: 16, kind: input, shape index: {}]   ;;  %s13823_s17 = inlined_call_operand.hbm [shape: f32[4,1,128], index: 17, kind: input, shape index: {}]   ;;  %s13824_s18 = inlined_call_operand.hbm [shape: f32[4,1,128], index: 18, kind: input, shape index: {}]   ;;  %s13825_s19 = inlined_call_operand.vmem [shape: bf16[128,32], index: 19, kind: input, shape index: {}]   ;;  %s13826_s20 = inlined_call_operand.hbm [shape: f32[1,32], index: 20, kind: input, shape index: {}]   ;;  %s13827_s21 = inlined_call_operand.hbm [shape: f32[1,32], index: 21, kind: input, shape index: {}]   ;;  %s13828_s22 = inlined_call_operand.hbm [shape: f32[1,32], index: 22, kind: input, shape index: {}]   ;;  %s13829_s23 = inlined_call_operand.vmem [shape: bf16[32,12], index: 23, kind: input, shape index: {}]   ;;  %s13830_s24 = inlined_call_operand.hbm [shape: f32[1,12], index: 24, kind: input, shape index: {}]   ;;  %s13831_s25 = inlined_call_operand.hbm [shape: f32[8,24], index: 25, kind: output, shape index: {}]  }
   0x1   :  { %13835 = sst [smem:[#allocation52_spill]] %s13806_s0 }
   0x2   :  { %13836 = sst [smem:[#allocation53_spill]] %s13807_s1 }
   0x3   :  { %13837 = sst [smem:[#allocation54_spill]] %s13808_s2 }
   0x4   :  { %13838 = sst [smem:[#allocation55_spill]] %s13809_s3 }
   0x5   :  { %13839 = sst [smem:[#allocation56_spill]] %s13810_s4 }
   0x6   :  { %13840 = sst [smem:[#allocation57_spill]] %s13811_s5 }
   0x7   :  { %13841 = sst [smem:[#allocation58_spill]] %s13812_s6 }
   0x8   :  { %13842 = sst [smem:[#allocation59_spill]] %s13813_s7 }
   0x9   :  { %13843 = sst [smem:[#allocation60_spill]] %s13814_s8 }
   0xa   :  { %13844 = sst [smem:[#allocation61_spill]] %s13815_s9 }
   0xb   :  { %13845 = sst [smem:[#allocation62_spill]] %s13831_s25 }
   0xc   :  { %30 = vsyncpa [#allocation3], 0 }
   0xd   :  { %31 = vsyncpa [#allocation6], 0 }
   0xe   :  { %32 = vsyncpa [#allocation9], 0 }
   0xf   :  { %33 = vsyncpa [#allocation12], 0 }
  0x10   :  { %34 = vsyncpa [#allocation15], 0 }
  0x11   :  { %35 = vsyncpa [#allocation18], 0 }
  0x12   :  { %36 = vsyncpa [#allocation21], 0 }
  0x13   :  { %37 = vsyncpa [#allocation24], 0 }
  0x14   :  { %38 = vsyncpa [#allocation27], 0 }
  0x15   :  { %39 = vsyncpa [#allocation30], 0 }
  0x16   :  { %40 = vsyncpa [#allocation33], 0 }
  0x17   :  { %41 = vsyncpa [#allocation36], 0 }
  0x18   :  { %42 = vsyncpa [#allocation4], 0  ;;  %s12869_s29 = smov [#allocation5]  }
  0x19   :  { %s59_s2 = sshll.u32 %s12869_s29, 4  ;;  %s60_s2 = int_to_ptr.vmem [resolvable:$true] %s59_s2 }
  0x1a   :  { %s12371_s6 = scalar_lea.vmem %s60_s2, 768  ;;  %p12376_p1 = scmp.lt.s32.totalorder %s60_s2, %s60_s2 }
  0x1b   :  { %p12372_p0 = scmp.ne.s32.totalorder %s60_s2, %s12371_s6  ;;  %p12377_p2 = scmp.lt.s32.totalorder %s12371_s6, %s12371_s6 }
  0x1d   :  { %p12378_p3 = por %p12377_p2, %p12376_p1 }
  0x1f   :  { %p12379_p4 = pnand %p12378_p3, %p12372_p0 }
  0x21   :  { %12382 = shalt.err (!%p12379_p4)
}
  0x22   :  { %s13846_s3 = sld [smem:[#allocation53_spill]]  ;;  %s12870_s26 = smov [#allocation8]  }
  0x23   :  { %s80_s1 = sshll.u32 %s12870_s26, 4  ;;  %s12871_s8 = smov [#allocation11]   ;;  %s81_s1 = int_to_ptr.vmem [resolvable:$true] %s80_s1 }
  0x24   :  { %s102_s27 = sshll.u32 %s12871_s8, 4  ;;  %s12391_s4 = scalar_lea.vmem %s81_s1, 24576  ;;  %s103_s27 = int_to_ptr.vmem [resolvable:$true] %s102_s27 }
  0x25   :  { %p12392_p5 = scmp.ne.s32.totalorder %s81_s1, %s12391_s4  ;;  %p12396_p6 = scmp.lt.s32.totalorder %s81_s1, %s81_s1 }
  0x26   :  { %p12397_p7 = scmp.lt.s32.totalorder %s12391_s4, %s12391_s4 }
  0x28   :  { %62 = dma.hbm_to_vmem [thread:$0]  %s13846_s3, 768, %s60_s2, [#allocation6]  }
  0x29   :  { %p12398_p8 = por %p12397_p7, %p12396_p6 }
  0x2b   :  { %p12399_p9 = pnand %p12398_p8, %p12392_p5 }
  0x2d   :  { %12402 = shalt.err (!%p12399_p9)
}
  0x2e   :  { %s13832_s28 = smov 256   ;;  %s13833_s9 = smov 16  }
  0x2f   :  { %s13847_s29 = sld [smem:[#allocation55_spill]]  ;;  %s12411_s2 = scalar_lea.vmem %s103_s27, 4096 }
  0x30   :  { %p12412_p10 = scmp.ne.s32.totalorder %s103_s27, %s12411_s2  ;;  %p12416_p11 = scmp.lt.s32.totalorder %s103_s27, %s103_s27 }
  0x31   :  { %p12417_p12 = scmp.lt.s32.totalorder %s12411_s2, %s12411_s2 }
  0x33   :  { %p12418_p13 = por %p12417_p12, %p12416_p11 }
  0x35   :  { %86 = dma.hbm_to_vmem [thread:$0]  %s13847_s29, 24576, %s81_s1, [#allocation9], %s13832_s28, %s13832_s28, %s13833_s9  }
  0x36   :  { %p12419_p0 = pnand %p12418_p13, %p12412_p10 }
  0x38   :  { %12422 = shalt.err (!%p12419_p0)
}
  0x39   :  { %s12874_s6 = smov 64   ;;  %s12875_s30 = smov 4  }
  0x3a   :  { %s13848_s26 = sld [smem:[#allocation57_spill]]  ;;  %s12876_s8 = smov [#allocation14]  }
  0x3b   :  { %s124_s4 = sshll.u32 %s12876_s8, 4  ;;  %s125_s4 = int_to_ptr.vmem [resolvable:$true] %s124_s4 }
  0x3c   :  { %s12431_s1 = scalar_lea.vmem %s125_s4, 12288  ;;  %p12436_p2 = scmp.lt.s32.totalorder %s125_s4, %s125_s4 }
  0x3d   :  { %p12432_p1 = scmp.ne.s32.totalorder %s125_s4, %s12431_s1  ;;  %p12437_p3 = scmp.lt.s32.totalorder %s12431_s1, %s12431_s1 }
  0x3f   :  { %p12438_p4 = por %p12437_p3, %p12436_p2 }
  0x40   :  { %108 = dma.hbm_to_vmem [thread:$0]  %s13848_s26, 4096, %s103_s27, [#allocation12], %s12874_s6, %s12874_s6, %s12875_s30  }
  0x41   :  { %p12439_p5 = pnand %p12438_p4, %p12432_p1 }
  0x43   :  { %12442 = shalt.err (!%p12439_p5)
}
  0x44   :  { %s12877_s5 = smov 192   ;;  %s12878_s0 = smov 12  }
  0x45   :  { %s13849_s28 = sld [smem:[#allocation59_spill]]  ;;  %s12879_s9 = smov [#allocation17]  }
  0x46   :  { %s148_s7 = sshll.u32 %s12879_s9, 4  ;;  %s12880_s27 = smov [#allocation20]   ;;  %s149_s7 = int_to_ptr.vmem [resolvable:$true] %s148_s7 }
  0x47   :  { %s172_s3 = sshll.u32 %s12880_s27, 4  ;;  %s12451_s26 = scalar_lea.vmem %s149_s7, 4096  ;;  %s173_s3 = int_to_ptr.vmem [resolvable:$true] %s172_s3 }
  0x48   :  { %p12452_p6 = scmp.ne.s32.totalorder %s149_s7, %s12451_s26  ;;  %p12456_p7 = scmp.lt.s32.totalorder %s149_s7, %s149_s7 }
  0x49   :  { %p12457_p8 = scmp.lt.s32.totalorder %s12451_s26, %s12451_s26 }
  0x4b   :  { %130 = dma.hbm_to_vmem [thread:$0]  %s13849_s28, 12288, %s125_s4, [#allocation15], %s12877_s5, %s12877_s5, %s12878_s0  }
  0x4c   :  { %p12458_p9 = por %p12457_p8, %p12456_p7 }
  0x4e   :  { %p12459_p10 = pnand %p12458_p9, %p12452_p6 }
  0x50   :  { %12462 = shalt.err (!%p12459_p10)
}
  0x51   :  { %s13850_s25 = sld [smem:[#allocation61_spill]]  ;;  %s12471_s28 = scalar_lea.vmem %s173_s3, 64 }
  0x52   :  { %p12472_p11 = scmp.ne.s32.totalorder %s173_s3, %s12471_s28  ;;  %p12476_p12 = scmp.lt.s32.totalorder %s173_s3, %s173_s3 }
  0x53   :  { %p12477_p13 = scmp.lt.s32.totalorder %s12471_s28, %s12471_s28 }
  0x55   :  { %p12478_p0 = por %p12477_p13, %p12476_p12 }
  0x57   :  { %154 = dma.hbm_to_vmem [thread:$0]  %s13850_s25, 4096, %s149_s7, [#allocation18], %s12874_s6, %s12874_s6, %s12875_s30  }
  0x58   :  { %p12479_p1 = pnand %p12478_p0, %p12472_p11 }
  0x5a   :  { %12482 = shalt.err (!%p12479_p1)
}
  0x5b   :  { %s12881_s9 = smov 1   ;;  %s13851_s4 = smov 16  }
  0x5c   :  { %178 = dma.hbm_to_vmem [thread:$0]  %s13817_s11, 64, %s173_s3, [#allocation21], %s13851_s4, %s13851_s4, %s12881_s9  }
  0x5d   :  { %s12882_s2 = smov [#allocation23]   ;;  %s12883_s25 = smov [#allocation26]  }
  0x5e   :  { %s196_s27 = sshll.u32 %s12882_s2, 4  ;;  %s220_s7 = sshll.u32 %s12883_s25, 4  ;;  %s197_s27 = int_to_ptr.vmem [resolvable:$true] %s196_s27  ;;  %s221_s7 = int_to_ptr.vmem [resolvable:$true] %s220_s7 }
  0x5f   :  { %s12491_s26 = scalar_lea.vmem %s197_s27, 4096  ;;  %p12496_p3 = scmp.lt.s32.totalorder %s197_s27, %s197_s27 }
  0x60   :  { %p12492_p2 = scmp.ne.s32.totalorder %s197_s27, %s12491_s26  ;;  %p12497_p4 = scmp.lt.s32.totalorder %s12491_s26, %s12491_s26 }
  0x62   :  { %p12498_p5 = por %p12497_p4, %p12496_p3 }
  0x64   :  { %p12499_p6 = pnand %p12498_p5, %p12492_p2 }
  0x66   :  { %12502 = shalt.err (!%p12499_p6)
}
  0x67   :  { %202 = dma.hbm_to_vmem [thread:$0]  %s13819_s13, 4096, %s197_s27, [#allocation24], %s12874_s6, %s12874_s6, %s12875_s30  }
  0x68   :  { %s12511_s11 = scalar_lea.vmem %s221_s7, 4096  ;;  %p12516_p8 = scmp.lt.s32.totalorder %s221_s7, %s221_s7 }
  0x69   :  { %p12512_p7 = scmp.ne.s32.totalorder %s221_s7, %s12511_s11  ;;  %p12517_p9 = scmp.lt.s32.totalorder %s12511_s11, %s12511_s11 }
  0x6b   :  { %p12518_p10 = por %p12517_p9, %p12516_p8 }
  0x6d   :  { %p12519_p11 = pnand %p12518_p10, %p12512_p7 }
  0x6f   :  { %12522 = shalt.err (!%p12519_p11)
}
  0x70   :  { %226 = dma.hbm_to_vmem [thread:$0]  %s13821_s15, 4096, %s221_s7, [#allocation27], %s12874_s6, %s12874_s6, %s12875_s30  }
  0x71   :  { %s12884_s5 = smov [#allocation29]   ;;  %s12885_s2 = smov [#allocation32]  }
  0x72   :  { %s244_s29 = sshll.u32 %s12884_s5, 4  ;;  %s271_s13 = sshll.u32 %s12885_s2, 4  ;;  %s245_s29 = int_to_ptr.vmem [resolvable:$true] %s244_s29  ;;  %s272_s13 = int_to_ptr.vmem [resolvable:$true] %s271_s13 }
  0x73   :  { %s12531_s27 = scalar_lea.vmem %s245_s29, 64  ;;  %p12536_p13 = scmp.lt.s32.totalorder %s245_s29, %s245_s29 }
  0x74   :  { %p12532_p12 = scmp.ne.s32.totalorder %s245_s29, %s12531_s27  ;;  %p12537_p0 = scmp.lt.s32.totalorder %s12531_s27, %s12531_s27 }
  0x76   :  { %p12538_p1 = por %p12537_p0, %p12536_p13 }
  0x78   :  { %p12539_p2 = pnand %p12538_p1, %p12532_p12 }
  0x7a   :  { %12542 = shalt.err (!%p12539_p2)
}
  0x7b   :  { %250 = dma.hbm_to_vmem [thread:$0]  %s13823_s17, 64, %s245_s29, [#allocation30], %s13851_s4, %s13851_s4, %s12881_s9  }
  0x7c   :  { %s12551_s15 = scalar_lea.vmem %s272_s13, 16  ;;  %s12555_s30 = scalar_lea.vmem %s272_s13, 32 }
  0x7d   :  { %p12552_p3 = scmp.ne.s32.totalorder %s272_s13, %s12551_s15  ;;  %p12556_p4 = scmp.lt.s32.totalorder %s272_s13, %s272_s13 }
  0x7e   :  { %p12557_p5 = scmp.lt.s32.totalorder %s12555_s30, %s12551_s15 }
  0x80   :  { %p12558_p6 = por %p12557_p5, %p12556_p4 }
  0x82   :  { %p12559_p7 = pnand %p12558_p6, %p12552_p3 }
  0x84   :  { %12562 = shalt.err (!%p12559_p7)
}
  0x85   :  { %274 = dma.hbm_to_vmem [thread:$0]  %s13826_s20, 16, %s272_s13, [#allocation33]  }
  0x86   :  { %s12886_s1 = smov [#allocation35]   ;;  %s12887_s3 = smov [#allocation2]  }
  0x87   :  { %s291_s11 = sshll.u32 %s12886_s1, 4  ;;  %s49_s28 = sshll.u32 %s12887_s3, 4  ;;  %s292_s11 = int_to_ptr.vmem [resolvable:$true] %s291_s11  ;;  %s50_s28 = int_to_ptr.vmem [resolvable:$true] %s49_s28 }
  0x88   :  { %s12571_s5 = scalar_lea.vmem %s292_s11, 16  ;;  %s12575_s17 = scalar_lea.vmem %s292_s11, 32 }
  0x89   :  { %p12572_p8 = scmp.ne.s32.totalorder %s292_s11, %s12571_s5  ;;  %p12576_p9 = scmp.lt.s32.totalorder %s292_s11, %s292_s11 }
  0x8a   :  { %p12577_p10 = scmp.lt.s32.totalorder %s12575_s17, %s12571_s5 }
  0x8c   :  { %p12578_p11 = por %p12577_p10, %p12576_p9 }
  0x8e   :  { %p12579_p12 = pnand %p12578_p11, %p12572_p8 }
  0x90   :  { %12582 = shalt.err (!%p12579_p12)
}
  0x91   :  { %294 = dma.hbm_to_vmem [thread:$0]  %s13828_s22, 16, %s292_s11, [#allocation36]  }
  0x92   :  { %s12591_s27 = scalar_lea.vmem %s50_s28, 1408  ;;  %p12596_p0 = scmp.lt.s32.totalorder %s50_s28, %s50_s28 }
  0x93   :  { %p12592_p13 = scmp.ne.s32.totalorder %s50_s28, %s12591_s27  ;;  %p12597_p1 = scmp.lt.s32.totalorder %s12591_s27, %s12591_s27 }
  0x95   :  { %p12598_p2 = por %p12597_p1, %p12596_p0 }
  0x97   :  { %p12599_p3 = pnand %p12598_p2, %p12592_p13 }
  0x99   :  { %12602 = shalt.err (!%p12599_p3)
}
  0x9a   :  { %s13852_s25 = sld [smem:[#allocation52_spill]]  ;;  %s12888_s26 = smov [#allocation7]  }
  0x9b   :  { %s68_s15 = sshll.u32 %s12888_s26, 4  ;;  %s12889_s30 = smov [#allocation10]   ;;  %s69_s15 = int_to_ptr.vmem [resolvable:$true] %s68_s15 }
  0x9c   :  { %s93_s7 = sshll.u32 %s12889_s30, 4  ;;  %s12611_s8 = scalar_lea.vmem %s69_s15, 45056  ;;  %s94_s7 = int_to_ptr.vmem [resolvable:$true] %s93_s7 }
  0x9d   :  { %p12612_p4 = scmp.ne.s32.totalorder %s69_s15, %s12611_s8  ;;  %p12616_p5 = scmp.lt.s32.totalorder %s69_s15, %s69_s15 }
  0x9e   :  { %p12617_p6 = scmp.lt.s32.totalorder %s12611_s8, %s12611_s8 }
  0xa0   :  { %52 = dma.hbm_to_vmem [thread:$0]  %s13852_s25, 1408, %s50_s28, [#allocation3]  }
  0xa1   :  { %p12618_p7 = por %p12617_p6, %p12616_p5 }
  0xa3   :  { %p12619_p8 = pnand %p12618_p7, %p12612_p4 }
  0xa5   :  { %12622 = shalt.err (!%p12619_p8)
}
  0xa6   :  { %s13853_s22 = smov 256   ;;  %s13854_s3 = sld [smem:[#allocation54_spill]] }
  0xa7   :  { %s12631_s28 = scalar_lea.vmem %s94_s7, 64  ;;  %p12636_p10 = scmp.lt.s32.totalorder %s94_s7, %s94_s7 }
  0xa8   :  { %p12632_p9 = scmp.ne.s32.totalorder %s94_s7, %s12631_s28  ;;  %p12637_p11 = scmp.lt.s32.totalorder %s12631_s28, %s12631_s28 }
  0xaa   :  { %p12638_p12 = por %p12637_p11, %p12636_p10 }
  0xac   :  { %74 = dma.hbm_to_vmem [thread:$0]  %s13854_s3, 45056, %s69_s15, [#allocation6], %s13853_s22, %s13853_s22, %s13851_s4  }
  0xad   :  { %p12639_p13 = pnand %p12638_p12, %p12632_p9 }
  0xaf   :  { %12642 = shalt.err (!%p12639_p13)
}
  0xb0   :  { %s13855_s29 = sld [smem:[#allocation56_spill]]  ;;  %s12890_s2 = smov [#allocation13]  }
  0xb1   :  { %s115_s27 = sshll.u32 %s12890_s2, 4  ;;  %s12891_s20 = smov [#allocation16]   ;;  %s116_s27 = int_to_ptr.vmem [resolvable:$true] %s115_s27 }
  0xb2   :  { %s136_s13 = sshll.u32 %s12891_s20, 4  ;;  %s12651_s25 = scalar_lea.vmem %s116_s27, 16  ;;  %s137_s13 = int_to_ptr.vmem [resolvable:$true] %s136_s13 }
  0xb3   :  { %p12652_p0 = scmp.ne.s32.totalorder %s116_s27, %s12651_s25  ;;  %s12655_s26 = scalar_lea.vmem %s116_s27, 32 }
  0xb4   :  { %p12656_p1 = scmp.lt.s32.totalorder %s116_s27, %s116_s27  ;;  %p12657_p2 = scmp.lt.s32.totalorder %s12655_s26, %s12651_s25 }
  0xb6   :  { %96 = dma.hbm_to_vmem [thread:$0]  %s13855_s29, 64, %s94_s7, [#allocation9]  }
  0xb7   :  { %p12658_p3 = por %p12657_p2, %p12656_p1 }
  0xb9   :  { %p12659_p4 = pnand %p12658_p3, %p12652_p0 }
  0xbb   :  { %12662 = shalt.err (!%p12659_p4)
}
  0xbc   :  { %s13856_s8 = sld [smem:[#allocation58_spill]]  ;;  %s12671_s22 = scalar_lea.vmem %s137_s13, 192 }
  0xbd   :  { %p12672_p5 = scmp.ne.s32.totalorder %s137_s13, %s12671_s22  ;;  %p12676_p6 = scmp.lt.s32.totalorder %s137_s13, %s137_s13 }
  0xbe   :  { %p12677_p7 = scmp.lt.s32.totalorder %s12671_s22, %s12671_s22 }
  0xc0   :  { %p12678_p8 = por %p12677_p7, %p12676_p6 }
  0xc2   :  { %118 = dma.hbm_to_vmem [thread:$0]  %s13856_s8, 16, %s116_s27, [#allocation12]  }
  0xc3   :  { %p12679_p9 = pnand %p12678_p8, %p12672_p5 }
  0xc5   :  { %12682 = shalt.err (!%p12679_p9)
}
  0xc6   :  { %s12892_s7 = smov 48   ;;  %s12893_s1 = smov 3  }
  0xc7   :  { %s13857_s28 = sld [smem:[#allocation60_spill]]  ;;  %s12894_s5 = smov [#allocation19]  }
  0xc8   :  { %s160_s17 = sshll.u32 %s12894_s5, 4  ;;  %s12895_s29 = smov [#allocation22]   ;;  %s161_s17 = int_to_ptr.vmem [resolvable:$true] %s160_s17 }
  0xc9   :  { %s184_s2 = sshll.u32 %s12895_s29, 4  ;;  %s12691_s27 = scalar_lea.vmem %s161_s17, 64  ;;  %s185_s2 = int_to_ptr.vmem [resolvable:$true] %s184_s2 }
  0xca   :  { %p12692_p10 = scmp.ne.s32.totalorder %s161_s17, %s12691_s27  ;;  %p12696_p11 = scmp.lt.s32.totalorder %s161_s17, %s161_s17 }
  0xcb   :  { %p12697_p12 = scmp.lt.s32.totalorder %s12691_s27, %s12691_s27 }
  0xcd   :  { %142 = dma.hbm_to_vmem [thread:$0]  %s13857_s28, 192, %s137_s13, [#allocation15], %s12892_s7, %s12892_s7, %s12893_s1  }
  0xce   :  { %p12698_p13 = por %p12697_p12, %p12696_p11 }
  0xd0   :  { %p12699_p0 = pnand %p12698_p13, %p12692_p10 }
  0xd2   :  { %12702 = shalt.err (!%p12699_p0)
}
  0xd3   :  { %166 = dma.hbm_to_vmem [thread:$0]  %s13816_s10, 64, %s161_s17, [#allocation18], %s13851_s4, %s13851_s4, %s12881_s9  }
  0xd4   :  { %s12711_s13 = scalar_lea.vmem %s185_s2, 64  ;;  %p12716_p2 = scmp.lt.s32.totalorder %s185_s2, %s185_s2 }
  0xd5   :  { %p12712_p1 = scmp.ne.s32.totalorder %s185_s2, %s12711_s13  ;;  %p12717_p3 = scmp.lt.s32.totalorder %s12711_s13, %s12711_s13 }
  0xd7   :  { %p12718_p4 = por %p12717_p3, %p12716_p2 }
  0xd9   :  { %p12719_p5 = pnand %p12718_p4, %p12712_p1 }
  0xdb   :  { %12722 = shalt.err (!%p12719_p5)
}
  0xdc   :  { %190 = dma.hbm_to_vmem [thread:$0]  %s13818_s12, 64, %s185_s2, [#allocation21], %s13851_s4, %s13851_s4, %s12881_s9  }
  0xdd   :  { %s12896_s30 = smov [#allocation25]   ;;  %s12897_s22 = smov [#allocation28]  }
  0xde   :  { %s208_s8 = sshll.u32 %s12896_s30, 4  ;;  %s232_s10 = sshll.u32 %s12897_s22, 4  ;;  %s209_s8 = int_to_ptr.vmem [resolvable:$true] %s208_s8  ;;  %s233_s10 = int_to_ptr.vmem [resolvable:$true] %s232_s10 }
  0xdf   :  { %s12731_s7 = scalar_lea.vmem %s209_s8, 64  ;;  %p12736_p7 = scmp.lt.s32.totalorder %s209_s8, %s209_s8 }
  0xe0   :  { %p12732_p6 = scmp.ne.s32.totalorder %s209_s8, %s12731_s7  ;;  %p12737_p8 = scmp.lt.s32.totalorder %s12731_s7, %s12731_s7 }
  0xe2   :  { %p12738_p9 = por %p12737_p8, %p12736_p7 }
  0xe4   :  { %p12739_p10 = pnand %p12738_p9, %p12732_p6 }
  0xe6   :  { %12742 = shalt.err (!%p12739_p10)
}
  0xe7   :  { %214 = dma.hbm_to_vmem [thread:$0]  %s13820_s14, 64, %s209_s8, [#allocation24], %s13851_s4, %s13851_s4, %s12881_s9  }
  0xe8   :  { %s12751_s12 = scalar_lea.vmem %s233_s10, 64  ;;  %p12756_p12 = scmp.lt.s32.totalorder %s233_s10, %s233_s10 }
  0xe9   :  { %p12752_p11 = scmp.ne.s32.totalorder %s233_s10, %s12751_s12  ;;  %p12757_p13 = scmp.lt.s32.totalorder %s12751_s12, %s12751_s12 }
  0xeb   :  { %p12758_p0 = por %p12757_p13, %p12756_p12 }
  0xed   :  { %p12759_p1 = pnand %p12758_p0, %p12752_p11 }
  0xef   :  { %12762 = shalt.err (!%p12759_p1)
}
  0xf0   :  { %238 = dma.hbm_to_vmem [thread:$0]  %s13822_s16, 64, %s233_s10, [#allocation27], %s13851_s4, %s13851_s4, %s12881_s9  }
  0xf1   :  { %s12898_s5 = smov [#allocation31]   ;;  %s12899_s29 = smov [#allocation34]  }
  0xf2   :  { %s256_s17 = sshll.u32 %s12898_s5, 4  ;;  %s281_s14 = sshll.u32 %s12899_s29, 4  ;;  %s257_s17 = int_to_ptr.vmem [resolvable:$true] %s256_s17  ;;  %s282_s14 = int_to_ptr.vmem [resolvable:$true] %s281_s14 }
  0xf3   :  { %s12771_s2 = scalar_lea.vmem %s257_s17, 64  ;;  %p12776_p3 = scmp.lt.s32.totalorder %s257_s17, %s257_s17 }
  0xf4   :  { %p12772_p2 = scmp.ne.s32.totalorder %s257_s17, %s12771_s2  ;;  %p12777_p4 = scmp.lt.s32.totalorder %s12771_s2, %s12771_s2 }
  0xf6   :  { %p12778_p5 = por %p12777_p4, %p12776_p3 }
  0xf8   :  { %p12779_p6 = pnand %p12778_p5, %p12772_p2 }
  0xfa   :  { %12782 = shalt.err (!%p12779_p6)
}
  0xfb   :  { %262 = dma.hbm_to_vmem [thread:$0]  %s13824_s18, 64, %s257_s17, [#allocation30], %s13851_s4, %s13851_s4, %s12881_s9  }
  0xfc   :  { %s12791_s16 = scalar_lea.vmem %s282_s14, 16  ;;  %s12795_s25 = scalar_lea.vmem %s282_s14, 32 }
  0xfd   :  { %p12792_p7 = scmp.ne.s32.totalorder %s282_s14, %s12791_s16  ;;  %p12796_p8 = scmp.lt.s32.totalorder %s282_s14, %s282_s14 }
  0xfe   :  { %p12797_p9 = scmp.lt.s32.totalorder %s12795_s25, %s12791_s16 }
 0x100   :  { %p12798_p10 = por %p12797_p9, %p12796_p8 }
 0x102   :  { %p12799_p11 = pnand %p12798_p10, %p12792_p7 }
 0x104   :  { %12802 = shalt.err (!%p12799_p11)
}
 0x105   :  { %284 = dma.hbm_to_vmem [thread:$0]  %s13827_s21, 16, %s282_s14, [#allocation33]  }
 0x106   :  { %s12900_s15 = smov [#allocation37]  }
 0x107   :  { %s303_s30 = sshll.u32 %s12900_s15, 4  ;;  %s304_s30 = int_to_ptr.vmem [resolvable:$true] %s303_s30 }
 0x108   :  { %s12811_s8 = scalar_lea.vmem %s304_s30, 16  ;;  %s12815_s22 = scalar_lea.vmem %s304_s30, 32 }
 0x109   :  { %p12812_p12 = scmp.ne.s32.totalorder %s304_s30, %s12811_s8  ;;  %p12816_p13 = scmp.lt.s32.totalorder %s304_s30, %s304_s30 }
 0x10a   :  { %p12817_p0 = scmp.lt.s32.totalorder %s12815_s22, %s12811_s8 }
 0x10c   :  { %p12818_p1 = por %p12817_p0, %p12816_p13 }
 0x10e   :  { %p12819_p2 = pnand %p12818_p1, %p12812_p12 }
 0x110   :  { %12822 = shalt.err (!%p12819_p2)
}
 0x111   :  { %306 = dma.hbm_to_vmem [thread:$0]  %s13830_s24, 16, %s304_s30, [#allocation36]  }
 0x112   :  { %12843 = dma.done.wait [#allocation3], 1408  }
 0x113   :  { %12844 = vsyncadd [#allocation3], 4294965888 }
 0x114   :  { %12845 = dma.done.wait [#allocation6], 45824  }
 0x115   :  { %12846 = vsyncadd [#allocation6], 4294921472 }
 0x116   :  { %12847 = dma.done.wait [#allocation9], 24640  }
 0x117   :  { %12848 = vsyncadd [#allocation9], 4294942656 }
 0x118   :  { %12849 = dma.done.wait [#allocation12], 4112  }
 0x119   :  { %12850 = vsyncadd [#allocation12], 4294963184 }
 0x11a   :  { %12851 = dma.done.wait [#allocation15], 12480  }
 0x11b   :  { %12852 = vsyncadd [#allocation15], 4294954816 }
 0x11c   :  { %12853 = dma.done.wait [#allocation18], 4160  }
 0x11d   :  { %12854 = vsyncadd [#allocation18], 4294963136 }
 0x11e   :  { %12855 = dma.done.wait [#allocation21], 128  }
 0x11f   :  { %12856 = vsyncadd [#allocation21], 4294967168 }
 0x120   :  { %12857 = dma.done.wait [#allocation24], 4160  }
 0x121   :  { %12858 = vsyncadd [#allocation24], 4294963136 }
 0x122   :  { %12859 = dma.done.wait [#allocation27], 4160  }
 0x123   :  { %12860 = vsyncadd [#allocation27], 4294963136 }
 0x124   :  { %12861 = dma.done.wait [#allocation30], 128  }
 0x125   :  { %12862 = vsyncadd [#allocation30], 4294967168 }
 0x126   :  { %12863 = dma.done.wait [#allocation33], 32  }
 0x127   :  { %12864 = vsyncadd [#allocation33], 4294967264 }
 0x128   :  { %12865 = dma.done.wait [#allocation36], 32  }
 0x129   :  { %12866 = vsyncadd [#allocation36], 4294967264  ;;  %v11199_v0 = vld [vmem:[#allocation8 + $0xe4] ss:$16 sps:$4 sm:$0xff]   ;;  %v11203_v2 = vld [vmem:[#allocation8 + $0xe0] ss:$16 sps:$4 sm:$0xff]  }
 0x12a   :  { %v11201_v1 = vld [vmem:[#allocation8 + $0x2e4] ss:$16 sps:$4 sm:$0xff]   ;;  %1915 = vmatprep.subr.bf16.mxu0 %v11199_v0  ;;  %v11204_v3 = vld [vmem:[#allocation8 + $0x2e0] ss:$16 sps:$4 sm:$0xff]   ;;  %v752_v46 = vld [vmem:[#allocation5 + $0x8] sm:$0xff]  ;;  %vm12903_vm0 = vmmov 0  }
 0x12b   :  { %1956 = vmatprep.subr.bf16.mxu1 %v11201_v1  ;;  %v11205_v4 = vld [vmem:[#allocation8 + $0xc4] ss:$16 sps:$4 sm:$0xff]   ;;  %1916 = vmatpush1.bf16.msra.mxu0 %v11203_v2  ;;  %v11209_v6 = vld [vmem:[#allocation8 + $0xc0] ss:$16 sps:$4 sm:$0xff]   ;;  %v13146_v49 = vpack.c.bf16 %v752_v46, %v752_v46  ;;  %v754_v50 = vld [vmem:[#allocation5 + $0x18] sm:$0xff]  ;;  %vm5120_vm1 = vcmask 1043456  }
 0x12c   :  { %1957 = vmatpush1.bf16.msra.mxu1 %v11204_v3  ;;  %v11207_v5 = vld [vmem:[#allocation8 + $0x2c4] ss:$16 sps:$4 sm:$0xff]   ;;  %1917 = vmatprep.subr.bf16.mxu0 %v11205_v4  ;;  %v11210_v7 = vld [vmem:[#allocation8 + $0x2c0] ss:$16 sps:$4 sm:$0xff]   ;;  %v13148_v52 = vpack.c.bf16 %v754_v50, %v754_v50  ;;  %vm5055_vm2 = vcmask 261120   ;;  %s12904_s21 = smov 96  }
 0x12d   :  { %1958 = vmatprep.subr.bf16.mxu1 %v11207_v5  ;;  %v11211_v8 = vld [vmem:[#allocation8 + $0xa4] ss:$16 sps:$4 sm:$0xff]   ;;  %v11215_v10 = vld [vmem:[#allocation8 + $0xa0] ss:$16 sps:$4 sm:$0xff]   ;;  %1947 = vmatprep.mubr.bf16.mxu0 %v13146_v49  ;;  %s12905_s24 = smov 32   ;;  %vm5103_vm3 = vcmask 64512  }
 0x12e   :  { %v11213_v9 = vld [vmem:[#allocation8 + $0x2a4] ss:$16 sps:$4 sm:$0xff]   ;;  %v11216_v11 = vld [vmem:[#allocation8 + $0x2a0] ss:$16 sps:$4 sm:$0xff]   ;;  %1988 = vmatprep.mubr.bf16.mxu1 %v13148_v52  ;;  %vm5513_vm4 = vcmask 523264   ;;  %vm5515_vm5 = vcmask 785408  }
 0x12f   :  { %1918 = vmatpush1.bf16.msra.mxu0 %v11209_v6  ;;  %v11217_v12 = vld [vmem:[#allocation8 + $0x84] ss:$16 sps:$4 sm:$0xff]   ;;  %v11221_v14 = vld [vmem:[#allocation8 + $0x80] ss:$16 sps:$4 sm:$0xff]   ;;  %vm9483_vm6 = vcmask 97280   ;;  %vm9485_vm7 = vcmask 195584  }
 0x130   :  { %1959 = vmatpush1.bf16.msra.mxu1 %v11210_v7  ;;  %1919 = vmatprep.subr.bf16.mxu0 %v11211_v8  ;;  %v11219_v13 = vld [vmem:[#allocation8 + $0x284] ss:$16 sps:$4 sm:$0xff]   ;;  %v11222_v15 = vld [vmem:[#allocation8 + $0x280] ss:$16 sps:$4 sm:$0xff]   ;;  %v11300_v7 = vld [vmem:[#allocation8 + $0xec] ss:$16 sps:$4 sm:$0xff]  }
 0x131   :  { %1960 = vmatprep.subr.bf16.mxu1 %v11213_v9  ;;  %v11223_v16 = vld [vmem:[#allocation8 + $0x64] ss:$16 sps:$4 sm:$0xff]   ;;  %v11227_v18 = vld [vmem:[#allocation8 + $0x60] ss:$16 sps:$4 sm:$0xff]  }
 0x132   :  { %v11225_v17 = vld [vmem:[#allocation8 + $0x264] ss:$16 sps:$4 sm:$0xff]   ;;  %v11228_v19 = vld [vmem:[#allocation8 + $0x260] ss:$16 sps:$4 sm:$0xff]  }
 0x133   :  { %1920 = vmatpush1.bf16.msra.mxu0 %v11215_v10  ;;  %v11229_v20 = vld [vmem:[#allocation8 + $0x44] ss:$16 sps:$4 sm:$0xff]   ;;  %v11233_v22 = vld [vmem:[#allocation8 + $0x40] ss:$16 sps:$4 sm:$0xff]  }
 0x134   :  { %1961 = vmatpush1.bf16.msra.mxu1 %v11216_v11  ;;  %1921 = vmatprep.subr.bf16.mxu0 %v11217_v12  ;;  %v11231_v21 = vld [vmem:[#allocation8 + $0x244] ss:$16 sps:$4 sm:$0xff]   ;;  %v11234_v23 = vld [vmem:[#allocation8 + $0x240] ss:$16 sps:$4 sm:$0xff]   ;;  %v11298_v11 = vld [vmem:[#allocation8 + $0xe8] ss:$16 sps:$4 sm:$0xff]  }
 0x135   :  { %1962 = vmatprep.subr.bf16.mxu1 %v11219_v13  ;;  %v11235_v24 = vld [vmem:[#allocation8 + $0x24] ss:$16 sps:$4 sm:$0xff]   ;;  %v11239_v26 = vld [vmem:[#allocation8 + $0x20] ss:$16 sps:$4 sm:$0xff]   ;;  %v11306_v13 = vld [vmem:[#allocation8 + $0xcc] ss:$16 sps:$4 sm:$0xff]  }
 0x136   :  { %v11237_v25 = vld [vmem:[#allocation8 + $0x224] ss:$16 sps:$4 sm:$0xff]   ;;  %v11240_v27 = vld [vmem:[#allocation8 + $0x220] ss:$16 sps:$4 sm:$0xff]  }
 0x137   :  { %1922 = vmatpush1.bf16.msra.mxu0 %v11221_v14  ;;  %v11241_v28 = vld [vmem:[#allocation8 + $0x4] ss:$16 sps:$4 sm:$0xff]   ;;  %v11245_v30 = vld [vmem:[#allocation8] ss:$16 sps:$4 sm:$0xff]  }
 0x138   :  { %1963 = vmatpush1.bf16.msra.mxu1 %v11222_v15  ;;  %1923 = vmatprep.subr.bf16.mxu0 %v11223_v16  ;;  %v11243_v29 = vld [vmem:[#allocation8 + $0x204] ss:$16 sps:$4 sm:$0xff]   ;;  %v11246_v31 = vld [vmem:[#allocation8 + $0x200] ss:$16 sps:$4 sm:$0xff]   ;;  %v11304_v15 = vld [vmem:[#allocation8 + $0xc8] ss:$16 sps:$4 sm:$0xff]  }
 0x139   :  { %1964 = vmatprep.subr.bf16.mxu1 %v11225_v17  ;;  %v11247_v32 = vld [vmem:[#allocation8 + $0x1e4] ss:$16 sps:$4 sm:$0xff]   ;;  %v11251_v34 = vld [vmem:[#allocation8 + $0x1e0] ss:$16 sps:$4 sm:$0xff]   ;;  %v11312_v17 = vld [vmem:[#allocation8 + $0xac] ss:$16 sps:$4 sm:$0xff]  }
 0x13a   :  { %v11249_v33 = vld [vmem:[#allocation8 + $0x3e4] ss:$16 sps:$4 sm:$0xff]   ;;  %v11252_v35 = vld [vmem:[#allocation8 + $0x3e0] ss:$16 sps:$4 sm:$0xff]  }
 0x13b   :  { %1924 = vmatpush1.bf16.msra.mxu0 %v11227_v18  ;;  %v11253_v36 = vld [vmem:[#allocation8 + $0x1c4] ss:$16 sps:$4 sm:$0xff]   ;;  %v11257_v38 = vld [vmem:[#allocation8 + $0x1c0] ss:$16 sps:$4 sm:$0xff]  }
 0x13c   :  { %1965 = vmatpush1.bf16.msra.mxu1 %v11228_v19  ;;  %1925 = vmatprep.subr.bf16.mxu0 %v11229_v20  ;;  %v11255_v37 = vld [vmem:[#allocation8 + $0x3c4] ss:$16 sps:$4 sm:$0xff]   ;;  %v11258_v39 = vld [vmem:[#allocation8 + $0x3c0] ss:$16 sps:$4 sm:$0xff]   ;;  %v11310_v19 = vld [vmem:[#allocation8 + $0xa8] ss:$16 sps:$4 sm:$0xff]  }
 0x13d   :  { %1966 = vmatprep.subr.bf16.mxu1 %v11231_v21  ;;  %v11259_v40 = vld [vmem:[#allocation8 + $0x1a4] ss:$16 sps:$4 sm:$0xff]   ;;  %v11263_v42 = vld [vmem:[#allocation8 + $0x1a0] ss:$16 sps:$4 sm:$0xff]   ;;  %v11318_v21 = vld [vmem:[#allocation8 + $0x8c] ss:$16 sps:$4 sm:$0xff]  }
 0x13e   :  { %v11261_v41 = vld [vmem:[#allocation8 + $0x3a4] ss:$16 sps:$4 sm:$0xff]   ;;  %v11264_v43 = vld [vmem:[#allocation8 + $0x3a0] ss:$16 sps:$4 sm:$0xff]  }
 0x13f   :  { %1926 = vmatpush1.bf16.msra.mxu0 %v11233_v22  ;;  %v11265_v44 = vld [vmem:[#allocation8 + $0x184] ss:$16 sps:$4 sm:$0xff]   ;;  %v11269_v47 = vld [vmem:[#allocation8 + $0x180] ss:$16 sps:$4 sm:$0xff]  }
 0x140   :  { %1967 = vmatpush1.bf16.msra.mxu1 %v11234_v23  ;;  %1927 = vmatprep.subr.bf16.mxu0 %v11235_v24  ;;  %v11267_v45 = vld [vmem:[#allocation8 + $0x384] ss:$16 sps:$4 sm:$0xff]   ;;  %v11270_v48 = vld [vmem:[#allocation8 + $0x380] ss:$16 sps:$4 sm:$0xff]   ;;  %v11316_v23 = vld [vmem:[#allocation8 + $0x88] ss:$16 sps:$4 sm:$0xff]  }
 0x141   :  { %1968 = vmatprep.subr.bf16.mxu1 %v11237_v25  ;;  %v11271_v51 = vld [vmem:[#allocation8 + $0x164] ss:$16 sps:$4 sm:$0xff]   ;;  %v11275_v54 = vld [vmem:[#allocation8 + $0x160] ss:$16 sps:$4 sm:$0xff]   ;;  %v11324_v25 = vld [vmem:[#allocation8 + $0x6c] ss:$16 sps:$4 sm:$0xff]  }
 0x142   :  { %v11273_v53 = vld [vmem:[#allocation8 + $0x364] ss:$16 sps:$4 sm:$0xff]   ;;  %v11276_v55 = vld [vmem:[#allocation8 + $0x360] ss:$16 sps:$4 sm:$0xff]  }
 0x143   :  { %1928 = vmatpush1.bf16.msra.mxu0 %v11239_v26  ;;  %v11277_v56 = vld [vmem:[#allocation8 + $0x144] ss:$16 sps:$4 sm:$0xff]   ;;  %v11281_v58 = vld [vmem:[#allocation8 + $0x140] ss:$16 sps:$4 sm:$0xff]  }
 0x144   :  { %1969 = vmatpush1.bf16.msra.mxu1 %v11240_v27  ;;  %1929 = vmatprep.subr.bf16.mxu0 %v11241_v28  ;;  %v11279_v57 = vld [vmem:[#allocation8 + $0x344] ss:$16 sps:$4 sm:$0xff]   ;;  %v11282_v59 = vld [vmem:[#allocation8 + $0x340] ss:$16 sps:$4 sm:$0xff]   ;;  %v11322_v27 = vld [vmem:[#allocation8 + $0x68] ss:$16 sps:$4 sm:$0xff]  }
 0x145   :  { %1970 = vmatprep.subr.bf16.mxu1 %v11243_v29  ;;  %v11283_v60 = vld [vmem:[#allocation8 + $0x124] ss:$16 sps:$4 sm:$0xff]   ;;  %v11287_v62 = vld [vmem:[#allocation8 + $0x120] ss:$16 sps:$4 sm:$0xff]   ;;  %v11330_v29 = vld [vmem:[#allocation8 + $0x4c] ss:$16 sps:$4 sm:$0xff]  }
 0x146   :  { %v11285_v61 = vld [vmem:[#allocation8 + $0x324] ss:$16 sps:$4 sm:$0xff]   ;;  %v11288_v63 = vld [vmem:[#allocation8 + $0x320] ss:$16 sps:$4 sm:$0xff]  }
 0x147   :  { %1930 = vmatpush1.bf16.msra.mxu0 %v11245_v30  ;;  %v11289_v0 = vld [vmem:[#allocation8 + $0x104] ss:$16 sps:$4 sm:$0xff]   ;;  %v11293_v2 = vld [vmem:[#allocation8 + $0x100] ss:$16 sps:$4 sm:$0xff]  }
 0x148   :  { %1971 = vmatpush1.bf16.msra.mxu1 %v11246_v31  ;;  %1931 = vmatprep.subr.bf16.mxu0 %v11247_v32  ;;  %v11291_v1 = vld [vmem:[#allocation8 + $0x304] ss:$16 sps:$4 sm:$0xff]   ;;  %v11294_v3 = vld [vmem:[#allocation8 + $0x300] ss:$16 sps:$4 sm:$0xff]   ;;  %v11328_v31 = vld [vmem:[#allocation8 + $0x48] ss:$16 sps:$4 sm:$0xff]  }
 0x149   :  { %1972 = vmatprep.subr.bf16.mxu1 %v11249_v33  ;;  %v751_v4 = vld [vmem:[#allocation5] sm:$0xff]  ;;  %v753_v5 = vld [vmem:[#allocation5 + $0x10] sm:$0xff]  ;;  %v11336_v33 = vld [vmem:[#allocation8 + $0x2c] ss:$16 sps:$4 sm:$0xff]  }
 0x14a   :  { %v11297_v6 = vld [vmem:[#allocation8 + $0x4e4] ss:$16 sps:$4 sm:$0xff]   ;;  %v13152_v8 = vpack.c.bf16 %v751_v4, %v751_v4  ;;  %v13154_v9 = vpack.c.bf16 %v753_v5, %v753_v5  ;;  %v11295_v10 = vld [vmem:[#allocation8 + $0x4e0] ss:$16 sps:$4 sm:$0xff]   ;;  %v11384_v4 = vld [vmem:[#allocation8 + $0x12c] ss:$16 sps:$4 sm:$0xff]  }
 0x14b   :  { %1932 = vmatpush2.bf16.msra.mxu0 %v11251_v34  ;;  %v11303_v12 = vld [vmem:[#allocation8 + $0x4c4] ss:$16 sps:$4 sm:$0xff]   ;;  %v11301_v14 = vld [vmem:[#allocation8 + $0x4c0] ss:$16 sps:$4 sm:$0xff]   ;;  %v756_v34 = vld [vmem:[#allocation5 + $0x28] sm:$0xff] }
 0x14c   :  { %1973 = vmatpush2.bf16.msra.mxu1 %v11252_v35  ;;  %1933 = vmatprep.subr.bf16.mxu0 %v11253_v36  ;;  %v11309_v16 = vld [vmem:[#allocation8 + $0x4a4] ss:$16 sps:$4 sm:$0xff]   ;;  %v11307_v18 = vld [vmem:[#allocation8 + $0x4a0] ss:$16 sps:$4 sm:$0xff]   ;;  %v13159_v35 = vpack.c.bf16 %v756_v34, %v756_v34  ;;  %v11426_v34 = vld [vmem:[#allocation8 + $0x44c] ss:$16 sps:$4 sm:$0xff]  }
 0x14d   :  { %1974 = vmatprep.subr.bf16.mxu1 %v11255_v37  ;;  %v11315_v20 = vld [vmem:[#allocation8 + $0x484] ss:$16 sps:$4 sm:$0xff]   ;;  %v11313_v22 = vld [vmem:[#allocation8 + $0x480] ss:$16 sps:$4 sm:$0xff]   ;;  %v11334_v37 = vld [vmem:[#allocation8 + $0x28] ss:$16 sps:$4 sm:$0xff]  }
 0x14e   :  { %v11321_v24 = vld [vmem:[#allocation8 + $0x464] ss:$16 sps:$4 sm:$0xff]   ;;  %v11319_v26 = vld [vmem:[#allocation8 + $0x460] ss:$16 sps:$4 sm:$0xff]  }
 0x14f   :  { %1934 = vmatpush2.bf16.msra.mxu0 %v11257_v38  ;;  %v11327_v28 = vld [vmem:[#allocation8 + $0x444] ss:$16 sps:$4 sm:$0xff]   ;;  %v11325_v30 = vld [vmem:[#allocation8 + $0x440] ss:$16 sps:$4 sm:$0xff]  }
 0x150   :  { %1975 = vmatpush2.bf16.msra.mxu1 %v11258_v39  ;;  %1935 = vmatprep.subr.bf16.mxu0 %v11259_v40  ;;  %v11333_v32 = vld [vmem:[#allocation8 + $0x424] ss:$16 sps:$4 sm:$0xff]   ;;  %v11331_v36 = vld [vmem:[#allocation8 + $0x420] ss:$16 sps:$4 sm:$0xff]   ;;  %v11342_v39 = vld [vmem:[#allocation8 + $0xc] ss:$16 sps:$4 sm:$0xff]  }
 0x151   :  { %1976 = vmatprep.subr.bf16.mxu1 %v11261_v41  ;;  %v11339_v38 = vld [vmem:[#allocation8 + $0x404] ss:$16 sps:$4 sm:$0xff]   ;;  %v11337_v40 = vld [vmem:[#allocation8 + $0x400] ss:$16 sps:$4 sm:$0xff]   ;;  %v11340_v41 = vld [vmem:[#allocation8 + $0x8] ss:$16 sps:$4 sm:$0xff]  }
 0x152   :  { %v11351_v46 = vld [vmem:[#allocation8 + $0x5c4] ss:$16 sps:$4 sm:$0xff]   ;;  %v11379_v5 = vld [vmem:[#allocation8 + $0x520] ss:$16 sps:$4 sm:$0xff]  }
 0x153   :  { %1936 = vmatpush2.bf16.msra.mxu0 %v11263_v42  ;;  %v11345_v42 = vld [vmem:[#allocation8 + $0x5e4] ss:$16 sps:$4 sm:$0xff]  }
 0x154   :  { %1977 = vmatpush2.bf16.msra.mxu1 %v11264_v43  ;;  %1937 = vmatprep.subr.bf16.mxu0 %v11265_v44  ;;  %v11348_v43 = vld [vmem:[#allocation8 + $0x1ec] ss:$16 sps:$4 sm:$0xff]   ;;  %v11343_v44 = vld [vmem:[#allocation8 + $0x5e0] ss:$16 sps:$4 sm:$0xff]   ;;  %v11357_v50 = vld [vmem:[#allocation8 + $0x5a4] ss:$16 sps:$4 sm:$0xff]  }
 0x155   :  { %1978 = vmatprep.subr.bf16.mxu1 %v11267_v45  ;;  %v11346_v45 = vld [vmem:[#allocation8 + $0x1e8] ss:$16 sps:$4 sm:$0xff]  }
 0x157   :  { %1938 = vmatpush2.bf16.msra.mxu0 %v11269_v47  ;;  %v11354_v47 = vld [vmem:[#allocation8 + $0x1cc] ss:$16 sps:$4 sm:$0xff]  }
 0x158   :  { %1979 = vmatpush2.bf16.msra.mxu1 %v11270_v48  ;;  %1939 = vmatprep.subr.bf16.mxu0 %v11271_v51  ;;  %v11349_v48 = vld [vmem:[#allocation8 + $0x5c0] ss:$16 sps:$4 sm:$0xff]   ;;  %v11360_v51 = vld [vmem:[#allocation8 + $0x1ac] ss:$16 sps:$4 sm:$0xff]  }
 0x159   :  { %1980 = vmatprep.subr.bf16.mxu1 %v11273_v53  ;;  %v11355_v53 = vld [vmem:[#allocation8 + $0x5a0] ss:$16 sps:$4 sm:$0xff]  }
 0x15b   :  { %1940 = vmatpush2.bf16.msra.mxu0 %v11275_v54  ;;  %v11358_v54 = vld [vmem:[#allocation8 + $0x1a8] ss:$16 sps:$4 sm:$0xff]  }
 0x15c   :  { %1981 = vmatpush2.bf16.msra.mxu1 %v11276_v55  ;;  %1941 = vmatprep.subr.bf16.mxu0 %v11277_v56  ;;  %v11363_v55 = vld [vmem:[#allocation8 + $0x584] ss:$16 sps:$4 sm:$0xff]   ;;  %v11366_v56 = vld [vmem:[#allocation8 + $0x18c] ss:$16 sps:$4 sm:$0xff]  }
 0x15d   :  { %1982 = vmatprep.subr.bf16.mxu1 %v11279_v57  ;;  %v11361_v57 = vld [vmem:[#allocation8 + $0x580] ss:$16 sps:$4 sm:$0xff]  }
 0x15f   :  { %1942 = vmatpush2.bf16.msra.mxu0 %v11281_v58  ;;  %v11364_v58 = vld [vmem:[#allocation8 + $0x188] ss:$16 sps:$4 sm:$0xff]  }
 0x160   :  { %1983 = vmatpush2.bf16.msra.mxu1 %v11282_v59  ;;  %1943 = vmatprep.subr.bf16.mxu0 %v11283_v60  ;;  %v11369_v59 = vld [vmem:[#allocation8 + $0x564] ss:$16 sps:$4 sm:$0xff]   ;;  %v11372_v60 = vld [vmem:[#allocation8 + $0x16c] ss:$16 sps:$4 sm:$0xff]  }
 0x161   :  { %1984 = vmatprep.subr.bf16.mxu1 %v11285_v61  ;;  %v11367_v61 = vld [vmem:[#allocation8 + $0x560] ss:$16 sps:$4 sm:$0xff]  }
 0x163   :  { %1944 = vmatpush2.bf16.msra.mxu0 %v11287_v62  ;;  %v11370_v62 = vld [vmem:[#allocation8 + $0x168] ss:$16 sps:$4 sm:$0xff]  }
 0x164   :  { %1985 = vmatpush2.bf16.msra.mxu1 %v11288_v63  ;;  %1945 = vmatprep.subr.bf16.mxu0 %v11289_v0  ;;  %v11375_v63 = vld [vmem:[#allocation8 + $0x544] ss:$16 sps:$4 sm:$0xff]   ;;  %v11378_v0 = vld [vmem:[#allocation8 + $0x14c] ss:$16 sps:$4 sm:$0xff]  }
 0x165   :  { %1986 = vmatprep.subr.bf16.mxu1 %v11291_v1  ;;  %v11373_v1 = vld [vmem:[#allocation8 + $0x540] ss:$16 sps:$4 sm:$0xff]  }
 0x167   :  { %1946 = vmatpush2.bf16.msra.mxu0 %v11293_v2  ;;  %v11376_v2 = vld [vmem:[#allocation8 + $0x148] ss:$16 sps:$4 sm:$0xff]  }
 0x168   :  { %1987 = vmatpush2.bf16.msra.mxu1 %v11294_v3  ;;  %1997 = vmatprep.subr.bf16.mxu0 %v11297_v6  ;;  %v11381_v3 = vld [vmem:[#allocation8 + $0x524] ss:$16 sps:$4 sm:$0xff]   ;;  %v11382_v6 = vld [vmem:[#allocation8 + $0x128] ss:$16 sps:$4 sm:$0xff]  }
 0x169   :  { %2038 = vmatprep.subr.bf16.mxu1 %v11300_v7  ;;  %v11387_v7 = vld [vmem:[#allocation8 + $0x504] ss:$16 sps:$4 sm:$0xff]  }
 0x16a   :  { %1948 = vmatmul.mubr.bf16.vlgmr.msra.gmra.mxu0 %v13152_v8 }
 0x16b   :  { %1989 = vmatmul.mubr.bf16.vlgmr.msra.gmra.mxu1 %v13154_v9  ;;  %1998 = vmatpush1.bf16.msra.mxu0 %v11295_v10  ;;  %v11390_v10 = vld [vmem:[#allocation8 + $0x10c] ss:$16 sps:$4 sm:$0xff]  }
 0x16c   :  { %2039 = vmatpush1.bf16.msra.mxu1 %v11298_v11  ;;  %1999 = vmatprep.subr.bf16.mxu0 %v11303_v12  ;;  %v11385_v11 = vld [vmem:[#allocation8 + $0x500] ss:$16 sps:$4 sm:$0xff]   ;;  %v11388_v12 = vld [vmem:[#allocation8 + $0x108] ss:$16 sps:$4 sm:$0xff]  }
 0x16d   :  { %2040 = vmatprep.subr.bf16.mxu1 %v11306_v13  ;;  %2070 = vmatprep.mubr.bf16.mxu1 %v13146_v49  ;;  %v11352_v49 = vld [vmem:[#allocation8 + $0x1c8] ss:$16 sps:$4 sm:$0xff]   ;;  %v755_v13 = vld [vmem:[#allocation5 + $0x20] sm:$0xff] }
 0x16e   :  { %2029 = vmatprep.mubr.bf16.mxu0 %v13159_v35 }
 0x16f   :  { %2000 = vmatpush1.bf16.msra.mxu0 %v11301_v14  ;;  %v11393_v14 = vld [vmem:[#allocation8 + $0x2ec] ss:$16 sps:$4 sm:$0xff]  }
 0x170   :  { %2041 = vmatpush1.bf16.msra.mxu1 %v11304_v15  ;;  %2001 = vmatprep.subr.bf16.mxu0 %v11309_v16  ;;  %v11396_v15 = vld [vmem:[#allocation8 + $0x4ec] ss:$16 sps:$4 sm:$0xff]   ;;  %v13162_v16 = vpack.c.bf16 %v755_v13, %v755_v13 }
 0x171   :  { %2042 = vmatprep.subr.bf16.mxu1 %v11312_v17  ;;  %v11391_v17 = vld [vmem:[#allocation8 + $0x2e8] ss:$16 sps:$4 sm:$0xff]   ;;  %v11486_v13 = vld [vmem:[#allocation8 + $0x50c] ss:$16 sps:$4 sm:$0xff]  }
 0x173   :  { %2002 = vmatpush1.bf16.msra.mxu0 %v11307_v18  ;;  %v11394_v18 = vld [vmem:[#allocation8 + $0x4e8] ss:$16 sps:$4 sm:$0xff]  }
 0x174   :  { %2043 = vmatpush1.bf16.msra.mxu1 %v11310_v19  ;;  %2003 = vmatprep.subr.bf16.mxu0 %v11315_v20  ;;  %v11399_v19 = vld [vmem:[#allocation8 + $0x2cc] ss:$16 sps:$4 sm:$0xff]  }
 0x175   :  { %2044 = vmatprep.subr.bf16.mxu1 %v11318_v21  ;;  %v11402_v20 = vld [vmem:[#allocation8 + $0x4cc] ss:$16 sps:$4 sm:$0xff]   ;;  %v11397_v21 = vld [vmem:[#allocation8 + $0x2c8] ss:$16 sps:$4 sm:$0xff]  }
 0x177   :  { %2004 = vmatpush1.bf16.msra.mxu0 %v11313_v22  ;;  %v11400_v22 = vld [vmem:[#allocation8 + $0x4c8] ss:$16 sps:$4 sm:$0xff]  }
 0x178   :  { %2045 = vmatpush1.bf16.msra.mxu1 %v11316_v23  ;;  %2005 = vmatprep.subr.bf16.mxu0 %v11321_v24  ;;  %v11405_v23 = vld [vmem:[#allocation8 + $0x2ac] ss:$16 sps:$4 sm:$0xff]  }
 0x179   :  { %2046 = vmatprep.subr.bf16.mxu1 %v11324_v25  ;;  %v11408_v24 = vld [vmem:[#allocation8 + $0x4ac] ss:$16 sps:$4 sm:$0xff]   ;;  %v11403_v25 = vld [vmem:[#allocation8 + $0x2a8] ss:$16 sps:$4 sm:$0xff]  }
 0x17b   :  { %2006 = vmatpush1.bf16.msra.mxu0 %v11319_v26  ;;  %v11406_v26 = vld [vmem:[#allocation8 + $0x4a8] ss:$16 sps:$4 sm:$0xff]  }
 0x17c   :  { %2047 = vmatpush1.bf16.msra.mxu1 %v11322_v27  ;;  %2007 = vmatprep.subr.bf16.mxu0 %v11327_v28  ;;  %v11411_v27 = vld [vmem:[#allocation8 + $0x28c] ss:$16 sps:$4 sm:$0xff]   ;;  %v11409_v28 = vld [vmem:[#allocation8 + $0x288] ss:$16 sps:$4 sm:$0xff]  }
 0x17d   :  { %2048 = vmatprep.subr.bf16.mxu1 %v11330_v29  ;;  %v11412_v29 = vld [vmem:[#allocation8 + $0x488] ss:$16 sps:$4 sm:$0xff]  }
 0x17f   :  { %2008 = vmatpush1.bf16.msra.mxu0 %v11325_v30  ;;  %v11417_v30 = vld [vmem:[#allocation8 + $0x26c] ss:$16 sps:$4 sm:$0xff]  }
 0x180   :  { %2049 = vmatpush1.bf16.msra.mxu1 %v11328_v31  ;;  %2009 = vmatprep.subr.bf16.mxu0 %v11333_v32  ;;  %v11420_v31 = vld [vmem:[#allocation8 + $0x46c] ss:$16 sps:$4 sm:$0xff]   ;;  %v11418_v32 = vld [vmem:[#allocation8 + $0x468] ss:$16 sps:$4 sm:$0xff]  }
 0x181   :  { %2050 = vmatprep.subr.bf16.mxu1 %v11336_v33  ;;  %v11423_v33 = vld [vmem:[#allocation8 + $0x24c] ss:$16 sps:$4 sm:$0xff]  }
 0x183   :  { %2010 = vmatpush1.bf16.msra.mxu0 %v11331_v36  ;;  %v11424_v36 = vld [vmem:[#allocation8 + $0x448] ss:$16 sps:$4 sm:$0xff]  }
 0x184   :  { %2051 = vmatpush1.bf16.msra.mxu1 %v11334_v37  ;;  %2011 = vmatprep.subr.bf16.mxu0 %v11339_v38  ;;  %v11429_v37 = vld [vmem:[#allocation8 + $0x22c] ss:$16 sps:$4 sm:$0xff]  }
 0x185   :  { %2052 = vmatprep.subr.bf16.mxu1 %v11342_v39  ;;  %v11432_v38 = vld [vmem:[#allocation8 + $0x42c] ss:$16 sps:$4 sm:$0xff]   ;;  %v11427_v39 = vld [vmem:[#allocation8 + $0x228] ss:$16 sps:$4 sm:$0xff]  }
 0x187   :  { %2012 = vmatpush1.bf16.msra.mxu0 %v11337_v40  ;;  %v11430_v40 = vld [vmem:[#allocation8 + $0x428] ss:$16 sps:$4 sm:$0xff]  }
 0x188   :  { %2053 = vmatpush1.bf16.msra.mxu1 %v11340_v41  ;;  %2013 = vmatprep.subr.bf16.mxu0 %v11345_v42  ;;  %v11435_v41 = vld [vmem:[#allocation8 + $0x20c] ss:$16 sps:$4 sm:$0xff]  }
 0x189   :  { %2054 = vmatprep.subr.bf16.mxu1 %v11348_v43  ;;  %v11438_v42 = vld [vmem:[#allocation8 + $0x40c] ss:$16 sps:$4 sm:$0xff]   ;;  %v11433_v43 = vld [vmem:[#allocation8 + $0x208] ss:$16 sps:$4 sm:$0xff]  }
 0x18b   :  { %2014 = vmatpush2.bf16.msra.mxu0 %v11343_v44  ;;  %v11436_v44 = vld [vmem:[#allocation8 + $0x408] ss:$16 sps:$4 sm:$0xff]  }
 0x18c   :  { %2055 = vmatpush2.bf16.msra.mxu1 %v11346_v45  ;;  %2015 = vmatprep.subr.bf16.mxu0 %v11351_v46  ;;  %v11441_v45 = vld [vmem:[#allocation8 + $0x3ec] ss:$16 sps:$4 sm:$0xff]  }
 0x18d   :  { %2056 = vmatprep.subr.bf16.mxu1 %v11354_v47  ;;  %v11444_v46 = vld [vmem:[#allocation8 + $0x5ec] ss:$16 sps:$4 sm:$0xff]   ;;  %v11439_v47 = vld [vmem:[#allocation8 + $0x3e8] ss:$16 sps:$4 sm:$0xff]  }
 0x18f   :  { %2016 = vmatpush2.bf16.msra.mxu0 %v11349_v48  ;;  %v11442_v48 = vld [vmem:[#allocation8 + $0x5e8] ss:$16 sps:$4 sm:$0xff]  }
 0x190   :  { %2057 = vmatpush2.bf16.msra.mxu1 %v11352_v49  ;;  %2017 = vmatprep.subr.bf16.mxu0 %v11357_v50  ;;  %v11447_v49 = vld [vmem:[#allocation8 + $0x3cc] ss:$16 sps:$4 sm:$0xff]  }
 0x191   :  { %2058 = vmatprep.subr.bf16.mxu1 %v11360_v51  ;;  %v11450_v50 = vld [vmem:[#allocation8 + $0x5cc] ss:$16 sps:$4 sm:$0xff]   ;;  %v11445_v51 = vld [vmem:[#allocation8 + $0x3c8] ss:$16 sps:$4 sm:$0xff]  }
 0x193   :  { %2018 = vmatpush2.bf16.msra.mxu0 %v11355_v53  ;;  %v11448_v53 = vld [vmem:[#allocation8 + $0x5c8] ss:$16 sps:$4 sm:$0xff]  }
 0x194   :  { %2059 = vmatpush2.bf16.msra.mxu1 %v11358_v54  ;;  %2019 = vmatprep.subr.bf16.mxu0 %v11363_v55  ;;  %v11453_v54 = vld [vmem:[#allocation8 + $0x3ac] ss:$16 sps:$4 sm:$0xff]  }
 0x195   :  { %2060 = vmatprep.subr.bf16.mxu1 %v11366_v56  ;;  %v11456_v55 = vld [vmem:[#allocation8 + $0x5ac] ss:$16 sps:$4 sm:$0xff]   ;;  %v11451_v56 = vld [vmem:[#allocation8 + $0x3a8] ss:$16 sps:$4 sm:$0xff]  }
 0x197   :  { %2020 = vmatpush2.bf16.msra.mxu0 %v11361_v57  ;;  %v11454_v57 = vld [vmem:[#allocation8 + $0x5a8] ss:$16 sps:$4 sm:$0xff]  }
 0x198   :  { %2061 = vmatpush2.bf16.msra.mxu1 %v11364_v58  ;;  %2021 = vmatprep.subr.bf16.mxu0 %v11369_v59  ;;  %v11459_v58 = vld [vmem:[#allocation8 + $0x38c] ss:$16 sps:$4 sm:$0xff]  }
 0x199   :  { %2062 = vmatprep.subr.bf16.mxu1 %v11372_v60  ;;  %v11462_v59 = vld [vmem:[#allocation8 + $0x58c] ss:$16 sps:$4 sm:$0xff]   ;;  %v11457_v60 = vld [vmem:[#allocation8 + $0x388] ss:$16 sps:$4 sm:$0xff]  }
 0x19b   :  { %2022 = vmatpush2.bf16.msra.mxu0 %v11367_v61  ;;  %v11460_v61 = vld [vmem:[#allocation8 + $0x588] ss:$16 sps:$4 sm:$0xff]  }
 0x19c   :  { %2063 = vmatpush2.bf16.msra.mxu1 %v11370_v62  ;;  %2023 = vmatprep.subr.bf16.mxu0 %v11375_v63  ;;  %v11465_v62 = vld [vmem:[#allocation8 + $0x36c] ss:$16 sps:$4 sm:$0xff]  }
 0x19d   :  { %2064 = vmatprep.subr.bf16.mxu1 %v11378_v0  ;;  %v11468_v63 = vld [vmem:[#allocation8 + $0x56c] ss:$16 sps:$4 sm:$0xff]   ;;  %v11463_v0 = vld [vmem:[#allocation8 + $0x368] ss:$16 sps:$4 sm:$0xff]  }
 0x19f   :  { %2024 = vmatpush2.bf16.msra.mxu0 %v11373_v1  ;;  %v11466_v1 = vld [vmem:[#allocation8 + $0x568] ss:$16 sps:$4 sm:$0xff]  }
 0x1a0   :  { %2065 = vmatpush2.bf16.msra.mxu1 %v11376_v2  ;;  %2025 = vmatprep.subr.bf16.mxu0 %v11381_v3  ;;  %v11471_v2 = vld [vmem:[#allocation8 + $0x34c] ss:$16 sps:$4 sm:$0xff]  }
 0x1a1   :  { %2066 = vmatprep.subr.bf16.mxu1 %v11384_v4  ;;  %v11474_v3 = vld [vmem:[#allocation8 + $0x54c] ss:$16 sps:$4 sm:$0xff]   ;;  %v11469_v4 = vld [vmem:[#allocation8 + $0x348] ss:$16 sps:$4 sm:$0xff]  }
 0x1a3   :  { %2026 = vmatpush2.bf16.msra.mxu0 %v11379_v5  ;;  %v11472_v5 = vld [vmem:[#allocation8 + $0x548] ss:$16 sps:$4 sm:$0xff]  }
 0x1a4   :  { %2067 = vmatpush2.bf16.msra.mxu1 %v11382_v6  ;;  %2027 = vmatprep.subr.bf16.mxu0 %v11387_v7  ;;  %v11477_v6 = vld [vmem:[#allocation8 + $0x32c] ss:$16 sps:$4 sm:$0xff]  }
 0x1a5   :  { %2068 = vmatprep.subr.bf16.mxu1 %v11390_v10  ;;  %v11480_v7 = vld [vmem:[#allocation8 + $0x52c] ss:$16 sps:$4 sm:$0xff]   ;;  %v11475_v10 = vld [vmem:[#allocation8 + $0x328] ss:$16 sps:$4 sm:$0xff]  }
 0x1a7   :  { %2028 = vmatpush2.bf16.msra.mxu0 %v11385_v11  ;;  %v11478_v11 = vld [vmem:[#allocation8 + $0x528] ss:$16 sps:$4 sm:$0xff]  }
 0x1a8   :  { %2069 = vmatpush2.bf16.msra.mxu1 %v11388_v12  ;;  %2079 = vmatprep.subr.bf16.mxu0 %v11393_v14  ;;  %v11483_v12 = vld [vmem:[#allocation8 + $0x30c] ss:$16 sps:$4 sm:$0xff]   ;;  %v11481_v14 = vld [vmem:[#allocation8 + $0x308] ss:$16 sps:$4 sm:$0xff]  }
 0x1a9   :  { %2120 = vmatprep.subr.bf16.mxu1 %v11396_v15  ;;  %v11484_v15 = vld [vmem:[#allocation8 + $0x508] ss:$16 sps:$4 sm:$0xff]  }
 0x1aa   :  { %2030 = vmatmul.mubr.bf16.vlgmr.msra.gmra.mxu0 %v13162_v16 }
 0x1ab   :  { %2071 = vmatmul.mubr.bf16.vlgmr.msra.gmra.mxu1 %v13152_v8  ;;  %2080 = vmatpush1.bf16.msra.mxu0 %v11391_v17  ;;  %v11414_v8 = vld [vmem:[#allocation8 + $0x48c] ss:$16 sps:$4 sm:$0xff]   ;;  %v11489_v17 = vld [vmem:[#allocation7 + $0xe4] ss:$16 sps:$4 sm:$0xff]  }
 0x1ac   :  { %2121 = vmatpush1.bf16.msra.mxu1 %v11394_v18  ;;  %2081 = vmatprep.subr.bf16.mxu0 %v11399_v19  ;;  %v11492_v18 = vld [vmem:[#allocation7 + $0x2e4] ss:$16 sps:$4 sm:$0xff]  }
 0x1ad   :  { %2122 = vmatprep.subr.bf16.mxu1 %v11402_v20  ;;  %2111 = vmatprep.mubr.bf16.mxu0 %v13148_v52  ;;  %v11415_v52 = vld [vmem:[#allocation8 + $0x268] ss:$16 sps:$4 sm:$0xff]   ;;  %v378_v19 = vld [vmem:[#allocation2 + $0x8] sm:$0xff]  ;;  %v380_v20 = vld [vmem:[#allocation2 + $0x18] sm:$0xff] }
 0x1ae   :  { %2152 = vmatprep.mubr.bf16.mxu1 %v13159_v35  ;;  %v11421_v35 = vld [vmem:[#allocation8 + $0x248] ss:$16 sps:$4 sm:$0xff]  }
 0x1af   :  { %2082 = vmatpush1.bf16.msra.mxu0 %v11397_v21  ;;  %v11487_v21 = vld [vmem:[#allocation7 + $0xe0] ss:$16 sps:$4 sm:$0xff]  }
 0x1b0   :  { %2123 = vmatpush1.bf16.msra.mxu1 %v11400_v22  ;;  %2083 = vmatprep.subr.bf16.mxu0 %v11405_v23  ;;  %v11490_v22 = vld [vmem:[#allocation7 + $0x2e0] ss:$16 sps:$4 sm:$0xff]   ;;  %v11495_v23 = vld [vmem:[#allocation7 + $0xc4] ss:$16 sps:$4 sm:$0xff]  }
 0x1b1   :  { %2124 = vmatprep.subr.bf16.mxu1 %v11408_v24  ;;  %v11498_v24 = vld [vmem:[#allocation7 + $0x2c4] ss:$16 sps:$4 sm:$0xff]  }
 0x1b3   :  { %2084 = vmatpush1.bf16.msra.mxu0 %v11403_v25  ;;  %v13168_v25 = vpack.c.bf16 %v378_v19, %v378_v19  ;;  %v11577_v19 = vld [vmem:[#allocation7 + $0x100] ss:$16 sps:$4 sm:$0xff]  }
 0x1b4   :  { %2125 = vmatpush1.bf16.msra.mxu1 %v11406_v26  ;;  %2085 = vmatprep.subr.bf16.mxu0 %v11411_v27  ;;  %v13170_v26 = vpack.c.bf16 %v380_v20, %v380_v20  ;;  %v11493_v27 = vld [vmem:[#allocation7 + $0xc0] ss:$16 sps:$4 sm:$0xff]  }
 0x1b5   :  { %2126 = vmatprep.subr.bf16.mxu1 %v11414_v8  ;;  %v11496_v8 = vld [vmem:[#allocation7 + $0x2c0] ss:$16 sps:$4 sm:$0xff]  }
 0x1b6   :  { %v11580_v20 = vld [vmem:[#allocation7 + $0x300] ss:$16 sps:$4 sm:$0xff]  }
 0x1b7   :  { %2086 = vmatpush1.bf16.msra.mxu0 %v11409_v28  ;;  %v11501_v28 = vld [vmem:[#allocation7 + $0xa4] ss:$16 sps:$4 sm:$0xff]  }
 0x1b8   :  { %2127 = vmatpush1.bf16.msra.mxu1 %v11412_v29  ;;  %2087 = vmatprep.subr.bf16.mxu0 %v11417_v30  ;;  %v11504_v29 = vld [vmem:[#allocation7 + $0x2a4] ss:$16 sps:$4 sm:$0xff]   ;;  %v11499_v30 = vld [vmem:[#allocation7 + $0xa0] ss:$16 sps:$4 sm:$0xff]  }
 0x1b9   :  { %2128 = vmatprep.subr.bf16.mxu1 %v11420_v31  ;;  %v11502_v31 = vld [vmem:[#allocation7 + $0x2a0] ss:$16 sps:$4 sm:$0xff]  }
 0x1bb   :  { %2088 = vmatpush1.bf16.msra.mxu0 %v11415_v52  ;;  %v11505_v52 = vld [vmem:[#allocation7 + $0x80] ss:$16 sps:$4 sm:$0xff]  }
 0x1bc   :  { %2129 = vmatpush1.bf16.msra.mxu1 %v11418_v32  ;;  %2089 = vmatprep.subr.bf16.mxu0 %v11423_v33  ;;  %v11508_v32 = vld [vmem:[#allocation7 + $0x280] ss:$16 sps:$4 sm:$0xff]   ;;  %v11513_v33 = vld [vmem:[#allocation7 + $0x64] ss:$16 sps:$4 sm:$0xff]  }
 0x1bd   :  { %2130 = vmatprep.subr.bf16.mxu1 %v11426_v34  ;;  %v11516_v34 = vld [vmem:[#allocation7 + $0x264] ss:$16 sps:$4 sm:$0xff]  }
 0x1bf   :  { %2090 = vmatpush1.bf16.msra.mxu0 %v11421_v35  ;;  %v11511_v35 = vld [vmem:[#allocation7 + $0x60] ss:$16 sps:$4 sm:$0xff]  }
 0x1c0   :  { %2131 = vmatpush1.bf16.msra.mxu1 %v11424_v36  ;;  %2091 = vmatprep.subr.bf16.mxu0 %v11429_v37  ;;  %v11514_v36 = vld [vmem:[#allocation7 + $0x260] ss:$16 sps:$4 sm:$0xff]   ;;  %v11519_v37 = vld [vmem:[#allocation7 + $0x44] ss:$16 sps:$4 sm:$0xff]  }
 0x1c1   :  { %2132 = vmatprep.subr.bf16.mxu1 %v11432_v38  ;;  %v11522_v38 = vld [vmem:[#allocation7 + $0x244] ss:$16 sps:$4 sm:$0xff]  }
 0x1c3   :  { %2092 = vmatpush1.bf16.msra.mxu0 %v11427_v39  ;;  %v11517_v39 = vld [vmem:[#allocation7 + $0x40] ss:$16 sps:$4 sm:$0xff]  }
 0x1c4   :  { %2133 = vmatpush1.bf16.msra.mxu1 %v11430_v40  ;;  %2093 = vmatprep.subr.bf16.mxu0 %v11435_v41  ;;  %v11520_v40 = vld [vmem:[#allocation7 + $0x240] ss:$16 sps:$4 sm:$0xff]   ;;  %v11525_v41 = vld [vmem:[#allocation7 + $0x24] ss:$16 sps:$4 sm:$0xff]  }
 0x1c5   :  { %2134 = vmatprep.subr.bf16.mxu1 %v11438_v42  ;;  %v11528_v42 = vld [vmem:[#allocation7 + $0x224] ss:$16 sps:$4 sm:$0xff]  }
 0x1c7   :  { %2094 = vmatpush1.bf16.msra.mxu0 %v11433_v43  ;;  %v11523_v43 = vld [vmem:[#allocation7 + $0x20] ss:$16 sps:$4 sm:$0xff]  }
 0x1c8   :  { %2135 = vmatpush1.bf16.msra.mxu1 %v11436_v44  ;;  %2095 = vmatprep.subr.bf16.mxu0 %v11441_v45  ;;  %v11526_v44 = vld [vmem:[#allocation7 + $0x220] ss:$16 sps:$4 sm:$0xff]   ;;  %v11531_v45 = vld [vmem:[#allocation7 + $0x4] ss:$16 sps:$4 sm:$0xff]  }
 0x1c9   :  { %2136 = vmatprep.subr.bf16.mxu1 %v11444_v46  ;;  %v11534_v46 = vld [vmem:[#allocation7 + $0x204] ss:$16 sps:$4 sm:$0xff]  }
 0x1cb   :  { %2096 = vmatpush2.bf16.msra.mxu0 %v11439_v47  ;;  %v11529_v47 = vld [vmem:[#allocation7] ss:$16 sps:$4 sm:$0xff]  }
 0x1cc   :  { %2137 = vmatpush2.bf16.msra.mxu1 %v11442_v48  ;;  %2097 = vmatprep.subr.bf16.mxu0 %v11447_v49  ;;  %v11532_v48 = vld [vmem:[#allocation7 + $0x200] ss:$16 sps:$4 sm:$0xff]   ;;  %v11537_v49 = vld [vmem:[#allocation7 + $0x1e4] ss:$16 sps:$4 sm:$0xff]  }
 0x1cd   :  { %2138 = vmatprep.subr.bf16.mxu1 %v11450_v50  ;;  %v11540_v50 = vld [vmem:[#allocation7 + $0x3e4] ss:$16 sps:$4 sm:$0xff]  }
 0x1cf   :  { %2098 = vmatpush2.bf16.msra.mxu0 %v11445_v51  ;;  %v11535_v51 = vld [vmem:[#allocation7 + $0x1e0] ss:$16 sps:$4 sm:$0xff]  }
 0x1d0   :  { %2139 = vmatpush2.bf16.msra.mxu1 %v11448_v53  ;;  %2099 = vmatprep.subr.bf16.mxu0 %v11453_v54  ;;  %v11538_v53 = vld [vmem:[#allocation7 + $0x3e0] ss:$16 sps:$4 sm:$0xff]   ;;  %v11543_v54 = vld [vmem:[#allocation7 + $0x1c4] ss:$16 sps:$4 sm:$0xff]  }
 0x1d1   :  { %2140 = vmatprep.subr.bf16.mxu1 %v11456_v55  ;;  %v11546_v55 = vld [vmem:[#allocation7 + $0x3c4] ss:$16 sps:$4 sm:$0xff]  }
 0x1d3   :  { %2100 = vmatpush2.bf16.msra.mxu0 %v11451_v56  ;;  %v11541_v56 = vld [vmem:[#allocation7 + $0x1c0] ss:$16 sps:$4 sm:$0xff]  }
 0x1d4   :  { %2141 = vmatpush2.bf16.msra.mxu1 %v11454_v57  ;;  %2101 = vmatprep.subr.bf16.mxu0 %v11459_v58  ;;  %v11544_v57 = vld [vmem:[#allocation7 + $0x3c0] ss:$16 sps:$4 sm:$0xff]   ;;  %v11549_v58 = vld [vmem:[#allocation7 + $0x1a4] ss:$16 sps:$4 sm:$0xff]  }
 0x1d5   :  { %2142 = vmatprep.subr.bf16.mxu1 %v11462_v59  ;;  %v11552_v59 = vld [vmem:[#allocation7 + $0x3a4] ss:$16 sps:$4 sm:$0xff]  }
 0x1d7   :  { %2102 = vmatpush2.bf16.msra.mxu0 %v11457_v60  ;;  %v11547_v60 = vld [vmem:[#allocation7 + $0x1a0] ss:$16 sps:$4 sm:$0xff]  }
 0x1d8   :  { %2143 = vmatpush2.bf16.msra.mxu1 %v11460_v61  ;;  %2103 = vmatprep.subr.bf16.mxu0 %v11465_v62  ;;  %v11550_v61 = vld [vmem:[#allocation7 + $0x3a0] ss:$16 sps:$4 sm:$0xff]   ;;  %v11555_v62 = vld [vmem:[#allocation7 + $0x184] ss:$16 sps:$4 sm:$0xff]  }
 0x1d9   :  { %2144 = vmatprep.subr.bf16.mxu1 %v11468_v63  ;;  %v11558_v63 = vld [vmem:[#allocation7 + $0x384] ss:$16 sps:$4 sm:$0xff]  }
 0x1db   :  { %2104 = vmatpush2.bf16.msra.mxu0 %v11463_v0  ;;  %v11553_v0 = vld [vmem:[#allocation7 + $0x180] ss:$16 sps:$4 sm:$0xff]  }
 0x1dc   :  { %2145 = vmatpush2.bf16.msra.mxu1 %v11466_v1  ;;  %2105 = vmatprep.subr.bf16.mxu0 %v11471_v2  ;;  %v11556_v1 = vld [vmem:[#allocation7 + $0x380] ss:$16 sps:$4 sm:$0xff]   ;;  %v11561_v2 = vld [vmem:[#allocation7 + $0x164] ss:$16 sps:$4 sm:$0xff]  }
 0x1dd   :  { %2146 = vmatprep.subr.bf16.mxu1 %v11474_v3  ;;  %v11564_v3 = vld [vmem:[#allocation7 + $0x364] ss:$16 sps:$4 sm:$0xff]  }
 0x1df   :  { %2106 = vmatpush2.bf16.msra.mxu0 %v11469_v4  ;;  %v11559_v4 = vld [vmem:[#allocation7 + $0x160] ss:$16 sps:$4 sm:$0xff]  }
 0x1e0   :  { %2147 = vmatpush2.bf16.msra.mxu1 %v11472_v5  ;;  %2107 = vmatprep.subr.bf16.mxu0 %v11477_v6  ;;  %v11562_v5 = vld [vmem:[#allocation7 + $0x360] ss:$16 sps:$4 sm:$0xff]   ;;  %v11567_v6 = vld [vmem:[#allocation7 + $0x144] ss:$16 sps:$4 sm:$0xff]  }
 0x1e1   :  { %2148 = vmatprep.subr.bf16.mxu1 %v11480_v7  ;;  %v11570_v7 = vld [vmem:[#allocation7 + $0x344] ss:$16 sps:$4 sm:$0xff]  }
 0x1e3   :  { %2108 = vmatpush2.bf16.msra.mxu0 %v11475_v10  ;;  %v11565_v10 = vld [vmem:[#allocation7 + $0x140] ss:$16 sps:$4 sm:$0xff]  }
 0x1e4   :  { %2149 = vmatpush2.bf16.msra.mxu1 %v11478_v11  ;;  %2109 = vmatprep.subr.bf16.mxu0 %v11483_v12  ;;  %v11568_v11 = vld [vmem:[#allocation7 + $0x340] ss:$16 sps:$4 sm:$0xff]   ;;  %v11573_v12 = vld [vmem:[#allocation7 + $0x124] ss:$16 sps:$4 sm:$0xff]  }
 0x1e5   :  { %2150 = vmatprep.subr.bf16.mxu1 %v11486_v13  ;;  %v11576_v13 = vld [vmem:[#allocation7 + $0x324] ss:$16 sps:$4 sm:$0xff]  }
 0x1e7   :  { %2110 = vmatpush2.bf16.msra.mxu0 %v11481_v14  ;;  %v11571_v14 = vld [vmem:[#allocation7 + $0x120] ss:$16 sps:$4 sm:$0xff]  }
 0x1e8   :  { %2151 = vmatpush2.bf16.msra.mxu1 %v11484_v15  ;;  %3921 = vmatprep.subr.bf16.mxu0 %v11489_v17  ;;  %v11574_v15 = vld [vmem:[#allocation7 + $0x320] ss:$16 sps:$4 sm:$0xff]   ;;  %v11579_v17 = vld [vmem:[#allocation7 + $0x104] ss:$16 sps:$4 sm:$0xff]  }
 0x1e9   :  { %3962 = vmatprep.subr.bf16.mxu1 %v11492_v18  ;;  %v11582_v18 = vld [vmem:[#allocation7 + $0x304] ss:$16 sps:$4 sm:$0xff]  }
 0x1ea   :  { %2112 = vmatmul.mubr.bf16.vlgmr.msra.gmra.mxu0 %v13154_v9  ;;  %v11507_v9 = vld [vmem:[#allocation7 + $0x84] ss:$16 sps:$4 sm:$0xff]  }
 0x1eb   :  { %2153 = vmatmul.mubr.bf16.vlgmr.msra.gmra.mxu1 %v13162_v16  ;;  %3922 = vmatpush1.bf16.msra.mxu0 %v11487_v21  ;;  %v11510_v16 = vld [vmem:[#allocation7 + $0x284] ss:$16 sps:$4 sm:$0xff]   ;;  %v377_v21 = vld [vmem:[#allocation2] sm:$0xff] }
 0x1ec   :  { %3963 = vmatpush1.bf16.msra.mxu1 %v11490_v22  ;;  %3923 = vmatprep.subr.bf16.mxu0 %v11495_v23  ;;  %v379_v22 = vld [vmem:[#allocation2 + $0x10] sm:$0xff]  ;;  %v11585_v23 = vld [vmem:[#allocation7 + $0x4e4] ss:$16 sps:$4 sm:$0xff]  }
 0x1ed   :  { %3964 = vmatprep.subr.bf16.mxu1 %v11498_v24  ;;  %3953 = vmatprep.mubr.bf16.mxu0 %v13168_v25  ;;  %v11588_v24 = vld [vmem:[#allocation7 + $0x6e4] ss:$16 sps:$4 sm:$0xff]  }
 0x1ee   :  { %3994 = vmatprep.mubr.bf16.mxu1 %v13170_v26 }
 0x1ef   :  { %3924 = vmatpush1.bf16.msra.mxu0 %v11493_v27  ;;  %v11583_v27 = vld [vmem:[#allocation7 + $0x4e0] ss:$16 sps:$4 sm:$0xff]  }
 0x1f0   :  { %3965 = vmatpush1.bf16.msra.mxu1 %v11496_v8  ;;  %3925 = vmatprep.subr.bf16.mxu0 %v11501_v28  ;;  %v13176_v8 = vpack.c.bf16 %v377_v21, %v377_v21  ;;  %v13178_v28 = vpack.c.bf16 %v379_v22, %v379_v22  ;;  %v11651_v21 = vld [vmem:[#allocation7 + $0x584] ss:$16 sps:$4 sm:$0xff]  }
 0x1f1   :  { %3966 = vmatprep.subr.bf16.mxu1 %v11504_v29  ;;  %v382_v29 = vld [vmem:[#allocation2 + $0x28] sm:$0xff] }
 0x1f2   :  { %v11654_v22 = vld [vmem:[#allocation7 + $0x784] ss:$16 sps:$4 sm:$0xff]  }
 0x1f3   :  { %3926 = vmatpush1.bf16.msra.mxu0 %v11499_v30  ;;  %v384_v30 = vld [vmem:[#allocation2 + $0x38] sm:$0xff] }
 0x1f4   :  { %3967 = vmatpush1.bf16.msra.mxu1 %v11502_v31  ;;  %3927 = vmatprep.subr.bf16.mxu0 %v11507_v9  ;;  %v11586_v31 = vld [vmem:[#allocation7 + $0x6e0] ss:$16 sps:$4 sm:$0xff]   ;;  %v11591_v9 = vld [vmem:[#allocation7 + $0x4c4] ss:$16 sps:$4 sm:$0xff]  }
 0x1f5   :  { %3968 = vmatprep.subr.bf16.mxu1 %v11510_v16  ;;  %v11594_v16 = vld [vmem:[#allocation7 + $0x6c4] ss:$16 sps:$4 sm:$0xff]  }
 0x1f7   :  { %3928 = vmatpush1.bf16.msra.mxu0 %v11505_v52  ;;  %v13180_v52 = vpack.c.bf16 %v382_v29, %v382_v29  ;;  %v11660_v29 = vld [vmem:[#allocation7 + $0x764] ss:$16 sps:$4 sm:$0xff]  }
 0x1f8   :  { %3969 = vmatpush1.bf16.msra.mxu1 %v11508_v32  ;;  %3929 = vmatprep.subr.bf16.mxu0 %v11513_v33  ;;  %v13182_v32 = vpack.c.bf16 %v384_v30, %v384_v30  ;;  %v11655_v30 = vld [vmem:[#allocation7 + $0x560] ss:$16 sps:$4 sm:$0xff]  }
 0x1f9   :  { %3970 = vmatprep.subr.bf16.mxu1 %v11516_v34 }
 0x1fb   :  { %3930 = vmatpush1.bf16.msra.mxu0 %v11511_v35 }
 0x1fc   :  { %3971 = vmatpush1.bf16.msra.mxu1 %v11514_v36  ;;  %3931 = vmatprep.subr.bf16.mxu0 %v11519_v37  ;;  %v11589_v36 = vld [vmem:[#allocation7 + $0x4c0] ss:$16 sps:$4 sm:$0xff]  }
 0x1fd   :  { %3972 = vmatprep.subr.bf16.mxu1 %v11522_v38  ;;  %v11592_v37 = vld [vmem:[#allocation7 + $0x6c0] ss:$16 sps:$4 sm:$0xff]  }
 0x1ff   :  { %3932 = vmatpush1.bf16.msra.mxu0 %v11517_v39 }
 0x200   :  { %3973 = vmatpush1.bf16.msra.mxu1 %v11520_v40  ;;  %3933 = vmatprep.subr.bf16.mxu0 %v11525_v41  ;;  %v11597_v40 = vld [vmem:[#allocation7 + $0x4a4] ss:$16 sps:$4 sm:$0xff]  }
 0x201   :  { %3974 = vmatprep.subr.bf16.mxu1 %v11528_v42  ;;  %v11600_v41 = vld [vmem:[#allocation7 + $0x6a4] ss:$16 sps:$4 sm:$0xff]  }
 0x203   :  { %3934 = vmatpush1.bf16.msra.mxu0 %v11523_v43 }
 0x204   :  { %3975 = vmatpush1.bf16.msra.mxu1 %v11526_v44  ;;  %3935 = vmatprep.subr.bf16.mxu0 %v11531_v45  ;;  %v11595_v45 = vld [vmem:[#allocation7 + $0x4a0] ss:$16 sps:$4 sm:$0xff]  }
 0x205   :  { %3976 = vmatprep.subr.bf16.mxu1 %v11534_v46  ;;  %v11598_v46 = vld [vmem:[#allocation7 + $0x6a0] ss:$16 sps:$4 sm:$0xff]  }
 0x207   :  { %3936 = vmatpush1.bf16.msra.mxu0 %v11529_v47 }
 0x208   :  { %3977 = vmatpush1.bf16.msra.mxu1 %v11532_v48  ;;  %3937 = vmatprep.subr.bf16.mxu0 %v11537_v49  ;;  %v11603_v49 = vld [vmem:[#allocation7 + $0x484] ss:$16 sps:$4 sm:$0xff]  }
 0x209   :  { %3978 = vmatprep.subr.bf16.mxu1 %v11540_v50  ;;  %v11606_v50 = vld [vmem:[#allocation7 + $0x684] ss:$16 sps:$4 sm:$0xff]  }
 0x20b   :  { %3938 = vmatpush2.bf16.msra.mxu0 %v11535_v51  ;;  %v11601_v51 = vld [vmem:[#allocation7 + $0x480] ss:$16 sps:$4 sm:$0xff]  }
 0x20c   :  { %3979 = vmatpush2.bf16.msra.mxu1 %v11538_v53  ;;  %3939 = vmatprep.subr.bf16.mxu0 %v11543_v54  ;;  %v11604_v53 = vld [vmem:[#allocation7 + $0x680] ss:$16 sps:$4 sm:$0xff]   ;;  %v11609_v54 = vld [vmem:[#allocation7 + $0x464] ss:$16 sps:$4 sm:$0xff]  }
 0x20d   :  { %3980 = vmatprep.subr.bf16.mxu1 %v11546_v55  ;;  %v11612_v55 = vld [vmem:[#allocation7 + $0x664] ss:$16 sps:$4 sm:$0xff]  }
 0x20f   :  { %3940 = vmatpush2.bf16.msra.mxu0 %v11541_v56  ;;  %v11607_v56 = vld [vmem:[#allocation7 + $0x460] ss:$16 sps:$4 sm:$0xff]  }
 0x210   :  { %3981 = vmatpush2.bf16.msra.mxu1 %v11544_v57  ;;  %3941 = vmatprep.subr.bf16.mxu0 %v11549_v58  ;;  %v11610_v57 = vld [vmem:[#allocation7 + $0x660] ss:$16 sps:$4 sm:$0xff]   ;;  %v11615_v58 = vld [vmem:[#allocation7 + $0x444] ss:$16 sps:$4 sm:$0xff]  }
 0x211   :  { %3982 = vmatprep.subr.bf16.mxu1 %v11552_v59  ;;  %v11618_v59 = vld [vmem:[#allocation7 + $0x644] ss:$16 sps:$4 sm:$0xff]  }
 0x213   :  { %3942 = vmatpush2.bf16.msra.mxu0 %v11547_v60  ;;  %v11613_v60 = vld [vmem:[#allocation7 + $0x440] ss:$16 sps:$4 sm:$0xff]  }
 0x214   :  { %3983 = vmatpush2.bf16.msra.mxu1 %v11550_v61  ;;  %3943 = vmatprep.subr.bf16.mxu0 %v11555_v62  ;;  %v11616_v61 = vld [vmem:[#allocation7 + $0x640] ss:$16 sps:$4 sm:$0xff]   ;;  %v11621_v62 = vld [vmem:[#allocation7 + $0x424] ss:$16 sps:$4 sm:$0xff]  }
 0x215   :  { %3984 = vmatprep.subr.bf16.mxu1 %v11558_v63  ;;  %v11624_v63 = vld [vmem:[#allocation7 + $0x624] ss:$16 sps:$4 sm:$0xff]  }
 0x217   :  { %3944 = vmatpush2.bf16.msra.mxu0 %v11553_v0  ;;  %v11619_v0 = vld [vmem:[#allocation7 + $0x420] ss:$16 sps:$4 sm:$0xff]  }
 0x218   :  { %3985 = vmatpush2.bf16.msra.mxu1 %v11556_v1  ;;  %3945 = vmatprep.subr.bf16.mxu0 %v11561_v2  ;;  %v11622_v1 = vld [vmem:[#allocation7 + $0x620] ss:$16 sps:$4 sm:$0xff]   ;;  %v11627_v2 = vld [vmem:[#allocation7 + $0x404] ss:$16 sps:$4 sm:$0xff]  }
 0x219   :  { %3986 = vmatprep.subr.bf16.mxu1 %v11564_v3  ;;  %v11630_v3 = vld [vmem:[#allocation7 + $0x604] ss:$16 sps:$4 sm:$0xff]  }
 0x21b   :  { %3946 = vmatpush2.bf16.msra.mxu0 %v11559_v4  ;;  %v11625_v4 = vld [vmem:[#allocation7 + $0x400] ss:$16 sps:$4 sm:$0xff]  }
 0x21c   :  { %3987 = vmatpush2.bf16.msra.mxu1 %v11562_v5  ;;  %3947 = vmatprep.subr.bf16.mxu0 %v11567_v6  ;;  %v11628_v5 = vld [vmem:[#allocation7 + $0x600] ss:$16 sps:$4 sm:$0xff]   ;;  %v11633_v6 = vld [vmem:[#allocation7 + $0x5e4] ss:$16 sps:$4 sm:$0xff]  }
 0x21d   :  { %3988 = vmatprep.subr.bf16.mxu1 %v11570_v7  ;;  %v11636_v7 = vld [vmem:[#allocation7 + $0x7e4] ss:$16 sps:$4 sm:$0xff]  }
 0x21f   :  { %3948 = vmatpush2.bf16.msra.mxu0 %v11565_v10  ;;  %v11631_v10 = vld [vmem:[#allocation7 + $0x5e0] ss:$16 sps:$4 sm:$0xff]  }
 0x220   :  { %3989 = vmatpush2.bf16.msra.mxu1 %v11568_v11  ;;  %3949 = vmatprep.subr.bf16.mxu0 %v11573_v12  ;;  %v11634_v11 = vld [vmem:[#allocation7 + $0x7e0] ss:$16 sps:$4 sm:$0xff]   ;;  %v11639_v12 = vld [vmem:[#allocation7 + $0x5c4] ss:$16 sps:$4 sm:$0xff]  }
 0x221   :  { %3990 = vmatprep.subr.bf16.mxu1 %v11576_v13  ;;  %v11642_v13 = vld [vmem:[#allocation7 + $0x7c4] ss:$16 sps:$4 sm:$0xff]  }
 0x223   :  { %3950 = vmatpush2.bf16.msra.mxu0 %v11571_v14  ;;  %v11637_v14 = vld [vmem:[#allocation7 + $0x5c0] ss:$16 sps:$4 sm:$0xff]  }
 0x224   :  { %3991 = vmatpush2.bf16.msra.mxu1 %v11574_v15  ;;  %3951 = vmatprep.subr.bf16.mxu0 %v11579_v17  ;;  %v11640_v15 = vld [vmem:[#allocation7 + $0x7c0] ss:$16 sps:$4 sm:$0xff]   ;;  %v11645_v17 = vld [vmem:[#allocation7 + $0x5a4] ss:$16 sps:$4 sm:$0xff]  }
 0x225   :  { %3992 = vmatprep.subr.bf16.mxu1 %v11582_v18  ;;  %v11648_v18 = vld [vmem:[#allocation7 + $0x7a4] ss:$16 sps:$4 sm:$0xff]  }
 0x227   :  { %3952 = vmatpush2.bf16.msra.mxu0 %v11577_v19  ;;  %v11643_v19 = vld [vmem:[#allocation7 + $0x5a0] ss:$16 sps:$4 sm:$0xff]  }
 0x228   :  { %3993 = vmatpush2.bf16.msra.mxu1 %v11580_v20  ;;  %4003 = vmatprep.subr.bf16.mxu0 %v11585_v23  ;;  %v11646_v20 = vld [vmem:[#allocation7 + $0x7a0] ss:$16 sps:$4 sm:$0xff]  }
 0x229   :  { %4044 = vmatprep.subr.bf16.mxu1 %v11588_v24  ;;  %v11649_v23 = vld [vmem:[#allocation7 + $0x580] ss:$16 sps:$4 sm:$0xff]  }
 0x22a   :  { %v1949_v33 = vpop.f32.mrf.mxu0  ;;  %3954 = vmatmul.mubr.bf16.vlgmr.msra.gmra.mxu0 %v13176_v8  ;;  %v11652_v24 = vld [vmem:[#allocation7 + $0x780] ss:$16 sps:$4 sm:$0xff]  }
 0x22b   :  { %v1990_v34 = vpop.f32.mrf.mxu1  ;;  %3995 = vmatmul.mubr.bf16.vlgmr.msra.gmra.mxu1 %v13178_v28  ;;  %4004 = vmatpush1.bf16.msra.mxu0 %v11583_v27  ;;  %v11657_v27 = vld [vmem:[#allocation7 + $0x564] ss:$16 sps:$4 sm:$0xff]  }
 0x22c   :  { %v13186_v35 = vadd.f32 %v1990_v34, %v1949_v33  ;;  %4045 = vmatpush1.bf16.msra.mxu1 %v11586_v31  ;;  %v1951_v38 = vpop.f32.mrf.mxu0  ;;  %4005 = vmatprep.subr.bf16.mxu0 %v11591_v9  ;;  %v11658_v31 = vld [vmem:[#allocation7 + $0x760] ss:$16 sps:$4 sm:$0xff]   ;;  %v11663_v9 = vld [vmem:[#allocation7 + $0x544] ss:$16 sps:$4 sm:$0xff]  }
 0x22d   :  { %v1992_v39 = vpop.f32.mrf.mxu1  ;;  %4046 = vmatprep.subr.bf16.mxu1 %v11594_v16  ;;  %4035 = vmatprep.mubr.bf16.mxu0 %v13180_v52  ;;  %v11666_v16 = vld [vmem:[#allocation7 + $0x744] ss:$16 sps:$4 sm:$0xff]   ;;  %v11661_v33 = vld [vmem:[#allocation7 + $0x540] ss:$16 sps:$4 sm:$0xff]  }
 0x22e   :  { %v13188_v42 = vadd.f32 %v1992_v39, %v1951_v38  ;;  %4076 = vmatprep.mubr.bf16.mxu1 %v13182_v32  ;;  %v1953_v43 = vpop.f32.mrf.mxu0  ;;  %v11664_v34 = vld [vmem:[#allocation7 + $0x740] ss:$16 sps:$4 sm:$0xff]  }
 0x22f   :  { %v1994_v44 = vpop.f32.mrf.mxu1  ;;  %4006 = vmatpush1.bf16.msra.mxu0 %v11589_v36  ;;  %v11669_v36 = vld [vmem:[#allocation7 + $0x524] ss:$16 sps:$4 sm:$0xff]   ;;  %v11667_v38 = vld [vmem:[#allocation7 + $0x520] ss:$16 sps:$4 sm:$0xff]  }
 0x230   :  { %4047 = vmatpush1.bf16.msra.mxu1 %v11592_v37  ;;  %v1954_v47 = vpop.f32.mrf.mxu0  ;;  %4007 = vmatprep.subr.bf16.mxu0 %v11597_v40  ;;  %v11672_v37 = vld [vmem:[#allocation7 + $0x724] ss:$16 sps:$4 sm:$0xff]   ;;  %v11670_v39 = vld [vmem:[#allocation7 + $0x720] ss:$16 sps:$4 sm:$0xff]  }
 0x231   :  { %v1995_v48 = vpop.f32.mrf.mxu1  ;;  %4048 = vmatprep.subr.bf16.mxu1 %v11600_v41  ;;  %v11675_v40 = vld [vmem:[#allocation7 + $0x504] ss:$16 sps:$4 sm:$0xff]   ;;  %v11673_v43 = vld [vmem:[#allocation7 + $0x500] ss:$16 sps:$4 sm:$0xff]  }
 0x232   :  { %v11678_v41 = vld [vmem:[#allocation7 + $0x704] ss:$16 sps:$4 sm:$0xff]   ;;  %v11676_v44 = vld [vmem:[#allocation7 + $0x700] ss:$16 sps:$4 sm:$0xff]  }
 0x233   :  { %4008 = vmatpush1.bf16.msra.mxu0 %v11595_v45  ;;  %v381_v45 = vld [vmem:[#allocation2 + $0x20] sm:$0xff]  ;;  %v11681_v47 = vld [vmem:[#allocation7 + $0x8e4] ss:$16 sps:$4 sm:$0xff]  }
 0x234   :  { %4049 = vmatpush1.bf16.msra.mxu1 %v11598_v46  ;;  %4009 = vmatprep.subr.bf16.mxu0 %v11603_v49  ;;  %v383_v46 = vld [vmem:[#allocation2 + $0x30] sm:$0xff]  ;;  %v11684_v48 = vld [vmem:[#allocation7 + $0xae4] ss:$16 sps:$4 sm:$0xff]  }
 0x235   :  { %4050 = vmatprep.subr.bf16.mxu1 %v11606_v50  ;;  %v386_v49 = vld [vmem:[#allocation2 + $0x48] sm:$0xff] }
 0x236   :  { %v11679_v50 = vld [vmem:[#allocation7 + $0x8e0] ss:$16 sps:$4 sm:$0xff]  }
 0x237   :  { %4010 = vmatpush1.bf16.msra.mxu0 %v11601_v51  ;;  %v11682_v51 = vld [vmem:[#allocation7 + $0xae0] ss:$16 sps:$4 sm:$0xff]  }
 0x238   :  { %4051 = vmatpush1.bf16.msra.mxu1 %v11604_v53  ;;  %4011 = vmatprep.subr.bf16.mxu0 %v11609_v54  ;;  %v13192_v53 = vpack.c.bf16 %v381_v45, %v381_v45  ;;  %v13194_v54 = vpack.c.bf16 %v383_v46, %v383_v46  ;;  %v11736_v45 = vld [vmem:[#allocation7 + $0xc8] ss:$16 sps:$4 sm:$0xff]   ;;  %v11741_v46 = vld [vmem:[#allocation7 + $0x9a4] ss:$16 sps:$4 sm:$0xff]  }
 0x239   :  { %4052 = vmatprep.subr.bf16.mxu1 %v11612_v55  ;;  %v11687_v55 = vld [vmem:[#allocation7 + $0x8c4] ss:$16 sps:$4 sm:$0xff]  }
 0x23b   :  { %4012 = vmatpush1.bf16.msra.mxu0 %v11607_v56  ;;  %v11690_v56 = vld [vmem:[#allocation7 + $0xac4] ss:$16 sps:$4 sm:$0xff]  }
 0x23c   :  { %4053 = vmatpush1.bf16.msra.mxu1 %v11610_v57  ;;  %4013 = vmatprep.subr.bf16.mxu0 %v11615_v58  ;;  %v11685_v57 = vld [vmem:[#allocation7 + $0x8c0] ss:$16 sps:$4 sm:$0xff]  }
 0x23d   :  { %4054 = vmatprep.subr.bf16.mxu1 %v11618_v59  ;;  %v11688_v58 = vld [vmem:[#allocation7 + $0xac0] ss:$16 sps:$4 sm:$0xff]   ;;  %v13196_v59 = vpack.c.bf16 %v386_v49, %v386_v49  ;;  %v11742_v49 = vld [vmem:[#allocation7 + $0xa8] ss:$16 sps:$4 sm:$0xff]  }
 0x23f   :  { %4014 = vmatpush1.bf16.msra.mxu0 %v11613_v60 }
 0x240   :  { %4055 = vmatpush1.bf16.msra.mxu1 %v11616_v61  ;;  %4015 = vmatprep.subr.bf16.mxu0 %v11621_v62 }
 0x241   :  { %4056 = vmatprep.subr.bf16.mxu1 %v11624_v63 }
 0x243   :  { %4016 = vmatpush1.bf16.msra.mxu0 %v11619_v0 }
 0x244   :  { %4057 = vmatpush1.bf16.msra.mxu1 %v11622_v1  ;;  %4017 = vmatprep.subr.bf16.mxu0 %v11627_v2  ;;  %v11693_v1 = vld [vmem:[#allocation7 + $0x8a4] ss:$16 sps:$4 sm:$0xff]  }
 0x245   :  { %4058 = vmatprep.subr.bf16.mxu1 %v11630_v3  ;;  %v11696_v2 = vld [vmem:[#allocation7 + $0xaa4] ss:$16 sps:$4 sm:$0xff]  }
 0x247   :  { %4018 = vmatpush1.bf16.msra.mxu0 %v11625_v4  ;;  %v11691_v4 = vld [vmem:[#allocation7 + $0x8a0] ss:$16 sps:$4 sm:$0xff]  }
 0x248   :  { %4059 = vmatpush1.bf16.msra.mxu1 %v11628_v5  ;;  %4019 = vmatprep.subr.bf16.mxu0 %v11633_v6  ;;  %v11694_v5 = vld [vmem:[#allocation7 + $0xaa0] ss:$16 sps:$4 sm:$0xff]   ;;  %v12901_v6 = vmov 0  }
 0x249   :  { %4060 = vmatprep.subr.bf16.mxu1 %v11636_v7 }
 0x24b   :  { %4020 = vmatpush2.bf16.msra.mxu0 %v11631_v10 }
 0x24c   :  { %4061 = vmatpush2.bf16.msra.mxu1 %v11634_v11  ;;  %4021 = vmatprep.subr.bf16.mxu0 %v11639_v12  ;;  %v11699_v12 = vld [vmem:[#allocation7 + $0x884] ss:$16 sps:$4 sm:$0xff]  }
 0x24d   :  { %4062 = vmatprep.subr.bf16.mxu1 %v11642_v13  ;;  %v11702_v13 = vld [vmem:[#allocation7 + $0xa84] ss:$16 sps:$4 sm:$0xff]  }
 0x24f   :  { %4022 = vmatpush2.bf16.msra.mxu0 %v11637_v14  ;;  %v11700_v14 = vld [vmem:[#allocation7 + $0xa80] ss:$16 sps:$4 sm:$0xff]  }
 0x250   :  { %4063 = vmatpush2.bf16.msra.mxu1 %v11640_v15  ;;  %4023 = vmatprep.subr.bf16.mxu0 %v11645_v17  ;;  %v11705_v15 = vld [vmem:[#allocation7 + $0x864] ss:$16 sps:$4 sm:$0xff]  }
 0x251   :  { %4064 = vmatprep.subr.bf16.mxu1 %v11648_v18  ;;  %v11708_v17 = vld [vmem:[#allocation7 + $0xa64] ss:$16 sps:$4 sm:$0xff]   ;;  %v11703_v18 = vld [vmem:[#allocation7 + $0x860] ss:$16 sps:$4 sm:$0xff]  }
 0x253   :  { %4024 = vmatpush2.bf16.msra.mxu0 %v11643_v19  ;;  %v11706_v19 = vld [vmem:[#allocation7 + $0xa60] ss:$16 sps:$4 sm:$0xff]  }
 0x254   :  { %4065 = vmatpush2.bf16.msra.mxu1 %v11646_v20  ;;  %4025 = vmatprep.subr.bf16.mxu0 %v11651_v21  ;;  %v11711_v20 = vld [vmem:[#allocation7 + $0x844] ss:$16 sps:$4 sm:$0xff]  }
 0x255   :  { %4066 = vmatprep.subr.bf16.mxu1 %v11654_v22  ;;  %v11714_v21 = vld [vmem:[#allocation7 + $0xa44] ss:$16 sps:$4 sm:$0xff]   ;;  %v11709_v22 = vld [vmem:[#allocation7 + $0x840] ss:$16 sps:$4 sm:$0xff]  }
 0x257   :  { %4026 = vmatpush2.bf16.msra.mxu0 %v11649_v23  ;;  %v11712_v23 = vld [vmem:[#allocation7 + $0xa40] ss:$16 sps:$4 sm:$0xff]  }
 0x258   :  { %4067 = vmatpush2.bf16.msra.mxu1 %v11652_v24  ;;  %4027 = vmatprep.subr.bf16.mxu0 %v11657_v27  ;;  %v11717_v24 = vld [vmem:[#allocation7 + $0x824] ss:$16 sps:$4 sm:$0xff]  }
 0x259   :  { %4068 = vmatprep.subr.bf16.mxu1 %v11660_v29  ;;  %v11720_v27 = vld [vmem:[#allocation7 + $0xa24] ss:$16 sps:$4 sm:$0xff]   ;;  %v11715_v29 = vld [vmem:[#allocation7 + $0x820] ss:$16 sps:$4 sm:$0xff]  }
 0x25b   :  { %4028 = vmatpush2.bf16.msra.mxu0 %v11655_v30  ;;  %v11718_v30 = vld [vmem:[#allocation7 + $0xa20] ss:$16 sps:$4 sm:$0xff]  }
 0x25c   :  { %4069 = vmatpush2.bf16.msra.mxu1 %v11658_v31  ;;  %4029 = vmatprep.subr.bf16.mxu0 %v11663_v9  ;;  %v11723_v31 = vld [vmem:[#allocation7 + $0x804] ss:$16 sps:$4 sm:$0xff]  }
 0x25d   :  { %4070 = vmatprep.subr.bf16.mxu1 %v11666_v16  ;;  %v11726_v9 = vld [vmem:[#allocation7 + $0xa04] ss:$16 sps:$4 sm:$0xff]   ;;  %v11721_v16 = vld [vmem:[#allocation7 + $0x800] ss:$16 sps:$4 sm:$0xff]  }
 0x25f   :  { %4030 = vmatpush2.bf16.msra.mxu0 %v11661_v33  ;;  %v11724_v33 = vld [vmem:[#allocation7 + $0xa00] ss:$16 sps:$4 sm:$0xff]  }
 0x260   :  { %4071 = vmatpush2.bf16.msra.mxu1 %v11664_v34  ;;  %4031 = vmatprep.subr.bf16.mxu0 %v11669_v36  ;;  %v387_v34 = vld [vmem:[#allocation2 + $0x50] sm:$0xff]  ;;  %v11729_v36 = vld [vmem:[#allocation7 + $0x9e4] ss:$16 sps:$4 sm:$0xff]  }
 0x261   :  { %4072 = vmatprep.subr.bf16.mxu1 %v11672_v37  ;;  %v11732_v37 = vld [vmem:[#allocation7 + $0xec] ss:$16 sps:$4 sm:$0xff]  }
 0x263   :  { %4032 = vmatpush2.bf16.msra.mxu0 %v11667_v38  ;;  %v11727_v38 = vld [vmem:[#allocation7 + $0x9e0] ss:$16 sps:$4 sm:$0xff]  }
 0x264   :  { %4073 = vmatpush2.bf16.msra.mxu1 %v11670_v39  ;;  %4033 = vmatprep.subr.bf16.mxu0 %v11675_v40  ;;  %v11730_v39 = vld [vmem:[#allocation7 + $0xe8] ss:$16 sps:$4 sm:$0xff]   ;;  %v13212_v40 = vpack.c.bf16 %v387_v34, %v387_v34 }
 0x265   :  { %4074 = vmatprep.subr.bf16.mxu1 %v11678_v41  ;;  %v11735_v41 = vld [vmem:[#allocation7 + $0x9c4] ss:$16 sps:$4 sm:$0xff]  }
 0x267   :  { %4034 = vmatpush2.bf16.msra.mxu0 %v11673_v43  ;;  %v11738_v43 = vld [vmem:[#allocation7 + $0xcc] ss:$16 sps:$4 sm:$0xff]  }
 0x268   :  { %4075 = vmatpush2.bf16.msra.mxu1 %v11676_v44  ;;  %4085 = vmatprep.subr.bf16.mxu0 %v11681_v47  ;;  %v11733_v44 = vld [vmem:[#allocation7 + $0x9c0] ss:$16 sps:$4 sm:$0xff]   ;;  %v11744_v47 = vld [vmem:[#allocation7 + $0xac] ss:$16 sps:$4 sm:$0xff]  }
 0x269   :  { %4126 = vmatprep.subr.bf16.mxu1 %v11684_v48  ;;  %v11739_v48 = vld [vmem:[#allocation7 + $0x9a0] ss:$16 sps:$4 sm:$0xff]  }
 0x26a   :  { %v2031_v60 = vpop.f32.mrf.mxu0  ;;  %4036 = vmatmul.mubr.bf16.vlgmr.msra.gmra.mxu0 %v13192_v53 }
 0x26b   :  { %v13198_v61 = vpop.f32.mrf.mxu1  ;;  %4077 = vmatmul.mubr.bf16.vlgmr.msra.gmra.mxu1 %v13194_v54  ;;  %v13203_v62 = vadd.f32 %v2031_v60, %v13186_v35  ;;  %4086 = vmatpush1.bf16.msra.mxu0 %v11679_v50  ;;  %v11747_v50 = vld [vmem:[#allocation7 + $0x984] ss:$16 sps:$4 sm:$0xff]   ;;  %v11751_v60 = vld [vmem:[#allocation7 + $0x960] ss:$16 sps:$4 sm:$0xff]  }
 0x26c   :  { %4127 = vmatpush1.bf16.msra.mxu1 %v11682_v51  ;;  %v2033_v63 = vpop.f32.mrf.mxu0  ;;  %4087 = vmatprep.subr.bf16.mxu0 %v11687_v55  ;;  %v11750_v51 = vld [vmem:[#allocation7 + $0x8c] ss:$16 sps:$4 sm:$0xff]   ;;  %v11745_v55 = vld [vmem:[#allocation7 + $0x980] ss:$16 sps:$4 sm:$0xff]  }
 0x26d   :  { %v13205_v0 = vpop.f32.mrf.mxu1  ;;  %4128 = vmatprep.subr.bf16.mxu1 %v11690_v56  ;;  %v13208_v3 = vadd.f32 %v2033_v63, %v13188_v42  ;;  %4158 = vmatprep.mubr.bf16.mxu1 %v12901_v6  ;;  %v11697_v42 = vld [vmem:[#allocation7 + $0x880] ss:$16 sps:$4 sm:$0xff]   ;;  %v11748_v56 = vld [vmem:[#allocation7 + $0x88] ss:$16 sps:$4 sm:$0xff]   ;;  %v11759_v63 = vld [vmem:[#allocation7 + $0x944] ss:$16 sps:$4 sm:$0xff]  }
 0x26e   :  { %4117 = vmatprep.mubr.bf16.mxu0 %v13196_v59  ;;  %v2035_v35 = vpop.f32.mrf.mxu0 }
 0x26f   :  { %v2076_v7 = vpop.f32.mrf.mxu1  ;;  %4088 = vmatpush1.bf16.msra.mxu0 %v11685_v57  ;;  %v11753_v57 = vld [vmem:[#allocation7 + $0x964] ss:$16 sps:$4 sm:$0xff]   ;;  %v11768_v35 = vld [vmem:[#allocation7 + $0x2c] ss:$16 sps:$4 sm:$0xff]  }
 0x270   :  { %4129 = vmatpush1.bf16.msra.mxu1 %v11688_v58  ;;  %v2036_v10 = vpop.f32.mrf.mxu0  ;;  %4089 = vmatprep.subr.bf16.mxu0 %v11693_v1  ;;  %v11756_v58 = vld [vmem:[#allocation7 + $0x6c] ss:$16 sps:$4 sm:$0xff]   ;;  %v11763_v7 = vld [vmem:[#allocation7 + $0x920] ss:$16 sps:$4 sm:$0xff]  }
 0x271   :  { %v2077_v11 = vpop.f32.mrf.mxu1  ;;  %4130 = vmatprep.subr.bf16.mxu1 %v11696_v2  ;;  %v11762_v1 = vld [vmem:[#allocation7 + $0x4c] ss:$16 sps:$4 sm:$0xff]   ;;  %v11757_v2 = vld [vmem:[#allocation7 + $0x940] ss:$16 sps:$4 sm:$0xff]   ;;  %v11766_v10 = vld [vmem:[#allocation7 + $0x28] ss:$16 sps:$4 sm:$0xff]  }
 0x272   :  { %v11771_v11 = vld [vmem:[#allocation7 + $0x904] ss:$16 sps:$4 sm:$0xff]  }
 0x273   :  { %4090 = vmatpush1.bf16.msra.mxu0 %v11691_v4  ;;  %v11760_v4 = vld [vmem:[#allocation7 + $0x48] ss:$16 sps:$4 sm:$0xff]  }
 0x274   :  { %4131 = vmatpush1.bf16.msra.mxu1 %v11694_v5  ;;  %4091 = vmatprep.subr.bf16.mxu0 %v11699_v12  ;;  %v11765_v5 = vld [vmem:[#allocation7 + $0x924] ss:$16 sps:$4 sm:$0xff]   ;;  %v11774_v12 = vld [vmem:[#allocation7 + $0xc] ss:$16 sps:$4 sm:$0xff]  }
 0x275   :  { %4132 = vmatprep.subr.bf16.mxu1 %v11702_v13  ;;  %v11769_v13 = vld [vmem:[#allocation7 + $0x900] ss:$16 sps:$4 sm:$0xff]  }
 0x277   :  { %4092 = vmatpush1.bf16.msra.mxu0 %v11697_v42  ;;  %v11772_v42 = vld [vmem:[#allocation7 + $0x8] ss:$16 sps:$4 sm:$0xff]  }
 0x278   :  { %4133 = vmatpush1.bf16.msra.mxu1 %v11700_v14  ;;  %4093 = vmatprep.subr.bf16.mxu0 %v11705_v15  ;;  %v385_v14 = vld [vmem:[#allocation2 + $0x40] sm:$0xff] }
 0x279   :  { %4134 = vmatprep.subr.bf16.mxu1 %v11708_v17  ;;  %v11777_v15 = vld [vmem:[#allocation7 + $0x1ec] ss:$16 sps:$4 sm:$0xff]  }
 0x27a   :  { %v11780_v17 = vld [vmem:[#allocation7 + $0x2ec] ss:$16 sps:$4 sm:$0xff]  }
 0x27b   :  { %4094 = vmatpush1.bf16.msra.mxu0 %v11703_v18  ;;  %v11775_v18 = vld [vmem:[#allocation7 + $0x1e8] ss:$16 sps:$4 sm:$0xff]  }
 0x27c   :  { %4135 = vmatpush1.bf16.msra.mxu1 %v11706_v19  ;;  %4095 = vmatprep.subr.bf16.mxu0 %v11711_v20  ;;  %v11778_v19 = vld [vmem:[#allocation7 + $0x2e8] ss:$16 sps:$4 sm:$0xff]   ;;  %v13216_v20 = vpack.c.bf16 %v385_v14, %v385_v14 }
 0x27d   :  { %4136 = vmatprep.subr.bf16.mxu1 %v11714_v21  ;;  %v11783_v21 = vld [vmem:[#allocation7 + $0x1cc] ss:$16 sps:$4 sm:$0xff]   ;;  %v11832_v14 = vld [vmem:[#allocation7 + $0x4c8] ss:$16 sps:$4 sm:$0xff]  }
 0x27f   :  { %4096 = vmatpush1.bf16.msra.mxu0 %v11709_v22  ;;  %v11786_v22 = vld [vmem:[#allocation7 + $0x2cc] ss:$16 sps:$4 sm:$0xff]  }
 0x280   :  { %4137 = vmatpush1.bf16.msra.mxu1 %v11712_v23  ;;  %4097 = vmatprep.subr.bf16.mxu0 %v11717_v24  ;;  %v11781_v23 = vld [vmem:[#allocation7 + $0x1c8] ss:$16 sps:$4 sm:$0xff]  }
 0x281   :  { %4138 = vmatprep.subr.bf16.mxu1 %v11720_v27  ;;  %v11784_v24 = vld [vmem:[#allocation7 + $0x2c8] ss:$16 sps:$4 sm:$0xff]  }
 0x283   :  { %4098 = vmatpush1.bf16.msra.mxu0 %v11715_v29 }
 0x284   :  { %4139 = vmatpush1.bf16.msra.mxu1 %v11718_v30  ;;  %4099 = vmatprep.subr.bf16.mxu0 %v11723_v31 }
 0x285   :  { %4140 = vmatprep.subr.bf16.mxu1 %v11726_v9 }
 0x287   :  { %4100 = vmatpush1.bf16.msra.mxu0 %v11721_v16  ;;  %v11789_v16 = vld [vmem:[#allocation7 + $0x1ac] ss:$16 sps:$4 sm:$0xff]  }
 0x288   :  { %4141 = vmatpush1.bf16.msra.mxu1 %v11724_v33  ;;  %4101 = vmatprep.subr.bf16.mxu0 %v11729_v36  ;;  %v11792_v33 = vld [vmem:[#allocation7 + $0x2ac] ss:$16 sps:$4 sm:$0xff]  }
 0x289   :  { %4167 = vmatprep.subr.bf16.mxu1 %v11732_v37  ;;  %v11787_v37 = vld [vmem:[#allocation7 + $0x1a8] ss:$16 sps:$4 sm:$0xff]  }
 0x28b   :  { %4159 = vmatmul.mubr.bf16.vlgmr.msra.gmra.mxu1 %v13212_v40  ;;  %4102 = vmatpush2.bf16.msra.mxu0 %v11727_v38  ;;  %v11790_v38 = vld [vmem:[#allocation7 + $0x2a8] ss:$16 sps:$4 sm:$0xff]  }
 0x28c   :  { %4168 = vmatpush1.bf16.msra.mxu1 %v11730_v39  ;;  %4103 = vmatprep.subr.bf16.mxu0 %v11735_v41 }
 0x28d   :  { %4169 = vmatprep.subr.bf16.mxu1 %v11738_v43  ;;  %4199 = vmatprep.mubr.bf16.mxu1 %v13168_v25  ;;  %v11754_v25 = vld [vmem:[#allocation7 + $0x68] ss:$16 sps:$4 sm:$0xff]  }
 0x28f   :  { %4104 = vmatpush2.bf16.msra.mxu0 %v11733_v44 }
 0x290   :  { %4170 = vmatpush1.bf16.msra.mxu1 %v11736_v45  ;;  %4105 = vmatprep.subr.bf16.mxu0 %v11741_v46  ;;  %v11795_v45 = vld [vmem:[#allocation7 + $0x18c] ss:$16 sps:$4 sm:$0xff]  }
 0x291   :  { %4171 = vmatprep.subr.bf16.mxu1 %v11744_v47  ;;  %v11798_v46 = vld [vmem:[#allocation7 + $0x28c] ss:$16 sps:$4 sm:$0xff]   ;;  %v11793_v47 = vld [vmem:[#allocation7 + $0x188] ss:$16 sps:$4 sm:$0xff]  }
 0x293   :  { %4106 = vmatpush2.bf16.msra.mxu0 %v11739_v48  ;;  %v11801_v48 = vld [vmem:[#allocation7 + $0x16c] ss:$16 sps:$4 sm:$0xff]  }
 0x294   :  { %4172 = vmatpush1.bf16.msra.mxu1 %v11742_v49  ;;  %4107 = vmatprep.subr.bf16.mxu0 %v11747_v50  ;;  %v11799_v49 = vld [vmem:[#allocation7 + $0x168] ss:$16 sps:$4 sm:$0xff]  }
 0x295   :  { %4173 = vmatprep.subr.bf16.mxu1 %v11750_v51  ;;  %v11802_v50 = vld [vmem:[#allocation7 + $0x268] ss:$16 sps:$4 sm:$0xff]   ;;  %v11807_v51 = vld [vmem:[#allocation7 + $0x14c] ss:$16 sps:$4 sm:$0xff]  }
 0x297   :  { %4108 = vmatpush2.bf16.msra.mxu0 %v11745_v55  ;;  %v11810_v55 = vld [vmem:[#allocation7 + $0x24c] ss:$16 sps:$4 sm:$0xff]  }
 0x298   :  { %4174 = vmatpush1.bf16.msra.mxu1 %v11748_v56  ;;  %4109 = vmatprep.subr.bf16.mxu0 %v11753_v57  ;;  %v11805_v56 = vld [vmem:[#allocation7 + $0x148] ss:$16 sps:$4 sm:$0xff]  }
 0x299   :  { %4175 = vmatprep.subr.bf16.mxu1 %v11756_v58  ;;  %v11808_v57 = vld [vmem:[#allocation7 + $0x248] ss:$16 sps:$4 sm:$0xff]   ;;  %v11813_v58 = vld [vmem:[#allocation7 + $0x12c] ss:$16 sps:$4 sm:$0xff]  }
 0x29b   :  { %4110 = vmatpush2.bf16.msra.mxu0 %v11751_v60  ;;  %v11816_v60 = vld [vmem:[#allocation7 + $0x22c] ss:$16 sps:$4 sm:$0xff]  }
 0x29c   :  { %4176 = vmatpush1.bf16.msra.mxu1 %v11754_v25  ;;  %4111 = vmatprep.subr.bf16.mxu0 %v11759_v63  ;;  %v11811_v25 = vld [vmem:[#allocation7 + $0x128] ss:$16 sps:$4 sm:$0xff]  }
 0x29d   :  { %4177 = vmatprep.subr.bf16.mxu1 %v11762_v1  ;;  %v11814_v63 = vld [vmem:[#allocation7 + $0x228] ss:$16 sps:$4 sm:$0xff]   ;;  %v11819_v1 = vld [vmem:[#allocation7 + $0x10c] ss:$16 sps:$4 sm:$0xff]  }
 0x29f   :  { %4112 = vmatpush2.bf16.msra.mxu0 %v11757_v2  ;;  %v11822_v2 = vld [vmem:[#allocation7 + $0x20c] ss:$16 sps:$4 sm:$0xff]  }
 0x2a0   :  { %4178 = vmatpush1.bf16.msra.mxu1 %v11760_v4  ;;  %4113 = vmatprep.subr.bf16.mxu0 %v11765_v5  ;;  %v11817_v4 = vld [vmem:[#allocation7 + $0x108] ss:$16 sps:$4 sm:$0xff]  }
 0x2a1   :  { %4179 = vmatprep.subr.bf16.mxu1 %v11768_v35  ;;  %v11820_v5 = vld [vmem:[#allocation7 + $0x208] ss:$16 sps:$4 sm:$0xff]   ;;  %v11825_v35 = vld [vmem:[#allocation7 + $0x3ec] ss:$16 sps:$4 sm:$0xff]  }
 0x2a3   :  { %4114 = vmatpush2.bf16.msra.mxu0 %v11763_v7  ;;  %v11828_v7 = vld [vmem:[#allocation7 + $0x4ec] ss:$16 sps:$4 sm:$0xff]  }
 0x2a4   :  { %4180 = vmatpush1.bf16.msra.mxu1 %v11766_v10  ;;  %4115 = vmatprep.subr.bf16.mxu0 %v11771_v11  ;;  %v11823_v10 = vld [vmem:[#allocation7 + $0x3e8] ss:$16 sps:$4 sm:$0xff]  }
 0x2a5   :  { %4181 = vmatprep.subr.bf16.mxu1 %v11774_v12  ;;  %v11826_v11 = vld [vmem:[#allocation7 + $0x4e8] ss:$16 sps:$4 sm:$0xff]   ;;  %v11831_v12 = vld [vmem:[#allocation7 + $0x3cc] ss:$16 sps:$4 sm:$0xff]  }
 0x2a7   :  { %4116 = vmatpush2.bf16.msra.mxu0 %v11769_v13  ;;  %v11834_v13 = vld [vmem:[#allocation7 + $0x4cc] ss:$16 sps:$4 sm:$0xff]  }
 0x2a8   :  { %4182 = vmatpush1.bf16.msra.mxu1 %v11772_v42  ;;  %4208 = vmatprep.subr.bf16.mxu0 %v11780_v17  ;;  %v11829_v42 = vld [vmem:[#allocation7 + $0x3c8] ss:$16 sps:$4 sm:$0xff]   ;;  %v11840_v17 = vld [vmem:[#allocation7 + $0x4ac] ss:$16 sps:$4 sm:$0xff]  }
 0x2a9   :  { %4183 = vmatprep.subr.bf16.mxu1 %v11777_v15  ;;  %v11837_v15 = vld [vmem:[#allocation7 + $0x3ac] ss:$16 sps:$4 sm:$0xff]  }
 0x2aa   :  { %v2113_v27 = vpop.f32.mrf.mxu0  ;;  %4118 = vmatmul.mubr.bf16.vlgmr.msra.gmra.mxu0 %v13216_v20 }
 0x2ab   :  { %v2154_v29 = vpop.f32.mrf.mxu1  ;;  %v2114_v30 = vadd.f32 %v2113_v27, %v13198_v61  ;;  %4209 = vmatpush1.bf16.msra.mxu0 %v11778_v19  ;;  %4240 = vmatprep.mubr.bf16.mxu0 %v13170_v26  ;;  %v11804_v26 = vld [vmem:[#allocation7 + $0x26c] ss:$16 sps:$4 sm:$0xff]   ;;  %v11838_v19 = vld [vmem:[#allocation7 + $0x4a8] ss:$16 sps:$4 sm:$0xff]  }
 0x2ac   :  { %4184 = vmatpush2.bf16.msra.mxu1 %v11775_v18  ;;  %v2115_v31 = vpop.f32.mrf.mxu0  ;;  %4210 = vmatprep.subr.bf16.mxu0 %v11786_v22  ;;  %v11835_v18 = vld [vmem:[#allocation7 + $0x3a8] ss:$16 sps:$4 sm:$0xff]   ;;  %v11846_v22 = vld [vmem:[#allocation7 + $0x48c] ss:$16 sps:$4 sm:$0xff]  }
 0x2ad   :  { %v2156_v9 = vpop.f32.mrf.mxu1  ;;  %4185 = vmatprep.subr.bf16.mxu1 %v11783_v21  ;;  %v13220_v34 = vadd.f32 %v2154_v29, %v2114_v30  ;;  %v2116_v36 = vadd.f32 %v2115_v31, %v13205_v0  ;;  %v11796_v0 = vld [vmem:[#allocation7 + $0x288] ss:$16 sps:$4 sm:$0xff]   ;;  %v11843_v21 = vld [vmem:[#allocation7 + $0x38c] ss:$16 sps:$4 sm:$0xff]  }
 0x2ae   :  { %v2117_v39 = vpop.f32.mrf.mxu0  ;;  %v11852_v27 = vld [vmem:[#allocation7 + $0x46c] ss:$16 sps:$4 sm:$0xff]   ;;  %v11847_v29 = vld [vmem:[#allocation7 + $0x368] ss:$16 sps:$4 sm:$0xff]  }
 0x2af   :  { %v2158_v41 = vpop.f32.mrf.mxu1  ;;  %v13224_v43 = vadd.f32 %v2156_v9, %v2116_v36  ;;  %4211 = vmatpush1.bf16.msra.mxu0 %v11784_v24  ;;  %v11844_v24 = vld [vmem:[#allocation7 + $0x488] ss:$16 sps:$4 sm:$0xff]   ;;  %v11855_v31 = vld [vmem:[#allocation7 + $0x34c] ss:$16 sps:$4 sm:$0xff]  }
 0x2b0   :  { %4186 = vmatpush2.bf16.msra.mxu1 %v11781_v23  ;;  %v2118_v61 = vpop.f32.mrf.mxu0  ;;  %4212 = vmatprep.subr.bf16.mxu0 %v11792_v33  ;;  %v11841_v23 = vld [vmem:[#allocation7 + $0x388] ss:$16 sps:$4 sm:$0xff]   ;;  %v11858_v9 = vld [vmem:[#allocation7 + $0x44c] ss:$16 sps:$4 sm:$0xff]  }
 0x2b1   :  { %v2159_v44 = vpop.f32.mrf.mxu1  ;;  %4187 = vmatprep.subr.bf16.mxu1 %v11789_v16  ;;  %v11850_v30 = vld [vmem:[#allocation7 + $0x468] ss:$16 sps:$4 sm:$0xff]   ;;  %v11861_v33 = vld [vmem:[#allocation7 + $0x32c] ss:$16 sps:$4 sm:$0xff]  }
 0x2b2   :  { %v11856_v16 = vld [vmem:[#allocation7 + $0x448] ss:$16 sps:$4 sm:$0xff]   ;;  %v11864_v36 = vld [vmem:[#allocation7 + $0x42c] ss:$16 sps:$4 sm:$0xff]  }
 0x2b3   :  { %4213 = vmatpush1.bf16.msra.mxu0 %v11790_v38  ;;  %v11862_v38 = vld [vmem:[#allocation7 + $0x428] ss:$16 sps:$4 sm:$0xff]   ;;  %v11867_v39 = vld [vmem:[#allocation7 + $0x30c] ss:$16 sps:$4 sm:$0xff]  }
 0x2b4   :  { %4188 = vmatpush2.bf16.msra.mxu1 %v11787_v37  ;;  %4214 = vmatprep.subr.bf16.mxu0 %v11798_v46  ;;  %v11859_v37 = vld [vmem:[#allocation7 + $0x328] ss:$16 sps:$4 sm:$0xff]   ;;  %v11870_v41 = vld [vmem:[#allocation7 + $0x40c] ss:$16 sps:$4 sm:$0xff]  }
 0x2b5   :  { %4189 = vmatprep.subr.bf16.mxu1 %v11795_v45  ;;  %v11865_v61 = vld [vmem:[#allocation7 + $0x308] ss:$16 sps:$4 sm:$0xff]   ;;  %v11873_v45 = vld [vmem:[#allocation7 + $0x5ec] ss:$16 sps:$4 sm:$0xff]  }
 0x2b6   :  { %v11868_v44 = vld [vmem:[#allocation7 + $0x408] ss:$16 sps:$4 sm:$0xff]   ;;  %v11876_v46 = vld [vmem:[#allocation7 + $0x6ec] ss:$16 sps:$4 sm:$0xff]  }
 0x2b7   :  { %4215 = vmatpush1.bf16.msra.mxu0 %v11796_v0  ;;  %v11874_v0 = vld [vmem:[#allocation7 + $0x6e8] ss:$16 sps:$4 sm:$0xff]  }
 0x2b8   :  { %4190 = vmatpush2.bf16.msra.mxu1 %v11793_v47  ;;  %4216 = vmatprep.subr.bf16.mxu0 %v11804_v26  ;;  %v11871_v47 = vld [vmem:[#allocation7 + $0x5e8] ss:$16 sps:$4 sm:$0xff]   ;;  %v11882_v26 = vld [vmem:[#allocation7 + $0x6cc] ss:$16 sps:$4 sm:$0xff]  }
 0x2b9   :  { %4191 = vmatprep.subr.bf16.mxu1 %v11801_v48  ;;  %v11879_v48 = vld [vmem:[#allocation7 + $0x5cc] ss:$16 sps:$4 sm:$0xff]  }
 0x2bb   :  { %4217 = vmatpush1.bf16.msra.mxu0 %v11802_v50  ;;  %v11880_v50 = vld [vmem:[#allocation7 + $0x6c8] ss:$16 sps:$4 sm:$0xff]  }
 0x2bc   :  { %4192 = vmatpush2.bf16.msra.mxu1 %v11799_v49  ;;  %4218 = vmatprep.subr.bf16.mxu0 %v11810_v55  ;;  %v11877_v49 = vld [vmem:[#allocation7 + $0x5c8] ss:$16 sps:$4 sm:$0xff]  }
 0x2bd   :  { %4193 = vmatprep.subr.bf16.mxu1 %v11807_v51 }
 0x2bf   :  { %4219 = vmatpush1.bf16.msra.mxu0 %v11808_v57 }
 0x2c0   :  { %4194 = vmatpush2.bf16.msra.mxu1 %v11805_v56  ;;  %4220 = vmatprep.subr.bf16.mxu0 %v11816_v60  ;;  %v11885_v60 = vld [vmem:[#allocation7 + $0x5ac] ss:$16 sps:$4 sm:$0xff]  }
 0x2c1   :  { %4195 = vmatprep.subr.bf16.mxu1 %v11813_v58 }
 0x2c3   :  { %4221 = vmatpush1.bf16.msra.mxu0 %v11814_v63 }
 0x2c4   :  { %4196 = vmatpush2.bf16.msra.mxu1 %v11811_v25  ;;  %4222 = vmatprep.subr.bf16.mxu0 %v11822_v2  ;;  %v11888_v25 = vld [vmem:[#allocation7 + $0x6ac] ss:$16 sps:$4 sm:$0xff]   ;;  %v11883_v2 = vld [vmem:[#allocation7 + $0x5a8] ss:$16 sps:$4 sm:$0xff]  }
 0x2c5   :  { %4197 = vmatprep.subr.bf16.mxu1 %v11819_v1 }
 0x2c7   :  { %4223 = vmatpush1.bf16.msra.mxu0 %v11820_v5 }
 0x2c8   :  { %4198 = vmatpush2.bf16.msra.mxu1 %v11817_v4  ;;  %4224 = vmatprep.subr.bf16.mxu0 %v11825_v35  ;;  %v11886_v4 = vld [vmem:[#allocation7 + $0x6a8] ss:$16 sps:$4 sm:$0xff]   ;;  %v11891_v35 = vld [vmem:[#allocation7 + $0x58c] ss:$16 sps:$4 sm:$0xff]  }
 0x2c9   :  { %4249 = vmatprep.subr.bf16.mxu1 %v11828_v7 }
 0x2cb   :  { %4200 = vmatmul.mubr.bf16.vlgmr.msra.gmra.mxu1 %v13176_v8  ;;  %4225 = vmatpush2.bf16.msra.mxu0 %v11823_v10  ;;  %v11849_v8 = vld [vmem:[#allocation7 + $0x36c] ss:$16 sps:$4 sm:$0xff]  }
 0x2cc   :  { %4250 = vmatpush1.bf16.msra.mxu1 %v11826_v11  ;;  %4226 = vmatprep.subr.bf16.mxu0 %v11831_v12  ;;  %v11894_v11 = vld [vmem:[#allocation7 + $0x68c] ss:$16 sps:$4 sm:$0xff]   ;;  %v11889_v12 = vld [vmem:[#allocation7 + $0x588] ss:$16 sps:$4 sm:$0xff]  }
 0x2cd   :  { %4251 = vmatprep.subr.bf16.mxu1 %v11834_v13  ;;  %4281 = vmatprep.mubr.bf16.mxu1 %v13180_v52  ;;  %v11853_v52 = vld [vmem:[#allocation7 + $0x348] ss:$16 sps:$4 sm:$0xff]  }
 0x2ce   :  { %v11892_v13 = vld [vmem:[#allocation7 + $0x688] ss:$16 sps:$4 sm:$0xff]  }
 0x2cf   :  { %4227 = vmatpush2.bf16.msra.mxu0 %v11829_v42  ;;  %v11897_v42 = vld [vmem:[#allocation7 + $0x56c] ss:$16 sps:$4 sm:$0xff]  }
 0x2d0   :  { %4252 = vmatpush1.bf16.msra.mxu1 %v11832_v14  ;;  %4228 = vmatprep.subr.bf16.mxu0 %v11837_v15  ;;  %v11898_v14 = vld [vmem:[#allocation7 + $0x668] ss:$16 sps:$4 sm:$0xff]   ;;  %v11903_v15 = vld [vmem:[#allocation7 + $0x54c] ss:$16 sps:$4 sm:$0xff]  }
 0x2d1   :  { %4253 = vmatprep.subr.bf16.mxu1 %v11840_v17  ;;  %v11906_v17 = vld [vmem:[#allocation7 + $0x64c] ss:$16 sps:$4 sm:$0xff]  }
 0x2d3   :  { %4229 = vmatpush2.bf16.msra.mxu0 %v11835_v18  ;;  %v11901_v18 = vld [vmem:[#allocation7 + $0x548] ss:$16 sps:$4 sm:$0xff]  }
 0x2d4   :  { %4254 = vmatpush1.bf16.msra.mxu1 %v11838_v19  ;;  %4230 = vmatprep.subr.bf16.mxu0 %v11843_v21  ;;  %v11904_v19 = vld [vmem:[#allocation7 + $0x648] ss:$16 sps:$4 sm:$0xff]   ;;  %v11909_v21 = vld [vmem:[#allocation7 + $0x52c] ss:$16 sps:$4 sm:$0xff]  }
 0x2d5   :  { %4255 = vmatprep.subr.bf16.mxu1 %v11846_v22  ;;  %v11912_v22 = vld [vmem:[#allocation7 + $0x62c] ss:$16 sps:$4 sm:$0xff]  }
 0x2d7   :  { %4231 = vmatpush2.bf16.msra.mxu0 %v11841_v23  ;;  %v11907_v23 = vld [vmem:[#allocation7 + $0x528] ss:$16 sps:$4 sm:$0xff]  }
 0x2d8   :  { %4256 = vmatpush1.bf16.msra.mxu1 %v11844_v24  ;;  %4232 = vmatprep.subr.bf16.mxu0 %v11849_v8  ;;  %v11910_v24 = vld [vmem:[#allocation7 + $0x628] ss:$16 sps:$4 sm:$0xff]   ;;  %v11915_v8 = vld [vmem:[#allocation7 + $0x50c] ss:$16 sps:$4 sm:$0xff]  }
 0x2d9   :  { %4257 = vmatprep.subr.bf16.mxu1 %v11852_v27  ;;  %v11918_v27 = vld [vmem:[#allocation7 + $0x60c] ss:$16 sps:$4 sm:$0xff]  }
 0x2db   :  { %4233 = vmatpush2.bf16.msra.mxu0 %v11847_v29  ;;  %v11913_v29 = vld [vmem:[#allocation7 + $0x508] ss:$16 sps:$4 sm:$0xff]  }
 0x2dc   :  { %4258 = vmatpush1.bf16.msra.mxu1 %v11850_v30  ;;  %4234 = vmatprep.subr.bf16.mxu0 %v11855_v31  ;;  %v11916_v30 = vld [vmem:[#allocation7 + $0x608] ss:$16 sps:$4 sm:$0xff]   ;;  %v11921_v31 = vld [vmem:[#allocation7 + $0x7ec] ss:$16 sps:$4 sm:$0xff]  }
 0x2dd   :  { %4259 = vmatprep.subr.bf16.mxu1 %v11858_v9  ;;  %v11924_v9 = vld [vmem:[#allocation7 + $0x8ec] ss:$16 sps:$4 sm:$0xff]  }
 0x2df   :  { %4235 = vmatpush2.bf16.msra.mxu0 %v11853_v52  ;;  %v11919_v52 = vld [vmem:[#allocation7 + $0x7e8] ss:$16 sps:$4 sm:$0xff]  }
 0x2e0   :  { %4260 = vmatpush1.bf16.msra.mxu1 %v11856_v16  ;;  %4236 = vmatprep.subr.bf16.mxu0 %v11861_v33  ;;  %v11922_v16 = vld [vmem:[#allocation7 + $0x8e8] ss:$16 sps:$4 sm:$0xff]   ;;  %v11927_v33 = vld [vmem:[#allocation7 + $0x7cc] ss:$16 sps:$4 sm:$0xff]  }
 0x2e1   :  { %4261 = vmatprep.subr.bf16.mxu1 %v11864_v36  ;;  %v11930_v36 = vld [vmem:[#allocation7 + $0x8cc] ss:$16 sps:$4 sm:$0xff]  }
 0x2e3   :  { %4237 = vmatpush2.bf16.msra.mxu0 %v11859_v37  ;;  %v11925_v37 = vld [vmem:[#allocation7 + $0x7c8] ss:$16 sps:$4 sm:$0xff]  }
 0x2e4   :  { %4262 = vmatpush1.bf16.msra.mxu1 %v11862_v38  ;;  %4238 = vmatprep.subr.bf16.mxu0 %v11867_v39  ;;  %v11928_v38 = vld [vmem:[#allocation7 + $0x8c8] ss:$16 sps:$4 sm:$0xff]   ;;  %v11933_v39 = vld [vmem:[#allocation7 + $0x7ac] ss:$16 sps:$4 sm:$0xff]  }
 0x2e5   :  { %4263 = vmatprep.subr.bf16.mxu1 %v11870_v41  ;;  %v11936_v41 = vld [vmem:[#allocation7 + $0x8ac] ss:$16 sps:$4 sm:$0xff]  }
 0x2e7   :  { %4239 = vmatpush2.bf16.msra.mxu0 %v11865_v61  ;;  %v11931_v61 = vld [vmem:[#allocation7 + $0x7a8] ss:$16 sps:$4 sm:$0xff]  }
 0x2e8   :  { %4264 = vmatpush1.bf16.msra.mxu1 %v11868_v44  ;;  %4290 = vmatprep.subr.bf16.mxu0 %v11876_v46  ;;  %v11934_v44 = vld [vmem:[#allocation7 + $0x8a8] ss:$16 sps:$4 sm:$0xff]   ;;  %v11942_v46 = vld [vmem:[#allocation7 + $0x88c] ss:$16 sps:$4 sm:$0xff]  }
 0x2e9   :  { %4265 = vmatprep.subr.bf16.mxu1 %v11873_v45  ;;  %v11939_v45 = vld [vmem:[#allocation7 + $0x78c] ss:$16 sps:$4 sm:$0xff]  }
 0x2ea   :  { %v3955_v51 = vpop.f32.mrf.mxu0  ;;  %4241 = vmatmul.mubr.bf16.vlgmr.msra.gmra.mxu0 %v13178_v28 }
 0x2eb   :  { %v3996_v55 = vpop.f32.mrf.mxu1  ;;  %v3956_v56 = vadd.f32 %v3955_v51, %v13203_v62  ;;  %4291 = vmatpush1.bf16.msra.mxu0 %v11874_v0  ;;  %4322 = vmatprep.mubr.bf16.mxu0 %v13182_v32  ;;  %v11900_v32 = vld [vmem:[#allocation7 + $0x66c] ss:$16 sps:$4 sm:$0xff]   ;;  %v11940_v0 = vld [vmem:[#allocation7 + $0x888] ss:$16 sps:$4 sm:$0xff]  }
 0x2ec   :  { %4266 = vmatpush2.bf16.msra.mxu1 %v11871_v47  ;;  %v3957_v57 = vpop.f32.mrf.mxu0  ;;  %4292 = vmatprep.subr.bf16.mxu0 %v11882_v26  ;;  %v11937_v47 = vld [vmem:[#allocation7 + $0x788] ss:$16 sps:$4 sm:$0xff]   ;;  %v11954_v51 = vld [vmem:[#allocation7 + $0x84c] ss:$16 sps:$4 sm:$0xff]  }
 0x2ed   :  { %v3998_v58 = vpop.f32.mrf.mxu1  ;;  %4267 = vmatprep.subr.bf16.mxu1 %v11879_v48  ;;  %v13230_v63 = vadd.f32 %v3996_v55, %v3956_v56  ;;  %v3958_v1 = vadd.f32 %v3957_v57, %v13208_v3  ;;  %v11895_v3 = vld [vmem:[#allocation7 + $0x568] ss:$16 sps:$4 sm:$0xff]   ;;  %v11945_v48 = vld [vmem:[#allocation7 + $0x76c] ss:$16 sps:$4 sm:$0xff]  }
 0x2ee   :  { %v3959_v5 = vpop.f32.mrf.mxu0  ;;  %v11943_v26 = vld [vmem:[#allocation7 + $0x768] ss:$16 sps:$4 sm:$0xff]   ;;  %v11957_v56 = vld [vmem:[#allocation7 + $0x72c] ss:$16 sps:$4 sm:$0xff]  }
 0x2ef   :  { %v4000_v28 = vpop.f32.mrf.mxu1  ;;  %v13234_v62 = vadd.f32 %v3998_v58, %v3958_v1  ;;  %4293 = vmatpush1.bf16.msra.mxu0 %v11880_v50  ;;  %v11951_v50 = vld [vmem:[#allocation7 + $0x74c] ss:$16 sps:$4 sm:$0xff]   ;;  %v11952_v55 = vld [vmem:[#allocation7 + $0x848] ss:$16 sps:$4 sm:$0xff]  }
 0x2f0   :  { %4268 = vmatpush2.bf16.msra.mxu1 %v11877_v49  ;;  %v3960_v7 = vpop.f32.mrf.mxu0  ;;  %4294 = vmatprep.subr.bf16.mxu0 %v11888_v25  ;;  %v11946_v49 = vld [vmem:[#allocation7 + $0x868] ss:$16 sps:$4 sm:$0xff]   ;;  %v11960_v57 = vld [vmem:[#allocation7 + $0x82c] ss:$16 sps:$4 sm:$0xff]  }
 0x2f1   :  { %v4001_v10 = vpop.f32.mrf.mxu1  ;;  %4269 = vmatprep.subr.bf16.mxu1 %v11885_v60  ;;  %v11955_v58 = vld [vmem:[#allocation7 + $0x728] ss:$16 sps:$4 sm:$0xff]   ;;  %v11963_v25 = vld [vmem:[#allocation7 + $0x70c] ss:$16 sps:$4 sm:$0xff]  }
 0x2f2   :  { %v11958_v60 = vld [vmem:[#allocation7 + $0x828] ss:$16 sps:$4 sm:$0xff]   ;;  %v11966_v1 = vld [vmem:[#allocation7 + $0x80c] ss:$16 sps:$4 sm:$0xff]  }
 0x2f3   :  { %4295 = vmatpush1.bf16.msra.mxu0 %v11886_v4  ;;  %v11964_v4 = vld [vmem:[#allocation7 + $0x808] ss:$16 sps:$4 sm:$0xff]   ;;  %v11969_v5 = vld [vmem:[#allocation7 + $0x9ec] ss:$16 sps:$4 sm:$0xff]  }
 0x2f4   :  { %4270 = vmatpush2.bf16.msra.mxu1 %v11883_v2  ;;  %4296 = vmatprep.subr.bf16.mxu0 %v11894_v11  ;;  %v11961_v2 = vld [vmem:[#allocation7 + $0x708] ss:$16 sps:$4 sm:$0xff]   ;;  %v11972_v28 = vld [vmem:[#allocation7 + $0xaec] ss:$16 sps:$4 sm:$0xff]  }
 0x2f5   :  { %4271 = vmatprep.subr.bf16.mxu1 %v11891_v35  ;;  %v11967_v35 = vld [vmem:[#allocation7 + $0x9e8] ss:$16 sps:$4 sm:$0xff]   ;;  %v11975_v10 = vld [vmem:[#allocation7 + $0x9cc] ss:$16 sps:$4 sm:$0xff]  }
 0x2f6   :  { %v11970_v7 = vld [vmem:[#allocation7 + $0xae8] ss:$16 sps:$4 sm:$0xff]   ;;  %v11978_v11 = vld [vmem:[#allocation7 + $0xacc] ss:$16 sps:$4 sm:$0xff]  }
 0x2f7   :  { %4297 = vmatpush1.bf16.msra.mxu0 %v11892_v13 }
 0x2f8   :  { %4272 = vmatpush2.bf16.msra.mxu1 %v11889_v12  ;;  %4298 = vmatprep.subr.bf16.mxu0 %v11900_v32  ;;  %v11973_v32 = vld [vmem:[#allocation7 + $0x9c8] ss:$16 sps:$4 sm:$0xff]  }
 0x2f9   :  { %4273 = vmatprep.subr.bf16.mxu1 %v11897_v42 }
 0x2fb   :  { %4299 = vmatpush1.bf16.msra.mxu0 %v11898_v14 }
 0x2fc   :  { %4274 = vmatpush2.bf16.msra.mxu1 %v11895_v3  ;;  %4300 = vmatprep.subr.bf16.mxu0 %v11906_v17  ;;  %v11976_v3 = vld [vmem:[#allocation7 + $0xac8] ss:$16 sps:$4 sm:$0xff]   ;;  %v11981_v17 = vld [vmem:[#allocation7 + $0x9ac] ss:$16 sps:$4 sm:$0xff]  }
 0x2fd   :  { %4275 = vmatprep.subr.bf16.mxu1 %v11903_v15 }
 0x2ff   :  { %4301 = vmatpush1.bf16.msra.mxu0 %v11904_v19 }
 0x300   :  { %4276 = vmatpush2.bf16.msra.mxu1 %v11901_v18  ;;  %4302 = vmatprep.subr.bf16.mxu0 %v11912_v22  ;;  %v11984_v18 = vld [vmem:[#allocation7 + $0xaac] ss:$16 sps:$4 sm:$0xff]   ;;  %v11982_v22 = vld [vmem:[#allocation7 + $0xaa8] ss:$16 sps:$4 sm:$0xff]  }
 0x301   :  { %4277 = vmatprep.subr.bf16.mxu1 %v11909_v21 }
 0x303   :  { %4303 = vmatpush1.bf16.msra.mxu0 %v11910_v24 }
 0x304   :  { %4278 = vmatpush2.bf16.msra.mxu1 %v11907_v23  ;;  %4304 = vmatprep.subr.bf16.mxu0 %v11918_v27  ;;  %v11990_v27 = vld [vmem:[#allocation7 + $0xa8c] ss:$16 sps:$4 sm:$0xff]  }
 0x305   :  { %4279 = vmatprep.subr.bf16.mxu1 %v11915_v8  ;;  %v11987_v8 = vld [vmem:[#allocation7 + $0x98c] ss:$16 sps:$4 sm:$0xff]  }
 0x307   :  { %4305 = vmatpush1.bf16.msra.mxu0 %v11916_v30  ;;  %v11988_v30 = vld [vmem:[#allocation7 + $0xa88] ss:$16 sps:$4 sm:$0xff]  }
 0x308   :  { %4280 = vmatpush2.bf16.msra.mxu1 %v11913_v29  ;;  %4306 = vmatprep.subr.bf16.mxu0 %v11921_v31  ;;  %v11985_v29 = vld [vmem:[#allocation7 + $0x988] ss:$16 sps:$4 sm:$0xff]   ;;  %v11993_v31 = vld [vmem:[#allocation7 + $0x96c] ss:$16 sps:$4 sm:$0xff]  }
 0x309   :  { %4331 = vmatprep.subr.bf16.mxu1 %v11924_v9  ;;  %v11996_v9 = vld [vmem:[#allocation7 + $0xa6c] ss:$16 sps:$4 sm:$0xff]  }
 0x30b   :  { %4282 = vmatmul.mubr.bf16.vlgmr.msra.gmra.mxu1 %v13192_v53  ;;  %4307 = vmatpush2.bf16.msra.mxu0 %v11919_v52  ;;  %v11948_v53 = vld [vmem:[#allocation7 + $0x86c] ss:$16 sps:$4 sm:$0xff]   ;;  %v11991_v52 = vld [vmem:[#allocation7 + $0x968] ss:$16 sps:$4 sm:$0xff]  }
 0x30c   :  { %4332 = vmatpush1.bf16.msra.mxu1 %v11922_v16  ;;  %4308 = vmatprep.subr.bf16.mxu0 %v11927_v33  ;;  %v11994_v16 = vld [vmem:[#allocation7 + $0xa68] ss:$16 sps:$4 sm:$0xff]   ;;  %v11999_v33 = vld [vmem:[#allocation7 + $0x94c] ss:$16 sps:$4 sm:$0xff]  }
 0x30d   :  { %4333 = vmatprep.subr.bf16.mxu1 %v11930_v36  ;;  %4363 = vmatprep.mubr.bf16.mxu1 %v13196_v59  ;;  %v11949_v59 = vld [vmem:[#allocation7 + $0x748] ss:$16 sps:$4 sm:$0xff]   ;;  %v12002_v36 = vld [vmem:[#allocation7 + $0xa4c] ss:$16 sps:$4 sm:$0xff]  }
 0x30f   :  { %4309 = vmatpush2.bf16.msra.mxu0 %v11925_v37  ;;  %v11997_v37 = vld [vmem:[#allocation7 + $0x948] ss:$16 sps:$4 sm:$0xff]  }
 0x310   :  { %4334 = vmatpush1.bf16.msra.mxu1 %v11928_v38  ;;  %4310 = vmatprep.subr.bf16.mxu0 %v11933_v39  ;;  %v12000_v38 = vld [vmem:[#allocation7 + $0xa48] ss:$16 sps:$4 sm:$0xff]   ;;  %v12005_v39 = vld [vmem:[#allocation7 + $0x92c] ss:$16 sps:$4 sm:$0xff]  }
 0x311   :  { %4335 = vmatprep.subr.bf16.mxu1 %v11936_v41  ;;  %v12008_v41 = vld [vmem:[#allocation7 + $0xa2c] ss:$16 sps:$4 sm:$0xff]  }
 0x313   :  { %4311 = vmatpush2.bf16.msra.mxu0 %v11931_v61  ;;  %v12003_v61 = vld [vmem:[#allocation7 + $0x928] ss:$16 sps:$4 sm:$0xff]  }
 0x314   :  { %4336 = vmatpush1.bf16.msra.mxu1 %v11934_v44  ;;  %4312 = vmatprep.subr.bf16.mxu0 %v11939_v45  ;;  %v12006_v44 = vld [vmem:[#allocation7 + $0xa28] ss:$16 sps:$4 sm:$0xff]   ;;  %v12011_v45 = vld [vmem:[#allocation7 + $0x90c] ss:$16 sps:$4 sm:$0xff]  }
 0x315   :  { %4337 = vmatprep.subr.bf16.mxu1 %v11942_v46  ;;  %v12014_v46 = vld [vmem:[#allocation7 + $0xa0c] ss:$16 sps:$4 sm:$0xff]  }
 0x317   :  { %4313 = vmatpush2.bf16.msra.mxu0 %v11937_v47  ;;  %v12009_v47 = vld [vmem:[#allocation7 + $0x908] ss:$16 sps:$4 sm:$0xff]  }
 0x318   :  { %4338 = vmatpush1.bf16.msra.mxu1 %v11940_v0  ;;  %4314 = vmatprep.subr.bf16.mxu0 %v11945_v48  ;;  %v12012_v0 = vld [vmem:[#allocation7 + $0xa08] ss:$16 sps:$4 sm:$0xff]   ;;  %v12015_v48 = vld [vmem:[#allocation11 + $0x78] sm:$0xff]  }
 0x319   :  { %4339 = vmatprep.subr.bf16.mxu1 %v11948_v53  ;;  %v12016_v53 = vld [vmem:[#allocation11 + $0x38] sm:$0xff]  }
 0x31b   :  { %4315 = vmatpush2.bf16.msra.mxu0 %v11943_v26  ;;  %v12017_v26 = vld [vmem:[#allocation11 + $0x70] sm:$0xff]  }
 0x31c   :  { %4340 = vmatpush1.bf16.msra.mxu1 %v11946_v49  ;;  %4316 = vmatprep.subr.bf16.mxu0 %v11951_v50  ;;  %v12018_v50 = vld [vmem:[#allocation11 + $0x30] sm:$0xff]  }
 0x31d   :  { %4341 = vmatprep.subr.bf16.mxu1 %v11954_v51 }
 0x31f   :  { %4317 = vmatpush2.bf16.msra.mxu0 %v11949_v59  ;;  %v12019_v59 = vld [vmem:[#allocation11 + $0x68] sm:$0xff]  }
 0x320   :  { %4342 = vmatpush1.bf16.msra.mxu1 %v11952_v55  ;;  %4318 = vmatprep.subr.bf16.mxu0 %v11957_v56  ;;  %v12020_v56 = vld [vmem:[#allocation11 + $0x28] sm:$0xff]  }
 0x321   :  { %4343 = vmatprep.subr.bf16.mxu1 %v11960_v57 }
 0x323   :  { %4319 = vmatpush2.bf16.msra.mxu0 %v11955_v58  ;;  %v12021_v58 = vld [vmem:[#allocation11 + $0x60] sm:$0xff]  }
 0x324   :  { %4344 = vmatpush1.bf16.msra.mxu1 %v11958_v60  ;;  %4320 = vmatprep.subr.bf16.mxu0 %v11963_v25  ;;  %v12022_v60 = vld [vmem:[#allocation11 + $0x20] sm:$0xff]   ;;  %v12023_v25 = vld [vmem:[#allocation11 + $0x58] sm:$0xff]  }
 0x325   :  { %4345 = vmatprep.subr.bf16.mxu1 %v11966_v1  ;;  %v12024_v1 = vld [vmem:[#allocation11 + $0x18] sm:$0xff]  }
 0x327   :  { %4321 = vmatpush2.bf16.msra.mxu0 %v11961_v2  ;;  %v12027_v2 = vld [vmem:[#allocation11 + $0x48] sm:$0xff]  }
 0x328   :  { %4346 = vmatpush1.bf16.msra.mxu1 %v11964_v4  ;;  %4372 = vmatprep.subr.bf16.mxu0 %v11972_v28  ;;  %v4415_v4 = vlaneseq  ;;  %v12029_v28 = vld [vmem:[#allocation11 + $0x40] sm:$0xff]  }
 0x329   :  { %4347 = vmatprep.subr.bf16.mxu1 %v11969_v5  ;;  %v12028_v5 = vld [vmem:[#allocation11 + $0x8] sm:$0xff]  }
 0x32a   :  { %v4037_v12 = vpop.f32.mrf.mxu0  ;;  %4323 = vmatmul.mubr.bf16.vlgmr.msra.gmra.mxu0 %v13194_v54 }
 0x32b   :  { %v4078_v13 = vpop.f32.mrf.mxu1  ;;  %v4038_v42 = vadd.f32 %v4037_v12, %v13230_v63  ;;  %4373 = vmatpush1.bf16.msra.mxu0 %v11970_v7  ;;  %4404 = vmatprep.mubr.bf16.mxu0 %v12901_v6  ;;  %v11979_v63 = vld [vmem:[#allocation7 + $0x9a8] ss:$16 sps:$4 sm:$0xff]   ;;  %v13256_v12 = vld [vmem:[#allocation10] sm:$0xf] }
 0x32c   :  { %4348 = vmatpush2.bf16.msra.mxu1 %v11967_v35  ;;  %v13240_v14 = vpop.f32.mrf.mxu0  ;;  %4374 = vmatprep.subr.bf16.mxu0 %v11978_v11  ;;  %v13249_v35 = vshrl.u32 %v4415_v4, 7  ;;  %v12030_v7 = vld [vmem:[#allocation11] sm:$0xff]  }
 0x32d   :  { %v13242_v15 = vpop.f32.mrf.mxu1  ;;  %4349 = vmatprep.subr.bf16.mxu1 %v11975_v10  ;;  %v13244_v19 = vadd.f32 %v4078_v13, %v4038_v42  ;;  %v4040_v10 = vadd.f32 %v13240_v14, %v13234_v62  ;;  %v12061_v4 = vld [vmem:[#allocation14 + $0x64] ss:$12 sps:$4 sm:$0xff]  }
 0x32e   :  { %v4041_v21 = vpop.f32.mrf.mxu0  ;;  %v13254_v11 = vsub.s32 0, %v13249_v35  ;;  %v13259_v13 = vsub.s32 1, %v13249_v35 }
 0x32f   :  { %v4082_v54 = vpop.f32.mrf.mxu1  ;;  %4375 = vmatpush1.bf16.msra.mxu0 %v11976_v3 }
 0x330   :  { %4350 = vmatpush2.bf16.msra.mxu1 %v11973_v32  ;;  %v4042_v23 = vpop.f32.mrf.mxu0  ;;  %4376 = vmatprep.subr.bf16.mxu0 %v11984_v18  ;;  %v4081_v32 = vadd.f32 %v13242_v15, %v4040_v10  ;;  %v4422_v14 = vrot.slane %v13256_v12, %v13259_v13  ;;  %v12065_v10 = vld [vmem:[#allocation14 + $0x4c] ss:$12 sps:$4 sm:$0xff]  }
 0x331   :  { %v4083_v24 = vpop.f32.mrf.mxu1  ;;  %4351 = vmatprep.subr.bf16.mxu1 %v11981_v17  ;;  %v4418_v17 = vrot.slane %v13256_v12, %v13254_v11 }
 0x332   :  { %v12031_v24 = vld [vmem:[#allocation11 + $0xf8] sm:$0xff]  }
 0x333   :  { %4377 = vmatpush1.bf16.msra.mxu0 %v11982_v22 }
 0x334   :  { %4352 = vmatpush2.bf16.msra.mxu1 %v11979_v63  ;;  %4378 = vmatprep.subr.bf16.mxu0 %v11990_v27  ;;  %v12033_v27 = vld [vmem:[#allocation11 + $0xf0] sm:$0xff]  }
 0x335   :  { %4353 = vmatprep.subr.bf16.mxu1 %v11987_v8  ;;  %v12032_v8 = vld [vmem:[#allocation11 + $0xb8] sm:$0xff]  }
 0x337   :  { %4379 = vmatpush1.bf16.msra.mxu0 %v11988_v30  ;;  %v12034_v30 = vld [vmem:[#allocation11 + $0xb0] sm:$0xff]  }
 0x338   :  { %4354 = vmatpush2.bf16.msra.mxu1 %v11985_v29  ;;  %4380 = vmatprep.subr.bf16.mxu0 %v11996_v9  ;;  %v12035_v9 = vld [vmem:[#allocation11 + $0xe8] sm:$0xff]  }
 0x339   :  { %4355 = vmatprep.subr.bf16.mxu1 %v11993_v31 }
 0x33b   :  { %4381 = vmatpush1.bf16.msra.mxu0 %v11994_v16 }
 0x33c   :  { %4356 = vmatpush2.bf16.msra.mxu1 %v11991_v52  ;;  %4382 = vmatprep.subr.bf16.mxu0 %v12002_v36 }
 0x33d   :  { %4357 = vmatprep.subr.bf16.mxu1 %v11999_v33  ;;  %v12036_v33 = vld [vmem:[#allocation11 + $0xa8] sm:$0xff]  }
 0x33f   :  { %4383 = vmatpush1.bf16.msra.mxu0 %v12000_v38  ;;  %v12038_v38 = vld [vmem:[#allocation11 + $0xa0] sm:$0xff]  }
 0x340   :  { %4358 = vmatpush2.bf16.msra.mxu1 %v11997_v37  ;;  %4384 = vmatprep.subr.bf16.mxu0 %v12008_v41  ;;  %v12037_v37 = vld [vmem:[#allocation11 + $0xe0] sm:$0xff]   ;;  %v12040_v41 = vld [vmem:[#allocation11 + $0x98] sm:$0xff]  }
 0x341   :  { %4359 = vmatprep.subr.bf16.mxu1 %v12005_v39  ;;  %v12039_v39 = vld [vmem:[#allocation11 + $0xd8] sm:$0xff]  }
 0x343   :  { %4385 = vmatpush1.bf16.msra.mxu0 %v12006_v44 }
 0x344   :  { %4360 = vmatpush2.bf16.msra.mxu1 %v12003_v61  ;;  %4386 = vmatprep.subr.bf16.mxu0 %v12014_v46  ;;  %v12041_v46 = vld [vmem:[#allocation11 + $0xd0] sm:$0xff]  }
 0x345   :  { %4361 = vmatprep.subr.bf16.mxu1 %v12011_v45 }
 0x347   :  { %4387 = vmatpush1.bf16.msra.mxu0 %v12012_v0  ;;  %v12042_v0 = vld [vmem:[#allocation11 + $0x90] sm:$0xff]  }
 0x348   :  { %4362 = vmatpush2.bf16.msra.mxu1 %v12009_v47  ;;  %10357 = vmatprep.subr.bf16.mxu0 %v12015_v48 }
 0x349   :  { %10379 = vmatprep.subr.bf16.mxu1 %v12031_v24 }
 0x34a   :  { %4405 = vmatmul.mubr.bf16.vlgmr.msra.gmra.mxu0 %v13212_v40  ;;  %v12026_v40 = vld [vmem:[#allocation11 + $0x10] sm:$0xff]  }
 0x34b   :  { %v4160_v49 = vpop.f32.mrf.mxu1  ;;  %4364 = vmatmul.mubr.bf16.vlgmr.msra.gmra.mxu1 %v13216_v20  ;;  %10358 = vmatpush3.bf16.msra.mxu0 %v12016_v53  ;;  %v12025_v20 = vld [vmem:[#allocation11 + $0x50] sm:$0xff]  }
 0x34c   :  { %10359 = vmatprep.subr.bf16.mxu0 %v12017_v26  ;;  %10380 = vmatpush3.bf16.msra.mxu1 %v12032_v8  ;;  %v12043_v26 = vld [vmem:[#allocation11 + $0xc8] sm:$0xff]   ;;  %v4429_v8 = vsub.s32 3, %v13249_v35 }
 0x34d   :  { %v4162_v51 = vpop.f32.mrf.mxu1  ;;  %10381 = vmatprep.subr.bf16.mxu1 %v12033_v27 }
 0x34f   :  { %v4164_v55 = vpop.f32.mrf.mxu1  ;;  %10360 = vmatpush3.bf16.msra.mxu0 %v12018_v50  ;;  %v12045_v50 = vld [vmem:[#allocation11 + $0xc0] sm:$0xff]  }
 0x350   :  { %10361 = vmatprep.subr.bf16.mxu0 %v12019_v59  ;;  %10382 = vmatpush3.bf16.msra.mxu1 %v12034_v30 }
 0x351   :  { %v4165_v57 = vpop.f32.mrf.mxu1  ;;  %10383 = vmatprep.subr.bf16.mxu1 %v12035_v9 }
 0x353   :  { %10362 = vmatpush3.bf16.msra.mxu0 %v12020_v56 }
 0x354   :  { %10363 = vmatprep.subr.bf16.mxu0 %v12021_v58  ;;  %10384 = vmatpush3.bf16.msra.mxu1 %v12036_v33  ;;  %v4430_v33 = vrot.slane %v13256_v12, %v4429_v8 }
 0x355   :  { %10385 = vmatprep.subr.bf16.mxu1 %v12037_v37 }
 0x357   :  { %10364 = vmatpush3.bf16.msra.mxu0 %v12022_v60  ;;  %v12049_v60 = vld [vmem:[#allocation14 + $0xac] ss:$12 sps:$4 sm:$0xff]  }
 0x358   :  { %10365 = vmatprep.subr.bf16.mxu0 %v12023_v25  ;;  %10386 = vmatpush3.bf16.msra.mxu1 %v12038_v38  ;;  %v12902_v25 = vmov 0.0  }
 0x359   :  { %10387 = vmatprep.subr.bf16.mxu1 %v12039_v39 }
 0x35b   :  { %10366 = vmatpush3.bf16.msra.mxu0 %v12024_v1  ;;  %v12053_v1 = vld [vmem:[#allocation14 + $0x94] ss:$12 sps:$4 sm:$0xff]  }
 0x35c   :  { %10367 = vmatprep.subr.bf16.mxu0 %v12025_v20  ;;  %10388 = vmatpush3.bf16.msra.mxu1 %v12040_v41  ;;  %v12051_v20 = vld [vmem:[#allocation14 + $0x90] ss:$12 sps:$4 sm:$0xff]  }
 0x35d   :  { %10389 = vmatprep.subr.bf16.mxu1 %v12041_v46 }
 0x35f   :  { %10368 = vmatpush3.bf16.msra.mxu0 %v12026_v40  ;;  %v12057_v40 = vld [vmem:[#allocation14 + $0x7c] ss:$12 sps:$4 sm:$0xff]  }
 0x360   :  { %10369 = vmatprep.subr.bf16.mxu0 %v12027_v2  ;;  %10390 = vmatpush3.bf16.msra.mxu1 %v12042_v0  ;;  %v12055_v2 = vld [vmem:[#allocation14 + $0x78] ss:$12 sps:$4 sm:$0xff]  }
 0x361   :  { %10391 = vmatprep.subr.bf16.mxu1 %v12043_v26  ;;  %v12054_v26 = vld [vmem:[#allocation14 + $0x98] ss:$12 sps:$4 sm:$0xff]  }
 0x363   :  { %10370 = vmatpush3.bf16.msra.mxu0 %v12028_v5 }
 0x364   :  { %10371 = vmatprep.subr.bf16.mxu0 %v12029_v28  ;;  %v12059_v28 = vld [vmem:[#allocation14 + $0x60] ss:$12 sps:$4 sm:$0xff]  }
 0x367   :  { %10372 = vmatpush3.bf16.msra.mxu0 %v12030_v7 }
 0x368   :  { %4972 = vmatprep.subr.bf16.mxu0 %v12049_v60  ;;  %v12074_v60 = vld [vmem:[#allocation14 + $0x20] ss:$12 sps:$4 sm:$0xff]  }
 0x36a   :  { %v4119_v42 = vpop.f32.mrf.mxu0 }
 0x36b   :  { %v4120_v3 = vadd.f32 %v4119_v42, %v13244_v19 }
 0x36c   :  { %v4121_v18 = vpop.f32.mrf.mxu0 }
 0x36d   :  { %v4161_v21 = vadd.f32 %v4160_v49, %v4120_v3  ;;  %v4122_v62 = vadd.f32 %v4121_v18, %v4081_v32  ;;  %v12044_v49 = vld [vmem:[#allocation11 + $0x88] sm:$0xff]   ;;  %v12067_v18 = vld [vmem:[#allocation14 + $0x30] ss:$12 sps:$4 sm:$0xff]  }
 0x36e   :  { %v4123_v54 = vpop.f32.mrf.mxu0  ;;  %10392 = vmatpush3.bf16.msra.mxu1 %v12044_v49  ;;  %v12063_v32 = vld [vmem:[#allocation14 + $0x48] ss:$12 sps:$4 sm:$0xff]  }
 0x36f   :  { %v4435_v63 = vadd.f32 %v4418_v17, %v4161_v21  ;;  %v4163_v22 = vadd.f32 %v4162_v51, %v4122_v62  ;;  %v12046_v51 = vld [vmem:[#allocation11 + $0x80] sm:$0xff]   ;;  %10393 = vmatprep.subr.bf16.mxu1 %v12045_v50  ;;  %v12062_v49 = vld [vmem:[#allocation14 + $0x68] ss:$12 sps:$4 sm:$0xff]  }
 0x370   :  { %v4124_v23 = vpop.f32.mrf.mxu0  ;;  %v12069_v17 = vld [vmem:[#allocation14 + $0x34] ss:$12 sps:$4 sm:$0xff]   ;;  %v12066_v50 = vld [vmem:[#allocation14 + $0x50] ss:$12 sps:$4 sm:$0xff]  }
 0x371   :  { %v4439_v29 = vmul.f32 0.1, %v4435_v63  ;;  %v4436_v15 = vadd.f32 %v4422_v14, %v4163_v22  ;;  %v13272_v22 = vsub.s32 2, %v13249_v35 }
 0x372   :  { %10394 = vmatpush3.bf16.msra.mxu1 %v12046_v51  ;;  %v12070_v51 = vld [vmem:[#allocation14 + $0x38] ss:$12 sps:$4 sm:$0xff]  }
 0x373   :  { %v4440_v19 = vmul.f32 0.1, %v4436_v15  ;;  %v4443_v31 = vmax.f32 %v4435_v63, %v4439_v29  ;;  %10621 = vmatprep.subr.bf16.mxu1 %v12902_v25  ;;  %v4426_v30 = vrot.slane %v13256_v12, %v13272_v22  ;;  %v12058_v12 = vld [vmem:[#allocation14 + $0x80] ss:$12 sps:$4 sm:$0xff]  }
 0x375   :  { %v4444_v52 = vmax.f32 %v4436_v15, %v4440_v19  ;;  %v4511_v36 = vpack.c.bf16 %v4443_v31, %v4443_v31 }
 0x377   :  { %v4512_v16 = vpack.c.bf16 %v4444_v52, %v4444_v52 }
 0x379   :  { %4746 = vmatprep.mubr.bf16.mxu0 %v4512_v16 }
 0x37a   :  { %4747 = vmatmul.mubr.bf16.vlgmr.msra.gmra.mxu0 %v4511_v36 }
 0x37b   :  { %5004 = vmatprep.mubr.bf16.mxu0 %v12901_v6 }
 0x38b   :  { %v4201_v61 = vpop.f32.mrf.mxu1 }
 0x38c   :  { %v4202_v44 = vadd.f32 %v4201_v61, %v13220_v34 }
 0x38d   :  { %v4203_v45 = vpop.f32.mrf.mxu1 }
 0x38e   :  { %v4204_v47 = vadd.f32 %v4203_v45, %v13224_v43  ;;  %v12047_v43 = vld [vmem:[#allocation14 + $0xa8] ss:$12 sps:$4 sm:$0xff]  }
 0x38f   :  { %v4205_v48 = vpop.f32.mrf.mxu1  ;;  %4973 = vmatpush1.bf16.msra.mxu0 %v12047_v43  ;;  %v12071_v43 = vld [vmem:[#allocation14 + $0x18] ss:$12 sps:$4 sm:$0xff]  }
 0x390   :  { %4974 = vmatprep.subr.bf16.mxu0 %v12053_v1  ;;  %v12050_v48 = vld [vmem:[#allocation14 + $0xb0] ss:$12 sps:$4 sm:$0xff]  }
 0x391   :  { %v4206_v53 = vpop.f32.mrf.mxu1  ;;  %v12077_v1 = vld [vmem:[#allocation14 + $0x4] ss:$12 sps:$4 sm:$0xff]  }
 0x393   :  { %4975 = vmatpush1.bf16.msra.mxu0 %v12051_v20  ;;  %v12075_v20 = vld [vmem:[#allocation14] ss:$12 sps:$4 sm:$0xff]  }
 0x394   :  { %4976 = vmatprep.subr.bf16.mxu0 %v12057_v40  ;;  %v12078_v40 = vld [vmem:[#allocation14 + $0x8] ss:$12 sps:$4 sm:$0xff]  }
 0x397   :  { %4977 = vmatpush1.bf16.msra.mxu0 %v12055_v2  ;;  %v10057_v2 = vld [vmem:[#allocation13] ss:$0 sm:$0xff] }
 0x398   :  { %4978 = vmatprep.subr.bf16.mxu0 %v12061_v4 }
 0x39b   :  { %4979 = vmatpush1.bf16.msra.mxu0 %v12059_v28 }
 0x39c   :  { %4980 = vmatprep.subr.bf16.mxu0 %v12065_v10 }
 0x39f   :  { %4981 = vmatpush1.bf16.msra.mxu0 %v12063_v32 }
 0x3a0   :  { %4982 = vmatprep.subr.bf16.mxu0 %v12069_v17  ;;  %v4827_v17 = vld [vmem:[#allocation16] sm:$0x7] }
 0x3a3   :  { %4983 = vmatpush1.bf16.msra.mxu0 %v12067_v18  ;;  %v4840_v18 = vrot.slane %v4827_v17, %v13272_v22 }
 0x3aa   :  { %v4242_v59 = vpop.f32.mrf.mxu0 }
 0x3ab   :  { %v4243_v34 = vadd.f32 %v4242_v59, %v4202_v44 }
 0x3ac   :  { %v4244_v55 = vpop.f32.mrf.mxu0 }
 0x3ad   :  { %v4245_v56 = vadd.f32 %v4244_v55, %v4204_v47 }
 0x3ae   :  { %v4246_v57 = vpop.f32.mrf.mxu0 }
 0x3b0   :  { %v4247_v58 = vpop.f32.mrf.mxu0 }
 0x3b1   :  { %v12073_v58 = vld [vmem:[#allocation14 + $0x1c] ss:$12 sps:$4 sm:$0xff]  }
 0x3b2   :  { %4984 = vmatprep.subr.bf16.mxu0 %v12073_v58 }
 0x3b3   :  { %4985 = vmatpush1.bf16.msra.mxu0 %v12071_v43 }
 0x3b4   :  { %4986 = vmatprep.subr.bf16.mxu0 %v12077_v1 }
 0x3b7   :  { %4987 = vmatpush1.bf16.msra.mxu0 %v12075_v20 }
 0x3b8   :  { %10641 = vmatprep.subr.bf16.mxu0 %v12902_v25 }
 0x3cb   :  { %v4283_v5 = vpop.f32.mrf.mxu1 }
 0x3cc   :  { %v4284_v63 = vadd.f32 %v4283_v5, %v4243_v34 }
 0x3cd   :  { %v4285_v7 = vpop.f32.mrf.mxu1 }
 0x3ce   :  { %v4286_v23 = vadd.f32 %v4285_v7, %v4245_v56 }
 0x3cf   :  { %v4287_v42 = vpop.f32.mrf.mxu1 }
 0x3d1   :  { %v4288_v3 = vpop.f32.mrf.mxu1 }
 0x3ea   :  { %v4324_v21 = vpop.f32.mrf.mxu0 }
 0x3eb   :  { %v4325_v24 = vadd.f32 %v4324_v21, %v4284_v63  ;;  %v4836_v21 = vrot.slane %v4827_v17, %v13259_v13 }
 0x3ec   :  { %v4326_v62 = vpop.f32.mrf.mxu0 }
 0x3ed   :  { %v4327_v15 = vadd.f32 %v4326_v62, %v4286_v23 }
 0x3ee   :  { %v4328_v14 = vpop.f32.mrf.mxu0 }
 0x3f0   :  { %v4329_v54 = vpop.f32.mrf.mxu0 }
 0x3f1   :  { %v4832_v54 = vrot.slane %v4827_v17, %v13254_v11 }
 0x40a   :  { %v4406_v29 = vpop.f32.mrf.mxu0 }
 0x40b   :  { %v4365_v27 = vpop.f32.mrf.mxu1 }
 0x40c   :  { %v4366_v19 = vadd.f32 %v4365_v27, %v4325_v24  ;;  %v4408_v9 = vpop.f32.mrf.mxu0 }
 0x40d   :  { %v4367_v31 = vpop.f32.mrf.mxu1 }
 0x40e   :  { %v4407_v52 = vadd.f32 %v4406_v29, %v4366_v19  ;;  %v4368_v16 = vadd.f32 %v4367_v31, %v4327_v15  ;;  %v4410_v37 = vpop.f32.mrf.mxu0 }
 0x40f   :  { %v4369_v36 = vpop.f32.mrf.mxu1 }
 0x410   :  { %v4437_v38 = vadd.f32 %v4426_v30, %v4407_v52  ;;  %v4409_v39 = vadd.f32 %v4408_v9, %v4368_v16  ;;  %v4411_v61 = vpop.f32.mrf.mxu0 }
 0x411   :  { %v4370_v41 = vpop.f32.mrf.mxu1 }
 0x412   :  { %v4441_v35 = vmul.f32 0.1, %v4437_v38  ;;  %v4438_v44 = vadd.f32 %v4430_v33, %v4409_v39 }
 0x414   :  { %v4442_v45 = vmul.f32 0.1, %v4438_v44  ;;  %v4445_v46 = vmax.f32 %v4437_v38, %v4441_v35 }
 0x416   :  { %v4446_v47 = vmax.f32 %v4438_v44, %v4442_v45  ;;  %v4513_v53 = vpack.c.bf16 %v4445_v46, %v4445_v46 }
 0x418   :  { %v4514_v0 = vpack.c.bf16 %v4446_v47, %v4446_v47 }
 0x41a   :  { %4786 = vmatprep.mubr.bf16.mxu1 %v4514_v0 }
 0x41b   :  { %4787 = vmatmul.mubr.bf16.vlgmr.msra.gmra.mxu1 %v4513_v53 }
 0x41c   :  { %10622 = vmatpush3.bf16.msra.mxu1 %v12050_v48  ;;  %10637 = vmatprep.mubr.msk.bf16.mxu1 %vm12903_vm0, %v12902_v25 }
 0x41d   :  { %10623 = vmatprep.subr.bf16.mxu1 %v12902_v25 }
 0x420   :  { %10624 = vmatpush3.bf16.msra.mxu1 %v12054_v26 }
 0x421   :  { %10625 = vmatprep.subr.bf16.mxu1 %v12902_v25 }
 0x424   :  { %10626 = vmatpush3.bf16.msra.mxu1 %v12058_v12 }
 0x425   :  { %10627 = vmatprep.subr.bf16.mxu1 %v12902_v25 }
 0x428   :  { %10628 = vmatpush3.bf16.msra.mxu1 %v12062_v49 }
 0x429   :  { %10629 = vmatprep.subr.bf16.mxu1 %v12902_v25 }
 0x42c   :  { %10630 = vmatpush3.bf16.msra.mxu1 %v12066_v50 }
 0x42d   :  { %10631 = vmatprep.subr.bf16.mxu1 %v12902_v25 }
 0x430   :  { %10632 = vmatpush3.bf16.msra.mxu1 %v12070_v51 }
 0x431   :  { %10633 = vmatprep.subr.bf16.mxu1 %v12902_v25 }
 0x434   :  { %10634 = vmatpush3.bf16.msra.mxu1 %v12074_v60 }
 0x435   :  { %10635 = vmatprep.subr.bf16.mxu1 %v12902_v25 }
 0x438   :  { %10636 = vmatpush3.bf16.msra.mxu1 %v12078_v40 }
 0x439   :  { %10647 = vmatprep.subr.bf16.mxu1 %v12902_v25 }
 0x43a   :  { %v10373_v59 = vpop.f32.mrf.mxu0 }
 0x43c   :  { %v10374_v34 = vpop.f32.mrf.mxu0 }
 0x43d   :  { %v10375_v55 = vadd.f32 %v10374_v34, %v10373_v59 }
 0x43e   :  { %v10376_v56 = vpop.f32.mrf.mxu0 }
 0x43f   :  { %v4749_v28 = vadd.f32 %v10375_v55, %v10057_v2 }
 0x440   :  { %v10377_v57 = vpop.f32.mrf.mxu0 }
 0x4db   :  { %v10395_v4 = vpop.f32.mrf.mxu1 }
 0x4dd   :  { %v10396_v5 = vpop.f32.mrf.mxu1 }
 0x4de   :  { %v10397_v7 = vadd.f32 %v10396_v5, %v10395_v4 }
 0x4df   :  { %v10398_v10 = vpop.f32.mrf.mxu1 }
 0x4e0   :  { %v13289_v42 = vadd.f32 %v10397_v7, %v4749_v28 }
 0x4e1   :  { %v10399_v32 = vpop.f32.mrf.mxu1 }
 0x4e2   :  { %v4826_v3 = vpack.c.bf16 %v13289_v42, %v13289_v42 }
 0x4e4   :  { %5005 = vmatmul.mubr.bf16.vlgmr.msra.gmra.mxu0 %v4826_v3  ;;  %10638 = vmatmul.mubr.bf16.vlgmr.msra.gmra.mxu1 %v4826_v3 }
 0x4e5   :  { %10643 = vmatprep.mubr.msk.bf16.mxu0 %vm12903_vm0, %v12902_v25  ;;  %10649 = vmatprep.mubr.msk.bf16.mxu1 %vm12903_vm0, %v12902_v25 }
 0x5a4   :  { %v5006_v62 = vpop.f32.mrf.mxu0  ;;  %v5047_v14 = vpop.f32.mrf.mxu1 }
 0x5a5   :  { %v5048_v63 = vadd.f32 %v5047_v14, %v4840_v18  ;;  %v5007_v19 = vadd.f32 %v5006_v62, %v4832_v54 }
 0x5a6   :  { %v5008_v23 = vpop.f32.mrf.mxu0  ;;  %v10639_v24 = vpop.f32.mrf.mxu1 }
 0x5a7   :  { %v13300_v8 = vpack.c.bf16 %v5048_v63, %v5048_v63  ;;  %v5009_v27 = vadd.f32 %v5008_v23, %v4836_v21  ;;  %v5053_v33 = vpack.c.bf16 %v5007_v19, %v5007_v19 }
 0x5a8   :  { %v5010_v29 = vpop.f32.mrf.mxu0  ;;  %v5050_v15 = vpop.f32.mrf.mxu1 }
 0x5a9   :  { %v5054_v30 = vpack.c.bf16 %v5009_v27, %v5009_v27  ;;  %v5122_v31 = vsel %vm5120_vm1, %v13300_v8, 0 }
 0x5aa   :  { %v5011_v9 = vpop.f32.mrf.mxu0  ;;  %v10640_v52 = vpop.f32.mrf.mxu1  ;;  %10648 = vmatpush3.bf16.msra.mxu1 %v5122_v31 }
 0x5ab   :  { %5280 = vrot.lane.b32.xlu1 %v5054_v30, %s12874_s6  ;;  %5168 = vrot.lane.b32.xlu0 %v5054_v30, %s12904_s21  ;;  %v5060_v16 = vsel %vm5055_vm2, %v5054_v30, 0 }
 0x5ac   :  { %10642 = vmatpush3.bf16.xpose.msra.mxu0 %v5060_v16  ;;  %10659 = vmatprep.subr.bf16.mxu1 %v12902_v25 }
 0x5ad   :  { %10653 = vmatprep.subr.bf16.mxu0 %v12902_v25 }
 0x5af   :  { %5278 = vrot.lane.b32.xlu1 %v5053_v33, %s12874_s6  ;;  %5165 = vrot.lane.b32.xlu0 %v5053_v33, %s12904_s21 }
 0x5b3   :  { %5389 = vrot.lane.b32.xlu1 %v5053_v33, %s12905_s24  ;;  %5391 = vrot.lane.b32.xlu0 %v5054_v30, %s12905_s24 }
 0x5b4   :  { %10644 = vmatmul.mubr.msk.bf16.vlgmr.msra.gmra.mxu0 %vm5055_vm2, %v5053_v33 }
 0x5b5   :  { %10655 = vmatprep.mubr.msk.bf16.mxu0 %vm12903_vm0, %v12902_v25 }
 0x61d   :  { %v5169_v36 = vpop.permute.xlu0 %5168  ;;  %v5281_v38 = vpop.permute.xlu1 %5280 }
 0x61e   :  { %v5174_v37 = vsel %vm5055_vm2, %v5169_v36, 0  ;;  %v5286_v41 = vsel %vm5055_vm2, %v5281_v38, 0 }
 0x61f   :  { %10654 = vmatpush3.bf16.xpose.msra.mxu0 %v5174_v37 }
 0x620   :  { %10665 = vmatprep.subr.bf16.mxu0 %v12902_v25 }
 0x621   :  { %v5166_v39 = vpop.permute.xlu0 %5165  ;;  %v5279_v35 = vpop.permute.xlu1 %5278 }
 0x625   :  { %v5392_v61 = vpop.permute.xlu0 %5391  ;;  %v5390_v45 = vpop.permute.xlu1 %5389 }
 0x626   :  { %10656 = vmatmul.mubr.msk.bf16.vlgmr.msra.gmra.mxu0 %vm5055_vm2, %v5166_v39  ;;  %v5397_v44 = vsel %vm5055_vm2, %v5392_v61, 0 }
 0x627   :  { %10666 = vmatpush3.bf16.xpose.msra.mxu0 %v5286_v41  ;;  %10667 = vmatprep.mubr.msk.bf16.mxu0 %vm12903_vm0, %v12902_v25 }
 0x628   :  { %10677 = vmatprep.subr.bf16.mxu0 %v12902_v25 }
 0x62e   :  { %10668 = vmatmul.mubr.msk.bf16.vlgmr.msra.gmra.mxu0 %vm5055_vm2, %v5279_v35 }
 0x62f   :  { %10678 = vmatpush3.bf16.xpose.msra.mxu0 %v5397_v44  ;;  %10679 = vmatprep.mubr.msk.bf16.mxu0 %vm12903_vm0, %v12902_v25 }
 0x630   :  { %10689 = vmatprep.subr.bf16.mxu0 %v12902_v25 }
 0x636   :  { %10680 = vmatmul.mubr.msk.bf16.vlgmr.msra.gmra.mxu0 %vm5055_vm2, %v5390_v45 }
 0x637   :  { %10705 = vmatprep.mubr.msk.bf16.mxu0 %vm12903_vm0, %v12902_v25 }
 0x674   :  { %v5096_v46 = vpop.f32.mrf.mxu0 }
 0x675   :  { %v5102_v47 = vmul.f32 0.17677669, %v5096_v46 }
 0x676   :  { %v10645_v0 = vpop.f32.mrf.mxu0 }
 0x677   :  { %v5104_v48 = vsel %vm5103_vm3, %v5102_v47, -inf }
 0x678   :  { %5105 = vmax.xlane.f32.xlu0 %v5104_v48  ;;  %v5099_v53 = vpop.f32.mrf.mxu0 }
 0x67a   :  { %v10646_v26 = vpop.f32.mrf.mxu0 }
 0x6e6   :  { %v5210_v12 = vpop.f32.mrf.mxu0 }
 0x6e7   :  { %v5216_v49 = vmul.f32 0.17677669, %v5210_v12 }
 0x6e8   :  { %v10657_v50 = vpop.f32.mrf.mxu0 }
 0x6e9   :  { %v5217_v51 = vsel %vm5103_vm3, %v5216_v49, -inf }
 0x6ea   :  { %5218 = vmax.xlane.f32.xlu1 %v5217_v51  ;;  %v5213_v59 = vpop.f32.mrf.mxu0 }
 0x6ec   :  { %v10658_v34 = vpop.f32.mrf.mxu0 }
 0x6ee   :  { %v5322_v55 = vpop.f32.mrf.mxu0 }
 0x6ef   :  { %v5328_v56 = vmul.f32 0.17677669, %v5322_v55  ;;  %v12079_v55 = vld [vmem:[#allocation17 + $0x38] sm:$0xff]  }
 0x6f0   :  { %v10669_v57 = vpop.f32.mrf.mxu0  ;;  %10690 = vmatpush3.bf16.msra.mxu0 %v12079_v55 }
 0x6f1   :  { %v5329_v58 = vsel %vm5103_vm3, %v5328_v56, -inf  ;;  %10691 = vmatprep.subr.bf16.mxu0 %v12902_v25  ;;  %v12081_v57 = vld [vmem:[#allocation17 + $0x28] sm:$0xff]  }
 0x6f2   :  { %5330 = vmax.xlane.f32.xlu0 %v5329_v58  ;;  %v5325_v43 = vpop.f32.mrf.mxu0  ;;  %v12082_v58 = vld [vmem:[#allocation17 + $0x20] sm:$0xff]  }
 0x6f3   :  { %v12083_v43 = vld [vmem:[#allocation17 + $0x18] sm:$0xff]  }
 0x6f4   :  { %v10670_v60 = vpop.f32.mrf.mxu0 }
 0x6f5   :  { %v12084_v60 = vld [vmem:[#allocation17 + $0x10] sm:$0xff]  }
 0x6f6   :  { %v5433_v1 = vpop.f32.mrf.mxu0 }
 0x6f7   :  { %v5439_v20 = vmul.f32 0.17677669, %v5433_v1  ;;  %v12085_v1 = vld [vmem:[#allocation17 + $0x8] sm:$0xff]  }
 0x6f8   :  { %v10681_v40 = vpop.f32.mrf.mxu0 }
 0x6f9   :  { %v5440_v2 = vsel %vm5103_vm3, %v5439_v20, -inf }
 0x6fa   :  { %5441 = vmax.xlane.f32.xlu0 %v5440_v2  ;;  %v5436_v4 = vpop.f32.mrf.mxu0 }
 0x6fb   :  { %v12086_v4 = vld [vmem:[#allocation17] sm:$0xff]  }
 0x6fc   :  { %v10682_v5 = vpop.f32.mrf.mxu0 }
 0x701   :  { %v5106_v28 = vpop.xlane.xlu0 %5105 }
 0x702   :  { %v5107_v7 = vsub.f32 %v5102_v47, %v5106_v28 }
 0x704   :  { %v5108_v10 = vmul.f32 1.442695, %v5107_v7 }
 0x706   :  { %12281 = vpow2.f32 %v5108_v10 }
 0x713   :  { %v12282_v32 = vpop.eup %12281 }
 0x714   :  { %v5110_v3 = vsel %vm5103_vm3, %v12282_v32, 0.0 }
 0x715   :  { %5111 = vadd.xlane.f32.xlu1 %v5110_v3 }
 0x726   :  { %5230 = vrot.lane.b32.xlu1 %v13300_v8, %s12904_s21 }
 0x773   :  { %v5219_v17 = vpop.xlane.xlu1 %5218 }
 0x774   :  { %v5220_v18 = vsub.f32 %v5216_v49, %v5219_v17 }
 0x776   :  { %v5221_v21 = vmul.f32 1.442695, %v5220_v18 }
 0x778   :  { %12283 = vpow2.f32 %v5221_v21 }
 0x77b   :  { %v5331_v62 = vpop.xlane.xlu0 %5330 }
 0x77c   :  { %v5332_v14 = vsub.f32 %v5328_v56, %v5331_v62  ;;  %v12080_v56 = vld [vmem:[#allocation17 + $0x30] sm:$0xff]  }
 0x77d   :  { %10692 = vmatpush3.bf16.msra.mxu0 %v12080_v56 }
 0x77e   :  { %v5333_v54 = vmul.f32 1.442695, %v5332_v14  ;;  %10693 = vmatprep.subr.bf16.mxu0 %v12902_v25 }
 0x780   :  { %12285 = vpow2.f32 %v5333_v54 }
 0x781   :  { %10694 = vmatpush3.bf16.msra.mxu0 %v12081_v57 }
 0x782   :  { %10695 = vmatprep.subr.bf16.mxu0 %v12902_v25 }
 0x783   :  { %v5442_v63 = vpop.xlane.xlu0 %5441 }
 0x784   :  { %v5443_v23 = vsub.f32 %v5439_v20, %v5442_v63 }
 0x785   :  { %v12284_v24 = vpop.eup %12283  ;;  %10696 = vmatpush3.bf16.msra.mxu0 %v12082_v58  ;;  %v12101_v58 = vld [vmem:[#allocation26 + $0x8] sm:$0xff]  }
 0x786   :  { %v5444_v27 = vmul.f32 1.442695, %v5443_v23  ;;  %v5223_v29 = vsel %vm5103_vm3, %v12284_v24, 0.0  ;;  %10697 = vmatprep.subr.bf16.mxu0 %v12902_v25 }
 0x787   :  { %5224 = vadd.xlane.f32.xlu0 %v5223_v29  ;;  %v10122_v29 = vld [vmem:[#allocation19] ss:$0 sm:$0xff] }
 0x788   :  { %12287 = vpow2.f32 %v5444_v27 }
 0x789   :  { %10698 = vmatpush3.bf16.msra.mxu0 %v12083_v43  ;;  %v12102_v43 = vld [vmem:[#allocation26] sm:$0xff]  }
 0x78a   :  { %10699 = vmatprep.subr.bf16.mxu0 %v12902_v25 }
 0x78d   :  { %v12286_v15 = vpop.eup %12285  ;;  %10700 = vmatpush3.bf16.msra.mxu0 %v12084_v60  ;;  %v10133_v60 = vld [vmem:[#allocation25] ss:$0 sm:$0xff] }
 0x78e   :  { %v5335_v19 = vsel %vm5103_vm3, %v12286_v15, 0.0  ;;  %10701 = vmatprep.subr.bf16.mxu0 %v12902_v25 }
 0x78f   :  { %5336 = vadd.xlane.f32.xlu1 %v5335_v19 }
 0x791   :  { %10702 = vmatpush3.bf16.msra.mxu0 %v12085_v1 }
 0x792   :  { %10703 = vmatprep.subr.bf16.mxu0 %v12902_v25 }
 0x795   :  { %v12288_v30 = vpop.eup %12287  ;;  %10704 = vmatpush3.bf16.msra.mxu0 %v12086_v4 }
 0x796   :  { %v5446_v31 = vsel %vm5103_vm3, %v12288_v30, 0.0  ;;  %10729 = vmatprep.subr.bf16.mxu0 %v12902_v25 }
 0x797   :  { %5447 = vadd.xlane.f32.xlu0 %v5446_v31 }
 0x79e   :  { %v5112_v9 = vpop.xlane.xlu1 %5111 }
 0x79f   :  { %12289 = vrcp.f32 %v5112_v9 }
 0x7a0   :  { %5452 = vrot.lane.b32.xlu1 %v13300_v8, %s12905_s24 }
 0x7a2   :  { %v5231_v33 = vpop.permute.xlu1 %5230 }
 0x7a3   :  { %v5236_v37 = vsel %vm5120_vm1, %v5231_v33, 0  ;;  %v12088_v33 = vld [vmem:[#allocation23 + $0x30] sm:$0xff]  }
 0x7ac   :  { %v12290_v52 = vpop.eup %12289 }
 0x7ad   :  { %5341 = vrot.lane.b32.xlu0 %v13300_v8, %s12874_s6  ;;  %v5114_v16 = vmul.f32 %v12290_v52, %v12282_v32 }
 0x7af   :  { %v5115_v36 = vpack.c.bf16 %v5114_v16, %v5114_v16  ;;  %v12087_v16 = vld [vmem:[#allocation23 + $0x38] sm:$0xff]  }
 0x7b1   :  { %10650 = vmatmul.mubr.msk.bf16.vlgmr.msra.gmra.mxu1 %vm5103_vm3, %v5115_v36 }
 0x7b2   :  { %10660 = vmatpush3.bf16.msra.mxu1 %v5236_v37  ;;  %10661 = vmatprep.mubr.msk.bf16.mxu1 %vm12903_vm0, %v12902_v25 }
 0x7b3   :  { %10671 = vmatprep.subr.bf16.mxu1 %v12902_v25 }
 0x810   :  { %v5225_v38 = vpop.xlane.xlu0 %5224 }
 0x811   :  { %12291 = vrcp.f32 %v5225_v38 }
 0x818   :  { %v5337_v39 = vpop.xlane.xlu1 %5336 }
 0x819   :  { %12293 = vrcp.f32 %v5337_v39 }
 0x81c   :  { %v5453_v0 = vpop.permute.xlu1 %5452 }
 0x81d   :  { %v5458_v53 = vsel %vm5120_vm1, %v5453_v0, 0  ;;  %v12098_v0 = vld [vmem:[#allocation26 + $0x20] sm:$0xff]  }
 0x81e   :  { %v12292_v41 = vpop.eup %12291 }
 0x81f   :  { %v5227_v61 = vmul.f32 %v12292_v41, %v12284_v24  ;;  %v12089_v41 = vld [vmem:[#allocation23 + $0x28] sm:$0xff]  }
 0x820   :  { %v5448_v8 = vpop.xlane.xlu0 %5447 }
 0x821   :  { %12295 = vrcp.f32 %v5448_v8  ;;  %v5228_v35 = vpack.c.bf16 %v5227_v61, %v5227_v61  ;;  %v12090_v61 = vld [vmem:[#allocation23 + $0x20] sm:$0xff]   ;;  %v12092_v8 = vld [vmem:[#allocation23 + $0x10] sm:$0xff]  }
 0x823   :  { %10662 = vmatmul.mubr.msk.bf16.vlgmr.msra.gmra.mxu1 %vm5103_vm3, %v5228_v35  ;;  %v12093_v35 = vld [vmem:[#allocation23 + $0x8] sm:$0xff]  }
 0x824   :  { %v5342_v44 = vpop.permute.xlu0 %5341  ;;  %10673 = vmatprep.mubr.msk.bf16.mxu1 %vm12903_vm0, %v12902_v25 }
 0x825   :  { %v5347_v45 = vsel %vm5120_vm1, %v5342_v44, 0  ;;  %v12094_v44 = vld [vmem:[#allocation23] sm:$0xff]  }
 0x826   :  { %v12294_v46 = vpop.eup %12293  ;;  %10672 = vmatpush3.bf16.msra.mxu1 %v5347_v45  ;;  %v12095_v45 = vld [vmem:[#allocation26 + $0x38] sm:$0xff]  }
 0x827   :  { %10683 = vmatprep.subr.bf16.mxu1 %v12902_v25  ;;  %v5339_v47 = vmul.f32 %v12294_v46, %v12286_v15  ;;  %v12096_v46 = vld [vmem:[#allocation26 + $0x30] sm:$0xff]  }
 0x829   :  { %v5340_v48 = vpack.c.bf16 %v5339_v47, %v5339_v47  ;;  %v12097_v47 = vld [vmem:[#allocation26 + $0x28] sm:$0xff]  }
 0x82b   :  { %10674 = vmatmul.mubr.msk.bf16.vlgmr.msra.gmra.mxu1 %vm5103_vm3, %v5340_v48  ;;  %v12099_v48 = vld [vmem:[#allocation26 + $0x18] sm:$0xff]  }
 0x82c   :  { %10684 = vmatpush3.bf16.msra.mxu1 %v5458_v53  ;;  %10685 = vmatprep.mubr.msk.bf16.mxu1 %vm12903_vm0, %v12902_v25  ;;  %v12100_v53 = vld [vmem:[#allocation26 + $0x10] sm:$0xff]  }
 0x82d   :  { %10709 = vmatprep.subr.bf16.mxu1 %v12902_v25 }
 0x82e   :  { %v12296_v26 = vpop.eup %12295 }
 0x82f   :  { %v5450_v12 = vmul.f32 %v12296_v26, %v12288_v30 }
 0x831   :  { %v5451_v49 = vpack.c.bf16 %v5450_v12, %v5450_v12 }
 0x833   :  { %10686 = vmatmul.mubr.msk.bf16.vlgmr.msra.gmra.mxu1 %vm5103_vm3, %v5451_v49 }
 0x834   :  { %10725 = vmatprep.mubr.msk.bf16.mxu1 %vm12903_vm0, %v12902_v25  ;;  %10710 = vmatpush3.bf16.msra.mxu1 %v12087_v16  ;;  %v12115_v16 = vld [vmem:[#allocation14 + $0x120] ss:$12 sps:$4 sm:$0xff]  }
 0x835   :  { %10711 = vmatprep.subr.bf16.mxu1 %v12902_v25 }
 0x838   :  { %10712 = vmatpush3.bf16.msra.mxu1 %v12088_v33  ;;  %v12118_v33 = vld [vmem:[#allocation14 + $0x128] ss:$12 sps:$4 sm:$0xff]  }
 0x839   :  { %10713 = vmatprep.subr.bf16.mxu1 %v12902_v25 }
 0x83c   :  { %10714 = vmatpush3.bf16.msra.mxu1 %v12089_v41  ;;  %v12123_v41 = vld [vmem:[#allocation14 + $0xf0] ss:$12 sps:$4 sm:$0xff]  }
 0x83d   :  { %10715 = vmatprep.subr.bf16.mxu1 %v12902_v25 }
 0x840   :  { %10716 = vmatpush3.bf16.msra.mxu1 %v12090_v61  ;;  %v12126_v61 = vld [vmem:[#allocation14 + $0xf8] ss:$12 sps:$4 sm:$0xff]  }
 0x841   :  { %10717 = vmatprep.subr.bf16.mxu1 %v12902_v25 }
 0x871   :  { %v5158_v50 = vpop.f32.mrf.mxu1 }
 0x873   :  { %v10651_v51 = vpop.f32.mrf.mxu1 }
 0x874   :  { %v10131_v51 = vld [vmem:[#allocation20] ss:$0 sm:$0xff] }
 0x875   :  { %v5161_v59 = vpop.f32.mrf.mxu1 }
 0x877   :  { %v10652_v34 = vpop.f32.mrf.mxu1 }
 0x878   :  { %v10132_v34 = vld [vmem:[#allocation22] ss:$0 sm:$0xff] }
 0x8e3   :  { %v5272_v20 = vpop.f32.mrf.mxu1 }
 0x8e4   :  { %5501 = vrot.lane.b32.xlu1 %v5272_v20, %s12905_s24 }
 0x8e5   :  { %v10663_v40 = vpop.f32.mrf.mxu1 }
 0x8e7   :  { %v5275_v2 = vpop.f32.mrf.mxu1 }
 0x8e9   :  { %v10664_v5 = vpop.f32.mrf.mxu1 }
 0x8eb   :  { %v5383_v28 = vpop.f32.mrf.mxu1 }
 0x8ec   :  { %5505 = vrot.lane.b32.xlu0 %v5383_v28, %s12874_s6 }
 0x8ed   :  { %v10675_v7 = vpop.f32.mrf.mxu1 }
 0x8ee   :  { %v10142_v7 = vld [vmem:[#allocation28] ss:$0 sm:$0xff] }
 0x8ef   :  { %v5386_v10 = vpop.f32.mrf.mxu1 }
 0x8f1   :  { %v10676_v32 = vpop.f32.mrf.mxu1 }
 0x8f3   :  { %v5494_v3 = vpop.f32.mrf.mxu1 }
 0x8f4   :  { %5509 = vrot.lane.b32.xlu1 %v5494_v3, %s12904_s21 }
 0x8f5   :  { %v10687_v17 = vpop.f32.mrf.mxu1 }
 0x8f7   :  { %v5497_v18 = vpop.f32.mrf.mxu1 }
 0x8f9   :  { %v10688_v21 = vpop.f32.mrf.mxu1 }
 0x956   :  { %v5502_v62 = vpop.permute.xlu1 %5501 }
 0x957   :  { %v5512_v54 = vsel %vm5055_vm2, %v5158_v50, %v5502_v62  ;;  %v12103_v62 = vld [vmem:[#allocation14 + $0x168] ss:$12 sps:$4 sm:$0xff]  }
 0x95e   :  { %v5506_v14 = vpop.permute.xlu0 %5505 }
 0x95f   :  { %v5514_v63 = vsel %vm5513_vm4, %v5512_v54, %v5506_v14  ;;  %v12105_v14 = vld [vmem:[#allocation14 + $0x16c] ss:$12 sps:$4 sm:$0xff]   ;;  %v12106_v54 = vld [vmem:[#allocation14 + $0x170] ss:$12 sps:$4 sm:$0xff]  }
 0x966   :  { %v5510_v23 = vpop.permute.xlu1 %5509 }
 0x967   :  { %v5516_v24 = vsel %vm5515_vm5, %v5514_v63, %v5510_v23  ;;  %v12109_v63 = vld [vmem:[#allocation14 + $0x154] ss:$12 sps:$4 sm:$0xff]   ;;  %v12110_v23 = vld [vmem:[#allocation14 + $0x158] ss:$12 sps:$4 sm:$0xff]  }
 0x968   :  { %v5533_v27 = vpack.c.bf16 %v5516_v24, %v5516_v24  ;;  %v12107_v24 = vld [vmem:[#allocation14 + $0x150] ss:$12 sps:$4 sm:$0xff]  }
 0x96a   :  { %10706 = vmatmul.mubr.bf16.vlgmr.msra.gmra.mxu0 %v5533_v27 }
 0x96b   :  { %10745 = vmatprep.mubr.msk.bf16.mxu0 %vm12903_vm0, %v12902_v25  ;;  %10730 = vmatpush3.bf16.msra.mxu0 %v12095_v45  ;;  %v12131_v45 = vld [vmem:[#allocation14 + $0xc0] ss:$12 sps:$4 sm:$0xff]  }
 0x96c   :  { %10731 = vmatprep.subr.bf16.mxu0 %v12902_v25 }
 0x96f   :  { %10732 = vmatpush3.bf16.msra.mxu0 %v12096_v46  ;;  %v12134_v46 = vld [vmem:[#allocation14 + $0xc8] ss:$12 sps:$4 sm:$0xff]  }
 0x970   :  { %10733 = vmatprep.subr.bf16.mxu0 %v12902_v25 }
 0x973   :  { %10734 = vmatpush3.bf16.msra.mxu0 %v12097_v47 }
 0x974   :  { %10735 = vmatprep.subr.bf16.mxu0 %v12902_v25 }
 0x977   :  { %10736 = vmatpush3.bf16.msra.mxu0 %v12098_v0 }
 0x978   :  { %10737 = vmatprep.subr.bf16.mxu0 %v12902_v25 }
 0x97b   :  { %10738 = vmatpush3.bf16.msra.mxu0 %v12099_v48 }
 0x97c   :  { %10739 = vmatprep.subr.bf16.mxu0 %v12902_v25 }
 0x97f   :  { %10740 = vmatpush3.bf16.msra.mxu0 %v12100_v53 }
 0x980   :  { %10741 = vmatprep.subr.bf16.mxu0 %v12902_v25 }
 0x983   :  { %10742 = vmatpush3.bf16.msra.mxu0 %v12101_v58 }
 0x984   :  { %10743 = vmatprep.subr.bf16.mxu0 %v12902_v25 }
 0x987   :  { %10744 = vmatpush3.bf16.msra.mxu0 %v12102_v43 }
 0x988   :  { %10749 = vmatprep.subr.bf16.mxu0 %v12902_v25 }
 0xa2a   :  { %v5623_v15 = vpop.f32.mrf.mxu0 }
 0xa2b   :  { %v5624_v19 = vadd.f32 %v10122_v29, %v5623_v15 }
 0xa2c   :  { %v10707_v30 = vpop.f32.mrf.mxu0 }
 0xa2d   :  { %v5629_v31 = vadd.f32 %v5624_v19, %v13289_v42  ;;  %v12091_v42 = vld [vmem:[#allocation23 + $0x18] sm:$0xff]   ;;  %v12113_v30 = vld [vmem:[#allocation14 + $0x13c] ss:$12 sps:$4 sm:$0xff]  }
 0xa2e   :  { %v5626_v9 = vpop.f32.mrf.mxu0  ;;  %10718 = vmatpush3.bf16.msra.mxu1 %v12091_v42  ;;  %v12129_v42 = vld [vmem:[#allocation14 + $0xdc] ss:$12 sps:$4 sm:$0xff]  }
 0xa2f   :  { %5632 = vadd.xlane.f32.xlu0 %v5629_v31  ;;  %10719 = vmatprep.subr.bf16.mxu1 %v12902_v25  ;;  %v12114_v9 = vld [vmem:[#allocation14 + $0x140] ss:$12 sps:$4 sm:$0xff]  }
 0xa30   :  { %v10708_v52 = vpop.f32.mrf.mxu0 }
 0xa31   :  { %v12117_v52 = vld [vmem:[#allocation14 + $0x124] ss:$12 sps:$4 sm:$0xff]  }
 0xa32   :  { %10720 = vmatpush3.bf16.msra.mxu1 %v12092_v8  ;;  %v12127_v8 = vld [vmem:[#allocation14 + $0xd8] ss:$12 sps:$4 sm:$0xff]  }
 0xa33   :  { %10721 = vmatprep.subr.bf16.mxu1 %v12902_v25 }
 0xa36   :  { %10722 = vmatpush3.bf16.msra.mxu1 %v12093_v35  ;;  %v12130_v35 = vld [vmem:[#allocation14 + $0xe0] ss:$12 sps:$4 sm:$0xff]  }
 0xa37   :  { %10723 = vmatprep.subr.bf16.mxu1 %v12902_v25 }
 0xa3a   :  { %10724 = vmatpush3.bf16.msra.mxu1 %v12094_v44  ;;  %v12133_v44 = vld [vmem:[#allocation14 + $0xc4] ss:$12 sps:$4 sm:$0xff]  }
 0xa3b   :  { %6091 = vmatprep.subr.bf16.mxu1 %v12105_v14 }
 0xab8   :  { %v5633_v36 = vpop.xlane.xlu0 %5632 }
 0xab9   :  { %v5635_v37 = vmul.f32 0.0078125, %v5633_v36  ;;  %v12121_v36 = vld [vmem:[#allocation14 + $0x10c] ss:$12 sps:$4 sm:$0xff]  }
 0xabb   :  { %v5636_v38 = vsub.f32 %v5629_v31, %v5635_v37  ;;  %v12111_v31 = vld [vmem:[#allocation14 + $0x138] ss:$12 sps:$4 sm:$0xff]   ;;  %v12119_v37 = vld [vmem:[#allocation14 + $0x108] ss:$12 sps:$4 sm:$0xff]  }
 0xabd   :  { %v5637_v39 = vmul.f32 %v5636_v38, %v5636_v38 }
 0xabf   :  { %5638 = vadd.xlane.f32.xlu1 %v5637_v39  ;;  %v12125_v39 = vld [vmem:[#allocation14 + $0xf4] ss:$12 sps:$4 sm:$0xff]  }
 0xb48   :  { %v5639_v26 = vpop.xlane.xlu1 %5638 }
 0xb49   :  { %v5640_v12 = vmul.f32 0.0078125, %v5639_v26  ;;  %v10151_v26 = vld [vmem:[#allocation29] ss:$0 sm:$0xff] }
 0xb4b   :  { %v5641_v49 = vadd.f32 1e-05, %v5640_v12 }
 0xb4d   :  { %12297 = vrsqrt.f32 %v5641_v49  ;;  %v10152_v49 = vld [vmem:[#allocation31] ss:$0 sm:$0xff] }
 0xb5a   :  { %v12298_v50 = vpop.eup %12297 }
 0xb5b   :  { %v5643_v59 = vmul.f32 %v12298_v50, %v5636_v38  ;;  %v12122_v38 = vld [vmem:[#allocation14 + $0x110] ss:$12 sps:$4 sm:$0xff]  }
 0xb5d   :  { %v5650_v55 = vmul.f32 %v10131_v51, %v5643_v59 }
 0xb5f   :  { %v5657_v56 = vadd.f32 %v10132_v34, %v5650_v55  ;;  %v5946_v34 = vld [vmem:[#allocation16 + $0x3] sm:$0x7] }
 0xb60   :  { %v5955_v55 = vrot.slane %v5946_v34, %v13259_v13 }
 0xb61   :  { %v5674_v57 = vpack.c.bf16 %v5657_v56, %v5657_v56 }
 0xb63   :  { %10726 = vmatmul.mubr.bf16.vlgmr.msra.gmra.mxu1 %v5674_v57 }
 0xb64   :  { %6123 = vmatprep.mubr.bf16.mxu1 %v12901_v6  ;;  %6092 = vmatpush1.bf16.msra.mxu1 %v12103_v62 }
 0xb65   :  { %6093 = vmatprep.subr.bf16.mxu1 %v12109_v63 }
 0xb68   :  { %6094 = vmatpush1.bf16.msra.mxu1 %v12107_v24 }
 0xb69   :  { %6095 = vmatprep.subr.bf16.mxu1 %v12113_v30 }
 0xb6c   :  { %6096 = vmatpush1.bf16.msra.mxu1 %v12111_v31 }
 0xb6d   :  { %6097 = vmatprep.subr.bf16.mxu1 %v12117_v52 }
 0xb70   :  { %6098 = vmatpush1.bf16.msra.mxu1 %v12115_v16 }
 0xb71   :  { %6099 = vmatprep.subr.bf16.mxu1 %v12121_v36 }
 0xb74   :  { %6100 = vmatpush1.bf16.msra.mxu1 %v12119_v37 }
 0xb75   :  { %6101 = vmatprep.subr.bf16.mxu1 %v12125_v39 }
 0xb78   :  { %6102 = vmatpush1.bf16.msra.mxu1 %v12123_v41 }
 0xb79   :  { %6103 = vmatprep.subr.bf16.mxu1 %v12129_v42 }
 0xb7c   :  { %6104 = vmatpush1.bf16.msra.mxu1 %v12127_v8 }
 0xb7d   :  { %6105 = vmatprep.subr.bf16.mxu1 %v12133_v44 }
 0xb80   :  { %6106 = vmatpush1.bf16.msra.mxu1 %v12131_v45 }
 0xb81   :  { %10769 = vmatprep.subr.bf16.mxu1 %v12902_v25 }
 0xc23   :  { %v5764_v1 = vpop.f32.mrf.mxu1 }
 0xc24   :  { %v5765_v20 = vadd.f32 %v10133_v60, %v5764_v1  ;;  %v5959_v60 = vrot.slane %v5946_v34, %v13272_v22 }
 0xc25   :  { %v10727_v40 = vpop.f32.mrf.mxu1 }
 0xc26   :  { %v5770_v2 = vmax.f32 %v5765_v20, 0.0 }
 0xc27   :  { %v5767_v4 = vpop.f32.mrf.mxu1 }
 0xc28   :  { %v5787_v5 = vpack.c.bf16 %v5770_v2, %v5770_v2  ;;  %v5951_v2 = vrot.slane %v5946_v34, %v13254_v11 }
 0xc29   :  { %v10728_v28 = vpop.f32.mrf.mxu1 }
 0xc2a   :  { %10746 = vmatmul.mubr.bf16.vlgmr.msra.gmra.mxu0 %v5787_v5 }
 0xc2b   :  { %10765 = vmatprep.mubr.msk.bf16.mxu0 %vm12903_vm0, %v12902_v25  ;;  %10750 = vmatpush3.bf16.msra.mxu0 %v12106_v54 }
 0xc2c   :  { %10751 = vmatprep.subr.bf16.mxu0 %v12902_v25 }
 0xc2f   :  { %10752 = vmatpush3.bf16.msra.mxu0 %v12110_v23 }
 0xc30   :  { %10753 = vmatprep.subr.bf16.mxu0 %v12902_v25 }
 0xc33   :  { %10754 = vmatpush3.bf16.msra.mxu0 %v12114_v9 }
 0xc34   :  { %10755 = vmatprep.subr.bf16.mxu0 %v12902_v25 }
 0xc37   :  { %10756 = vmatpush3.bf16.msra.mxu0 %v12118_v33 }
 0xc38   :  { %10757 = vmatprep.subr.bf16.mxu0 %v12902_v25 }
 0xc3b   :  { %10758 = vmatpush3.bf16.msra.mxu0 %v12122_v38 }
 0xc3c   :  { %10759 = vmatprep.subr.bf16.mxu0 %v12902_v25 }
 0xc3f   :  { %10760 = vmatpush3.bf16.msra.mxu0 %v12126_v61 }
 0xc40   :  { %10761 = vmatprep.subr.bf16.mxu0 %v12902_v25 }
 0xc43   :  { %10762 = vmatpush3.bf16.msra.mxu0 %v12130_v35 }
 0xc44   :  { %10763 = vmatprep.subr.bf16.mxu0 %v12902_v25 }
 0xc47   :  { %10764 = vmatpush3.bf16.msra.mxu0 %v12134_v46 }
 0xc48   :  { %10793 = vmatprep.subr.bf16.mxu0 %v12902_v25 }
 0xcea   :  { %v5877_v10 = vpop.f32.mrf.mxu0 }
 0xceb   :  { %v5878_v32 = vadd.f32 %v10142_v7, %v5877_v10 }
 0xcec   :  { %v10747_v3 = vpop.f32.mrf.mxu0 }
 0xced   :  { %v5883_v17 = vadd.f32 %v5878_v32, %v5657_v56 }
 0xcee   :  { %v5880_v18 = vpop.f32.mrf.mxu0 }
 0xcef   :  { %5886 = vadd.xlane.f32.xlu0 %v5883_v17 }
 0xcf0   :  { %v10748_v21 = vpop.f32.mrf.mxu0 }
 0xd78   :  { %v5887_v27 = vpop.xlane.xlu0 %5886 }
 0xd79   :  { %v5888_v29 = vmul.f32 0.0078125, %v5887_v27 }
 0xd7b   :  { %v5889_v15 = vsub.f32 %v5883_v17, %v5888_v29 }
 0xd7d   :  { %v5890_v19 = vmul.f32 %v5889_v15, %v5889_v15 }
 0xd7f   :  { %5891 = vadd.xlane.f32.xlu0 %v5890_v19 }
 0xe08   :  { %v5892_v47 = vpop.xlane.xlu0 %5891 }
 0xe09   :  { %v5893_v0 = vmul.f32 0.0078125, %v5892_v47 }
 0xe0b   :  { %v5894_v48 = vadd.f32 1e-05, %v5893_v0 }
 0xe0d   :  { %12299 = vrsqrt.f32 %v5894_v48 }
 0xe1a   :  { %v12300_v53 = vpop.eup %12299 }
 0xe1b   :  { %v5896_v12 = vmul.f32 %v12300_v53, %v5889_v15 }
 0xe1d   :  { %v5903_v50 = vmul.f32 %v10151_v26, %v5896_v12 }
 0xe1f   :  { %v13407_v51 = vadd.f32 %v10152_v49, %v5903_v50 }
 0xe21   :  { %v5944_v59 = vpack.c.bf16 %v13407_v51, %v13407_v51 }
 0xe23   :  { %6124 = vmatmul.mubr.bf16.vlgmr.msra.gmra.mxu1 %v5944_v59  ;;  %10766 = vmatmul.mubr.bf16.vlgmr.msra.gmra.mxu0 %v5944_v59 }
 0xe24   :  { %10771 = vmatprep.mubr.msk.bf16.mxu1 %vm12903_vm0, %v12902_v25  ;;  %10795 = vmatprep.mubr.msk.bf16.mxu0 %vm12903_vm0, %v12902_v25 }
 0xee3   :  { %v6125_v56 = vpop.f32.mrf.mxu1  ;;  %v6166_v57 = vpop.f32.mrf.mxu0 }
 0xee4   :  { %v6167_v7 = vadd.f32 %v6166_v57, %v5959_v60  ;;  %v6126_v32 = vadd.f32 %v6125_v56, %v5951_v2 }
 0xee5   :  { %v6127_v58 = vpop.f32.mrf.mxu1  ;;  %v10767_v43 = vpop.f32.mrf.mxu0 }
 0xee6   :  { %v6128_v1 = vadd.f32 %v6127_v58, %v5955_v55  ;;  %v13420_v3 = vpack.c.bf16 %v6167_v7, %v6167_v7  ;;  %v6172_v17 = vpack.c.bf16 %v6126_v32, %v6126_v32 }
 0xee7   :  { %v6129_v20 = vpop.f32.mrf.mxu1  ;;  %v6169_v40 = vpop.f32.mrf.mxu0 }
 0xee8   :  { %v6173_v4 = vpack.c.bf16 %v6128_v1, %v6128_v1  ;;  %v6238_v18 = vsel %vm5120_vm1, %v13420_v3, 0 }
 0xee9   :  { %v6130_v5 = vpop.f32.mrf.mxu1  ;;  %v10768_v28 = vpop.f32.mrf.mxu0 }
 0xeea   :  { %v6178_v10 = vsel %vm5055_vm2, %v6173_v4, 0 }
 0xeeb   :  { %10770 = vmatpush3.bf16.xpose.msra.mxu1 %v6178_v10 }
 0xeec   :  { %10775 = vmatprep.subr.bf16.mxu1 %v12902_v25 }
 0xef2   :  { %10772 = vmatmul.mubr.msk.bf16.vlgmr.msra.gmra.mxu1 %vm5055_vm2, %v6172_v17 }
 0xef3   :  { %10776 = vmatpush3.bf16.msra.mxu1 %v6238_v18  ;;  %10777 = vmatprep.mubr.msk.bf16.mxu1 %vm12903_vm0, %v12902_v25 }
 0xef4   :  { %10781 = vmatprep.subr.bf16.mxu1 %v12902_v25 }
 0xfb2   :  { %v6214_v21 = vpop.f32.mrf.mxu1 }
 0xfb3   :  { %v6220_v62 = vmul.f32 0.17677669, %v6214_v21 }
 0xfb4   :  { %v10773_v14 = vpop.f32.mrf.mxu1 }
 0xfb5   :  { %v6221_v54 = vsel %vm5103_vm3, %v6220_v62, -inf }
 0xfb6   :  { %6222 = vmax.xlane.f32.xlu1 %v6221_v54  ;;  %v6217_v63 = vpop.f32.mrf.mxu1 }
 0xfb8   :  { %v10774_v23 = vpop.f32.mrf.mxu1 }
 0xfc7   :  { %6284 = vrot.lane.b32.xlu1 %v6173_v4, %s12904_s21 }
 0xfcb   :  { %6396 = vrot.lane.b32.xlu1 %v6173_v4, %s12874_s6 }
 0xfcf   :  { %6394 = vrot.lane.b32.xlu1 %v6172_v17, %s12874_s6 }
 0xfd3   :  { %6505 = vrot.lane.b32.xlu1 %v6172_v17, %s12905_s24 }
0x103f   :  { %v6223_v24 = vpop.xlane.xlu1 %6222 }
0x1040   :  { %v6224_v27 = vsub.f32 %v6220_v62, %v6223_v24 }
0x1042   :  { %v6225_v29 = vmul.f32 1.442695, %v6224_v27 }
0x1043   :  { %v6285_v15 = vpop.permute.xlu1 %6284 }
0x1044   :  { %12301 = vpow2.f32 %v6225_v29  ;;  %v6290_v42 = vsel %vm5055_vm2, %v6285_v15, 0 }
0x1047   :  { %v6397_v19 = vpop.permute.xlu1 %6396 }
0x1048   :  { %v6402_v30 = vsel %vm5055_vm2, %v6397_v19, 0 }
0x1049   :  { %10794 = vmatpush3.bf16.xpose.msra.mxu0 %v6402_v30 }
0x104a   :  { %10805 = vmatprep.subr.bf16.mxu0 %v12902_v25 }
0x104b   :  { %v6395_v31 = vpop.permute.xlu1 %6394 }
0x104f   :  { %v6506_v41 = vpop.permute.xlu1 %6505 }
0x1050   :  { %10796 = vmatmul.mubr.msk.bf16.vlgmr.msra.gmra.mxu0 %vm5055_vm2, %v6395_v31 }
0x1051   :  { %v12302_v9 = vpop.eup %12301  ;;  %10807 = vmatprep.mubr.msk.bf16.mxu0 %vm12903_vm0, %v12902_v25 }
0x1052   :  { %v6227_v52 = vsel %vm5103_vm3, %v12302_v9, 0.0 }
0x1053   :  { %6228 = vadd.xlane.f32.xlu0 %v6227_v52 }
0x1069   :  { %6281 = vrot.lane.b32.xlu0 %v6172_v17, %s12904_s21 }
0x106d   :  { %6507 = vrot.lane.b32.xlu0 %v6173_v4, %s12905_s24 }
0x10dc   :  { %v6229_v16 = vpop.xlane.xlu0 %6228 }
0x10dd   :  { %12303 = vrcp.f32 %v6229_v16 }
0x10e0   :  { %v6282_v33 = vpop.permute.xlu0 %6281 }
0x10e4   :  { %v6508_v36 = vpop.permute.xlu0 %6507 }
0x10e5   :  { %v6513_v37 = vsel %vm5055_vm2, %v6508_v36, 0 }
0x10e6   :  { %10806 = vmatpush3.bf16.xpose.msra.mxu0 %v6513_v37 }
0x10e7   :  { %10817 = vmatprep.subr.bf16.mxu0 %v12902_v25 }
0x10ea   :  { %v12304_v38 = vpop.eup %12303 }
0x10eb   :  { %v6231_v39 = vmul.f32 %v12304_v38, %v12302_v9 }
0x10ed   :  { %10808 = vmatmul.mubr.msk.bf16.vlgmr.msra.gmra.mxu0 %vm5055_vm2, %v6506_v41  ;;  %v6232_v61 = vpack.c.bf16 %v6231_v39, %v6231_v39  ;;  %v12135_v41 = vld [vmem:[#allocation17 + $0x78] sm:$0xff]  }
0x10ee   :  { %10833 = vmatprep.mubr.msk.bf16.mxu0 %vm12903_vm0, %v12902_v25  ;;  %10818 = vmatpush3.bf16.msra.mxu0 %v12135_v41 }
0x10ef   :  { %10778 = vmatmul.mubr.msk.bf16.vlgmr.msra.gmra.mxu1 %vm5103_vm3, %v6232_v61  ;;  %v12136_v61 = vld [vmem:[#allocation17 + $0x70] sm:$0xff]   ;;  %10819 = vmatprep.subr.bf16.mxu0 %v12902_v25 }
0x10f0   :  { %10782 = vmatpush3.bf16.xpose.msra.mxu1 %v6290_v42  ;;  %10783 = vmatprep.mubr.msk.bf16.mxu1 %vm12903_vm0, %v12902_v25  ;;  %v12137_v42 = vld [vmem:[#allocation17 + $0x68] sm:$0xff]  }
0x10f1   :  { %10787 = vmatprep.subr.bf16.mxu1 %v12902_v25 }
0x10f2   :  { %10820 = vmatpush3.bf16.msra.mxu0 %v12136_v61 }
0x10f3   :  { %10821 = vmatprep.subr.bf16.mxu0 %v12902_v25 }
0x10f6   :  { %10822 = vmatpush3.bf16.msra.mxu0 %v12137_v42 }
0x10f7   :  { %10784 = vmatmul.mubr.msk.bf16.vlgmr.msra.gmra.mxu1 %vm5055_vm2, %v6282_v33  ;;  %10823 = vmatprep.subr.bf16.mxu0 %v12902_v25 }
0x10f8   :  { %10789 = vmatprep.mubr.msk.bf16.mxu1 %vm12903_vm0, %v12902_v25 }
0x1110   :  { %v6438_v8 = vpop.f32.mrf.mxu0 }
0x1111   :  { %v6444_v35 = vmul.f32 0.17677669, %v6438_v8  ;;  %v12138_v8 = vld [vmem:[#allocation17 + $0x60] sm:$0xff]  }
0x1112   :  { %v10797_v44 = vpop.f32.mrf.mxu0  ;;  %10824 = vmatpush3.bf16.msra.mxu0 %v12138_v8  ;;  %v12157_v8 = vld [vmem:[#allocation26 + $0x48] sm:$0xff]  }
0x1113   :  { %v6445_v45 = vsel %vm5103_vm3, %v6444_v35, -inf  ;;  %10825 = vmatprep.subr.bf16.mxu0 %v12902_v25  ;;  %v12140_v44 = vld [vmem:[#allocation17 + $0x50] sm:$0xff]  }
0x1114   :  { %6446 = vmax.xlane.f32.xlu1 %v6445_v45  ;;  %v6441_v46 = vpop.f32.mrf.mxu0  ;;  %v12141_v45 = vld [vmem:[#allocation17 + $0x48] sm:$0xff]  }
0x1116   :  { %v10798_v47 = vpop.f32.mrf.mxu0 }
0x119d   :  { %v6447_v0 = vpop.xlane.xlu1 %6446 }
0x119e   :  { %v6448_v48 = vsub.f32 %v6444_v35, %v6447_v0  ;;  %v12139_v35 = vld [vmem:[#allocation17 + $0x58] sm:$0xff]  }
0x119f   :  { %10826 = vmatpush3.bf16.msra.mxu0 %v12139_v35  ;;  %v12158_v35 = vld [vmem:[#allocation26 + $0x40] sm:$0xff]  }
0x11a0   :  { %v6449_v53 = vmul.f32 1.442695, %v6448_v48  ;;  %10827 = vmatprep.subr.bf16.mxu0 %v12902_v25  ;;  %v12142_v48 = vld [vmem:[#allocation17 + $0x40] sm:$0xff]  }
0x11a2   :  { %12305 = vpow2.f32 %v6449_v53 }
0x11a3   :  { %10828 = vmatpush3.bf16.msra.mxu0 %v12140_v44  ;;  %v10196_v44 = vld [vmem:[#allocation25 + $0x1] ss:$0 sm:$0xff] }
0x11a4   :  { %10829 = vmatprep.subr.bf16.mxu0 %v12902_v25 }
0x11a7   :  { %10830 = vmatpush3.bf16.msra.mxu0 %v12141_v45 }
0x11a8   :  { %10831 = vmatprep.subr.bf16.mxu0 %v12902_v25 }
0x11ab   :  { %10832 = vmatpush3.bf16.msra.mxu0 %v12142_v48 }
0x11ac   :  { %10857 = vmatprep.subr.bf16.mxu0 %v12902_v25 }
0x11ad   :  { %v6549_v26 = vpop.f32.mrf.mxu0 }
0x11ae   :  { %v6555_v20 = vmul.f32 0.17677669, %v6549_v26 }
0x11af   :  { %v12306_v12 = vpop.eup %12305  ;;  %v13455_v49 = vpop.f32.mrf.mxu1 }
0x11b0   :  { %v10809_v50 = vpop.f32.mrf.mxu0  ;;  %v6451_v59 = vsel %vm5103_vm3, %v12306_v12, 0.0  ;;  %v6556_v5 = vsel %vm5103_vm3, %v6555_v20, -inf }
0x11b1   :  { %v10779_v34 = vpop.f32.mrf.mxu1  ;;  %6452 = vadd.xlane.f32.xlu1 %v6451_v59 }
0x11b2   :  { %v6552_v55 = vpop.f32.mrf.mxu0 }
0x11b3   :  { %v6277_v56 = vpop.f32.mrf.mxu1 }
0x11b4   :  { %v10810_v57 = vpop.f32.mrf.mxu0 }
0x11b5   :  { %v10780_v58 = vpop.f32.mrf.mxu1 }
0x11b7   :  { %v6326_v43 = vpop.f32.mrf.mxu1 }
0x11b8   :  { %v6332_v60 = vmul.f32 0.17677669, %v6326_v43 }
0x11b9   :  { %v10785_v1 = vpop.f32.mrf.mxu1 }
0x11ba   :  { %v6333_v40 = vsel %vm5103_vm3, %v6332_v60, -inf }
0x11bb   :  { %6334 = vmax.xlane.f32.xlu0 %v6333_v40  ;;  %v6329_v2 = vpop.f32.mrf.mxu1 }
0x11bd   :  { %v10786_v4 = vpop.f32.mrf.mxu1 }
0x11be   :  { %v10185_v4 = vld [vmem:[#allocation19 + $0x1] ss:$0 sm:$0xff] }
0x11bf   :  { %6557 = vmax.xlane.f32.xlu0 %v6556_v5 }
0x11c2   :  { %6346 = vrot.lane.b32.xlu1 %v13420_v3, %s12904_s21 }
0x11c6   :  { %6568 = vrot.lane.b32.xlu1 %v13420_v3, %s12905_s24 }
0x123a   :  { %v6453_v28 = vpop.xlane.xlu1 %6452 }
0x123e   :  { %v6347_v7 = vpop.permute.xlu1 %6346 }
0x123f   :  { %v6352_v10 = vsel %vm5120_vm1, %v6347_v7, 0 }
0x1240   :  { %10788 = vmatpush3.bf16.msra.mxu1 %v6352_v10 }
0x1241   :  { %10799 = vmatprep.subr.bf16.mxu1 %v12902_v25 }
0x1242   :  { %v6569_v16 = vpop.permute.xlu1 %6568 }
0x1243   :  { %v6574_v37 = vsel %vm5120_vm1, %v6569_v16, 0 }
0x1244   :  { %v6335_v32 = vpop.xlane.xlu0 %6334 }
0x1245   :  { %v6336_v17 = vsub.f32 %v6332_v60, %v6335_v32 }
0x1247   :  { %v6337_v18 = vmul.f32 1.442695, %v6336_v17 }
0x1248   :  { %v6558_v21 = vpop.xlane.xlu0 %6557 }
0x1249   :  { %12307 = vpow2.f32 %v6337_v18  ;;  %v6559_v62 = vsub.f32 %v6555_v20, %v6558_v21  ;;  %v12144_v18 = vld [vmem:[#allocation23 + $0x70] sm:$0xff]  }
0x124b   :  { %v6560_v14 = vmul.f32 1.442695, %v6559_v62 }
0x124d   :  { %12309 = vpow2.f32 %v6560_v14 }
0x1256   :  { %v12308_v54 = vpop.eup %12307 }
0x1257   :  { %v6339_v63 = vsel %vm5103_vm3, %v12308_v54, 0.0 }
0x1258   :  { %6340 = vadd.xlane.f32.xlu0 %v6339_v63  ;;  %v12145_v63 = vld [vmem:[#allocation23 + $0x68] sm:$0xff]  }
0x125a   :  { %v12310_v23 = vpop.eup %12309 }
0x125b   :  { %v6562_v24 = vsel %vm5103_vm3, %v12310_v23, 0.0 }
0x125c   :  { %6563 = vadd.xlane.f32.xlu0 %v6562_v24  ;;  %v12148_v24 = vld [vmem:[#allocation23 + $0x50] sm:$0xff]  }
0x1272   :  { %6457 = vrot.lane.b32.xlu0 %v13420_v3, %s12874_s6 }
0x12e1   :  { %v6341_v27 = vpop.xlane.xlu0 %6340 }
0x12e2   :  { %12311 = vrcp.f32 %v6341_v27  ;;  %v12149_v27 = vld [vmem:[#allocation23 + $0x48] sm:$0xff]  }
0x12e3   :  { %12313 = vrcp.f32 %v6453_v28 }
0x12e5   :  { %v6564_v29 = vpop.xlane.xlu0 %6563 }
0x12e6   :  { %12315 = vrcp.f32 %v6564_v29  ;;  %v12150_v29 = vld [vmem:[#allocation23 + $0x40] sm:$0xff]  }
0x12e9   :  { %v6458_v30 = vpop.permute.xlu0 %6457 }
0x12ea   :  { %v6463_v52 = vsel %vm5120_vm1, %v6458_v30, 0  ;;  %v12153_v30 = vld [vmem:[#allocation26 + $0x68] sm:$0xff]  }
0x12ef   :  { %v12312_v15 = vpop.eup %12311 }
0x12f0   :  { %v6343_v19 = vmul.f32 %v12312_v15, %v12308_v54  ;;  %v12314_v9 = vpop.eup %12313  ;;  %v12151_v15 = vld [vmem:[#allocation26 + $0x78] sm:$0xff]  }
0x12f1   :  { %v6455_v3 = vmul.f32 %v12314_v9, %v12306_v12  ;;  %v12155_v9 = vld [vmem:[#allocation26 + $0x58] sm:$0xff]  }
0x12f2   :  { %v6344_v31 = vpack.c.bf16 %v6343_v19, %v6343_v19  ;;  %v12152_v19 = vld [vmem:[#allocation26 + $0x70] sm:$0xff]  }
0x12f3   :  { %v6456_v33 = vpack.c.bf16 %v6455_v3, %v6455_v3  ;;  %v12316_v36 = vpop.eup %12315 }
0x12f4   :  { %10790 = vmatmul.mubr.msk.bf16.vlgmr.msra.gmra.mxu1 %vm5103_vm3, %v6344_v31  ;;  %v6566_v38 = vmul.f32 %v12316_v36, %v12310_v23  ;;  %v12146_v23 = vld [vmem:[#allocation23 + $0x60] sm:$0xff]  }
0x12f5   :  { %10800 = vmatpush3.bf16.msra.mxu1 %v6463_v52  ;;  %10801 = vmatprep.mubr.msk.bf16.mxu1 %vm12903_vm0, %v12902_v25  ;;  %v12154_v31 = vld [vmem:[#allocation26 + $0x60] sm:$0xff]   ;;  %v12156_v52 = vld [vmem:[#allocation26 + $0x50] sm:$0xff]  }
0x12f6   :  { %10811 = vmatprep.subr.bf16.mxu1 %v12902_v25  ;;  %v6567_v39 = vpack.c.bf16 %v6566_v38, %v6566_v38 }
0x12fc   :  { %10802 = vmatmul.mubr.msk.bf16.vlgmr.msra.gmra.mxu1 %vm5103_vm3, %v6456_v33 }
0x12fd   :  { %10812 = vmatpush3.bf16.msra.mxu1 %v6574_v37  ;;  %10813 = vmatprep.mubr.msk.bf16.mxu1 %vm12903_vm0, %v12902_v25  ;;  %v10194_v37 = vld [vmem:[#allocation20 + $0x1] ss:$0 sm:$0xff] }
0x12fe   :  { %10837 = vmatprep.subr.bf16.mxu1 %v12902_v25 }
0x1304   :  { %10814 = vmatmul.mubr.msk.bf16.vlgmr.msra.gmra.mxu1 %vm5103_vm3, %v6567_v39  ;;  %v10195_v39 = vld [vmem:[#allocation22 + $0x1] ss:$0 sm:$0xff] }
0x1305   :  { %10853 = vmatprep.mubr.msk.bf16.mxu1 %vm12903_vm0, %v12902_v25 }
0x13b4   :  { %v6388_v46 = vpop.f32.mrf.mxu1 }
0x13b5   :  { %6617 = vrot.lane.b32.xlu1 %v6388_v46, %s12905_s24 }
0x13b6   :  { %v10791_v47 = vpop.f32.mrf.mxu1 }
0x13b8   :  { %v6391_v0 = vpop.f32.mrf.mxu1 }
0x13ba   :  { %v10792_v53 = vpop.f32.mrf.mxu1 }
0x13bc   :  { %v6499_v26 = vpop.f32.mrf.mxu1 }
0x13bd   :  { %6621 = vrot.lane.b32.xlu0 %v6499_v26, %s12874_s6 }
0x13be   :  { %v10803_v12 = vpop.f32.mrf.mxu1 }
0x13bf   :  { %v10205_v12 = vld [vmem:[#allocation28 + $0x1] ss:$0 sm:$0xff] }
0x13c0   :  { %v6502_v50 = vpop.f32.mrf.mxu1 }
0x13c2   :  { %v10804_v59 = vpop.f32.mrf.mxu1 }
0x13c4   :  { %v6610_v34 = vpop.f32.mrf.mxu1 }
0x13c5   :  { %6625 = vrot.lane.b32.xlu1 %v6610_v34, %s12904_s21 }
0x13c6   :  { %v10815_v55 = vpop.f32.mrf.mxu1 }
0x13c8   :  { %v6613_v56 = vpop.f32.mrf.mxu1 }
0x13ca   :  { %v10816_v57 = vpop.f32.mrf.mxu1 }
0x1427   :  { %v6618_v58 = vpop.permute.xlu1 %6617 }
0x1428   :  { %v6628_v60 = vsel %vm5055_vm2, %v13455_v49, %v6618_v58  ;;  %v12143_v49 = vld [vmem:[#allocation23 + $0x78] sm:$0xff]  }
0x1429   :  { %10838 = vmatpush3.bf16.msra.mxu1 %v12143_v49  ;;  %v12159_v58 = vld [vmem:[#allocation14 + $0x228] ss:$12 sps:$4 sm:$0xff]   ;;  %v12171_v49 = vld [vmem:[#allocation14 + $0x1e0] ss:$12 sps:$4 sm:$0xff]  }
0x142a   :  { %10839 = vmatprep.subr.bf16.mxu1 %v12902_v25 }
0x142d   :  { %10840 = vmatpush3.bf16.msra.mxu1 %v12144_v18  ;;  %v12174_v18 = vld [vmem:[#allocation14 + $0x1e8] ss:$12 sps:$4 sm:$0xff]  }
0x142e   :  { %10841 = vmatprep.subr.bf16.mxu1 %v12902_v25 }
0x142f   :  { %v6622_v43 = vpop.permute.xlu0 %6621 }
0x1430   :  { %v6629_v1 = vsel %vm5513_vm4, %v6628_v60, %v6622_v43  ;;  %v12161_v43 = vld [vmem:[#allocation14 + $0x22c] ss:$12 sps:$4 sm:$0xff]   ;;  %v12162_v60 = vld [vmem:[#allocation14 + $0x230] ss:$12 sps:$4 sm:$0xff]  }
0x1431   :  { %10842 = vmatpush3.bf16.msra.mxu1 %v12145_v63  ;;  %v12179_v63 = vld [vmem:[#allocation14 + $0x1b0] ss:$12 sps:$4 sm:$0xff]  }
0x1432   :  { %10843 = vmatprep.subr.bf16.mxu1 %v12902_v25 }
0x1435   :  { %10844 = vmatpush3.bf16.msra.mxu1 %v12146_v23  ;;  %v12182_v23 = vld [vmem:[#allocation14 + $0x1b8] ss:$12 sps:$4 sm:$0xff]  }
0x1436   :  { %10845 = vmatprep.subr.bf16.mxu1 %v12902_v25 }
0x1437   :  { %v6626_v20 = vpop.permute.xlu1 %6625 }
0x1438   :  { %v6630_v40 = vsel %vm5515_vm5, %v6629_v1, %v6626_v20  ;;  %v12165_v1 = vld [vmem:[#allocation14 + $0x214] ss:$12 sps:$4 sm:$0xff]   ;;  %v12166_v20 = vld [vmem:[#allocation14 + $0x218] ss:$12 sps:$4 sm:$0xff]  }
0x1439   :  { %v6648_v2 = vpack.c.bf16 %v6630_v40, %v6630_v40  ;;  %v12163_v40 = vld [vmem:[#allocation14 + $0x210] ss:$12 sps:$4 sm:$0xff]  }
0x143b   :  { %10834 = vmatmul.mubr.bf16.vlgmr.msra.gmra.mxu0 %v6648_v2 }
0x143c   :  { %10873 = vmatprep.mubr.msk.bf16.mxu0 %vm12903_vm0, %v12902_v25  ;;  %10858 = vmatpush3.bf16.msra.mxu0 %v12151_v15  ;;  %v12187_v15 = vld [vmem:[#allocation14 + $0x180] ss:$12 sps:$4 sm:$0xff]  }
0x143d   :  { %10859 = vmatprep.subr.bf16.mxu0 %v12902_v25 }
0x1440   :  { %10860 = vmatpush3.bf16.msra.mxu0 %v12152_v19  ;;  %v12190_v19 = vld [vmem:[#allocation14 + $0x188] ss:$12 sps:$4 sm:$0xff]  }
0x1441   :  { %10861 = vmatprep.subr.bf16.mxu0 %v12902_v25 }
0x1444   :  { %10862 = vmatpush3.bf16.msra.mxu0 %v12153_v30 }
0x1445   :  { %10863 = vmatprep.subr.bf16.mxu0 %v12902_v25 }
0x1448   :  { %10864 = vmatpush3.bf16.msra.mxu0 %v12154_v31 }
0x1449   :  { %10865 = vmatprep.subr.bf16.mxu0 %v12902_v25 }
0x144c   :  { %10866 = vmatpush3.bf16.msra.mxu0 %v12155_v9 }
0x144d   :  { %10867 = vmatprep.subr.bf16.mxu0 %v12902_v25 }
0x1450   :  { %10868 = vmatpush3.bf16.msra.mxu0 %v12156_v52 }
0x1451   :  { %10869 = vmatprep.subr.bf16.mxu0 %v12902_v25 }
0x1454   :  { %10870 = vmatpush3.bf16.msra.mxu0 %v12157_v8 }
0x1455   :  { %10871 = vmatprep.subr.bf16.mxu0 %v12902_v25 }
0x1458   :  { %10872 = vmatpush3.bf16.msra.mxu0 %v12158_v35 }
0x1459   :  { %10877 = vmatprep.subr.bf16.mxu0 %v12902_v25 }
0x14fb   :  { %v6739_v5 = vpop.f32.mrf.mxu0 }
0x14fc   :  { %v6740_v28 = vadd.f32 %v10185_v4, %v6739_v5 }
0x14fd   :  { %v10835_v7 = vpop.f32.mrf.mxu0 }
0x14fe   :  { %v6745_v10 = vadd.f32 %v6740_v28, %v13407_v51  ;;  %v12147_v51 = vld [vmem:[#allocation23 + $0x58] sm:$0xff]   ;;  %v12169_v7 = vld [vmem:[#allocation14 + $0x1fc] ss:$12 sps:$4 sm:$0xff]  }
0x14ff   :  { %v6742_v32 = vpop.f32.mrf.mxu0  ;;  %10846 = vmatpush3.bf16.msra.mxu1 %v12147_v51  ;;  %v12185_v51 = vld [vmem:[#allocation14 + $0x19c] ss:$12 sps:$4 sm:$0xff]  }
0x1500   :  { %6750 = vadd.xlane.f32.xlu0 %v6745_v10  ;;  %10847 = vmatprep.subr.bf16.mxu1 %v12902_v25  ;;  %v12170_v32 = vld [vmem:[#allocation14 + $0x200] ss:$12 sps:$4 sm:$0xff]  }
0x1501   :  { %v10836_v17 = vpop.f32.mrf.mxu0 }
0x1502   :  { %v12173_v17 = vld [vmem:[#allocation14 + $0x1e4] ss:$12 sps:$4 sm:$0xff]  }
0x1503   :  { %10848 = vmatpush3.bf16.msra.mxu1 %v12148_v24  ;;  %v12183_v24 = vld [vmem:[#allocation14 + $0x198] ss:$12 sps:$4 sm:$0xff]  }
0x1504   :  { %10849 = vmatprep.subr.bf16.mxu1 %v12902_v25 }
0x1507   :  { %10850 = vmatpush3.bf16.msra.mxu1 %v12149_v27  ;;  %v12186_v27 = vld [vmem:[#allocation14 + $0x1a0] ss:$12 sps:$4 sm:$0xff]  }
0x1508   :  { %10851 = vmatprep.subr.bf16.mxu1 %v12902_v25 }
0x150b   :  { %10852 = vmatpush3.bf16.msra.mxu1 %v12150_v29  ;;  %v12189_v29 = vld [vmem:[#allocation14 + $0x184] ss:$12 sps:$4 sm:$0xff]  }
0x150c   :  { %7214 = vmatprep.subr.bf16.mxu1 %v12161_v43 }
0x1589   :  { %v6751_v21 = vpop.xlane.xlu0 %6750 }
0x158a   :  { %v6752_v62 = vmul.f32 0.0078125, %v6751_v21  ;;  %v12177_v21 = vld [vmem:[#allocation14 + $0x1cc] ss:$12 sps:$4 sm:$0xff]  }
0x158c   :  { %v6753_v14 = vsub.f32 %v6745_v10, %v6752_v62  ;;  %v12167_v10 = vld [vmem:[#allocation14 + $0x1f8] ss:$12 sps:$4 sm:$0xff]   ;;  %v12175_v62 = vld [vmem:[#allocation14 + $0x1c8] ss:$12 sps:$4 sm:$0xff]  }
0x158e   :  { %v6754_v54 = vmul.f32 %v6753_v14, %v6753_v14 }
0x1590   :  { %6755 = vadd.xlane.f32.xlu1 %v6754_v54  ;;  %v12181_v54 = vld [vmem:[#allocation14 + $0x1b4] ss:$12 sps:$4 sm:$0xff]  }
0x1619   :  { %v6756_v3 = vpop.xlane.xlu1 %6755 }
0x161a   :  { %v6757_v16 = vmul.f32 0.0078125, %v6756_v3  ;;  %v10214_v3 = vld [vmem:[#allocation29 + $0x1] ss:$0 sm:$0xff] }
0x161c   :  { %v6758_v33 = vadd.f32 1e-05, %v6757_v16 }
0x161e   :  { %12317 = vrsqrt.f32 %v6758_v33  ;;  %v10215_v33 = vld [vmem:[#allocation31 + $0x1] ss:$0 sm:$0xff] }
0x162b   :  { %v12318_v36 = vpop.eup %12317 }
0x162c   :  { %v6760_v38 = vmul.f32 %v12318_v36, %v6753_v14  ;;  %v12178_v14 = vld [vmem:[#allocation14 + $0x1d0] ss:$12 sps:$4 sm:$0xff]  }
0x162e   :  { %v6767_v41 = vmul.f32 %v10194_v37, %v6760_v38 }
0x1630   :  { %v6774_v61 = vadd.f32 %v10195_v39, %v6767_v41  ;;  %v7069_v39 = vld [vmem:[#allocation16 + $0x6] sm:$0x7] }
0x1631   :  { %v7078_v41 = vrot.slane %v7069_v39, %v13259_v13 }
0x1632   :  { %v6792_v42 = vpack.c.bf16 %v6774_v61, %v6774_v61 }
0x1634   :  { %10854 = vmatmul.mubr.bf16.vlgmr.msra.gmra.mxu1 %v6792_v42 }
0x1635   :  { %7246 = vmatprep.mubr.bf16.mxu1 %v12901_v6  ;;  %7215 = vmatpush1.bf16.msra.mxu1 %v12159_v58 }
0x1636   :  { %7216 = vmatprep.subr.bf16.mxu1 %v12165_v1 }
0x1639   :  { %7217 = vmatpush1.bf16.msra.mxu1 %v12163_v40 }
0x163a   :  { %7218 = vmatprep.subr.bf16.mxu1 %v12169_v7 }
0x163d   :  { %7219 = vmatpush1.bf16.msra.mxu1 %v12167_v10 }
0x163e   :  { %7220 = vmatprep.subr.bf16.mxu1 %v12173_v17 }
0x1641   :  { %7221 = vmatpush1.bf16.msra.mxu1 %v12171_v49 }
0x1642   :  { %7222 = vmatprep.subr.bf16.mxu1 %v12177_v21 }
0x1645   :  { %7223 = vmatpush1.bf16.msra.mxu1 %v12175_v62 }
0x1646   :  { %7224 = vmatprep.subr.bf16.mxu1 %v12181_v54 }
0x1649   :  { %7225 = vmatpush1.bf16.msra.mxu1 %v12179_v63 }
0x164a   :  { %7226 = vmatprep.subr.bf16.mxu1 %v12185_v51 }
0x164d   :  { %7227 = vmatpush1.bf16.msra.mxu1 %v12183_v24 }
0x164e   :  { %7228 = vmatprep.subr.bf16.mxu1 %v12189_v29 }
0x1651   :  { %7229 = vmatpush1.bf16.msra.mxu1 %v12187_v15 }
0x1652   :  { %10897 = vmatprep.subr.bf16.mxu1 %v12902_v25 }
0x16f4   :  { %v6883_v45 = vpop.f32.mrf.mxu1 }
0x16f5   :  { %v6884_v46 = vadd.f32 %v10196_v44, %v6883_v45  ;;  %v7082_v44 = vrot.slane %v7069_v39, %v13272_v22 }
0x16f6   :  { %v10855_v47 = vpop.f32.mrf.mxu1 }
0x16f7   :  { %v6889_v0 = vmax.f32 %v6884_v46, 0.0 }
0x16f8   :  { %v6886_v48 = vpop.f32.mrf.mxu1 }
0x16f9   :  { %v6907_v53 = vpack.c.bf16 %v6889_v0, %v6889_v0  ;;  %v7074_v0 = vrot.slane %v7069_v39, %v13254_v11 }
0x16fa   :  { %v10856_v26 = vpop.f32.mrf.mxu1 }
0x16fb   :  { %10874 = vmatmul.mubr.bf16.vlgmr.msra.gmra.mxu0 %v6907_v53 }
0x16fc   :  { %10893 = vmatprep.mubr.msk.bf16.mxu0 %vm12903_vm0, %v12902_v25  ;;  %10878 = vmatpush3.bf16.msra.mxu0 %v12162_v60 }
0x16fd   :  { %10879 = vmatprep.subr.bf16.mxu0 %v12902_v25 }
0x1700   :  { %10880 = vmatpush3.bf16.msra.mxu0 %v12166_v20 }
0x1701   :  { %10881 = vmatprep.subr.bf16.mxu0 %v12902_v25 }
0x1704   :  { %10882 = vmatpush3.bf16.msra.mxu0 %v12170_v32 }
0x1705   :  { %10883 = vmatprep.subr.bf16.mxu0 %v12902_v25 }
0x1708   :  { %10884 = vmatpush3.bf16.msra.mxu0 %v12174_v18 }
0x1709   :  { %10885 = vmatprep.subr.bf16.mxu0 %v12902_v25 }
0x170c   :  { %10886 = vmatpush3.bf16.msra.mxu0 %v12178_v14 }
0x170d   :  { %10887 = vmatprep.subr.bf16.mxu0 %v12902_v25 }
0x1710   :  { %10888 = vmatpush3.bf16.msra.mxu0 %v12182_v23 }
0x1711   :  { %10889 = vmatprep.subr.bf16.mxu0 %v12902_v25 }
0x1714   :  { %10890 = vmatpush3.bf16.msra.mxu0 %v12186_v27 }
0x1715   :  { %10891 = vmatprep.subr.bf16.mxu0 %v12902_v25 }
0x1718   :  { %10892 = vmatpush3.bf16.msra.mxu0 %v12190_v19 }
0x1719   :  { %10921 = vmatprep.subr.bf16.mxu0 %v12902_v25 }
0x17bb   :  { %v6998_v50 = vpop.f32.mrf.mxu0 }
0x17bc   :  { %v6999_v59 = vadd.f32 %v10205_v12, %v6998_v50 }
0x17bd   :  { %v10875_v34 = vpop.f32.mrf.mxu0 }
0x17be   :  { %v7004_v55 = vadd.f32 %v6999_v59, %v6774_v61 }
0x17bf   :  { %v7001_v56 = vpop.f32.mrf.mxu0 }
0x17c0   :  { %7009 = vadd.xlane.f32.xlu0 %v7004_v55 }
0x17c1   :  { %v10876_v57 = vpop.f32.mrf.mxu0 }
0x1849   :  { %v7010_v2 = vpop.xlane.xlu0 %7009 }
0x184a   :  { %v7011_v4 = vmul.f32 0.0078125, %v7010_v2 }
0x184c   :  { %v7012_v5 = vsub.f32 %v7004_v55, %v7011_v4 }
0x184e   :  { %v7013_v28 = vmul.f32 %v7012_v5, %v7012_v5 }
0x1850   :  { %7014 = vadd.xlane.f32.xlu0 %v7013_v28 }
0x18d9   :  { %v7015_v30 = vpop.xlane.xlu0 %7014 }
0x18da   :  { %v7016_v31 = vmul.f32 0.0078125, %v7015_v30 }
0x18dc   :  { %v7017_v9 = vadd.f32 1e-05, %v7016_v31 }
0x18de   :  { %12319 = vrsqrt.f32 %v7017_v9 }
0x18eb   :  { %v12320_v52 = vpop.eup %12319 }
0x18ec   :  { %v7019_v16 = vmul.f32 %v12320_v52, %v7012_v5 }
0x18ee   :  { %v7026_v36 = vmul.f32 %v10214_v3, %v7019_v16 }
0x18f0   :  { %v13528_v37 = vadd.f32 %v10215_v33, %v7026_v36 }
0x18f2   :  { %v7067_v38 = vpack.c.bf16 %v13528_v37, %v13528_v37 }
0x18f4   :  { %7247 = vmatmul.mubr.bf16.vlgmr.msra.gmra.mxu1 %v7067_v38  ;;  %10894 = vmatmul.mubr.bf16.vlgmr.msra.gmra.mxu0 %v7067_v38 }
0x18f5   :  { %10899 = vmatprep.mubr.msk.bf16.mxu1 %vm12903_vm0, %v12902_v25  ;;  %10923 = vmatprep.mubr.msk.bf16.mxu0 %vm12903_vm0, %v12902_v25 }
0x19b4   :  { %v7248_v61 = vpop.f32.mrf.mxu1  ;;  %v7289_v42 = vpop.f32.mrf.mxu0 }
0x19b5   :  { %v7290_v12 = vadd.f32 %v7289_v42, %v7082_v44  ;;  %v7249_v59 = vadd.f32 %v7248_v61, %v7074_v0 }
0x19b6   :  { %v7250_v8 = vpop.f32.mrf.mxu1  ;;  %v10895_v35 = vpop.f32.mrf.mxu0 }
0x19b7   :  { %v7251_v45 = vadd.f32 %v7250_v8, %v7078_v41  ;;  %v13541_v34 = vpack.c.bf16 %v7290_v12, %v7290_v12  ;;  %v7295_v55 = vpack.c.bf16 %v7249_v59, %v7249_v59 }
0x19b8   :  { %v7252_v46 = vpop.f32.mrf.mxu1  ;;  %v7292_v47 = vpop.f32.mrf.mxu0 }
0x19b9   :  { %v7296_v48 = vpack.c.bf16 %v7251_v45, %v7251_v45  ;;  %v7361_v56 = vsel %vm5120_vm1, %v13541_v34, 0 }
0x19ba   :  { %v7253_v53 = vpop.f32.mrf.mxu1  ;;  %v10896_v26 = vpop.f32.mrf.mxu0 }
0x19bb   :  { %v7301_v50 = vsel %vm5055_vm2, %v7296_v48, 0 }
0x19bc   :  { %10898 = vmatpush3.bf16.xpose.msra.mxu1 %v7301_v50 }
0x19bd   :  { %10903 = vmatprep.subr.bf16.mxu1 %v12902_v25 }
0x19c3   :  { %10900 = vmatmul.mubr.msk.bf16.vlgmr.msra.gmra.mxu1 %vm5055_vm2, %v7295_v55 }
0x19c4   :  { %10904 = vmatpush3.bf16.msra.mxu1 %v7361_v56  ;;  %10905 = vmatprep.mubr.msk.bf16.mxu1 %vm12903_vm0, %v12902_v25 }
0x19c5   :  { %10909 = vmatprep.subr.bf16.mxu1 %v12902_v25 }
0x1a83   :  { %v7337_v57 = vpop.f32.mrf.mxu1 }
0x1a84   :  { %v7343_v58 = vmul.f32 0.17677669, %v7337_v57 }
0x1a85   :  { %v10901_v43 = vpop.f32.mrf.mxu1 }
0x1a86   :  { %v7344_v60 = vsel %vm5103_vm3, %v7343_v58, -inf }
0x1a87   :  { %7345 = vmax.xlane.f32.xlu1 %v7344_v60  ;;  %v7340_v1 = vpop.f32.mrf.mxu1 }
0x1a89   :  { %v10902_v20 = vpop.f32.mrf.mxu1 }
0x1a98   :  { %7407 = vrot.lane.b32.xlu1 %v7296_v48, %s12904_s21 }
0x1a9c   :  { %7519 = vrot.lane.b32.xlu1 %v7296_v48, %s12874_s6 }
0x1aa0   :  { %7517 = vrot.lane.b32.xlu1 %v7295_v55, %s12874_s6 }
0x1aa4   :  { %7628 = vrot.lane.b32.xlu1 %v7295_v55, %s12905_s24 }
0x1b10   :  { %v7346_v40 = vpop.xlane.xlu1 %7345 }
0x1b11   :  { %v7347_v2 = vsub.f32 %v7343_v58, %v7346_v40 }
0x1b13   :  { %v7348_v4 = vmul.f32 1.442695, %v7347_v2 }
0x1b14   :  { %v7408_v5 = vpop.permute.xlu1 %7407 }
0x1b15   :  { %12321 = vpow2.f32 %v7348_v4  ;;  %v7413_v51 = vsel %vm5055_vm2, %v7408_v5, 0 }
0x1b18   :  { %v7520_v28 = vpop.permute.xlu1 %7519 }
0x1b19   :  { %v7525_v7 = vsel %vm5055_vm2, %v7520_v28, 0 }
0x1b1a   :  { %10922 = vmatpush3.bf16.xpose.msra.mxu0 %v7525_v7 }
0x1b1b   :  { %10933 = vmatprep.subr.bf16.mxu0 %v12902_v25 }
0x1b1c   :  { %v7518_v10 = vpop.permute.xlu1 %7517 }
0x1b20   :  { %v7629_v63 = vpop.permute.xlu1 %7628 }
0x1b21   :  { %10924 = vmatmul.mubr.msk.bf16.vlgmr.msra.gmra.mxu0 %vm5055_vm2, %v7518_v10 }
0x1b22   :  { %v12322_v32 = vpop.eup %12321  ;;  %10935 = vmatprep.mubr.msk.bf16.mxu0 %vm12903_vm0, %v12902_v25 }
0x1b23   :  { %v7350_v17 = vsel %vm5103_vm3, %v12322_v32, 0.0 }
0x1b24   :  { %7351 = vadd.xlane.f32.xlu0 %v7350_v17 }
0x1b3a   :  { %7404 = vrot.lane.b32.xlu0 %v7295_v55, %s12904_s21 }
0x1b3e   :  { %7630 = vrot.lane.b32.xlu0 %v7296_v48, %s12905_s24 }
0x1bad   :  { %v7352_v49 = vpop.xlane.xlu0 %7351 }
0x1bae   :  { %12323 = vrcp.f32 %v7352_v49 }
0x1bb1   :  { %v7405_v18 = vpop.permute.xlu0 %7404 }
0x1bb5   :  { %v7631_v21 = vpop.permute.xlu0 %7630 }
0x1bb6   :  { %v7636_v62 = vsel %vm5055_vm2, %v7631_v21, 0 }
0x1bb7   :  { %10934 = vmatpush3.bf16.xpose.msra.mxu0 %v7636_v62 }
0x1bb8   :  { %10945 = vmatprep.subr.bf16.mxu0 %v12902_v25 }
0x1bbb   :  { %v12324_v14 = vpop.eup %12323 }
0x1bbc   :  { %v7354_v54 = vmul.f32 %v12324_v14, %v12322_v32 }
0x1bbe   :  { %10936 = vmatmul.mubr.msk.bf16.vlgmr.msra.gmra.mxu0 %vm5055_vm2, %v7629_v63  ;;  %v7355_v23 = vpack.c.bf16 %v7354_v54, %v7354_v54  ;;  %v12191_v63 = vld [vmem:[#allocation17 + $0xb8] sm:$0xff]  }
0x1bbf   :  { %10961 = vmatprep.mubr.msk.bf16.mxu0 %vm12903_vm0, %v12902_v25  ;;  %10946 = vmatpush3.bf16.msra.mxu0 %v12191_v63 }
0x1bc0   :  { %10906 = vmatmul.mubr.msk.bf16.vlgmr.msra.gmra.mxu1 %vm5103_vm3, %v7355_v23  ;;  %v12192_v23 = vld [vmem:[#allocation17 + $0xb0] sm:$0xff]   ;;  %10947 = vmatprep.subr.bf16.mxu0 %v12902_v25 }
0x1bc1   :  { %10910 = vmatpush3.bf16.xpose.msra.mxu1 %v7413_v51  ;;  %10911 = vmatprep.mubr.msk.bf16.mxu1 %vm12903_vm0, %v12902_v25  ;;  %v12193_v51 = vld [vmem:[#allocation17 + $0xa8] sm:$0xff]  }
0x1bc2   :  { %10915 = vmatprep.subr.bf16.mxu1 %v12902_v25 }
0x1bc3   :  { %10948 = vmatpush3.bf16.msra.mxu0 %v12192_v23 }
0x1bc4   :  { %10949 = vmatprep.subr.bf16.mxu0 %v12902_v25 }
0x1bc7   :  { %10950 = vmatpush3.bf16.msra.mxu0 %v12193_v51 }
0x1bc8   :  { %10912 = vmatmul.mubr.msk.bf16.vlgmr.msra.gmra.mxu1 %vm5055_vm2, %v7405_v18  ;;  %10951 = vmatprep.subr.bf16.mxu0 %v12902_v25 }
0x1bc9   :  { %10917 = vmatprep.mubr.msk.bf16.mxu1 %vm12903_vm0, %v12902_v25 }
0x1be1   :  { %v7561_v24 = vpop.f32.mrf.mxu0 }
0x1be2   :  { %v7567_v27 = vmul.f32 0.17677669, %v7561_v24  ;;  %v12194_v24 = vld [vmem:[#allocation17 + $0xa0] sm:$0xff]  }
0x1be3   :  { %v10925_v29 = vpop.f32.mrf.mxu0  ;;  %10952 = vmatpush3.bf16.msra.mxu0 %v12194_v24  ;;  %v12213_v24 = vld [vmem:[#allocation26 + $0x88] sm:$0xff]  }
0x1be4   :  { %v7568_v15 = vsel %vm5103_vm3, %v7567_v27, -inf  ;;  %10953 = vmatprep.subr.bf16.mxu0 %v12902_v25  ;;  %v12196_v29 = vld [vmem:[#allocation17 + $0x90] sm:$0xff]  }
0x1be5   :  { %7569 = vmax.xlane.f32.xlu1 %v7568_v15  ;;  %v7564_v19 = vpop.f32.mrf.mxu0  ;;  %v12197_v15 = vld [vmem:[#allocation17 + $0x88] sm:$0xff]  }
0x1be7   :  { %v10926_v30 = vpop.f32.mrf.mxu0 }
0x1c6e   :  { %v7570_v31 = vpop.xlane.xlu1 %7569 }
0x1c6f   :  { %v7571_v9 = vsub.f32 %v7567_v27, %v7570_v31  ;;  %v12195_v27 = vld [vmem:[#allocation17 + $0x98] sm:$0xff]  }
0x1c70   :  { %10954 = vmatpush3.bf16.msra.mxu0 %v12195_v27  ;;  %v12214_v27 = vld [vmem:[#allocation26 + $0x80] sm:$0xff]  }
0x1c71   :  { %v7572_v52 = vmul.f32 1.442695, %v7571_v9  ;;  %10955 = vmatprep.subr.bf16.mxu0 %v12902_v25  ;;  %v12198_v9 = vld [vmem:[#allocation17 + $0x80] sm:$0xff]  }
0x1c73   :  { %12325 = vpow2.f32 %v7572_v52 }
0x1c74   :  { %10956 = vmatpush3.bf16.msra.mxu0 %v12196_v29  ;;  %v10259_v29 = vld [vmem:[#allocation25 + $0x2] ss:$0 sm:$0xff] }
0x1c75   :  { %10957 = vmatprep.subr.bf16.mxu0 %v12902_v25 }
0x1c78   :  { %10958 = vmatpush3.bf16.msra.mxu0 %v12197_v15 }
0x1c79   :  { %10959 = vmatprep.subr.bf16.mxu0 %v12902_v25 }
0x1c7c   :  { %10960 = vmatpush3.bf16.msra.mxu0 %v12198_v9 }
0x1c7d   :  { %10985 = vmatprep.subr.bf16.mxu0 %v12902_v25 }
0x1c7e   :  { %v7672_v3 = vpop.f32.mrf.mxu0 }
0x1c7f   :  { %v7678_v46 = vmul.f32 0.17677669, %v7672_v3 }
0x1c80   :  { %v12326_v16 = vpop.eup %12325  ;;  %v13576_v33 = vpop.f32.mrf.mxu1 }
0x1c81   :  { %v10937_v36 = vpop.f32.mrf.mxu0  ;;  %v7574_v38 = vsel %vm5103_vm3, %v12326_v16, 0.0  ;;  %v7679_v53 = vsel %vm5103_vm3, %v7678_v46, -inf }
0x1c82   :  { %v10907_v39 = vpop.f32.mrf.mxu1  ;;  %7575 = vadd.xlane.f32.xlu1 %v7574_v38 }
0x1c83   :  { %v7675_v41 = vpop.f32.mrf.mxu0 }
0x1c84   :  { %v7400_v61 = vpop.f32.mrf.mxu1 }
0x1c85   :  { %v10938_v42 = vpop.f32.mrf.mxu0 }
0x1c86   :  { %v10908_v8 = vpop.f32.mrf.mxu1 }
0x1c88   :  { %v7449_v35 = vpop.f32.mrf.mxu1 }
0x1c89   :  { %v7455_v44 = vmul.f32 0.17677669, %v7449_v35 }
0x1c8a   :  { %v10913_v45 = vpop.f32.mrf.mxu1 }
0x1c8b   :  { %v7456_v47 = vsel %vm5103_vm3, %v7455_v44, -inf }
0x1c8c   :  { %7457 = vmax.xlane.f32.xlu0 %v7456_v47  ;;  %v7452_v0 = vpop.f32.mrf.mxu1 }
0x1c8e   :  { %v10914_v48 = vpop.f32.mrf.mxu1 }
0x1c8f   :  { %v10248_v48 = vld [vmem:[#allocation19 + $0x2] ss:$0 sm:$0xff] }
0x1c90   :  { %7680 = vmax.xlane.f32.xlu0 %v7679_v53 }
0x1c93   :  { %7469 = vrot.lane.b32.xlu1 %v13541_v34, %s12904_s21 }
0x1c97   :  { %7691 = vrot.lane.b32.xlu1 %v13541_v34, %s12905_s24 }
0x1d0b   :  { %v7576_v26 = vpop.xlane.xlu1 %7575 }
0x1d0f   :  { %v7470_v12 = vpop.permute.xlu1 %7469 }
0x1d10   :  { %v7475_v50 = vsel %vm5120_vm1, %v7470_v12, 0 }
0x1d11   :  { %10916 = vmatpush3.bf16.msra.mxu1 %v7475_v50 }
0x1d12   :  { %10927 = vmatprep.subr.bf16.mxu1 %v12902_v25 }
0x1d15   :  { %v7458_v59 = vpop.xlane.xlu0 %7457 }
0x1d16   :  { %v7459_v55 = vsub.f32 %v7455_v44, %v7458_v59 }
0x1d18   :  { %v7460_v56 = vmul.f32 1.442695, %v7459_v55 }
0x1d19   :  { %v7681_v57 = vpop.xlane.xlu0 %7680 }
0x1d1a   :  { %12327 = vpow2.f32 %v7460_v56  ;;  %v7682_v58 = vsub.f32 %v7678_v46, %v7681_v57  ;;  %v12200_v56 = vld [vmem:[#allocation23 + $0xb0] sm:$0xff]  }
0x1d1c   :  { %v7683_v43 = vmul.f32 1.442695, %v7682_v58 }
0x1d1e   :  { %12329 = vpow2.f32 %v7683_v43 }
0x1d27   :  { %v12328_v60 = vpop.eup %12327 }
0x1d28   :  { %v7462_v1 = vsel %vm5103_vm3, %v12328_v60, 0.0 }
0x1d29   :  { %7463 = vadd.xlane.f32.xlu0 %v7462_v1  ;;  %v12201_v1 = vld [vmem:[#allocation23 + $0xa8] sm:$0xff]  }
0x1d2b   :  { %v12330_v20 = vpop.eup %12329 }
0x1d2c   :  { %v7685_v40 = vsel %vm5103_vm3, %v12330_v20, 0.0 }
0x1d2d   :  { %7686 = vadd.xlane.f32.xlu0 %v7685_v40  ;;  %v12204_v40 = vld [vmem:[#allocation23 + $0x90] sm:$0xff]  }
0x1d43   :  { %7580 = vrot.lane.b32.xlu0 %v13541_v34, %s12874_s6  ;;  %v7692_v34 = vpop.permute.xlu1 %7691 }
0x1d44   :  { %v7697_v62 = vsel %vm5120_vm1, %v7692_v34, 0 }
0x1db2   :  { %v7464_v2 = vpop.xlane.xlu0 %7463 }
0x1db3   :  { %12331 = vrcp.f32 %v7464_v2  ;;  %v12205_v2 = vld [vmem:[#allocation23 + $0x88] sm:$0xff]  }
0x1db4   :  { %12333 = vrcp.f32 %v7576_v26 }
0x1db6   :  { %v7687_v4 = vpop.xlane.xlu0 %7686 }
0x1db7   :  { %12335 = vrcp.f32 %v7687_v4  ;;  %v12206_v4 = vld [vmem:[#allocation23 + $0x80] sm:$0xff]  }
0x1dba   :  { %v7581_v7 = vpop.permute.xlu0 %7580 }
0x1dbb   :  { %v7586_v17 = vsel %vm5120_vm1, %v7581_v7, 0  ;;  %v12209_v7 = vld [vmem:[#allocation26 + $0xa8] sm:$0xff]  }
0x1dc0   :  { %v12332_v5 = vpop.eup %12331 }
0x1dc1   :  { %v7466_v28 = vmul.f32 %v12332_v5, %v12328_v60  ;;  %v12334_v32 = vpop.eup %12333  ;;  %v12207_v5 = vld [vmem:[#allocation26 + $0xb8] sm:$0xff]  }
0x1dc2   :  { %v7578_v49 = vmul.f32 %v12334_v32, %v12326_v16  ;;  %v12211_v32 = vld [vmem:[#allocation26 + $0x98] sm:$0xff]  }
0x1dc3   :  { %v7467_v10 = vpack.c.bf16 %v7466_v28, %v7466_v28  ;;  %v12208_v28 = vld [vmem:[#allocation26 + $0xb0] sm:$0xff]  }
0x1dc4   :  { %v7579_v18 = vpack.c.bf16 %v7578_v49, %v7578_v49  ;;  %v12336_v21 = vpop.eup %12335 }
0x1dc5   :  { %10918 = vmatmul.mubr.msk.bf16.vlgmr.msra.gmra.mxu1 %vm5103_vm3, %v7467_v10  ;;  %v7689_v14 = vmul.f32 %v12336_v21, %v12330_v20  ;;  %v12203_v20 = vld [vmem:[#allocation23 + $0x98] sm:$0xff]   ;;  %v12210_v10 = vld [vmem:[#allocation26 + $0xa0] sm:$0xff]  }
0x1dc6   :  { %10928 = vmatpush3.bf16.msra.mxu1 %v7586_v17  ;;  %10929 = vmatprep.mubr.msk.bf16.mxu1 %vm12903_vm0, %v12902_v25  ;;  %v12212_v17 = vld [vmem:[#allocation26 + $0x90] sm:$0xff]  }
0x1dc7   :  { %10939 = vmatprep.subr.bf16.mxu1 %v12902_v25  ;;  %v7690_v54 = vpack.c.bf16 %v7689_v14, %v7689_v14 }
0x1dcd   :  { %10930 = vmatmul.mubr.msk.bf16.vlgmr.msra.gmra.mxu1 %vm5103_vm3, %v7579_v18 }
0x1dce   :  { %10940 = vmatpush3.bf16.msra.mxu1 %v7697_v62  ;;  %10941 = vmatprep.mubr.msk.bf16.mxu1 %vm12903_vm0, %v12902_v25  ;;  %v10257_v62 = vld [vmem:[#allocation20 + $0x2] ss:$0 sm:$0xff] }
0x1dcf   :  { %10965 = vmatprep.subr.bf16.mxu1 %v12902_v25 }
0x1dd5   :  { %10942 = vmatmul.mubr.msk.bf16.vlgmr.msra.gmra.mxu1 %vm5103_vm3, %v7690_v54  ;;  %v10258_v54 = vld [vmem:[#allocation22 + $0x2] ss:$0 sm:$0xff] }
0x1dd6   :  { %10981 = vmatprep.mubr.msk.bf16.mxu1 %vm12903_vm0, %v12902_v25 }
0x1e85   :  { %v7511_v19 = vpop.f32.mrf.mxu1 }
0x1e86   :  { %7740 = vrot.lane.b32.xlu1 %v7511_v19, %s12905_s24 }
0x1e87   :  { %v10919_v30 = vpop.f32.mrf.mxu1 }
0x1e89   :  { %v7514_v31 = vpop.f32.mrf.mxu1 }
0x1e8b   :  { %v10920_v52 = vpop.f32.mrf.mxu1 }
0x1e8d   :  { %v7622_v3 = vpop.f32.mrf.mxu1 }
0x1e8e   :  { %7744 = vrot.lane.b32.xlu0 %v7622_v3, %s12874_s6 }
0x1e8f   :  { %v10931_v16 = vpop.f32.mrf.mxu1 }
0x1e91   :  { %v7625_v36 = vpop.f32.mrf.mxu1 }
0x1e93   :  { %v10932_v38 = vpop.f32.mrf.mxu1 }
0x1e95   :  { %v7733_v39 = vpop.f32.mrf.mxu1 }
0x1e96   :  { %7748 = vrot.lane.b32.xlu1 %v7733_v39, %s12904_s21 }
0x1e97   :  { %v10943_v41 = vpop.f32.mrf.mxu1 }
0x1e99   :  { %v7736_v61 = vpop.f32.mrf.mxu1 }
0x1e9b   :  { %v10944_v42 = vpop.f32.mrf.mxu1 }
0x1e9c   :  { %v12215_v42 = vld [vmem:[#allocation14 + $0x2e8] ss:$12 sps:$4 sm:$0xff]  }
0x1ef8   :  { %v7741_v8 = vpop.permute.xlu1 %7740 }
0x1ef9   :  { %v7751_v44 = vsel %vm5055_vm2, %v13576_v33, %v7741_v8  ;;  %v12199_v33 = vld [vmem:[#allocation23 + $0xb8] sm:$0xff]   ;;  %v12217_v8 = vld [vmem:[#allocation14 + $0x2ec] ss:$12 sps:$4 sm:$0xff]  }
0x1efa   :  { %10966 = vmatpush3.bf16.msra.mxu1 %v12199_v33  ;;  %v12230_v33 = vld [vmem:[#allocation14 + $0x2a8] ss:$12 sps:$4 sm:$0xff]  }
0x1efb   :  { %10967 = vmatprep.subr.bf16.mxu1 %v12902_v25 }
0x1efe   :  { %10968 = vmatpush3.bf16.msra.mxu1 %v12200_v56  ;;  %v12233_v56 = vld [vmem:[#allocation14 + $0x28c] ss:$12 sps:$4 sm:$0xff]  }
0x1eff   :  { %10969 = vmatprep.subr.bf16.mxu1 %v12902_v25 }
0x1f00   :  { %v7745_v35 = vpop.permute.xlu0 %7744 }
0x1f01   :  { %v7752_v45 = vsel %vm5513_vm4, %v7751_v44, %v7745_v35  ;;  %v12218_v35 = vld [vmem:[#allocation14 + $0x2f0] ss:$12 sps:$4 sm:$0xff]   ;;  %v12221_v44 = vld [vmem:[#allocation14 + $0x2d4] ss:$12 sps:$4 sm:$0xff]  }
0x1f02   :  { %10970 = vmatpush3.bf16.msra.mxu1 %v12201_v1  ;;  %v12238_v1 = vld [vmem:[#allocation14 + $0x278] ss:$12 sps:$4 sm:$0xff]  }
0x1f03   :  { %10971 = vmatprep.subr.bf16.mxu1 %v12902_v25 }
0x1f08   :  { %v7749_v46 = vpop.permute.xlu1 %7748 }
0x1f09   :  { %v7753_v47 = vsel %vm5515_vm5, %v7752_v45, %v7749_v46  ;;  %v12222_v45 = vld [vmem:[#allocation14 + $0x2d8] ss:$12 sps:$4 sm:$0xff]   ;;  %v12219_v46 = vld [vmem:[#allocation14 + $0x2d0] ss:$12 sps:$4 sm:$0xff]  }
0x1f0a   :  { %v7771_v0 = vpack.c.bf16 %v7753_v47, %v7753_v47 }
0x1f0c   :  { %10962 = vmatmul.mubr.bf16.vlgmr.msra.gmra.mxu0 %v7771_v0 }
0x1f0d   :  { %11001 = vmatprep.mubr.msk.bf16.mxu0 %vm12903_vm0, %v12902_v25  ;;  %10986 = vmatpush3.bf16.msra.mxu0 %v12207_v5  ;;  %v12246_v5 = vld [vmem:[#allocation14 + $0x248] ss:$12 sps:$4 sm:$0xff]  }
0x1f0e   :  { %10987 = vmatprep.subr.bf16.mxu0 %v12902_v25 }
0x1f11   :  { %10988 = vmatpush3.bf16.msra.mxu0 %v12208_v28 }
0x1f12   :  { %10989 = vmatprep.subr.bf16.mxu0 %v12902_v25 }
0x1f15   :  { %10990 = vmatpush3.bf16.msra.mxu0 %v12209_v7 }
0x1f16   :  { %10991 = vmatprep.subr.bf16.mxu0 %v12902_v25 }
0x1f19   :  { %10992 = vmatpush3.bf16.msra.mxu0 %v12210_v10 }
0x1f1a   :  { %10993 = vmatprep.subr.bf16.mxu0 %v12902_v25 }
0x1f1d   :  { %10994 = vmatpush3.bf16.msra.mxu0 %v12211_v32 }
0x1f1e   :  { %10995 = vmatprep.subr.bf16.mxu0 %v12902_v25 }
0x1f21   :  { %10996 = vmatpush3.bf16.msra.mxu0 %v12212_v17  ;;  %v10277_v17 = vld [vmem:[#allocation29 + $0x2] ss:$0 sm:$0xff] }
0x1f22   :  { %10997 = vmatprep.subr.bf16.mxu0 %v12902_v25 }
0x1f25   :  { %10998 = vmatpush3.bf16.msra.mxu0 %v12213_v24 }
0x1f26   :  { %10999 = vmatprep.subr.bf16.mxu0 %v12902_v25 }
0x1f29   :  { %11000 = vmatpush3.bf16.msra.mxu0 %v12214_v27 }
0x1f2a   :  { %11005 = vmatprep.subr.bf16.mxu0 %v12902_v25 }
0x1fcc   :  { %v7862_v53 = vpop.f32.mrf.mxu0 }
0x1fcd   :  { %v7863_v26 = vadd.f32 %v10248_v48, %v7862_v53 }
0x1fce   :  { %v10963_v12 = vpop.f32.mrf.mxu0 }
0x1fcf   :  { %v7868_v50 = vadd.f32 %v7863_v26, %v13528_v37  ;;  %v12202_v37 = vld [vmem:[#allocation23 + $0xa0] sm:$0xff]  }
0x1fd0   :  { %v7865_v59 = vpop.f32.mrf.mxu0  ;;  %10972 = vmatpush3.bf16.msra.mxu1 %v12202_v37  ;;  %v12225_v26 = vld [vmem:[#allocation14 + $0x2bc] ss:$12 sps:$4 sm:$0xff]   ;;  %v12223_v12 = vld [vmem:[#allocation14 + $0x2b8] ss:$12 sps:$4 sm:$0xff]  }
0x1fd1   :  { %7873 = vadd.xlane.f32.xlu0 %v7868_v50  ;;  %10973 = vmatprep.subr.bf16.mxu1 %v12902_v25  ;;  %v12229_v59 = vld [vmem:[#allocation14 + $0x2a4] ss:$12 sps:$4 sm:$0xff]  }
0x1fd2   :  { %v10964_v55 = vpop.f32.mrf.mxu0  ;;  %v12239_v37 = vld [vmem:[#allocation14 + $0x258] ss:$12 sps:$4 sm:$0xff]  }
0x1fd3   :  { %v12227_v55 = vld [vmem:[#allocation14 + $0x2a0] ss:$12 sps:$4 sm:$0xff]  }
0x1fd4   :  { %10974 = vmatpush3.bf16.msra.mxu1 %v12203_v20  ;;  %v12241_v20 = vld [vmem:[#allocation14 + $0x25c] ss:$12 sps:$4 sm:$0xff]  }
0x1fd5   :  { %10975 = vmatprep.subr.bf16.mxu1 %v12902_v25 }
0x1fd8   :  { %10976 = vmatpush3.bf16.msra.mxu1 %v12204_v40  ;;  %v12242_v40 = vld [vmem:[#allocation14 + $0x260] ss:$12 sps:$4 sm:$0xff]  }
0x1fd9   :  { %10977 = vmatprep.subr.bf16.mxu1 %v12902_v25 }
0x1fdc   :  { %10978 = vmatpush3.bf16.msra.mxu1 %v12205_v2  ;;  %v12245_v2 = vld [vmem:[#allocation14 + $0x244] ss:$12 sps:$4 sm:$0xff]  }
0x1fdd   :  { %10979 = vmatprep.subr.bf16.mxu1 %v12902_v25 }
0x1fe0   :  { %10980 = vmatpush3.bf16.msra.mxu1 %v12206_v4  ;;  %v12243_v4 = vld [vmem:[#allocation14 + $0x240] ss:$12 sps:$4 sm:$0xff]  }
0x1fe1   :  { %8337 = vmatprep.subr.bf16.mxu1 %v12217_v8 }
0x205a   :  { %v7874_v57 = vpop.xlane.xlu0 %7873 }
0x205b   :  { %v7875_v58 = vmul.f32 0.0078125, %v7874_v57  ;;  %v12231_v57 = vld [vmem:[#allocation14 + $0x288] ss:$12 sps:$4 sm:$0xff]  }
0x205d   :  { %v7876_v43 = vsub.f32 %v7868_v50, %v7875_v58  ;;  %v12226_v50 = vld [vmem:[#allocation14 + $0x2c0] ss:$12 sps:$4 sm:$0xff]   ;;  %v12234_v58 = vld [vmem:[#allocation14 + $0x290] ss:$12 sps:$4 sm:$0xff]  }
0x205f   :  { %v7877_v60 = vmul.f32 %v7876_v43, %v7876_v43 }
0x2061   :  { %7878 = vadd.xlane.f32.xlu1 %v7877_v60  ;;  %v12235_v60 = vld [vmem:[#allocation14 + $0x270] ss:$12 sps:$4 sm:$0xff]  }
0x20ea   :  { %v7879_v49 = vpop.xlane.xlu1 %7878 }
0x20eb   :  { %v7880_v34 = vmul.f32 0.0078125, %v7879_v49 }
0x20ed   :  { %v7881_v18 = vadd.f32 1e-05, %v7880_v34  ;;  %v10278_v34 = vld [vmem:[#allocation31 + $0x2] ss:$0 sm:$0xff] }
0x20ef   :  { %12337 = vrsqrt.f32 %v7881_v18 }
0x20fc   :  { %v12338_v21 = vpop.eup %12337 }
0x20fd   :  { %v7883_v14 = vmul.f32 %v12338_v21, %v7876_v43  ;;  %v12237_v43 = vld [vmem:[#allocation14 + $0x274] ss:$12 sps:$4 sm:$0xff]  }
0x20ff   :  { %v7890_v63 = vmul.f32 %v10257_v62, %v7883_v14  ;;  %v8192_v14 = vld [vmem:[#allocation16 + $0x9] sm:$0x7] }
0x2100   :  { %v8205_v27 = vrot.slane %v8192_v14, %v13272_v22 }
0x2101   :  { %v7897_v23 = vadd.f32 %v10258_v54, %v7890_v63  ;;  %v8201_v54 = vrot.slane %v8192_v14, %v13259_v13 }
0x2103   :  { %v7915_v51 = vpack.c.bf16 %v7897_v23, %v7897_v23 }
0x2105   :  { %10982 = vmatmul.mubr.bf16.vlgmr.msra.gmra.mxu1 %v7915_v51 }
0x2106   :  { %8369 = vmatprep.mubr.bf16.mxu1 %v12901_v6  ;;  %v10268_v6 = vld [vmem:[#allocation28 + $0x2] ss:$0 sm:$0xff]  ;;  %8338 = vmatpush1.bf16.msra.mxu1 %v12215_v42 }
0x2107   :  { %8339 = vmatprep.subr.bf16.mxu1 %v12221_v44 }
0x210a   :  { %8340 = vmatpush1.bf16.msra.mxu1 %v12219_v46 }
0x210b   :  { %8341 = vmatprep.subr.bf16.mxu1 %v12225_v26 }
0x210e   :  { %8342 = vmatpush1.bf16.msra.mxu1 %v12223_v12 }
0x210f   :  { %8343 = vmatprep.subr.bf16.mxu1 %v12229_v59 }
0x2112   :  { %8344 = vmatpush1.bf16.msra.mxu1 %v12227_v55 }
0x2113   :  { %8345 = vmatprep.subr.bf16.mxu1 %v12233_v56 }
0x2116   :  { %8346 = vmatpush1.bf16.msra.mxu1 %v12231_v57 }
0x2117   :  { %8347 = vmatprep.subr.bf16.mxu1 %v12237_v43 }
0x211a   :  { %8348 = vmatpush1.bf16.msra.mxu1 %v12235_v60 }
0x211b   :  { %8349 = vmatprep.subr.bf16.mxu1 %v12241_v20 }
0x211e   :  { %8350 = vmatpush1.bf16.msra.mxu1 %v12239_v37 }
0x211f   :  { %8351 = vmatprep.subr.bf16.mxu1 %v12245_v2 }
0x2122   :  { %8352 = vmatpush1.bf16.msra.mxu1 %v12243_v4 }
0x2123   :  { %11025 = vmatprep.subr.bf16.mxu1 %v12902_v25 }
0x21c5   :  { %v8006_v15 = vpop.f32.mrf.mxu1 }
0x21c6   :  { %v8007_v19 = vadd.f32 %v10259_v29, %v8006_v15 }
0x21c7   :  { %v10983_v30 = vpop.f32.mrf.mxu1 }
0x21c8   :  { %v8012_v31 = vmax.f32 %v8007_v19, 0.0  ;;  %v8197_v30 = vrot.slane %v8192_v14, %v13254_v11 }
0x21c9   :  { %v8009_v9 = vpop.f32.mrf.mxu1 }
0x21ca   :  { %v8030_v52 = vpack.c.bf16 %v8012_v31, %v8012_v31 }
0x21cb   :  { %v10984_v3 = vpop.f32.mrf.mxu1 }
0x21cc   :  { %11002 = vmatmul.mubr.bf16.vlgmr.msra.gmra.mxu0 %v8030_v52 }
0x21cd   :  { %11021 = vmatprep.mubr.msk.bf16.mxu0 %vm12903_vm0, %v12902_v25  ;;  %11006 = vmatpush3.bf16.msra.mxu0 %v12218_v35 }
0x21ce   :  { %11007 = vmatprep.subr.bf16.mxu0 %v12902_v25 }
0x21d1   :  { %11008 = vmatpush3.bf16.msra.mxu0 %v12222_v45 }
0x21d2   :  { %11009 = vmatprep.subr.bf16.mxu0 %v12902_v25 }
0x21d5   :  { %11010 = vmatpush3.bf16.msra.mxu0 %v12226_v50 }
0x21d6   :  { %11011 = vmatprep.subr.bf16.mxu0 %v12902_v25 }
0x21d9   :  { %11012 = vmatpush3.bf16.msra.mxu0 %v12230_v33 }
0x21da   :  { %11013 = vmatprep.subr.bf16.mxu0 %v12902_v25 }
0x21dd   :  { %11014 = vmatpush3.bf16.msra.mxu0 %v12234_v58 }
0x21de   :  { %11015 = vmatprep.subr.bf16.mxu0 %v12902_v25 }
0x21e1   :  { %11016 = vmatpush3.bf16.msra.mxu0 %v12238_v1 }
0x21e2   :  { %11017 = vmatprep.subr.bf16.mxu0 %v12902_v25 }
0x21e5   :  { %11018 = vmatpush3.bf16.msra.mxu0 %v12242_v40 }
0x21e6   :  { %11019 = vmatprep.subr.bf16.mxu0 %v12902_v25 }
0x21e9   :  { %11020 = vmatpush3.bf16.msra.mxu0 %v12246_v5 }
0x21ea   :  { %11049 = vmatprep.subr.bf16.mxu0 %v12902_v25 }
0x228c   :  { %v8121_v16 = vpop.f32.mrf.mxu0 }
0x228d   :  { %v8122_v36 = vadd.f32 %v10268_v6, %v8121_v16 }
0x228e   :  { %v11003_v38 = vpop.f32.mrf.mxu0 }
0x228f   :  { %v8127_v39 = vadd.f32 %v8122_v36, %v7897_v23 }
0x2290   :  { %v8124_v41 = vpop.f32.mrf.mxu0 }
0x2291   :  { %8132 = vadd.xlane.f32.xlu0 %v8127_v39 }
0x2292   :  { %v11004_v61 = vpop.f32.mrf.mxu0 }
0x231a   :  { %v8133_v47 = vpop.xlane.xlu0 %8132 }
0x231b   :  { %v8134_v0 = vmul.f32 0.0078125, %v8133_v47 }
0x231d   :  { %v8135_v48 = vsub.f32 %v8127_v39, %v8134_v0 }
0x231f   :  { %v8136_v53 = vmul.f32 %v8135_v48, %v8135_v48 }
0x2321   :  { %8137 = vadd.xlane.f32.xlu0 %v8136_v53 }
0x23aa   :  { %v8138_v28 = vpop.xlane.xlu0 %8137 }
0x23ab   :  { %v8139_v7 = vmul.f32 0.0078125, %v8138_v28 }
0x23ad   :  { %v8140_v10 = vadd.f32 1e-05, %v8139_v7 }
0x23af   :  { %12339 = vrsqrt.f32 %v8140_v10 }
0x23bc   :  { %v12340_v32 = vpop.eup %12339 }
0x23bd   :  { %v8142_v49 = vmul.f32 %v12340_v32, %v8135_v48 }
0x23bf   :  { %v8149_v18 = vmul.f32 %v10277_v17, %v8142_v49 }
0x23c1   :  { %v13649_v21 = vadd.f32 %v10278_v34, %v8149_v18 }
0x23c3   :  { %v8190_v62 = vpack.c.bf16 %v13649_v21, %v13649_v21 }
0x23c5   :  { %8370 = vmatmul.mubr.bf16.vlgmr.msra.gmra.mxu1 %v8190_v62  ;;  %11022 = vmatmul.mubr.bf16.vlgmr.msra.gmra.mxu0 %v8190_v62 }
0x23c6   :  { %11027 = vmatprep.mubr.msk.bf16.mxu1 %vm12903_vm0, %v12902_v25  ;;  %11051 = vmatprep.mubr.msk.bf16.mxu0 %vm12903_vm0, %v12902_v25 }
0x2485   :  { %v8371_v63 = vpop.f32.mrf.mxu1  ;;  %v8412_v23 = vpop.f32.mrf.mxu0 }
0x2486   :  { %v8413_v3 = vadd.f32 %v8412_v23, %v8205_v27  ;;  %v8372_v16 = vadd.f32 %v8371_v63, %v8197_v30 }
0x2487   :  { %v8373_v51 = vpop.f32.mrf.mxu1  ;;  %v11023_v24 = vpop.f32.mrf.mxu0 }
0x2488   :  { %v8374_v29 = vadd.f32 %v8373_v51, %v8201_v54  ;;  %v13662_v13 = vpack.c.bf16 %v8413_v3, %v8413_v3  ;;  %v8418_v36 = vpack.c.bf16 %v8372_v16, %v8372_v16 }
0x2489   :  { %v8375_v15 = vpop.f32.mrf.mxu1  ;;  %v8415_v19 = vpop.f32.mrf.mxu0 }
0x248a   :  { %v8419_v31 = vpack.c.bf16 %v8374_v29, %v8374_v29  ;;  %v8484_v22 = vsel %vm5120_vm1, %v13662_v13, 0 }
0x248b   :  { %v8376_v9 = vpop.f32.mrf.mxu1  ;;  %v11024_v52 = vpop.f32.mrf.mxu0 }
0x248c   :  { %v8424_v6 = vsel %vm5055_vm2, %v8419_v31, 0 }
0x248d   :  { %11026 = vmatpush3.bf16.xpose.msra.mxu1 %v8424_v6 }
0x248e   :  { %11031 = vmatprep.subr.bf16.mxu1 %v12902_v25 }
0x2494   :  { %11028 = vmatmul.mubr.msk.bf16.vlgmr.msra.gmra.mxu1 %vm5055_vm2, %v8418_v36 }
0x2495   :  { %11032 = vmatpush3.bf16.msra.mxu1 %v8484_v22  ;;  %11033 = vmatprep.mubr.msk.bf16.mxu1 %vm12903_vm0, %v12902_v25 }
0x2496   :  { %11037 = vmatprep.subr.bf16.mxu1 %v12902_v25 }
0x2554   :  { %v8460_v11 = vpop.f32.mrf.mxu1 }
0x2555   :  { %v8466_v38 = vmul.f32 0.17677669, %v8460_v11 }
0x2556   :  { %v11029_v39 = vpop.f32.mrf.mxu1 }
0x2557   :  { %v8467_v41 = vsel %vm5103_vm3, %v8466_v38, -inf }
0x2558   :  { %8468 = vmax.xlane.f32.xlu1 %v8467_v41  ;;  %v8463_v61 = vpop.f32.mrf.mxu1 }
0x255a   :  { %v11030_v42 = vpop.f32.mrf.mxu1 }
0x2569   :  { %8530 = vrot.lane.b32.xlu1 %v8419_v31, %s12904_s21 }
0x256d   :  { %8642 = vrot.lane.b32.xlu1 %v8419_v31, %s12874_s6 }
0x2571   :  { %8640 = vrot.lane.b32.xlu1 %v8418_v36, %s12874_s6 }
0x2575   :  { %8751 = vrot.lane.b32.xlu1 %v8418_v36, %s12905_s24 }
0x25e1   :  { %v8469_v8 = vpop.xlane.xlu1 %8468 }
0x25e2   :  { %v8470_v35 = vsub.f32 %v8466_v38, %v8469_v8 }
0x25e4   :  { %v8471_v44 = vmul.f32 1.442695, %v8470_v35 }
0x25e5   :  { %v8531_v45 = vpop.permute.xlu1 %8530 }
0x25e6   :  { %12341 = vpow2.f32 %v8471_v44  ;;  %v8536_v58 = vsel %vm5055_vm2, %v8531_v45, 0 }
0x25e9   :  { %v8643_v46 = vpop.permute.xlu1 %8642 }
0x25ea   :  { %v8648_v47 = vsel %vm5055_vm2, %v8643_v46, 0 }
0x25eb   :  { %11050 = vmatpush3.bf16.xpose.msra.mxu0 %v8648_v47 }
0x25ec   :  { %11061 = vmatprep.subr.bf16.mxu0 %v12902_v25 }
0x25ed   :  { %v8641_v0 = vpop.permute.xlu1 %8640 }
0x25f1   :  { %v8752_v56 = vpop.permute.xlu1 %8751 }
0x25f2   :  { %11052 = vmatmul.mubr.msk.bf16.vlgmr.msra.gmra.mxu0 %vm5055_vm2, %v8641_v0 }
0x25f3   :  { %v12342_v48 = vpop.eup %12341  ;;  %11063 = vmatprep.mubr.msk.bf16.mxu0 %vm12903_vm0, %v12902_v25 }
0x25f4   :  { %v8473_v53 = vsel %vm5103_vm3, %v12342_v48, 0.0 }
0x25f5   :  { %8474 = vadd.xlane.f32.xlu0 %v8473_v53 }
0x260b   :  { %8527 = vrot.lane.b32.xlu0 %v8418_v36, %s12904_s21 }
0x260f   :  { %8753 = vrot.lane.b32.xlu0 %v8419_v31, %s12905_s24 }
0x267e   :  { %v8475_v26 = vpop.xlane.xlu0 %8474 }
0x267f   :  { %12343 = vrcp.f32 %v8475_v26 }
0x2682   :  { %v8528_v12 = vpop.permute.xlu0 %8527 }
0x2686   :  { %v8754_v50 = vpop.permute.xlu0 %8753 }
0x2687   :  { %v8759_v59 = vsel %vm5055_vm2, %v8754_v50, 0  ;;  %v12247_v50 = vld [vmem:[#allocation17 + $0xf8] sm:$0xff]  }
0x2688   :  { %11062 = vmatpush3.bf16.xpose.msra.mxu0 %v8759_v59  ;;  %v12248_v59 = vld [vmem:[#allocation17 + $0xf0] sm:$0xff]  }
0x2689   :  { %11073 = vmatprep.subr.bf16.mxu0 %v12902_v25 }
0x268c   :  { %v12344_v55 = vpop.eup %12343 }
0x268d   :  { %v8477_v33 = vmul.f32 %v12344_v55, %v12342_v48  ;;  %v12249_v55 = vld [vmem:[#allocation17 + $0xe8] sm:$0xff]  }
0x268f   :  { %v8478_v57 = vpack.c.bf16 %v8477_v33, %v8477_v33  ;;  %11064 = vmatmul.mubr.msk.bf16.vlgmr.msra.gmra.mxu0 %vm5055_vm2, %v8752_v56  ;;  %v12250_v33 = vld [vmem:[#allocation17 + $0xe0] sm:$0xff]   ;;  %v12251_v56 = vld [vmem:[#allocation17 + $0xd8] sm:$0xff]  }
0x2690   :  { %11089 = vmatprep.mubr.msk.bf16.mxu0 %vm12903_vm0, %v12902_v25  ;;  %11074 = vmatpush3.bf16.msra.mxu0 %v12247_v50  ;;  %v12270_v50 = vld [vmem:[#allocation26 + $0xc0] sm:$0xff]  }
0x2691   :  { %11034 = vmatmul.mubr.msk.bf16.vlgmr.msra.gmra.mxu1 %vm5103_vm3, %v8478_v57  ;;  %11075 = vmatprep.subr.bf16.mxu0 %v12902_v25  ;;  %v12252_v57 = vld [vmem:[#allocation17 + $0xd0] sm:$0xff]  }
0x2692   :  { %11038 = vmatpush3.bf16.xpose.msra.mxu1 %v8536_v58  ;;  %11039 = vmatprep.mubr.msk.bf16.mxu1 %vm12903_vm0, %v12902_v25  ;;  %v12253_v58 = vld [vmem:[#allocation17 + $0xc8] sm:$0xff]  }
0x2693   :  { %11043 = vmatprep.subr.bf16.mxu1 %v12902_v25 }
0x2694   :  { %11076 = vmatpush3.bf16.msra.mxu0 %v12248_v59  ;;  %v10322_v59 = vld [vmem:[#allocation25 + $0x3] ss:$0 sm:$0xff] }
0x2695   :  { %11077 = vmatprep.subr.bf16.mxu0 %v12902_v25 }
0x2698   :  { %11078 = vmatpush3.bf16.msra.mxu0 %v12249_v55 }
0x2699   :  { %11040 = vmatmul.mubr.msk.bf16.vlgmr.msra.gmra.mxu1 %vm5055_vm2, %v8528_v12  ;;  %11079 = vmatprep.subr.bf16.mxu0 %v12902_v25 }
0x269a   :  { %11045 = vmatprep.mubr.msk.bf16.mxu1 %vm12903_vm0, %v12902_v25 }
0x269c   :  { %11080 = vmatpush3.bf16.msra.mxu0 %v12250_v33 }
0x269d   :  { %11081 = vmatprep.subr.bf16.mxu0 %v12902_v25 }
0x26a0   :  { %11082 = vmatpush3.bf16.msra.mxu0 %v12251_v56 }
0x26a1   :  { %11083 = vmatprep.subr.bf16.mxu0 %v12902_v25 }
0x26a4   :  { %11084 = vmatpush3.bf16.msra.mxu0 %v12252_v57 }
0x26a5   :  { %11085 = vmatprep.subr.bf16.mxu0 %v12902_v25 }
0x26a8   :  { %11086 = vmatpush3.bf16.msra.mxu0 %v12253_v58 }
0x26a9   :  { %11087 = vmatprep.subr.bf16.mxu0 %v12902_v25 }
0x26b2   :  { %v8684_v43 = vpop.f32.mrf.mxu0 }
0x26b3   :  { %v8690_v60 = vmul.f32 0.17677669, %v8684_v43 }
0x26b4   :  { %v11053_v1 = vpop.f32.mrf.mxu0 }
0x26b5   :  { %v8691_v37 = vsel %vm5103_vm3, %v8690_v60, -inf }
0x26b6   :  { %8692 = vmax.xlane.f32.xlu1 %v8691_v37  ;;  %v8687_v20 = vpop.f32.mrf.mxu0  ;;  %v12254_v37 = vld [vmem:[#allocation17 + $0xc0] sm:$0xff]  }
0x26b7   :  { %11088 = vmatpush3.bf16.msra.mxu0 %v12254_v37 }
0x26b8   :  { %v11054_v40 = vpop.f32.mrf.mxu0  ;;  %11113 = vmatprep.subr.bf16.mxu0 %v12902_v25 }
0x273f   :  { %v8693_v2 = vpop.xlane.xlu1 %8692 }
0x2740   :  { %v8694_v4 = vsub.f32 %v8690_v60, %v8693_v2 }
0x2742   :  { %v8695_v5 = vmul.f32 1.442695, %v8694_v4 }
0x2744   :  { %12345 = vpow2.f32 %v8695_v5 }
0x274f   :  { %v8795_v28 = vpop.f32.mrf.mxu0 }
0x2750   :  { %v8801_v51 = vmul.f32 0.17677669, %v8795_v28 }
0x2751   :  { %v12346_v7 = vpop.eup %12345  ;;  %v13697_v10 = vpop.f32.mrf.mxu1 }
0x2752   :  { %v11065_v32 = vpop.f32.mrf.mxu0  ;;  %v8697_v17 = vsel %vm5103_vm3, %v12346_v7, 0.0  ;;  %v8802_v15 = vsel %vm5103_vm3, %v8801_v51, -inf }
0x2753   :  { %v11035_v49 = vpop.f32.mrf.mxu1  ;;  %8698 = vadd.xlane.f32.xlu1 %v8697_v17 }
0x2754   :  { %v8798_v34 = vpop.f32.mrf.mxu0 }
0x2755   :  { %v8523_v18 = vpop.f32.mrf.mxu1 }
0x2756   :  { %v11066_v62 = vpop.f32.mrf.mxu0 }
0x2757   :  { %v11036_v14 = vpop.f32.mrf.mxu1 }
0x2759   :  { %v8572_v54 = vpop.f32.mrf.mxu1 }
0x275a   :  { %v8578_v63 = vmul.f32 0.17677669, %v8572_v54 }
0x275b   :  { %v11041_v23 = vpop.f32.mrf.mxu1 }
0x275c   :  { %v8579_v24 = vsel %vm5103_vm3, %v8578_v63, -inf  ;;  %v10311_v23 = vld [vmem:[#allocation19 + $0x3] ss:$0 sm:$0xff] }
0x275d   :  { %8580 = vmax.xlane.f32.xlu0 %v8579_v24  ;;  %v8575_v27 = vpop.f32.mrf.mxu1 }
0x275f   :  { %v11042_v29 = vpop.f32.mrf.mxu1 }
0x2761   :  { %8803 = vmax.xlane.f32.xlu0 %v8802_v15 }
0x2764   :  { %8592 = vrot.lane.b32.xlu1 %v13662_v13, %s12904_s21 }
0x2768   :  { %8814 = vrot.lane.b32.xlu1 %v13662_v13, %s12905_s24 }
0x27dc   :  { %v8699_v19 = vpop.xlane.xlu1 %8698 }
0x27e0   :  { %v8593_v30 = vpop.permute.xlu1 %8592 }
0x27e1   :  { %v8598_v31 = vsel %vm5120_vm1, %v8593_v30, 0  ;;  %v12256_v30 = vld [vmem:[#allocation23 + $0xf0] sm:$0xff]  }
0x27e2   :  { %11044 = vmatpush3.bf16.msra.mxu1 %v8598_v31 }
0x27e3   :  { %11055 = vmatprep.subr.bf16.mxu1 %v12902_v25 }
0x27e6   :  { %v8581_v9 = vpop.xlane.xlu0 %8580 }
0x27e7   :  { %v8582_v52 = vsub.f32 %v8578_v63, %v8581_v9 }
0x27e9   :  { %v8583_v3 = vmul.f32 1.442695, %v8582_v52 }
0x27ea   :  { %v8804_v6 = vpop.xlane.xlu0 %8803 }
0x27eb   :  { %12347 = vpow2.f32 %v8583_v3  ;;  %v8805_v16 = vsub.f32 %v8801_v51, %v8804_v6  ;;  %v12257_v6 = vld [vmem:[#allocation23 + $0xe8] sm:$0xff]  }
0x27ed   :  { %v8806_v36 = vmul.f32 1.442695, %v8805_v16  ;;  %v12259_v16 = vld [vmem:[#allocation23 + $0xd8] sm:$0xff]  }
0x27ef   :  { %12349 = vpow2.f32 %v8806_v36  ;;  %v12260_v36 = vld [vmem:[#allocation23 + $0xd0] sm:$0xff]  }
0x27f8   :  { %v12348_v22 = vpop.eup %12347 }
0x27f9   :  { %v8585_v11 = vsel %vm5103_vm3, %v12348_v22, 0.0 }
0x27fa   :  { %8586 = vadd.xlane.f32.xlu0 %v8585_v11  ;;  %v12262_v11 = vld [vmem:[#allocation23 + $0xc0] sm:$0xff]  }
0x27fc   :  { %v12350_v38 = vpop.eup %12349 }
0x27fd   :  { %v8808_v39 = vsel %vm5103_vm3, %v12350_v38, 0.0 }
0x27fe   :  { %8809 = vadd.xlane.f32.xlu0 %v8808_v39  ;;  %v12264_v39 = vld [vmem:[#allocation26 + $0xf0] sm:$0xff]  }
0x2814   :  { %8703 = vrot.lane.b32.xlu0 %v13662_v13, %s12874_s6  ;;  %v8815_v13 = vpop.permute.xlu1 %8814 }
0x2815   :  { %v8820_v53 = vsel %vm5120_vm1, %v8815_v13, 0 }
0x2883   :  { %v8587_v41 = vpop.xlane.xlu0 %8586 }
0x2884   :  { %12351 = vrcp.f32 %v8587_v41  ;;  %v12265_v41 = vld [vmem:[#allocation26 + $0xe8] sm:$0xff]  }
0x2885   :  { %12353 = vrcp.f32 %v8699_v19 }
0x2887   :  { %v8810_v61 = vpop.xlane.xlu0 %8809 }
0x2888   :  { %12355 = vrcp.f32 %v8810_v61  ;;  %v12266_v61 = vld [vmem:[#allocation26 + $0xe0] sm:$0xff]  }
0x288b   :  { %v8704_v35 = vpop.permute.xlu0 %8703 }
0x288c   :  { %v8709_v46 = vsel %vm5120_vm1, %v8704_v35, 0 }
0x2891   :  { %v12352_v42 = vpop.eup %12351 }
0x2892   :  { %v8589_v8 = vmul.f32 %v12352_v42, %v12348_v22  ;;  %v12354_v45 = vpop.eup %12353  ;;  %v12261_v22 = vld [vmem:[#allocation23 + $0xc8] sm:$0xff]   ;;  %v12267_v42 = vld [vmem:[#allocation26 + $0xd8] sm:$0xff]  }
0x2893   :  { %v8701_v47 = vmul.f32 %v12354_v45, %v12346_v7 }
0x2894   :  { %v8590_v44 = vpack.c.bf16 %v8589_v8, %v8589_v8  ;;  %v12268_v8 = vld [vmem:[#allocation26 + $0xd0] sm:$0xff]  }
0x2895   :  { %v8702_v0 = vpack.c.bf16 %v8701_v47, %v8701_v47  ;;  %v12356_v48 = vpop.eup %12355  ;;  %v10320_v47 = vld [vmem:[#allocation20 + $0x3] ss:$0 sm:$0xff] }
0x2896   :  { %11046 = vmatmul.mubr.msk.bf16.vlgmr.msra.gmra.mxu1 %vm5103_vm3, %v8590_v44  ;;  %v8812_v26 = vmul.f32 %v12356_v48, %v12350_v38  ;;  %v12263_v38 = vld [vmem:[#allocation26 + $0xf8] sm:$0xff]  }
0x2897   :  { %11056 = vmatpush3.bf16.msra.mxu1 %v8709_v46  ;;  %11057 = vmatprep.mubr.msk.bf16.mxu1 %vm12903_vm0, %v12902_v25 }
0x2898   :  { %11067 = vmatprep.subr.bf16.mxu1 %v12902_v25  ;;  %v8813_v12 = vpack.c.bf16 %v8812_v26, %v8812_v26 }
0x289e   :  { %11058 = vmatmul.mubr.msk.bf16.vlgmr.msra.gmra.mxu1 %vm5103_vm3, %v8702_v0  ;;  %v10321_v0 = vld [vmem:[#allocation22 + $0x3] ss:$0 sm:$0xff] }
0x289f   :  { %11068 = vmatpush3.bf16.msra.mxu1 %v8820_v53  ;;  %11069 = vmatprep.mubr.msk.bf16.mxu1 %vm12903_vm0, %v12902_v25 }
0x28a0   :  { %11093 = vmatprep.subr.bf16.mxu1 %v12902_v25 }
0x28a6   :  { %11070 = vmatmul.mubr.msk.bf16.vlgmr.msra.gmra.mxu1 %vm5103_vm3, %v8813_v12  ;;  %v12269_v12 = vld [vmem:[#allocation26 + $0xc8] sm:$0xff]  }
0x28a7   :  { %11109 = vmatprep.mubr.msk.bf16.mxu1 %vm12903_vm0, %v12902_v25 }
0x2956   :  { %v8634_v43 = vpop.f32.mrf.mxu1 }
0x2957   :  { %8863 = vrot.lane.b32.xlu1 %v8634_v43, %s12905_s24 }
0x2958   :  { %v11047_v60 = vpop.f32.mrf.mxu1 }
0x295a   :  { %v8637_v1 = vpop.f32.mrf.mxu1 }
0x295b   :  { %v10331_v1 = vld [vmem:[#allocation28 + $0x3] ss:$0 sm:$0xff] }
0x295c   :  { %v11048_v20 = vpop.f32.mrf.mxu1 }
0x295e   :  { %v8745_v40 = vpop.f32.mrf.mxu1 }
0x295f   :  { %8867 = vrot.lane.b32.xlu0 %v8745_v40, %s12874_s6 }
0x2960   :  { %v11059_v2 = vpop.f32.mrf.mxu1 }
0x2962   :  { %v8748_v4 = vpop.f32.mrf.mxu1 }
0x2964   :  { %v11060_v5 = vpop.f32.mrf.mxu1 }
0x2966   :  { %v8856_v28 = vpop.f32.mrf.mxu1 }
0x2967   :  { %8871 = vrot.lane.b32.xlu1 %v8856_v28, %s12904_s21  ;;  %v12271_v28 = vld [vmem:[%s13825_s19 + $0x38] sm:$0xff]  }
0x2968   :  { %v11071_v7 = vpop.f32.mrf.mxu1 }
0x2969   :  { %v12272_v7 = vld [vmem:[%s13825_s19 + $0x30] sm:$0xff]  }
0x296a   :  { %v8859_v32 = vpop.f32.mrf.mxu1 }
0x296c   :  { %v11072_v17 = vpop.f32.mrf.mxu1 }
0x29c9   :  { %v8864_v49 = vpop.permute.xlu1 %8863 }
0x29ca   :  { %v8874_v18 = vsel %vm5055_vm2, %v13697_v10, %v8864_v49  ;;  %v12255_v10 = vld [vmem:[#allocation23 + $0xf8] sm:$0xff]  }
0x29cb   :  { %11094 = vmatpush3.bf16.msra.mxu1 %v12255_v10  ;;  %v10341_v10 = vld [vmem:[#allocation31 + $0x3] ss:$0 sm:$0xff] }
0x29cc   :  { %11095 = vmatprep.subr.bf16.mxu1 %v12902_v25 }
0x29cf   :  { %11096 = vmatpush3.bf16.msra.mxu1 %v12256_v30 }
0x29d0   :  { %11097 = vmatprep.subr.bf16.mxu1 %v12902_v25 }
0x29d1   :  { %v8868_v34 = vpop.permute.xlu0 %8867 }
0x29d2   :  { %v8875_v62 = vsel %vm5513_vm4, %v8874_v18, %v8868_v34  ;;  %v12273_v18 = vld [vmem:[%s13825_s19 + $0x28] sm:$0xff]  }
0x29d3   :  { %11098 = vmatpush3.bf16.msra.mxu1 %v12257_v6  ;;  %v10342_v6 = vld [vmem:[#allocation32] ss:$0 sm:$0xff] }
0x29d4   :  { %11099 = vmatprep.subr.bf16.mxu1 %v12902_v25 }
0x29d9   :  { %v8872_v14 = vpop.permute.xlu1 %8871 }
0x29da   :  { %v8876_v54 = vsel %vm5515_vm5, %v8875_v62, %v8872_v14  ;;  %v12274_v62 = vld [vmem:[%s13825_s19 + $0x20] sm:$0xff]   ;;  %v12275_v14 = vld [vmem:[%s13825_s19 + $0x18] sm:$0xff]  }
0x29db   :  { %v8894_v63 = vpack.c.bf16 %v8876_v54, %v8876_v54  ;;  %v12276_v54 = vld [vmem:[%s13825_s19 + $0x10] sm:$0xff]  }
0x29dd   :  { %11090 = vmatmul.mubr.bf16.vlgmr.msra.gmra.mxu0 %v8894_v63  ;;  %v12277_v63 = vld [vmem:[%s13825_s19 + $0x8] sm:$0xff]  }
0x29de   :  { %11129 = vmatprep.mubr.msk.bf16.mxu0 %vm12903_vm0, %v12902_v25  ;;  %11114 = vmatpush3.bf16.msra.mxu0 %v12263_v38 }
0x29df   :  { %11115 = vmatprep.subr.bf16.mxu0 %v12902_v25 }
0x29e2   :  { %11116 = vmatpush3.bf16.msra.mxu0 %v12264_v39 }
0x29e3   :  { %11117 = vmatprep.subr.bf16.mxu0 %v12902_v25 }
0x29e6   :  { %11118 = vmatpush3.bf16.msra.mxu0 %v12265_v41 }
0x29e7   :  { %11119 = vmatprep.subr.bf16.mxu0 %v12902_v25 }
0x29ea   :  { %11120 = vmatpush3.bf16.msra.mxu0 %v12266_v61 }
0x29eb   :  { %11121 = vmatprep.subr.bf16.mxu0 %v12902_v25 }
0x29ee   :  { %11122 = vmatpush3.bf16.msra.mxu0 %v12267_v42 }
0x29ef   :  { %11123 = vmatprep.subr.bf16.mxu0 %v12902_v25 }
0x29f2   :  { %11124 = vmatpush3.bf16.msra.mxu0 %v12268_v8  ;;  %v10353_v8 = vld [vmem:[#allocation37] ss:$0 sm:$0xff] }
0x29f3   :  { %11125 = vmatprep.subr.bf16.mxu0 %v12902_v25 }
0x29f6   :  { %11126 = vmatpush3.bf16.msra.mxu0 %v12269_v12 }
0x29f7   :  { %11127 = vmatprep.subr.bf16.mxu0 %v12902_v25 }
0x29fa   :  { %11128 = vmatpush3.bf16.msra.mxu0 %v12270_v50 }
0x29fb   :  { %11153 = vmatprep.subr.bf16.mxu0 %v12902_v25 }
0x2a9d   :  { %v8985_v51 = vpop.f32.mrf.mxu0 }
0x2a9e   :  { %v8986_v24 = vadd.f32 %v10311_v23, %v8985_v51  ;;  %v12278_v23 = vld [vmem:[%s13825_s19] sm:$0xff]  }
0x2a9f   :  { %v11091_v27 = vpop.f32.mrf.mxu0 }
0x2aa0   :  { %v8991_v29 = vadd.f32 %v8986_v24, %v13649_v21  ;;  %v12258_v21 = vld [vmem:[#allocation23 + $0xe0] sm:$0xff]  }
0x2aa1   :  { %v8988_v15 = vpop.f32.mrf.mxu0  ;;  %11100 = vmatpush3.bf16.msra.mxu1 %v12258_v21 }
0x2aa2   :  { %8996 = vadd.xlane.f32.xlu0 %v8991_v29  ;;  %11101 = vmatprep.subr.bf16.mxu1 %v12902_v25  ;;  %v10340_v15 = vld [vmem:[#allocation29 + $0x3] ss:$0 sm:$0xff] }
0x2aa3   :  { %v11092_v19 = vpop.f32.mrf.mxu0 }
0x2aa5   :  { %11102 = vmatpush3.bf16.msra.mxu1 %v12259_v16  ;;  %v10351_v16 = vld [vmem:[#allocation34] ss:$0 sm:$0xff] }
0x2aa6   :  { %11103 = vmatprep.subr.bf16.mxu1 %v12902_v25 }
0x2aa9   :  { %11104 = vmatpush3.bf16.msra.mxu1 %v12260_v36 }
0x2aaa   :  { %11105 = vmatprep.subr.bf16.mxu1 %v12902_v25 }
0x2aad   :  { %11106 = vmatpush3.bf16.msra.mxu1 %v12261_v22  ;;  %v10352_v22 = vld [vmem:[#allocation35] ss:$0 sm:$0xff] }
0x2aae   :  { %11107 = vmatprep.subr.bf16.mxu1 %v12902_v25 }
0x2ab1   :  { %11108 = vmatpush3.bf16.msra.mxu1 %v12262_v11 }
0x2ab2   :  { %11133 = vmatprep.subr.bf16.mxu1 %v12902_v25 }
0x2b2b   :  { %v8997_v31 = vpop.xlane.xlu0 %8996 }
0x2b2c   :  { %v8998_v9 = vmul.f32 0.0078125, %v8997_v31 }
0x2b2e   :  { %v8999_v52 = vsub.f32 %v8991_v29, %v8998_v9 }
0x2b30   :  { %v9000_v3 = vmul.f32 %v8999_v52, %v8999_v52 }
0x2b32   :  { %9001 = vadd.xlane.f32.xlu1 %v9000_v3  ;;  %v12280_v3 = vld [vmem:[%s13829_s23] sm:$0xff]  }
0x2bbb   :  { %v9002_v35 = vpop.xlane.xlu1 %9001 }
0x2bbc   :  { %v9003_v44 = vmul.f32 0.0078125, %v9002_v35 }
0x2bbe   :  { %v9004_v45 = vadd.f32 1e-05, %v9003_v44 }
0x2bc0   :  { %12357 = vrsqrt.f32 %v9004_v45 }
0x2bcd   :  { %v12358_v46 = vpop.eup %12357 }
0x2bce   :  { %v9006_v13 = vmul.f32 %v12358_v46, %v8999_v52  ;;  %v12279_v52 = vld [vmem:[%s13829_s23 + $0x8] sm:$0xff]   ;;  %s12906_s23 = smov [#allocation38]  }
0x2bcf   :  { %s9493_s26 = sshll.u32 %s12906_s23, 4  ;;  %s9494_s26 = int_to_ptr.vmem [resolvable:$true] %s9493_s26 }
0x2bd0   :  { %v9013_v48 = vmul.f32 %v10320_v47, %v9006_v13  ;;  %s12823_s15 = scalar_lea.vmem %s9494_s26, 128  ;;  %p12828_p4 = scmp.lt.s32.totalorder %s9494_s26, %s9494_s26 }
0x2bd1   :  { %p12824_p3 = scmp.ne.s32.totalorder %s9494_s26, %s12823_s15  ;;  %p12829_p5 = scmp.lt.s32.totalorder %s12823_s15, %s12823_s15 }
0x2bd2   :  { %v9020_v53 = vadd.f32 %v10321_v0, %v9013_v48 }
0x2bd3   :  { %p12830_p6 = por %p12829_p5, %p12828_p4 }
0x2bd4   :  { %v9038_v26 = vpack.c.bf16 %v9020_v53, %v9020_v53 }
0x2bd5   :  { %p12831_p7 = pnand %p12830_p6, %p12824_p3 }
0x2bd6   :  { %11110 = vmatmul.mubr.bf16.vlgmr.msra.gmra.mxu1 %v9038_v26 }
0x2bd7   :  { %11149 = vmatprep.mubr.msk.bf16.mxu1 %vm12903_vm0, %v12902_v25  ;;  %11134 = vmatpush3.bf16.msra.mxu1 %v12271_v28 }
0x2bd8   :  { %11135 = vmatprep.subr.bf16.mxu1 %v12902_v25 }
0x2bdb   :  { %11136 = vmatpush3.bf16.msra.mxu1 %v12272_v7 }
0x2bdc   :  { %11137 = vmatprep.subr.bf16.mxu1 %v12902_v25 }
0x2bdf   :  { %11138 = vmatpush3.bf16.msra.mxu1 %v12273_v18 }
0x2be0   :  { %11139 = vmatprep.subr.bf16.mxu1 %v12902_v25 }
0x2be3   :  { %11140 = vmatpush3.bf16.msra.mxu1 %v12274_v62 }
0x2be4   :  { %11141 = vmatprep.subr.bf16.mxu1 %v12902_v25 }
0x2be7   :  { %11142 = vmatpush3.bf16.msra.mxu1 %v12275_v14 }
0x2be8   :  { %11143 = vmatprep.subr.bf16.mxu1 %v12902_v25 }
0x2beb   :  { %11144 = vmatpush3.bf16.msra.mxu1 %v12276_v54 }
0x2bec   :  { %11145 = vmatprep.subr.bf16.mxu1 %v12902_v25 }
0x2bef   :  { %11146 = vmatpush3.bf16.msra.mxu1 %v12277_v63 }
0x2bf0   :  { %11147 = vmatprep.subr.bf16.mxu1 %v12902_v25 }
0x2bf3   :  { %11148 = vmatpush3.bf16.msra.mxu1 %v12278_v23 }
0x2c96   :  { %v9129_v55 = vpop.f32.mrf.mxu1 }
0x2c97   :  { %v9130_v33 = vadd.f32 %v10322_v59, %v9129_v55 }
0x2c98   :  { %v11111_v56 = vpop.f32.mrf.mxu1 }
0x2c99   :  { %v9135_v57 = vmax.f32 %v9130_v33, 0.0 }
0x2c9a   :  { %v9132_v58 = vpop.f32.mrf.mxu1 }
0x2c9b   :  { %v9153_v43 = vpack.c.bf16 %v9135_v57, %v9135_v57 }
0x2c9c   :  { %v11112_v60 = vpop.f32.mrf.mxu1 }
0x2c9d   :  { %11130 = vmatmul.mubr.bf16.vlgmr.msra.gmra.mxu0 %v9153_v43 }
0x2c9e   :  { %11157 = vmatprep.mubr.msk.bf16.mxu0 %vm12903_vm0, %v12902_v25  ;;  %11154 = vmatpush3.bf16.msra.mxu0 %v12279_v52 }
0x2c9f   :  { %11155 = vmatprep.subr.bf16.mxu0 %v12902_v25 }
0x2ca2   :  { %11156 = vmatpush3.bf16.msra.mxu0 %v12280_v3 }
0x2d5d   :  { %v9244_v37 = vpop.f32.mrf.mxu0 }
0x2d5e   :  { %v9245_v20 = vadd.f32 %v10331_v1, %v9244_v37 }
0x2d5f   :  { %v11131_v40 = vpop.f32.mrf.mxu0 }
0x2d60   :  { %v9250_v2 = vadd.f32 %v9245_v20, %v9020_v53 }
0x2d61   :  { %v9247_v4 = vpop.f32.mrf.mxu0 }
0x2d62   :  { %9255 = vadd.xlane.f32.xlu0 %v9250_v2 }
0x2d63   :  { %v11132_v5 = vpop.f32.mrf.mxu0 }
0x2deb   :  { %v9256_v32 = vpop.xlane.xlu0 %9255 }
0x2dec   :  { %v9257_v17 = vmul.f32 0.0078125, %v9256_v32 }
0x2dee   :  { %v9258_v49 = vsub.f32 %v9250_v2, %v9257_v17 }
0x2df0   :  { %v9259_v34 = vmul.f32 %v9258_v49, %v9258_v49 }
0x2df2   :  { %9260 = vadd.xlane.f32.xlu0 %v9259_v34 }
0x2e7b   :  { %v9261_v51 = vpop.xlane.xlu0 %9260 }
0x2e7c   :  { %v9262_v24 = vmul.f32 0.0078125, %v9261_v51 }
0x2e7e   :  { %v9263_v27 = vadd.f32 1e-05, %v9262_v24 }
0x2e80   :  { %12359 = vrsqrt.f32 %v9263_v27 }
0x2e8d   :  { %v12360_v29 = vpop.eup %12359 }
0x2e8e   :  { %v9265_v19 = vmul.f32 %v12360_v29, %v9258_v49 }
0x2e90   :  { %v9272_v30 = vmul.f32 %v10340_v15, %v9265_v19 }
0x2e92   :  { %v9279_v31 = vadd.f32 %v10341_v10, %v9272_v30 }
0x2e94   :  { %v9296_v9 = vpack.c.bf16 %v9279_v31, %v9279_v31 }
0x2e96   :  { %11150 = vmatmul.mubr.bf16.vlgmr.msra.gmra.mxu1 %v9296_v9 }
0x2f56   :  { %v9386_v21 = vpop.f32.mrf.mxu1 }
0x2f57   :  { %v9387_v36 = vadd.f32 %v10342_v6, %v9386_v21 }
0x2f58   :  { %v11151_v11 = vpop.f32.mrf.mxu1 }
0x2f59   :  { %v9399_v38 = vmul.f32 %v10351_v16, %v9387_v36 }
0x2f5a   :  { %v9389_v39 = vpop.f32.mrf.mxu1 }
0x2f5b   :  { %v9407_v41 = vadd.f32 %v10352_v22, %v9399_v38 }
0x2f5c   :  { %v11152_v61 = vpop.f32.mrf.mxu1 }
0x2f5d   :  { %v9412_v42 = vpack.c.bf16 %v9407_v41, %v9407_v41 }
0x2f5f   :  { %11158 = vmatmul.mubr.msk.bf16.vlgmr.msra.gmra.mxu0 %vm5055_vm2, %v9412_v42 }
0x301f   :  { %v9469_v25 = vpop.f32.mrf.mxu0 }
0x3020   :  { %v9470_v35 = vadd.f32 %v10353_v8, %v9469_v25 }
0x3021   :  { %v11159_v44 = vpop.f32.mrf.mxu0 }
0x3022   :  { %v9475_v45 = vmul.f32 0.5, %v9470_v35 }
0x3023   :  { %v9472_v46 = vpop.f32.mrf.mxu0 }
0x3024   :  { %12361 = vtanh.f32 %v9475_v45 }
0x3025   :  { %v11160_v47 = vpop.f32.mrf.mxu0 }
0x3031   :  { %v12362_v13 = vpop.eup %12361 }
0x3032   :  { %v9477_v0 = vadd.f32 1.0, %v12362_v13 }
0x3034   :  { %v9478_v48 = vmul.f32 0.5, %v9477_v0 }
0x3036   :  { %9480 = vrot.lane.b32.xlu1 %v9478_v48, %s12878_s0 }
0x30a8   :  { %v9481_v53 = vpop.permute.xlu1 %9480 }
0x30a9   :  { %v9484_v26 = vsel %vm9483_vm6, %v9470_v35, %v9481_v53 }
0x30aa   :  { %9486 = vst.msk [vmem:[#allocation38] sm:$0xff] %vm9485_vm7, %v9484_v26 }
0x30ab   :  { %12834 = shalt.err (!%p12831_p7)
}
0x30ac   :  { %s13858_s22 = sld [smem:[#allocation62_spill]] }
0x30b2   :  { %9496 = dma.vmem_to_hbm [thread:$0]  %s9494_s26, 128, %s13858_s22, [#allocation4]  }
0x30b3   :  { %12867 = dma.done.wait [#allocation4], 128  }
0x30b4   :  { %12868 = vsyncadd [#allocation4], 4294967168 }
0x30b5   :  { %9500 = vsyncpa [#allocation3], 1 }
0x30b6   :  { %9501 = vsyncpa [#allocation6], 1 }
0x30b7   :  { %9502 = vsyncpa [#allocation9], 1 }
0x30b8   :  { %9503 = vsyncpa [#allocation12], 1 }
0x30b9   :  { %9504 = vsyncpa [#allocation15], 1 }
0x30ba   :  { %9505 = vsyncpa [#allocation18], 1 }
0x30bb   :  { %9506 = vsyncpa [#allocation21], 1 }
0x30bc   :  { %9507 = vsyncpa [#allocation24], 1 }
0x30bd   :  { %9508 = vsyncpa [#allocation27], 1 }
0x30be   :  { %9509 = vsyncpa [#allocation30], 1 }
0x30bf   :  { %9510 = vsyncpa [#allocation33], 1 }
0x30c0   :  { %9511 = vsyncpa [#allocation36], 1 }
0x30c1   :  { %9512 = vsyncpa [#allocation4], 1 }

</bundles_post_ra>
